<compile_context>
chip_gen: v7x
topology: tpu7x:2x2x1
jax: 0.10.0
libtpu: 0.0.40
codegen_flags: <defaults>
</compile_context>

<pallas_src>
import functools

import jax
import jax.numpy as jnp
from jax.experimental import pallas as pl
from jax.experimental.pallas import tpu as pltpu

_LANE = 128


def _round_up(n, m):
    return ((n + m - 1) // m) * m


def _pad2(a, rows, cols):
    return jnp.pad(a, ((0, rows - a.shape[0]), (0, cols - a.shape[1])))


def _vmem_limit_bytes():
    """Per-generation scoped-VMEM budget: ~10 MiB headroom under physical
    capacity (64 MiB v7x, 128 MiB v5e/v6e), capped at 100 MiB."""
    cap = None
    try:
        info = pltpu.get_tpu_info()
        for name in ("vmem_capacity_bytes", "vmem_bytes", "vmem_size_bytes"):
            cap = getattr(info, name, None)
            if cap:
                break
    except Exception:
        cap = None
    if not cap:
        return 48 * 1024 * 1024            # conservative fallback (< v7x 64 MiB)
    return int(min(cap - 10 * 1024 * 1024, 100 * 1024 * 1024))


def _probe_kernel(x_ref, o_ref):
    o_ref[...] = x_ref[...] + 1.0


@functools.lru_cache(maxsize=None)
def _single_buffer_ok():
    """Whether this jax/Mosaic build accepts pl.Buffered(1) on a grid-invariant
    input BlockSpec (single-buffers resident weights -> halves their VMEM)."""
    try:
        fn = pl.pallas_call(
            _probe_kernel,
            grid=(2,),
            in_specs=[pl.BlockSpec((8, _LANE), lambda i: (0, 0),
                                   pipeline_mode=pl.Buffered(1))],
            out_specs=pl.BlockSpec((8, _LANE), lambda i: (0, 0)),
            out_shape=jax.ShapeDtypeStruct((8, _LANE), jnp.float32),
        )
        jax.jit(fn).lower(jax.ShapeDtypeStruct((8, _LANE), jnp.float32)).compile()
        return True
    except Exception:
        return False


# --------------------------------------------------------------------------- #
# Kernels
# --------------------------------------------------------------------------- #
def _prologue_kernel(x_ref, wcat_ref, wci_ref, bci_ref,
                     inx_ref, gin_ref, sup0_ref, *, nhid_p):
    """Per row tile, single matmul against [wsc | w0]:
       in_x = x@Wsc, gate_in = in_x@Wci + bci, support0 = x@W0."""
    f32 = jnp.float32
    x = x_ref[...]
    xw = jnp.dot(x, wcat_ref[...], preferred_element_type=f32)     # (TM, 2*nhid_p)
    sup0_ref[...] = xw[:, nhid_p:].astype(sup0_ref.dtype)
    in_x = xw[:, :nhid_p]
    inx_ref[...] = in_x.astype(inx_ref.dtype)
    gin_ref[...] = (
        jnp.dot(in_x, wci_ref[...], preferred_element_type=f32) + bci_ref[...]
    ).astype(gin_ref.dtype)


def _prologue_identity_kernel(x_ref, wcat_ref, bci_ref,
                              inx_ref, gin_ref, sup0_ref, *, nhid_p):
    """nfeat == nhid: residual projection skipped. Single matmul against
       [wci | w0]: in_x = x, gate_in = x@Wci + bci, support0 = x@W0."""
    f32 = jnp.float32
    x = x_ref[...]
    xw = jnp.dot(x, wcat_ref[...], preferred_element_type=f32)     # (TM, 2*nhid_p)
    sup0_ref[...] = xw[:, nhid_p:].astype(sup0_ref.dtype)
    inx_ref[...] = x.astype(inx_ref.dtype)
    gin_ref[...] = (xw[:, :nhid_p] + bci_ref[...]).astype(gin_ref.dtype)


def _agg_gate_kernel(adj_ref, sup_ref, b_ref, inx_ref, gin_ref,
                     wco_ref, bco_ref, wnext_ref, bnext_ref,
                     out_ref, acc_ref, *, apply_relu):
    """One GCN layer for one (row tile, K block): accumulate adj@support into
    a VMEM f32 scratch; on the last K block apply bias + gated skip (+ReLU)
    fused with the next layer's support matmul (or the final fc)."""
    f32 = jnp.float32
    k = pl.program_id(1)

    @pl.when(k == 0)
    def _():
        acc_ref[...] = jnp.zeros_like(acc_ref)

    # GCNLayer aggregation: partial sum of adj @ (h @ W)  (both bf16, f32 acc).
    acc_ref[...] += jnp.dot(adj_ref[...], sup_ref[...], preferred_element_type=f32)

    @pl.when(k == pl.num_programs(1) - 1)
    def _():
        agg = acc_ref[...] + b_ref[...]
        # GatedSkipConnection: z = sigmoid(coef_in(in_x) + coef_out(out_x));
        # the in_x half is the hoisted gate_in. Combine as in_x + z*(out-in_x).
        z = jax.nn.sigmoid(
            gin_ref[...].astype(f32)
            + jnp.dot(agg, wco_ref[...], preferred_element_type=f32)
            + bco_ref[...]
        )
        in_x = inx_ref[...].astype(f32)
        g = in_x + z * (agg - in_x)
        if apply_relu:
            g = jnp.maximum(g, 0.0)
        # Fused tail: next layer's support (g @ W_next) or final fc (g @ Wfc + bfc).
        out_ref[...] = (
            jnp.dot(g, wnext_ref[...], preferred_element_type=f32) + bnext_ref[...]
        ).astype(out_ref.dtype)


# --------------------------------------------------------------------------- #
# Wrapper
# --------------------------------------------------------------------------- #
def gcn_forward(x, adj, params, *, row_tile=512, k_tile=2048,
                compute_dtype=jnp.bfloat16):
    """x: (N, nfeat) f32, adj: (N, N) f32 dense (normalized), params: dict."""
    f32 = jnp.float32
    N, nfeat = x.shape
    nhid = params["w0"].shape[1]
    nclass = params["wfc"].shape[1]
    assert row_tile % _LANE == 0 and k_tile % _LANE == 0

    # Tile sizes: TM for output rows, TK for the adj-column / contraction axis.
    # TK is clamped for small graphs and kept a multiple of TM so that the
    # row-padded node arrays also cover every contraction block.
    N128 = _round_up(N, _LANE)
    TM = min(row_tile, N128)
    TK = _round_up(min(k_tile, N128), TM)
    K_p = _round_up(N, TK)                       # adj columns / contraction extent
    N_p = max(_round_up(N, TM), K_p)             # node rows (multiple of TM)
    nfeat_p = _round_up(nfeat, _LANE)
    nhid_p = _round_up(nhid, _LANE)
    nclass_p = _round_up(nclass, _LANE)

    row_grid = (N_p // TM,)
    layer_grid = (N_p // TM, K_p // TK)

    vmem_limit = _vmem_limit_bytes()
    cparams_rows = pltpu.CompilerParams(
        dimension_semantics=("parallel",), vmem_limit_bytes=vmem_limit)
    cparams_layer = pltpu.CompilerParams(
        dimension_semantics=("parallel", "arbitrary"), vmem_limit_bytes=vmem_limit)

    const_kwargs = {}
    if _single_buffer_ok():
        const_kwargs = dict(pipeline_mode=pl.Buffered(1))

    # --- zero-pad to lane-dense shapes (padding provably inert) --------------
    # TODO(synk): for large nfeat (citation graphs), cast x_p / wcat to bf16 here
    # to halve prologue VMEM/HBM traffic (kept f32 for exactness at demo scale).
    x_p = _pad2(x, N_p, nfeat_p)
    adj_p = _pad2(adj, N_p, K_p).astype(compute_dtype)
    # TODO(synk): for real sparse / very large graphs, store adj int8/fp8 with a
    # per-row scale and/or skip all-zero (TM, TK) blocks via a scalar-prefetched
    # nonzero-block list (PrefetchScalarGridSpec) instead of densifying to bf16.

    w0 = _pad2(params["w0"], nfeat_p, nhid_p)
    b0 = _pad2(params["b0"], 1, nhid_p)
    w1 = _pad2(params["w1"], nhid_p, nhid_p)
    b1 = _pad2(params["b1"], 1, nhid_p)
    w2 = _pad2(params["w2"], nhid_p, nhid_p)
    b2 = _pad2(params["b2"], 1, nhid_p)
    wci = _pad2(params["wci"], nhid_p, nhid_p)
    bci = _pad2(params["bci"], 1, nhid_p)
    wco = _pad2(params["wco"], nhid_p, nhid_p)
    bco = _pad2(params["bco"], 1, nhid_p)
    wfc = _pad2(params["wfc"], nhid_p, nclass_p)
    bfc = _pad2(params["bfc"], 1, nclass_p)
    zero_bias = jnp.zeros((1, nhid_p), f32)

    identity_residual = (nfeat == nhid)   # GatedSkipConnection skips its projection

    def row_spec(cols, *, two_axes=False):
        idx = (lambda i, k: (i, 0)) if two_axes else (lambda i: (i, 0))
        return pl.BlockSpec((TM, cols), idx)

    def const_spec(rows, cols, *, two_axes=False):
        idx = (lambda i, k: (0, 0)) if two_axes else (lambda i: (0, 0))
        return pl.BlockSpec((rows, cols), idx, **const_kwargs)

    # --- prologue: hoisted gate residual term + layer-0 support -------------- #
    if identity_residual:
        wcat = jnp.concatenate([wci, w0], axis=1)            # x @ [wci | w0]
        prologue = functools.partial(_prologue_identity_kernel, nhid_p=nhid_p)
        prologue_args = (x_p, wcat, bci)
        prologue_in_specs = [
            row_spec(nfeat_p),                 # x row tile
            const_spec(nfeat_p, 2 * nhid_p),   # [wci | w0]
            const_spec(1, nhid_p),             # bci
        ]
    else:
        wsc = _pad2(params["wsc"], nfeat_p, nhid_p)
        wcat = jnp.concatenate([wsc, w0], axis=1)             # x @ [wsc | w0]
        prologue = functools.partial(_prologue_kernel, nhid_p=nhid_p)
        prologue_args = (x_p, wcat, wci, bci)
        prologue_in_specs = [
            row_spec(nfeat_p),                 # x row tile
            const_spec(nfeat_p, 2 * nhid_p),   # [wsc | w0]
            const_spec(nhid_p, nhid_p),        # wci
            const_spec(1, nhid_p),             # bci
        ]

    in_x, gate_in, sup = pl.pallas_call(
        prologue,
        grid=row_grid,
        in_specs=prologue_in_specs,
        out_specs=(row_spec(nhid_p), row_spec(nhid_p), row_spec(nhid_p)),
        out_shape=(
            jax.ShapeDtypeStruct((N_p, nhid_p), compute_dtype),   # in_x
            jax.ShapeDtypeStruct((N_p, nhid_p), compute_dtype),   # gate_in
            jax.ShapeDtypeStruct((N_p, nhid_p), compute_dtype),   # support_0
        ),
        compiler_params=cparams_rows,
    )(*prologue_args)

    # --- three fused (aggregate + gate [+relu] + next matmul) layers ---------- #
    cd_bytes = jnp.dtype(compute_dtype).itemsize
    layer_cfg = [
        # (layer bias, fused weight, fused bias, out cols, out dtype, relu?)
        (b0, w1, zero_bias, nhid_p, compute_dtype, True),
        (b1, w2, zero_bias, nhid_p, compute_dtype, True),
        (b2, wfc, bfc, nclass_p, f32, False),
    ]
    out = None
    for b_l, w_next, b_next, out_cols, out_dtype, relu in layer_cfg:
        flops = (2 * N_p * K_p * nhid_p             # adj @ support
                 + 2 * N_p * nhid_p * nhid_p        # agg @ wco (gate)
                 + 2 * N_p * nhid_p * out_cols)     # g @ w_next / wfc
        bytes_accessed = (
            N_p * K_p * cd_bytes                              # adj streamed once
            + (N_p // TM) * K_p * nhid_p * cd_bytes           # support re-read / row tile
            + 2 * N_p * nhid_p * cd_bytes                     # in_x + gate_in
            + N_p * out_cols * jnp.dtype(out_dtype).itemsize  # output
            + (nhid_p * nhid_p + nhid_p * out_cols
               + 3 * nhid_p + out_cols) * 4)                  # weights / biases
        out = pl.pallas_call(
            functools.partial(_agg_gate_kernel, apply_relu=relu),
            grid=layer_grid,
            in_specs=[
                pl.BlockSpec((TM, TK), lambda i, k: (i, k)),       # adj tile
                pl.BlockSpec((TK, nhid_p), lambda i, k: (k, 0)),   # support K block
                const_spec(1, nhid_p, two_axes=True),              # layer bias
                row_spec(nhid_p, two_axes=True),                   # in_x tile
                row_spec(nhid_p, two_axes=True),                   # gate_in tile
                const_spec(nhid_p, nhid_p, two_axes=True),         # wco
                const_spec(1, nhid_p, two_axes=True),              # bco
                const_spec(nhid_p, out_cols, two_axes=True),       # next weight / wfc
                const_spec(1, out_cols, two_axes=True),            # next bias / bfc
            ],
            out_specs=pl.BlockSpec((TM, out_cols), lambda i, k: (i, 0)),
            out_shape=jax.ShapeDtypeStruct((N_p, out_cols), out_dtype),
            scratch_shapes=[pltpu.VMEM((TM, nhid_p), jnp.float32)],
            compiler_params=cparams_layer,
            cost_estimate=pl.CostEstimate(
                flops=int(flops),
                transcendentals=int(N_p * nhid_p),
                bytes_accessed=int(bytes_accessed),
            ),
        )(adj_p, sup, b_l, in_x, gate_in, wco, bco, w_next, b_next)
        sup = out

    return out[:N, :nclass]


# --------------------------------------------------------------------------- #
# Parameters & reference
# --------------------------------------------------------------------------- #
def init_params(key, nfeat, nhid1, nhid2, nclass):
    assert nhid1 == nhid2, "shared GatedSkipConnection requires nhid1 == nhid2"
    keys = jax.random.split(key, 16)

    def xavier_normal(k, fan_in, fan_out, gain=0.02):
        std = gain * jnp.sqrt(2.0 / (fan_in + fan_out))
        return std * jax.random.normal(k, (fan_in, fan_out), jnp.float32)

    def linear_w(k, fan_in, fan_out):
        bound = 1.0 / jnp.sqrt(fan_in)
        return jax.random.uniform(k, (fan_in, fan_out), jnp.float32, -bound, bound)

    def linear_b(k, fan_in, fan_out):
        bound = 1.0 / jnp.sqrt(fan_in)
        return jax.random.uniform(k, (1, fan_out), jnp.float32, -bound, bound)

    return {
        # GCNLayer weights: Parameter(in, out), xavier_normal(gain=0.02), bias=0.
        "w0": xavier_normal(keys[0], nfeat, nhid1),
        "b0": jnp.zeros((1, nhid1), jnp.float32),
        "w1": xavier_normal(keys[1], nhid1, nhid2),
        "b1": jnp.zeros((1, nhid2), jnp.float32),
        "w2": xavier_normal(keys[2], nhid2, nhid2),
        "b2": jnp.zeros((1, nhid2), jnp.float32),
        # GatedSkipConnection (nn.Linear default init), weights stored (in, out).
        "wsc": linear_w(keys[3], nfeat, nhid1),
        "wci": linear_w(keys[4], nhid1, nhid1),
        "bci": linear_b(keys[5], nhid1, nhid1),
        "wco": linear_w(keys[6], nhid1, nhid1),
        "bco": linear_b(keys[7], nhid1, nhid1),
        # fc0
        "wfc": linear_w(keys[8], nhid2, nclass),
        "bfc": linear_b(keys[9], nhid2, nclass),
    }


def reference_forward(x, adj, p, compute_dtype=jnp.bfloat16):
    """Pure-JAX reference mirroring the PyTorch forward (and the kernel's
    bf16 casts of adj / support / in_x / gate_in — the only numerical
    deviations from the torch module)."""
    f32 = jnp.float32
    cd = compute_dtype
    nfeat = x.shape[1]
    nhid = p["w0"].shape[1]

    adj_c = adj.astype(cd)
    in_x_f32 = x if nfeat == nhid else x @ p["wsc"]
    gate_in = (in_x_f32 @ p["wci"] + p["bci"]).astype(cd).astype(f32)
    in_x = in_x_f32.astype(cd).astype(f32)

    def aggregate(sup_cd, bias):
        return jnp.dot(adj_c, sup_cd, preferred_element_type=f32) + bias

    def gate(out_x):
        z = jax.nn.sigmoid(gate_in + out_x @ p["wco"] + p["bco"])
        return in_x + z * (out_x - in_x)

    sup = (x @ p["w0"]).astype(cd)
    g = jnp.maximum(gate(aggregate(sup, p["b0"])), 0.0)        # out3
    sup = (g @ p["w1"]).astype(cd)
    g = jnp.maximum(gate(aggregate(sup, p["b1"])), 0.0)        # out6
    sup = (g @ p["w2"]).astype(cd)
    g = gate(aggregate(sup, p["b2"]))                          # out8 (no relu)
    return g @ p["wfc"] + p["bfc"]                             # out10


# --------------------------------------------------------------------------- #
if __name__ == "__main__":
    # Demo shapes: 1024 nodes with row_tile=512 / k_tile=512 -> layer grid (2, 2),
    # exercising the K-split accumulator, the pl.when init/finalize paths and
    # megacore-parallel row tiles; feature dims padded 16/32/8 -> 128.
    N, nfeat, nhid1, nhid2, nclass = 1024, 16, 32, 32, 8

    key = jax.random.PRNGKey(0)
    k_x, k_adj, k_p = jax.random.split(key, 3)

    x = jax.random.normal(k_x, (N, nfeat), jnp.float32)

    # Symmetrically-normalized dense adjacency (with self loops).
    a = (jax.random.uniform(k_adj, (N, N)) > 0.99).astype(jnp.float32)
    a = jnp.maximum(a, a.T) + jnp.eye(N, dtype=jnp.float32)
    d_inv_sqrt = 1.0 / jnp.sqrt(a.sum(axis=1))
    adj = a * d_inv_sqrt[:, None] * d_inv_sqrt[None, :]

    params = init_params(k_p, nfeat, nhid1, nhid2, nclass)

    _single_buffer_ok()   # warm the Buffered(1) capability probe outside jit

    fwd = jax.jit(functools.partial(gcn_forward, row_tile=512, k_tile=512))
    out = fwd(x, adj, params)
    jax.block_until_ready(out)

    ref = reference_forward(x, adj, params)
    assert out.shape == (N, nclass)
    max_err = float(jnp.max(jnp.abs(out - ref)))
    assert jnp.allclose(out, ref, atol=2e-2, rtol=2e-2), (
        f"mismatch vs JAX reference, max abs err = {max_err}"
    )

    print("KERNEL_OK")
</pallas_src>

<mosaic_0001>
module attributes {stable_mosaic.version = 11 : i64} {
  func.func @_prologue_kernel(%arg0: i32, %arg1: memref<512x128xf32, #tpu.memory_space<vmem>>, %arg2: memref<128x256xf32, #tpu.memory_space<vmem>>, %arg3: memref<128x128xf32, #tpu.memory_space<vmem>>, %arg4: memref<1x128xf32, #tpu.memory_space<vmem>>, %arg5: memref<512x128xbf16, #tpu.memory_space<vmem>>, %arg6: memref<512x128xbf16, #tpu.memory_space<vmem>>, %arg7: memref<512x128xbf16, #tpu.memory_space<vmem>>) attributes {dimension_semantics = [#tpu.dimension_semantics<parallel>], iteration_bounds = array<i64: 2>, scalar_prefetch = 0 : i64, scratch_operands = 0 : i64, tpu.core_type = #tpu.core_type<tc>, window_params = [{transform_indices = @transform_0, window_bounds = array<i64: 512, 128>}, {pipeline_mode = #tpu.pipeline_mode<synchronous>, transform_indices = @transform_1, window_bounds = array<i64: 128, 256>}, {pipeline_mode = #tpu.pipeline_mode<synchronous>, transform_indices = @transform_2, window_bounds = array<i64: 128, 128>}, {pipeline_mode = #tpu.pipeline_mode<synchronous>, transform_indices = @transform_3, window_bounds = array<i64: 1, 128>}, {transform_indices = @transform_4, window_bounds = array<i64: 512, 128>}, {transform_indices = @transform_5, window_bounds = array<i64: 512, 128>}, {transform_indices = @transform_6, window_bounds = array<i64: 512, 128>}]} {
    %c0 = arith.constant 0 : index
    %c0_0 = arith.constant 0 : index
    %0 = vector.load %arg1[%c0, %c0_0] : memref<512x128xf32, #tpu.memory_space<vmem>>, vector<512x128xf32>
    %c0_1 = arith.constant 0 : index
    %c0_2 = arith.constant 0 : index
    %1 = vector.load %arg2[%c0_1, %c0_2] : memref<128x256xf32, #tpu.memory_space<vmem>>, vector<128x256xf32>
    %cst = arith.constant dense<0.000000e+00> : vector<512x256xf32>
    %2 = tpu.matmul %0, %1, %cst {dimension_numbers = #tpu.dot_dimension_numbers<[1], [0], [0], [1], [0, 0, 1, 1], [], []>} : vector<512x128xf32>, vector<128x256xf32>, vector<512x256xf32> -> vector<512x256xf32>
    %3 = vector.extract_strided_slice %2 {offsets = [0, 128], sizes = [512, 128], strides = [1, 1]} : vector<512x256xf32> to vector<512x128xf32>
    %4 = arith.truncf %3 : vector<512x128xf32> to vector<512x128xbf16>
    %c0_3 = arith.constant 0 : index
    %c0_4 = arith.constant 0 : index
    %5 = vector.load %arg7[%c0_3, %c0_4] : memref<512x128xbf16, #tpu.memory_space<vmem>>, vector<512x128xbf16>
    tpu.vector_store %arg7[%c0_3, %c0_4], %4 {strides = array<i32>} : memref<512x128xbf16, #tpu.memory_space<vmem>>, vector<512x128xbf16>,
    %6 = vector.extract_strided_slice %2 {offsets = [0, 0], sizes = [512, 128], strides = [1, 1]} : vector<512x256xf32> to vector<512x128xf32>
    %7 = arith.truncf %6 : vector<512x128xf32> to vector<512x128xbf16>
    %c0_5 = arith.constant 0 : index
    %c0_6 = arith.constant 0 : index
    %8 = vector.load %arg5[%c0_5, %c0_6] : memref<512x128xbf16, #tpu.memory_space<vmem>>, vector<512x128xbf16>
    tpu.vector_store %arg5[%c0_5, %c0_6], %7 {strides = array<i32>} : memref<512x128xbf16, #tpu.memory_space<vmem>>, vector<512x128xbf16>,
    %c0_7 = arith.constant 0 : index
    %c0_8 = arith.constant 0 : index
    %9 = vector.load %arg3[%c0_7, %c0_8] : memref<128x128xf32, #tpu.memory_space<vmem>>, vector<128x128xf32>
    %cst_9 = arith.constant dense<0.000000e+00> : vector<512x128xf32>
    %10 = tpu.matmul %6, %9, %cst_9 {dimension_numbers = #tpu.dot_dimension_numbers<[1], [0], [0], [1], [0, 0, 1, 1], [], []>} : vector<512x128xf32>, vector<128x128xf32>, vector<512x128xf32> -> vector<512x128xf32>
    %c0_10 = arith.constant 0 : index
    %c0_11 = arith.constant 0 : index
    %11 = vector.load %arg4[%c0_10, %c0_11] : memref<1x128xf32, #tpu.memory_space<vmem>>, vector<1x128xf32>
    %12 = vector.broadcast %11 : vector<1x128xf32> to vector<512x128xf32>
    %13 = arith.addf %10, %12 : vector<512x128xf32>
    %14 = arith.truncf %13 : vector<512x128xf32> to vector<512x128xbf16>
    %c0_12 = arith.constant 0 : index
    %c0_13 = arith.constant 0 : index
    %15 = vector.load %arg6[%c0_12, %c0_13] : memref<512x128xbf16, #tpu.memory_space<vmem>>, vector<512x128xbf16>
    tpu.vector_store %arg6[%c0_12, %c0_13], %14 {strides = array<i32>} : memref<512x128xbf16, #tpu.memory_space<vmem>>, vector<512x128xbf16>,
    return
  }
  func.func @transform_0(%arg0: i32) -> (i32, i32) {
    %c0_i32 = arith.constant 0 : i32
    %c0_i32_0 = arith.constant 0 : i32
    return %arg0, %c0_i32 : i32, i32
  }
  func.func @transform_1(%arg0: i32) -> (i32, i32) {
    %c0_i32 = arith.constant 0 : i32
    %c0_i32_0 = arith.constant 0 : i32
    %c0_i32_1 = arith.constant 0 : i32
    return %c0_i32, %c0_i32_0 : i32, i32
  }
  func.func @transform_2(%arg0: i32) -> (i32, i32) {
    %c0_i32 = arith.constant 0 : i32
    %c0_i32_0 = arith.constant 0 : i32
    %c0_i32_1 = arith.constant 0 : i32
    return %c0_i32, %c0_i32_0 : i32, i32
  }
  func.func @transform_3(%arg0: i32) -> (i32, i32) {
    %c0_i32 = arith.constant 0 : i32
    %c0_i32_0 = arith.constant 0 : i32
    %c0_i32_1 = arith.constant 0 : i32
    return %c0_i32, %c0_i32_0 : i32, i32
  }
  func.func @transform_4(%arg0: i32) -> (i32, i32) {
    %c0_i32 = arith.constant 0 : i32
    %c0_i32_0 = arith.constant 0 : i32
    return %arg0, %c0_i32 : i32, i32
  }
  func.func @transform_5(%arg0: i32) -> (i32, i32) {
    %c0_i32 = arith.constant 0 : i32
    %c0_i32_0 = arith.constant 0 : i32
    return %arg0, %c0_i32 : i32, i32
  }
  func.func @transform_6(%arg0: i32) -> (i32, i32) {
    %c0_i32 = arith.constant 0 : i32
    %c0_i32_0 = arith.constant 0 : i32
    return %arg0, %c0_i32 : i32, i32
  }
}

module attributes {stable_mosaic.version = 11 : i64} {
  func.func @_agg_gate_kernel(%arg0: i32, %arg1: i32, %arg2: memref<512x512xbf16, #tpu.memory_space<vmem>>, %arg3: memref<512x128xbf16, #tpu.memory_space<vmem>>, %arg4: memref<1x128xf32, #tpu.memory_space<vmem>>, %arg5: memref<512x128xbf16, #tpu.memory_space<vmem>>, %arg6: memref<512x128xbf16, #tpu.memory_space<vmem>>, %arg7: memref<128x128xf32, #tpu.memory_space<vmem>>, %arg8: memref<1x128xf32, #tpu.memory_space<vmem>>, %arg9: memref<128x128xf32, #tpu.memory_space<vmem>>, %arg10: memref<1x128xf32, #tpu.memory_space<vmem>>, %arg11: memref<512x128xbf16, #tpu.memory_space<vmem>>, %arg12: memref<512x128xf32, #tpu.memory_space<vmem>>) attributes {dimension_semantics = [#tpu.dimension_semantics<parallel>, #tpu.dimension_semantics<arbitrary>], iteration_bounds = array<i64: 2, 2>, scalar_prefetch = 0 : i64, scratch_operands = 1 : i64, tpu.core_type = #tpu.core_type<tc>, window_params = [{transform_indices = @transform_0, window_bounds = array<i64: 512, 512>}, {transform_indices = @transform_1, window_bounds = array<i64: 512, 128>}, {pipeline_mode = #tpu.pipeline_mode<synchronous>, transform_indices = @transform_2, window_bounds = array<i64: 1, 128>}, {transform_indices = @transform_3, window_bounds = array<i64: 512, 128>}, {transform_indices = @transform_4, window_bounds = array<i64: 512, 128>}, {pipeline_mode = #tpu.pipeline_mode<synchronous>, transform_indices = @transform_5, window_bounds = array<i64: 128, 128>}, {pipeline_mode = #tpu.pipeline_mode<synchronous>, transform_indices = @transform_6, window_bounds = array<i64: 1, 128>}, {pipeline_mode = #tpu.pipeline_mode<synchronous>, transform_indices = @transform_7, window_bounds = array<i64: 128, 128>}, {pipeline_mode = #tpu.pipeline_mode<synchronous>, transform_indices = @transform_8, window_bounds = array<i64: 1, 128>}, {transform_indices = @transform_9, window_bounds = array<i64: 512, 128>}]} {
    %c0_i32 = arith.constant 0 : i32
    %0 = arith.cmpi eq, %arg1, %c0_i32 : i32
    %1 = arith.extui %0 : i1 to i32
    %c0_i32_0 = arith.constant 0 : i32
    %2 = arith.cmpi ne, %1, %c0_i32_0 : i32
    scf.if %2 {
      %cst_9 = arith.constant 0.000000e+00 : f32
      %12 = vector.broadcast %cst_9 : f32 to vector<512x128xf32>
      %c0_10 = arith.constant 0 : index
      %c0_11 = arith.constant 0 : index
      %13 = vector.load %arg12[%c0_10, %c0_11] : memref<512x128xf32, #tpu.memory_space<vmem>>, vector<512x128xf32>
      tpu.vector_store %arg12[%c0_10, %c0_11], %12 {strides = array<i32>} : memref<512x128xf32, #tpu.memory_space<vmem>>, vector<512x128xf32>,
    } else {
    }
    %c0 = arith.constant 0 : index
    %c0_1 = arith.constant 0 : index
    %3 = vector.load %arg12[%c0, %c0_1] : memref<512x128xf32, #tpu.memory_space<vmem>>, vector<512x128xf32>
    %c0_2 = arith.constant 0 : index
    %c0_3 = arith.constant 0 : index
    %4 = vector.load %arg2[%c0_2, %c0_3] : memref<512x512xbf16, #tpu.memory_space<vmem>>, vector<512x512xbf16>
    %c0_4 = arith.constant 0 : index
    %c0_5 = arith.constant 0 : index
    %5 = vector.load %arg3[%c0_4, %c0_5] : memref<512x128xbf16, #tpu.memory_space<vmem>>, vector<512x128xbf16>
    %cst = arith.constant dense<0.000000e+00> : vector<512x128xf32>
    %6 = tpu.matmul %4, %5, %cst {dimension_numbers = #tpu.dot_dimension_numbers<[1], [0], [0], [1], [0, 0, 1, 1], [], []>} : vector<512x512xbf16>, vector<512x128xbf16>, vector<512x128xf32> -> vector<512x128xf32>
    %7 = arith.addf %3, %6 : vector<512x128xf32>
    %c0_6 = arith.constant 0 : index
    %c0_7 = arith.constant 0 : index
    %8 = vector.load %arg12[%c0_6, %c0_7] : memref<512x128xf32, #tpu.memory_space<vmem>>, vector<512x128xf32>
    tpu.vector_store %arg12[%c0_6, %c0_7], %7 {strides = array<i32>} : memref<512x128xf32, #tpu.memory_space<vmem>>, vector<512x128xf32>,
    %c1_i32 = arith.constant 1 : i32
    %9 = arith.cmpi eq, %arg1, %c1_i32 : i32
    %10 = arith.extui %9 : i1 to i32
    %c0_i32_8 = arith.constant 0 : i32
    %11 = arith.cmpi ne, %10, %c0_i32_8 : i32
    scf.if %11 {
      %c0_9 = arith.constant 0 : index
      %c0_10 = arith.constant 0 : index
      %12 = vector.load %arg12[%c0_9, %c0_10] : memref<512x128xf32, #tpu.memory_space<vmem>>, vector<512x128xf32>
      %c0_11 = arith.constant 0 : index
      %c0_12 = arith.constant 0 : index
      %13 = vector.load %arg4[%c0_11, %c0_12] : memref<1x128xf32, #tpu.memory_space<vmem>>, vector<1x128xf32>
      %14 = vector.broadcast %13 : vector<1x128xf32> to vector<512x128xf32>
      %15 = arith.addf %12, %14 : vector<512x128xf32>
      %c0_13 = arith.constant 0 : index
      %c0_14 = arith.constant 0 : index
      %16 = vector.load %arg6[%c0_13, %c0_14] : memref<512x128xbf16, #tpu.memory_space<vmem>>, vector<512x128xbf16>
      %17 = arith.extf %16 : vector<512x128xbf16> to vector<512x128xf32>
      %c0_15 = arith.constant 0 : index
      %c0_16 = arith.constant 0 : index
      %18 = vector.load %arg7[%c0_15, %c0_16] : memref<128x128xf32, #tpu.memory_space<vmem>>, vector<128x128xf32>
      %cst_17 = arith.constant dense<0.000000e+00> : vector<512x128xf32>
      %19 = tpu.matmul %15, %18, %cst_17 {dimension_numbers = #tpu.dot_dimension_numbers<[1], [0], [0], [1], [0, 0, 1, 1], [], []>} : vector<512x128xf32>, vector<128x128xf32>, vector<512x128xf32> -> vector<512x128xf32>
      %20 = arith.addf %17, %19 : vector<512x128xf32>
      %c0_18 = arith.constant 0 : index
      %c0_19 = arith.constant 0 : index
      %21 = vector.load %arg8[%c0_18, %c0_19] : memref<1x128xf32, #tpu.memory_space<vmem>>, vector<1x128xf32>
      %22 = vector.broadcast %21 : vector<1x128xf32> to vector<512x128xf32>
      %23 = arith.addf %20, %22 : vector<512x128xf32>
      %24 = arith.negf %23 : vector<512x128xf32>
      %25 = math.exp %24 : vector<512x128xf32>
      %cst_20 = arith.constant 1.000000e+00 : f32
      %26 = vector.broadcast %cst_20 : f32 to vector<512x128xf32>
      %27 = arith.addf %26, %25 : vector<512x128xf32>
      %28 = arith.divf %26, %27 : vector<512x128xf32>
      %c0_21 = arith.constant 0 : index
      %c0_22 = arith.constant 0 : index
      %29 = vector.load %arg5[%c0_21, %c0_22] : memref<512x128xbf16, #tpu.memory_space<vmem>>, vector<512x128xbf16>
      %30 = arith.extf %29 : vector<512x128xbf16> to vector<512x128xf32>
      %31 = arith.subf %15, %30 : vector<512x128xf32>
      %32 = arith.mulf %28, %31 : vector<512x128xf32>
      %33 = arith.addf %30, %32 : vector<512x128xf32>
      %cst_23 = arith.constant 0.000000e+00 : f32
      %34 = vector.broadcast %cst_23 : f32 to vector<512x128xf32>
      %35 = arith.maximumf %33, %34 : vector<512x128xf32>
      %c0_24 = arith.constant 0 : index
      %c0_25 = arith.constant 0 : index
      %36 = vector.load %arg9[%c0_24, %c0_25] : memref<128x128xf32, #tpu.memory_space<vmem>>, vector<128x128xf32>
      %cst_26 = arith.constant dense<0.000000e+00> : vector<512x128xf32>
      %37 = tpu.matmul %35, %36, %cst_26 {dimension_numbers = #tpu.dot_dimension_numbers<[1], [0], [0], [1], [0, 0, 1, 1], [], []>} : vector<512x128xf32>, vector<128x128xf32>, vector<512x128xf32> -> vector<512x128xf32>
      %c0_27 = arith.constant 0 : index
      %c0_28 = arith.constant 0 : index
      %38 = vector.load %arg10[%c0_27, %c0_28] : memref<1x128xf32, #tpu.memory_space<vmem>>, vector<1x128xf32>
      %39 = vector.broadcast %38 : vector<1x128xf32> to vector<512x128xf32>
      %40 = arith.addf %37, %39 : vector<512x128xf32>
      %41 = arith.truncf %40 : vector<512x128xf32> to vector<512x128xbf16>
      %c0_29 = arith.constant 0 : index
      %c0_30 = arith.constant 0 : index
      %42 = vector.load %arg11[%c0_29, %c0_30] : memref<512x128xbf16, #tpu.memory_space<vmem>>, vector<512x128xbf16>
      tpu.vector_store %arg11[%c0_29, %c0_30], %41 {strides = array<i32>} : memref<512x128xbf16, #tpu.memory_space<vmem>>, vector<512x128xbf16>,
    } else {
    }
    return
  }
  func.func @transform_0(%arg0: i32, %arg1: i32) -> (i32, i32) {
    %c0_i32 = arith.constant 0 : i32
    return %arg0, %arg1 : i32, i32
  }
  func.func @transform_1(%arg0: i32, %arg1: i32) -> (i32, i32) {
    %c0_i32 = arith.constant 0 : i32
    %c0_i32_0 = arith.constant 0 : i32
    return %arg1, %c0_i32 : i32, i32
  }
  func.func @transform_2(%arg0: i32, %arg1: i32) -> (i32, i32) {
    %c0_i32 = arith.constant 0 : i32
    %c0_i32_0 = arith.constant 0 : i32
    %c0_i32_1 = arith.constant 0 : i32
    return %c0_i32, %c0_i32_0 : i32, i32
  }
  func.func @transform_3(%arg0: i32, %arg1: i32) -> (i32, i32) {
    %c0_i32 = arith.constant 0 : i32
    %c0_i32_0 = arith.constant 0 : i32
    return %arg0, %c0_i32 : i32, i32
  }
  func.func @transform_4(%arg0: i32, %arg1: i32) -> (i32, i32) {
    %c0_i32 = arith.constant 0 : i32
    %c0_i32_0 = arith.constant 0 : i32
    return %arg0, %c0_i32 : i32, i32
  }
  func.func @transform_5(%arg0: i32, %arg1: i32) -> (i32, i32) {
    %c0_i32 = arith.constant 0 : i32
    %c0_i32_0 = arith.constant 0 : i32
    %c0_i32_1 = arith.constant 0 : i32
    return %c0_i32, %c0_i32_0 : i32, i32
  }
  func.func @transform_6(%arg0: i32, %arg1: i32) -> (i32, i32) {
    %c0_i32 = arith.constant 0 : i32
    %c0_i32_0 = arith.constant 0 : i32
    %c0_i32_1 = arith.constant 0 : i32
    return %c0_i32, %c0_i32_0 : i32, i32
  }
  func.func @transform_7(%arg0: i32, %arg1: i32) -> (i32, i32) {
    %c0_i32 = arith.constant 0 : i32
    %c0_i32_0 = arith.constant 0 : i32
    %c0_i32_1 = arith.constant 0 : i32
    return %c0_i32, %c0_i32_0 : i32, i32
  }
  func.func @transform_8(%arg0: i32, %arg1: i32) -> (i32, i32) {
    %c0_i32 = arith.constant 0 : i32
    %c0_i32_0 = arith.constant 0 : i32
    %c0_i32_1 = arith.constant 0 : i32
    return %c0_i32, %c0_i32_0 : i32, i32
  }
  func.func @transform_9(%arg0: i32, %arg1: i32) -> (i32, i32) {
    %c0_i32 = arith.constant 0 : i32
    %c0_i32_0 = arith.constant 0 : i32
    return %arg0, %c0_i32 : i32, i32
  }
}

module attributes {stable_mosaic.version = 11 : i64} {
  func.func @_agg_gate_kernel(%arg0: i32, %arg1: i32, %arg2: memref<512x512xbf16, #tpu.memory_space<vmem>>, %arg3: memref<512x128xbf16, #tpu.memory_space<vmem>>, %arg4: memref<1x128xf32, #tpu.memory_space<vmem>>, %arg5: memref<512x128xbf16, #tpu.memory_space<vmem>>, %arg6: memref<512x128xbf16, #tpu.memory_space<vmem>>, %arg7: memref<128x128xf32, #tpu.memory_space<vmem>>, %arg8: memref<1x128xf32, #tpu.memory_space<vmem>>, %arg9: memref<128x128xf32, #tpu.memory_space<vmem>>, %arg10: memref<1x128xf32, #tpu.memory_space<vmem>>, %arg11: memref<512x128xf32, #tpu.memory_space<vmem>>, %arg12: memref<512x128xf32, #tpu.memory_space<vmem>>) attributes {dimension_semantics = [#tpu.dimension_semantics<parallel>, #tpu.dimension_semantics<arbitrary>], iteration_bounds = array<i64: 2, 2>, scalar_prefetch = 0 : i64, scratch_operands = 1 : i64, tpu.core_type = #tpu.core_type<tc>, window_params = [{transform_indices = @transform_0, window_bounds = array<i64: 512, 512>}, {transform_indices = @transform_1, window_bounds = array<i64: 512, 128>}, {pipeline_mode = #tpu.pipeline_mode<synchronous>, transform_indices = @transform_2, window_bounds = array<i64: 1, 128>}, {transform_indices = @transform_3, window_bounds = array<i64: 512, 128>}, {transform_indices = @transform_4, window_bounds = array<i64: 512, 128>}, {pipeline_mode = #tpu.pipeline_mode<synchronous>, transform_indices = @transform_5, window_bounds = array<i64: 128, 128>}, {pipeline_mode = #tpu.pipeline_mode<synchronous>, transform_indices = @transform_6, window_bounds = array<i64: 1, 128>}, {pipeline_mode = #tpu.pipeline_mode<synchronous>, transform_indices = @transform_7, window_bounds = array<i64: 128, 128>}, {pipeline_mode = #tpu.pipeline_mode<synchronous>, transform_indices = @transform_8, window_bounds = array<i64: 1, 128>}, {transform_indices = @transform_9, window_bounds = array<i64: 512, 128>}]} {
    %c0_i32 = arith.constant 0 : i32
    %0 = arith.cmpi eq, %arg1, %c0_i32 : i32
    %1 = arith.extui %0 : i1 to i32
    %c0_i32_0 = arith.constant 0 : i32
    %2 = arith.cmpi ne, %1, %c0_i32_0 : i32
    scf.if %2 {
      %cst_9 = arith.constant 0.000000e+00 : f32
      %12 = vector.broadcast %cst_9 : f32 to vector<512x128xf32>
      %c0_10 = arith.constant 0 : index
      %c0_11 = arith.constant 0 : index
      %13 = vector.load %arg12[%c0_10, %c0_11] : memref<512x128xf32, #tpu.memory_space<vmem>>, vector<512x128xf32>
      tpu.vector_store %arg12[%c0_10, %c0_11], %12 {strides = array<i32>} : memref<512x128xf32, #tpu.memory_space<vmem>>, vector<512x128xf32>,
    } else {
    }
    %c0 = arith.constant 0 : index
    %c0_1 = arith.constant 0 : index
    %3 = vector.load %arg12[%c0, %c0_1] : memref<512x128xf32, #tpu.memory_space<vmem>>, vector<512x128xf32>
    %c0_2 = arith.constant 0 : index
    %c0_3 = arith.constant 0 : index
    %4 = vector.load %arg2[%c0_2, %c0_3] : memref<512x512xbf16, #tpu.memory_space<vmem>>, vector<512x512xbf16>
    %c0_4 = arith.constant 0 : index
    %c0_5 = arith.constant 0 : index
    %5 = vector.load %arg3[%c0_4, %c0_5] : memref<512x128xbf16, #tpu.memory_space<vmem>>, vector<512x128xbf16>
    %cst = arith.constant dense<0.000000e+00> : vector<512x128xf32>
    %6 = tpu.matmul %4, %5, %cst {dimension_numbers = #tpu.dot_dimension_numbers<[1], [0], [0], [1], [0, 0, 1, 1], [], []>} : vector<512x512xbf16>, vector<512x128xbf16>, vector<512x128xf32> -> vector<512x128xf32>
    %7 = arith.addf %3, %6 : vector<512x128xf32>
    %c0_6 = arith.constant 0 : index
    %c0_7 = arith.constant 0 : index
    %8 = vector.load %arg12[%c0_6, %c0_7] : memref<512x128xf32, #tpu.memory_space<vmem>>, vector<512x128xf32>
    tpu.vector_store %arg12[%c0_6, %c0_7], %7 {strides = array<i32>} : memref<512x128xf32, #tpu.memory_space<vmem>>, vector<512x128xf32>,
    %c1_i32 = arith.constant 1 : i32
    %9 = arith.cmpi eq, %arg1, %c1_i32 : i32
    %10 = arith.extui %9 : i1 to i32
    %c0_i32_8 = arith.constant 0 : i32
    %11 = arith.cmpi ne, %10, %c0_i32_8 : i32
    scf.if %11 {
      %c0_9 = arith.constant 0 : index
      %c0_10 = arith.constant 0 : index
      %12 = vector.load %arg12[%c0_9, %c0_10] : memref<512x128xf32, #tpu.memory_space<vmem>>, vector<512x128xf32>
      %c0_11 = arith.constant 0 : index
      %c0_12 = arith.constant 0 : index
      %13 = vector.load %arg4[%c0_11, %c0_12] : memref<1x128xf32, #tpu.memory_space<vmem>>, vector<1x128xf32>
      %14 = vector.broadcast %13 : vector<1x128xf32> to vector<512x128xf32>
      %15 = arith.addf %12, %14 : vector<512x128xf32>
      %c0_13 = arith.constant 0 : index
      %c0_14 = arith.constant 0 : index
      %16 = vector.load %arg6[%c0_13, %c0_14] : memref<512x128xbf16, #tpu.memory_space<vmem>>, vector<512x128xbf16>
      %17 = arith.extf %16 : vector<512x128xbf16> to vector<512x128xf32>
      %c0_15 = arith.constant 0 : index
      %c0_16 = arith.constant 0 : index
      %18 = vector.load %arg7[%c0_15, %c0_16] : memref<128x128xf32, #tpu.memory_space<vmem>>, vector<128x128xf32>
      %cst_17 = arith.constant dense<0.000000e+00> : vector<512x128xf32>
      %19 = tpu.matmul %15, %18, %cst_17 {dimension_numbers = #tpu.dot_dimension_numbers<[1], [0], [0], [1], [0, 0, 1, 1], [], []>} : vector<512x128xf32>, vector<128x128xf32>, vector<512x128xf32> -> vector<512x128xf32>
      %20 = arith.addf %17, %19 : vector<512x128xf32>
      %c0_18 = arith.constant 0 : index
      %c0_19 = arith.constant 0 : index
      %21 = vector.load %arg8[%c0_18, %c0_19] : memref<1x128xf32, #tpu.memory_space<vmem>>, vector<1x128xf32>
      %22 = vector.broadcast %21 : vector<1x128xf32> to vector<512x128xf32>
      %23 = arith.addf %20, %22 : vector<512x128xf32>
      %24 = arith.negf %23 : vector<512x128xf32>
      %25 = math.exp %24 : vector<512x128xf32>
      %cst_20 = arith.constant 1.000000e+00 : f32
      %26 = vector.broadcast %cst_20 : f32 to vector<512x128xf32>
      %27 = arith.addf %26, %25 : vector<512x128xf32>
      %28 = arith.divf %26, %27 : vector<512x128xf32>
      %c0_21 = arith.constant 0 : index
      %c0_22 = arith.constant 0 : index
      %29 = vector.load %arg5[%c0_21, %c0_22] : memref<512x128xbf16, #tpu.memory_space<vmem>>, vector<512x128xbf16>
      %30 = arith.extf %29 : vector<512x128xbf16> to vector<512x128xf32>
      %31 = arith.subf %15, %30 : vector<512x128xf32>
      %32 = arith.mulf %28, %31 : vector<512x128xf32>
      %33 = arith.addf %30, %32 : vector<512x128xf32>
      %c0_23 = arith.constant 0 : index
      %c0_24 = arith.constant 0 : index
      %34 = vector.load %arg9[%c0_23, %c0_24] : memref<128x128xf32, #tpu.memory_space<vmem>>, vector<128x128xf32>
      %cst_25 = arith.constant dense<0.000000e+00> : vector<512x128xf32>
      %35 = tpu.matmul %33, %34, %cst_25 {dimension_numbers = #tpu.dot_dimension_numbers<[1], [0], [0], [1], [0, 0, 1, 1], [], []>} : vector<512x128xf32>, vector<128x128xf32>, vector<512x128xf32> -> vector<512x128xf32>
      %c0_26 = arith.constant 0 : index
      %c0_27 = arith.constant 0 : index
      %36 = vector.load %arg10[%c0_26, %c0_27] : memref<1x128xf32, #tpu.memory_space<vmem>>, vector<1x128xf32>
      %37 = vector.broadcast %36 : vector<1x128xf32> to vector<512x128xf32>
      %38 = arith.addf %35, %37 : vector<512x128xf32>
      %c0_28 = arith.constant 0 : index
      %c0_29 = arith.constant 0 : index
      %39 = vector.load %arg11[%c0_28, %c0_29] : memref<512x128xf32, #tpu.memory_space<vmem>>, vector<512x128xf32>
      tpu.vector_store %arg11[%c0_28, %c0_29], %38 {strides = array<i32>} : memref<512x128xf32, #tpu.memory_space<vmem>>, vector<512x128xf32>,
    } else {
    }
    return
  }
  func.func @transform_0(%arg0: i32, %arg1: i32) -> (i32, i32) {
    %c0_i32 = arith.constant 0 : i32
    return %arg0, %arg1 : i32, i32
  }
  func.func @transform_1(%arg0: i32, %arg1: i32) -> (i32, i32) {
    %c0_i32 = arith.constant 0 : i32
    %c0_i32_0 = arith.constant 0 : i32
    return %arg1, %c0_i32 : i32, i32
  }
  func.func @transform_2(%arg0: i32, %arg1: i32) -> (i32, i32) {
    %c0_i32 = arith.constant 0 : i32
    %c0_i32_0 = arith.constant 0 : i32
    %c0_i32_1 = arith.constant 0 : i32
    return %c0_i32, %c0_i32_0 : i32, i32
  }
  func.func @transform_3(%arg0: i32, %arg1: i32) -> (i32, i32) {
    %c0_i32 = arith.constant 0 : i32
    %c0_i32_0 = arith.constant 0 : i32
    return %arg0, %c0_i32 : i32, i32
  }
  func.func @transform_4(%arg0: i32, %arg1: i32) -> (i32, i32) {
    %c0_i32 = arith.constant 0 : i32
    %c0_i32_0 = arith.constant 0 : i32
    return %arg0, %c0_i32 : i32, i32
  }
  func.func @transform_5(%arg0: i32, %arg1: i32) -> (i32, i32) {
    %c0_i32 = arith.constant 0 : i32
    %c0_i32_0 = arith.constant 0 : i32
    %c0_i32_1 = arith.constant 0 : i32
    return %c0_i32, %c0_i32_0 : i32, i32
  }
  func.func @transform_6(%arg0: i32, %arg1: i32) -> (i32, i32) {
    %c0_i32 = arith.constant 0 : i32
    %c0_i32_0 = arith.constant 0 : i32
    %c0_i32_1 = arith.constant 0 : i32
    return %c0_i32, %c0_i32_0 : i32, i32
  }
  func.func @transform_7(%arg0: i32, %arg1: i32) -> (i32, i32) {
    %c0_i32 = arith.constant 0 : i32
    %c0_i32_0 = arith.constant 0 : i32
    %c0_i32_1 = arith.constant 0 : i32
    return %c0_i32, %c0_i32_0 : i32, i32
  }
  func.func @transform_8(%arg0: i32, %arg1: i32) -> (i32, i32) {
    %c0_i32 = arith.constant 0 : i32
    %c0_i32_0 = arith.constant 0 : i32
    %c0_i32_1 = arith.constant 0 : i32
    return %c0_i32, %c0_i32_0 : i32, i32
  }
  func.func @transform_9(%arg0: i32, %arg1: i32) -> (i32, i32) {
    %c0_i32 = arith.constant 0 : i32
    %c0_i32_0 = arith.constant 0 : i32
    return %arg0, %c0_i32 : i32, i32
  }
}

</mosaic_0001>

<bundles_post_ra>
// kernel: gcn_forward.4
= control target key start
LH: loop header
LB: loop body
LE: loop exit
PB: predicated region body
PF: predicated region fallthrough
CT: control target
= control target key end

     0   :  { %s3633_s21 = smov 0   ;;  %s4176_s0 = inlined_call_operand.vmem [shape: f32[1024,128], index: 0, kind: input, shape index: {}]   ;;  %s4177_s1 = inlined_call_operand.vmem [shape: f32[128,256], index: 1, kind: input, shape index: {}]   ;;  %s4178_s2 = inlined_call_operand.vmem [shape: f32[128,128], index: 2, kind: input, shape index: {}]   ;;  %s4179_s3 = inlined_call_operand.vmem [shape: f32[1,128], index: 3, kind: input, shape index: {}]   ;;  %s4180_s4 = inlined_call_operand.vmem [shape: bf16[1024,128], index: 4, kind: output, shape index: {0}]   ;;  %s4181_s5 = inlined_call_operand.vmem [shape: bf16[1024,128], index: 5, kind: output, shape index: {1}]   ;;  %s4182_s6 = inlined_call_operand.vmem [shape: bf16[1024,128], index: 6, kind: output, shape index: {2}]  }
   0x1 LB: > { %s2319_s22 = sadd.s32 4294967295, %s3595_s21   ;;  %p2323_p0 = scmp.ge.s32.totalorder %s3595_s21, 1  ;;  %s3595_s21 = sphi %s3633_s21, %s17_s21  }
   0x2   : > { %p218_p1 = scmp.lt.s32.totalorder %s3595_s21, 3 }
   0x4   : > { %p219_p2 = pnand %p2323_p0, %p218_p1 }
   0x5   : > { %v347_v0 = vld [vmem:[%s4177_s1 + $0x8] sm:$0xff] (!%p219_p2)  ;;  %v349_v1 = vld [vmem:[%s4177_s1 + $0x18] sm:$0xff] (!%p219_p2)  ;;  %v346_v2 = vld [vmem:[%s4177_s1] sm:$0xff] (!%p219_p2)  ;;  %v3597_v7 = vmov (!%p219_p2), 0.0   ;;  %s2324_s23 = sshll.u32 (!%p219_p2), %s2319_s22, 6 }
   0x6   : > { %222 = sbr.rel (%p219_p2) target bundleno = 690 (0x2b2), region = 36  ;;  %v3500_v3 = vpack.c.bf16 (!%p219_p2), %v349_v1, %v347_v0  ;;  %v348_v4 = vld [vmem:[%s4177_s1 + $0x10] sm:$0xff] (!%p219_p2)  ;;  %v351_v5 = vld [vmem:[%s4177_s1 + $0x28] sm:$0xff] (!%p219_p2)  ;;  %v353_v6 = vld [vmem:[%s4177_s1 + $0x38] sm:$0xff] (!%p219_p2)  ;;  %442 = vmatprep.mubr.f32.mxu0 (!%p219_p2), %v3597_v7  ;;  %730 = vmatprep.mubr.f32.mxu1 (!%p219_p2), %v3597_v7  ;;  %p259_p3 = scmp.lt.s32.totalorder (!%p219_p2), %s2324_s23, 127 }
   0x7   : > { %v3502_v8 = vpack.c.bf16 (!%p219_p2), %v348_v4, %v346_v2  ;;  %v3504_v9 = vpack.c.bf16 (!%p219_p2), %v353_v6, %v351_v5  ;;  %v350_v10 = vld [vmem:[%s4177_s1 + $0x20] sm:$0xff] (!%p219_p2)  ;;  %v352_v11 = vld [vmem:[%s4177_s1 + $0x30] sm:$0xff] (!%p219_p2)  ;;  %v355_v12 = vld [vmem:[%s4177_s1 + $0x48] sm:$0xff] (!%p219_p2) }
   0x8   : > { %3501 = vmatprep.subr.bf16.mxu0 (!%p219_p2), %v3500_v3  ;;  %v357_v13 = vld [vmem:[%s4177_s1 + $0x58] sm:$0xff] (!%p219_p2)  ;;  %3564 = vmatprep.subr.bf16.mxu1 (!%p219_p2), %v3500_v3  ;;  %v3506_v14 = vpack.c.bf16 (!%p219_p2), %v352_v11, %v350_v10  ;;  %v354_v16 = vld [vmem:[%s4177_s1 + $0x40] sm:$0xff] (!%p219_p2)  ;;  %v356_v17 = vld [vmem:[%s4177_s1 + $0x50] sm:$0xff] (!%p219_p2) }
   0x9   : > { %3503 = vmatpush1.bf16.msra.mxu0 (!%p219_p2), %v3502_v8  ;;  %3572 = vmatpush1.bf16.msra.mxu1 (!%p219_p2), %v3502_v8  ;;  %v3508_v15 = vpack.c.bf16 (!%p219_p2), %v357_v13, %v355_v12  ;;  %v359_v18 = vld [vmem:[%s4177_s1 + $0x68] sm:$0xff] (!%p219_p2)  ;;  %v361_v19 = vld [vmem:[%s4177_s1 + $0x78] sm:$0xff] (!%p219_p2)  ;;  %v3510_v20 = vpack.c.bf16 (!%p219_p2), %v356_v17, %v354_v16  ;;  %v358_v22 = vld [vmem:[%s4177_s1 + $0x60] sm:$0xff] (!%p219_p2) }
   0xa   : > { %3505 = vmatprep.subr.bf16.mxu0 (!%p219_p2), %v3504_v9  ;;  %3565 = vmatprep.subr.bf16.mxu1 (!%p219_p2), %v3504_v9  ;;  %v3512_v21 = vpack.c.bf16 (!%p219_p2), %v361_v19, %v359_v18  ;;  %v360_v23 = vld [vmem:[%s4177_s1 + $0x70] sm:$0xff] (!%p219_p2)  ;;  %v363_v24 = vld [vmem:[%s4177_s1 + $0x88] sm:$0xff] (!%p219_p2)  ;;  %v365_v25 = vld [vmem:[%s4177_s1 + $0x98] sm:$0xff] (!%p219_p2) }
   0xb   : > { %v3514_v26 = vpack.c.bf16 (!%p219_p2), %v360_v23, %v358_v22  ;;  %v3516_v27 = vpack.c.bf16 (!%p219_p2), %v365_v25, %v363_v24  ;;  %v362_v28 = vld [vmem:[%s4177_s1 + $0x80] sm:$0xff] (!%p219_p2)  ;;  %v364_v29 = vld [vmem:[%s4177_s1 + $0x90] sm:$0xff] (!%p219_p2)  ;;  %v367_v30 = vld [vmem:[%s4177_s1 + $0xa8] sm:$0xff] (!%p219_p2) }
   0xc   : > { %v369_v31 = vld [vmem:[%s4177_s1 + $0xb8] sm:$0xff] (!%p219_p2)  ;;  %v3518_v32 = vpack.c.bf16 (!%p219_p2), %v364_v29, %v362_v28  ;;  %v366_v34 = vld [vmem:[%s4177_s1 + $0xa0] sm:$0xff] (!%p219_p2)  ;;  %v368_v35 = vld [vmem:[%s4177_s1 + $0xb0] sm:$0xff] (!%p219_p2) }
   0xd   : > { %3507 = vmatpush1.bf16.msra.mxu0 %v3506_v14  ;;  %3573 = vmatpush1.bf16.msra.mxu1 %v3506_v14  ;;  %v3520_v33 = vpack.c.bf16 %v369_v31, %v367_v30  ;;  %v371_v36 = vld [vmem:[%s4177_s1 + $0xc8] sm:$0xff]  ;;  %v373_v37 = vld [vmem:[%s4177_s1 + $0xd8] sm:$0xff]  ;;  %v3522_v38 = vpack.c.bf16 %v368_v35, %v366_v34  ;;  %v370_v40 = vld [vmem:[%s4177_s1 + $0xc0] sm:$0xff]  ;;  %s4184_s23 = smov (!%p259_p3, %s2324_s23), 127 }
   0xe   : > { %3509 = vmatprep.subr.bf16.mxu0 %v3508_v15  ;;  %3566 = vmatprep.subr.bf16.mxu1 %v3508_v15  ;;  %v3524_v39 = vpack.c.bf16 %v373_v37, %v371_v36  ;;  %v372_v41 = vld [vmem:[%s4177_s1 + $0xd0] sm:$0xff]  ;;  %v375_v42 = vld [vmem:[%s4177_s1 + $0xe8] sm:$0xff]  ;;  %v377_v43 = vld [vmem:[%s4177_s1 + $0xf8] sm:$0xff]  ;;  %s2325_s19 = sshll.u32 %s4184_s23, 3  ;;  %s3924_s12 = sshll.u32 %s4184_s23, 2 }
   0xf   : > { %v3526_v44 = vpack.c.bf16 %v372_v41, %v370_v40  ;;  %v3528_v45 = vpack.c.bf16 %v377_v43, %v375_v42  ;;  %v374_v46 = vld [vmem:[%s4177_s1 + $0xe0] sm:$0xff]  ;;  %v376_v47 = vld [vmem:[%s4177_s1 + $0xf0] sm:$0xff]  ;;  %s3747_s25 = scalar_lea.vmem %s4176_s0, %s2325_s19  ;;  %v1468_v11 = vld [vmem:[%s4178_s2 + $0x8] sm:$0xff]  ;;  %s3930_s15 = scalar_lea.vmem %s4180_s4, %s3924_s12 }
  0x10   : > { %v3530_v48 = vpack.c.bf16 %v376_v47, %v374_v46  ;;  %v282_v49 = vld [vmem:[%s3747_s25] sm:$0xff]  ;;  %v283_v50 = vld [vmem:[%s3747_s25 + $0x8] sm:$0xff]  ;;  %v284_v51 = vld [vmem:[%s3747_s25 + $0x10] sm:$0xff]  ;;  %s4076_s24 = scalar_lea.vmem %s4181_s5, %s3924_s12 }
  0x11   : > { %3511 = vmatpush1.bf16.msra.mxu0 %v3510_v20  ;;  %3574 = vmatpush1.bf16.msra.mxu1 %v3510_v20  ;;  %v285_v52 = vld [vmem:[%s3747_s25 + $0x18] sm:$0xff]  ;;  %v286_v53 = vld [vmem:[%s3747_s25 + $0x20] sm:$0xff]  ;;  %v287_v54 = vld [vmem:[%s3747_s25 + $0x28] sm:$0xff] }
  0x12   : > { %3513 = vmatprep.subr.bf16.mxu0 %v3512_v21  ;;  %3567 = vmatprep.subr.bf16.mxu1 %v3512_v21  ;;  %v288_v55 = vld [vmem:[%s3747_s25 + $0x30] sm:$0xff]  ;;  %v330_v56 = vld [vmem:[%s3747_s25 + $0x180] sm:$0xff]  ;;  %v289_v57 = vld [vmem:[%s3747_s25 + $0x38] sm:$0xff] }
  0x13   : > { %v331_v58 = vld [vmem:[%s3747_s25 + $0x188] sm:$0xff]  ;;  %v290_v59 = vld [vmem:[%s3747_s25 + $0x40] sm:$0xff]  ;;  %v332_v60 = vld [vmem:[%s3747_s25 + $0x190] sm:$0xff] }
  0x14   : > { %v291_v61 = vld [vmem:[%s3747_s25 + $0x48] sm:$0xff]  ;;  %v333_v62 = vld [vmem:[%s3747_s25 + $0x198] sm:$0xff]  ;;  %v292_v63 = vld [vmem:[%s3747_s25 + $0x50] sm:$0xff] }
  0x15   : > { %3515 = vmatpush1.bf16.msra.mxu0 %v3514_v26  ;;  %3575 = vmatpush1.bf16.msra.mxu1 %v3514_v26  ;;  %v334_v0 = vld [vmem:[%s3747_s25 + $0x1a0] sm:$0xff]  ;;  %v293_v1 = vld [vmem:[%s3747_s25 + $0x58] sm:$0xff]  ;;  %v335_v2 = vld [vmem:[%s3747_s25 + $0x1a8] sm:$0xff] }
  0x16   : > { %3517 = vmatprep.subr.bf16.mxu0 %v3516_v27  ;;  %3568 = vmatprep.subr.bf16.mxu1 %v3516_v27  ;;  %v294_v3 = vld [vmem:[%s3747_s25 + $0x60] sm:$0xff]  ;;  %v336_v4 = vld [vmem:[%s3747_s25 + $0x1b0] sm:$0xff]  ;;  %v295_v5 = vld [vmem:[%s3747_s25 + $0x68] sm:$0xff] }
  0x17   : > { %v337_v6 = vld [vmem:[%s3747_s25 + $0x1b8] sm:$0xff]  ;;  %v296_v8 = vld [vmem:[%s3747_s25 + $0x70] sm:$0xff]  ;;  %v338_v9 = vld [vmem:[%s3747_s25 + $0x1c0] sm:$0xff] }
  0x18   : > { %v1467_v10 = vld [vmem:[%s4178_s2] sm:$0xff]  ;;  %v297_v13 = vld [vmem:[%s3747_s25 + $0x78] sm:$0xff]  ;;  %v339_v14 = vld [vmem:[%s3747_s25 + $0x1c8] sm:$0xff] }
  0x19   : > { %3519 = vmatpush1.bf16.msra.mxu0 %v3518_v32  ;;  %3576 = vmatpush1.bf16.msra.mxu1 %v3518_v32  ;;  %v3532_v12 = vpack.c.bf16 %v1468_v11, %v1467_v10  ;;  %v1469_v15 = vld [vmem:[%s4178_s2 + $0x10] sm:$0xff]  ;;  %v1470_v16 = vld [vmem:[%s4178_s2 + $0x18] sm:$0xff]  ;;  %v1471_v19 = vld [vmem:[%s4178_s2 + $0x20] sm:$0xff] }
  0x1a   : > { %3521 = vmatprep.subr.bf16.mxu0 %v3520_v33  ;;  %3569 = vmatprep.subr.bf16.mxu1 %v3520_v33  ;;  %v3536_v17 = vpack.c.bf16 %v1470_v16, %v1469_v15  ;;  %v340_v18 = vld [vmem:[%s3747_s25 + $0x1d0] sm:$0xff]  ;;  %v1472_v20 = vld [vmem:[%s4178_s2 + $0x28] sm:$0xff]  ;;  %v298_v21 = vld [vmem:[%s3747_s25 + $0x80] sm:$0xff] }
  0x1b   : > { %v3540_v22 = vpack.c.bf16 %v1472_v20, %v1471_v19  ;;  %v1473_v23 = vld [vmem:[%s4178_s2 + $0x30] sm:$0xff]  ;;  %v1474_v24 = vld [vmem:[%s4178_s2 + $0x38] sm:$0xff]  ;;  %v1475_v27 = vld [vmem:[%s4178_s2 + $0x40] sm:$0xff] }
  0x1c   : > { %v3544_v25 = vpack.c.bf16 %v1474_v24, %v1473_v23  ;;  %v341_v26 = vld [vmem:[%s3747_s25 + $0x1d8] sm:$0xff]  ;;  %v1476_v28 = vld [vmem:[%s4178_s2 + $0x48] sm:$0xff]  ;;  %v342_v31 = vld [vmem:[%s3747_s25 + $0x1e0] sm:$0xff] }
  0x1d   : > { %3523 = vmatpush1.bf16.msra.mxu0 %v3522_v38  ;;  %3577 = vmatpush1.bf16.msra.mxu1 %v3522_v38  ;;  %v299_v29 = vld [vmem:[%s3747_s25 + $0x88] sm:$0xff]  ;;  %v3548_v30 = vpack.c.bf16 %v1476_v28, %v1475_v27  ;;  %v1477_v32 = vld [vmem:[%s4178_s2 + $0x50] sm:$0xff]  ;;  %v1478_v33 = vld [vmem:[%s4178_s2 + $0x58] sm:$0xff] }
  0x1e   : > { %3525 = vmatprep.subr.bf16.mxu0 %v3524_v39  ;;  %3570 = vmatprep.subr.bf16.mxu1 %v3524_v39  ;;  %v300_v34 = vld [vmem:[%s3747_s25 + $0x90] sm:$0xff]  ;;  %v3552_v35 = vpack.c.bf16 %v1478_v33, %v1477_v32  ;;  %v343_v36 = vld [vmem:[%s3747_s25 + $0x1e8] sm:$0xff]  ;;  %v1479_v37 = vld [vmem:[%s4178_s2 + $0x60] sm:$0xff] }
  0x1f   : > { %v1480_v38 = vld [vmem:[%s4178_s2 + $0x68] sm:$0xff]  ;;  %v301_v39 = vld [vmem:[%s3747_s25 + $0x98] sm:$0xff]  ;;  %v344_v41 = vld [vmem:[%s3747_s25 + $0x1f0] sm:$0xff] }
  0x20   : > { %v3556_v40 = vpack.c.bf16 %v1480_v38, %v1479_v37  ;;  %v302_v42 = vld [vmem:[%s3747_s25 + $0xa0] sm:$0xff]  ;;  %v303_v43 = vld [vmem:[%s3747_s25 + $0xa8] sm:$0xff]  ;;  %v345_v46 = vld [vmem:[%s3747_s25 + $0x1f8] sm:$0xff] }
  0x21   : > { %3527 = vmatpush1.bf16.msra.mxu0 %v3526_v44  ;;  %3578 = vmatpush1.bf16.msra.mxu1 %v3526_v44  ;;  %v1481_v44 = vld [vmem:[%s4178_s2 + $0x70] sm:$0xff]  ;;  %v329_v10 = vld [vmem:[%s3747_s25 + $0x178] sm:$0xff] }
  0x22   : > { %3529 = vmatprep.subr.bf16.mxu0 %v3528_v45  ;;  %3571 = vmatprep.subr.bf16.mxu1 %v3528_v45  ;;  %v1482_v45 = vld [vmem:[%s4178_s2 + $0x78] sm:$0xff] }
  0x23   : > { %v3560_v47 = vpack.c.bf16 %v1482_v45, %v1481_v44 }
  0x25   : > { %3531 = vmatpush1.bf16.msra.mxu0 %v3530_v48  ;;  %3579 = vmatpush1.bf16.msra.mxu1 %v3530_v48  ;;  %v304_v48 = vld [vmem:[%s3747_s25 + $0xb0] sm:$0xff] }
  0x26   : > { %3533 = vmatprep.subr.bf16.mxu1 %v3532_v12 }
  0x28   : > { %443 = vmatmul.mubr.f32.vlgmr.msra.gmra.mrb[0].mxu0 %v282_v49  ;;  %731 = vmatmul.mubr.f32.vlgmr.msra.gmra.mrb[0].mxu1 %v330_v56  ;;  %v305_v49 = vld [vmem:[%s3747_s25 + $0xb8] sm:$0xff]  ;;  %v312_v56 = vld [vmem:[%s3747_s25 + $0xf0] sm:$0xff] }
  0x29   : > { %448 = vmatprep.mubr.f32.mxu0 %v3597_v7  ;;  %736 = vmatprep.mubr.f32.mxu1 %v3597_v7 }
  0x2a   : > { %3535 = vmatpush3.bf16.msra.mxu1 %v3532_v12 }
  0x2b   : > { %3537 = vmatprep.subr.bf16.mxu1 %v3536_v17 }
  0x2c   : > { %449 = vmatmul.mubr.f32.gmra.mrb[2].mxu0 %v283_v50  ;;  %737 = vmatmul.mubr.f32.gmra.mrb[2].mxu1 %v331_v58  ;;  %v306_v50 = vld [vmem:[%s3747_s25 + $0xc0] sm:$0xff] }
  0x2d   : > { %454 = vmatprep.mubr.f32.mxu0 %v3597_v7  ;;  %742 = vmatprep.mubr.f32.mxu1 %v3597_v7  ;;  %v314_v58 = vld [vmem:[%s3747_s25 + $0x100] sm:$0xff] }
  0x2e   : > { %3539 = vmatpush3.bf16.msra.mxu1 %v3536_v17 }
  0x2f   : > { %3541 = vmatprep.subr.bf16.mxu1 %v3540_v22 }
  0x30   : > { %455 = vmatmul.mubr.f32.gmra.mrb[4].mxu0 %v284_v51  ;;  %743 = vmatmul.mubr.f32.gmra.mrb[4].mxu1 %v332_v60  ;;  %v307_v51 = vld [vmem:[%s3747_s25 + $0xc8] sm:$0xff]  ;;  %v316_v60 = vld [vmem:[%s3747_s25 + $0x110] sm:$0xff] }
  0x31   : > { %460 = vmatprep.mubr.f32.mxu0 %v3597_v7  ;;  %748 = vmatprep.mubr.f32.mxu1 %v3597_v7 }
  0x32   : > { %3543 = vmatpush3.bf16.msra.mxu1 %v3540_v22 }
  0x33   : > { %3545 = vmatprep.subr.bf16.mxu1 %v3544_v25 }
  0x34   : > { %461 = vmatmul.mubr.f32.gmra.mrb[6].mxu0 %v285_v52  ;;  %749 = vmatmul.mubr.f32.gmra.mrb[6].mxu1 %v333_v62  ;;  %v308_v52 = vld [vmem:[%s3747_s25 + $0xd0] sm:$0xff]  ;;  %v318_v62 = vld [vmem:[%s3747_s25 + $0x120] sm:$0xff] }
  0x35   : > { %466 = vmatprep.mubr.f32.mxu0 %v3597_v7  ;;  %754 = vmatprep.mubr.f32.mxu1 %v3597_v7 }
  0x36   : > { %3547 = vmatpush3.bf16.msra.mxu1 %v3544_v25 }
  0x37   : > { %3549 = vmatprep.subr.bf16.mxu1 %v3548_v30 }
  0x38   : > { %467 = vmatmul.mubr.f32.gmra.mrb[8].mxu0 %v286_v53  ;;  %755 = vmatmul.mubr.f32.gmra.mrb[8].mxu1 %v334_v0  ;;  %v309_v53 = vld [vmem:[%s3747_s25 + $0xd8] sm:$0xff]  ;;  %v320_v0 = vld [vmem:[%s3747_s25 + $0x130] sm:$0xff] }
  0x39   : > { %472 = vmatprep.mubr.f32.mxu0 %v3597_v7  ;;  %760 = vmatprep.mubr.f32.mxu1 %v3597_v7 }
  0x3a   : > { %3551 = vmatpush3.bf16.msra.mxu1 %v3548_v30 }
  0x3b   : > { %3553 = vmatprep.subr.bf16.mxu1 %v3552_v35 }
  0x3c   : > { %473 = vmatmul.mubr.f32.gmra.mrb[10].mxu0 %v287_v54  ;;  %761 = vmatmul.mubr.f32.gmra.mrb[10].mxu1 %v335_v2  ;;  %v310_v54 = vld [vmem:[%s3747_s25 + $0xe0] sm:$0xff] }
  0x3d   : > { %478 = vmatprep.mubr.f32.mxu0 %v3597_v7  ;;  %766 = vmatprep.mubr.f32.mxu1 %v3597_v7  ;;  %v322_v2 = vld [vmem:[%s3747_s25 + $0x140] sm:$0xff] }
  0x3e   : > { %3555 = vmatpush3.bf16.msra.mxu1 %v3552_v35 }
  0x3f   : > { %3557 = vmatprep.subr.bf16.mxu1 %v3556_v40 }
  0x40   : > { %479 = vmatmul.mubr.f32.gmra.mrb[12].mxu0 %v288_v55  ;;  %767 = vmatmul.mubr.f32.gmra.mrb[12].mxu1 %v336_v4  ;;  %v311_v55 = vld [vmem:[%s3747_s25 + $0xe8] sm:$0xff]  ;;  %v324_v4 = vld [vmem:[%s3747_s25 + $0x150] sm:$0xff] }
  0x41   : > { %484 = vmatprep.mubr.f32.mxu0 %v3597_v7  ;;  %772 = vmatprep.mubr.f32.mxu1 %v3597_v7 }
  0x42   : > { %3559 = vmatpush3.bf16.msra.mxu1 %v3556_v40 }
  0x43   : > { %3561 = vmatprep.subr.bf16.mxu1 %v3560_v47 }
  0x44   : > { %485 = vmatmul.mubr.f32.gmra.mrb[14].mxu0 %v289_v57  ;;  %773 = vmatmul.mubr.f32.gmra.mrb[14].mxu1 %v337_v6  ;;  %v313_v57 = vld [vmem:[%s3747_s25 + $0xf8] sm:$0xff]  ;;  %v326_v6 = vld [vmem:[%s3747_s25 + $0x160] sm:$0xff] }
  0x45   : > { %490 = vmatprep.mubr.f32.mxu0 %v3597_v7  ;;  %778 = vmatprep.mubr.f32.mxu1 %v3597_v7 }
  0x46   : > { %3563 = vmatpush3.bf16.msra.mxu1 %v3560_v47 }
  0x48   : > { %491 = vmatmul.mubr.f32.gmra.mrb[16].mxu0 %v290_v59  ;;  %779 = vmatmul.mubr.f32.gmra.mrb[16].mxu1 %v338_v9  ;;  %v315_v59 = vld [vmem:[%s3747_s25 + $0x108] sm:$0xff]  ;;  %v328_v9 = vld [vmem:[%s3747_s25 + $0x170] sm:$0xff] }
  0x49   : > { %496 = vmatprep.mubr.f32.mxu0 %v3597_v7  ;;  %784 = vmatprep.mubr.f32.mxu1 %v3597_v7 }
  0x4c   : > { %497 = vmatmul.mubr.f32.gmra.mrb[18].mxu0 %v291_v61  ;;  %785 = vmatmul.mubr.f32.gmra.mrb[18].mxu1 %v339_v14  ;;  %v317_v61 = vld [vmem:[%s3747_s25 + $0x118] sm:$0xff] }
  0x4d   : > { %502 = vmatprep.mubr.f32.mxu0 %v3597_v7  ;;  %790 = vmatprep.mubr.f32.mxu1 %v3597_v7 }
  0x50   : > { %503 = vmatmul.mubr.f32.gmra.mrb[20].mxu0 %v292_v63  ;;  %791 = vmatmul.mubr.f32.gmra.mrb[20].mxu1 %v340_v18  ;;  %v319_v63 = vld [vmem:[%s3747_s25 + $0x128] sm:$0xff] }
  0x51   : > { %508 = vmatprep.mubr.f32.mxu0 %v3597_v7  ;;  %796 = vmatprep.mubr.f32.mxu1 %v3597_v7 }
  0x54   : > { %509 = vmatmul.mubr.f32.gmra.mrb[22].mxu0 %v293_v1  ;;  %797 = vmatmul.mubr.f32.gmra.mrb[22].mxu1 %v341_v26  ;;  %v321_v1 = vld [vmem:[%s3747_s25 + $0x138] sm:$0xff] }
  0x55   : > { %514 = vmatprep.mubr.f32.mxu0 %v3597_v7  ;;  %802 = vmatprep.mubr.f32.mxu1 %v3597_v7 }
  0x58   : > { %515 = vmatmul.mubr.f32.gmra.mrb[24].mxu0 %v294_v3  ;;  %803 = vmatmul.mubr.f32.gmra.mrb[24].mxu1 %v342_v31  ;;  %v323_v3 = vld [vmem:[%s3747_s25 + $0x148] sm:$0xff] }
  0x59   : > { %520 = vmatprep.mubr.f32.mxu0 %v3597_v7  ;;  %808 = vmatprep.mubr.f32.mxu1 %v3597_v7 }
  0x5c   : > { %521 = vmatmul.mubr.f32.gmra.mrb[26].mxu0 %v295_v5  ;;  %809 = vmatmul.mubr.f32.gmra.mrb[26].mxu1 %v343_v36  ;;  %v325_v5 = vld [vmem:[%s3747_s25 + $0x158] sm:$0xff] }
  0x5d   : > { %526 = vmatprep.mubr.f32.mxu0 %v3597_v7  ;;  %814 = vmatprep.mubr.f32.mxu1 %v3597_v7 }
  0x60   : > { %527 = vmatmul.mubr.f32.gmra.mrb[28].mxu0 %v296_v8  ;;  %815 = vmatmul.mubr.f32.gmra.mrb[28].mxu1 %v344_v41  ;;  %v327_v8 = vld [vmem:[%s3747_s25 + $0x168] sm:$0xff]  ;;  %s3936_s25 = scalar_lea.vmem %s4182_s6, %s3924_s12 }
  0x61   : > { %532 = vmatprep.mubr.f32.mxu0 %v3597_v7  ;;  %820 = vmatprep.mubr.f32.mxu1 %v3597_v7 }
  0x64   : > { %533 = vmatmul.mubr.f32.gmra.mrb[30].mxu0 %v297_v13  ;;  %821 = vmatmul.mubr.f32.gmra.mrb[30].mxu1 %v345_v46 }
  0x65   : > { %538 = vmatprep.mubr.f32.mxu0 %v3597_v7 }
  0x68   : > { %539 = vmatmul.mubr.f32.gmra.mrb[32].mxu0 %v298_v21 }
  0x69   : > { %544 = vmatprep.mubr.f32.mxu0 %v3597_v7 }
  0x6c   : > { %545 = vmatmul.mubr.f32.gmra.mrb[34].mxu0 %v299_v29 }
  0x6d   : > { %550 = vmatprep.mubr.f32.mxu0 %v3597_v7 }
  0x70   : > { %551 = vmatmul.mubr.f32.gmra.mrb[36].mxu0 %v300_v34 }
  0x71   : > { %556 = vmatprep.mubr.f32.mxu0 %v3597_v7 }
  0x74   : > { %557 = vmatmul.mubr.f32.gmra.mrb[38].mxu0 %v301_v39 }
  0x75   : > { %562 = vmatprep.mubr.f32.mxu0 %v3597_v7 }
  0x78   : > { %563 = vmatmul.mubr.f32.gmra.mrb[40].mxu0 %v302_v42 }
  0x79   : > { %568 = vmatprep.mubr.f32.mxu0 %v3597_v7 }
  0x7c   : > { %569 = vmatmul.mubr.f32.gmra.mrb[42].mxu0 %v303_v43 }
  0x7d   : > { %574 = vmatprep.mubr.f32.mxu0 %v3597_v7 }
  0x80   : > { %575 = vmatmul.mubr.f32.gmra.mrb[44].mxu0 %v304_v48 }
  0x81   : > { %580 = vmatprep.mubr.f32.mxu0 %v3597_v7 }
  0x84   : > { %581 = vmatmul.mubr.f32.gmra.mrb[46].mxu0 %v305_v49 }
  0x85   : > { %586 = vmatprep.mubr.f32.mxu0 %v3597_v7 }
  0x88   : > { %587 = vmatmul.mubr.f32.gmra.mrb[48].mxu0 %v306_v50 }
  0x89   : > { %592 = vmatprep.mubr.f32.mxu0 %v3597_v7 }
  0x8c   : > { %593 = vmatmul.mubr.f32.gmra.mrb[50].mxu0 %v307_v51 }
  0x8d   : > { %598 = vmatprep.mubr.f32.mxu0 %v3597_v7 }
  0x90   : > { %599 = vmatmul.mubr.f32.gmra.mrb[52].mxu0 %v308_v52 }
  0x91   : > { %604 = vmatprep.mubr.f32.mxu0 %v3597_v7 }
  0x94   : > { %605 = vmatmul.mubr.f32.gmra.mrb[54].mxu0 %v309_v53 }
  0x95   : > { %610 = vmatprep.mubr.f32.mxu0 %v3597_v7 }
  0x98   : > { %611 = vmatmul.mubr.f32.gmra.mrb[56].mxu0 %v310_v54 }
  0x99   : > { %616 = vmatprep.mubr.f32.mxu0 %v3597_v7 }
  0x9c   : > { %617 = vmatmul.mubr.f32.gmra.mrb[58].mxu0 %v311_v55 }
  0x9d   : > { %622 = vmatprep.mubr.f32.mxu0 %v3597_v7 }
  0xa0   : > { %623 = vmatmul.mubr.f32.gmra.mrb[60].mxu0 %v312_v56 }
  0xa1   : > { %628 = vmatprep.mubr.f32.mxu0 %v3597_v7 }
  0xa4   : > { %629 = vmatmul.mubr.f32.gmra.mrb[62].mxu0 %v313_v57 }
  0xa5   : > { %634 = vmatprep.mubr.f32.mxu0 %v3597_v7 }
  0xa8   : > { %635 = vmatmul.mubr.f32.gmra.mrb[64].mxu0 %v314_v58 }
  0xa9   : > { %640 = vmatprep.mubr.f32.mxu0 %v3597_v7 }
  0xac   : > { %641 = vmatmul.mubr.f32.gmra.mrb[66].mxu0 %v315_v59 }
  0xad   : > { %646 = vmatprep.mubr.f32.mxu0 %v3597_v7 }
  0xb0   : > { %647 = vmatmul.mubr.f32.gmra.mrb[68].mxu0 %v316_v60 }
  0xb1   : > { %652 = vmatprep.mubr.f32.mxu0 %v3597_v7 }
  0xb4   : > { %653 = vmatmul.mubr.f32.gmra.mrb[70].mxu0 %v317_v61 }
  0xb5   : > { %658 = vmatprep.mubr.f32.mxu0 %v3597_v7 }
  0xb8   : > { %659 = vmatmul.mubr.f32.gmra.mrb[72].mxu0 %v318_v62 }
  0xb9   : > { %664 = vmatprep.mubr.f32.mxu0 %v3597_v7 }
  0xbc   : > { %665 = vmatmul.mubr.f32.gmra.mrb[74].mxu0 %v319_v63 }
  0xbd   : > { %670 = vmatprep.mubr.f32.mxu0 %v3597_v7 }
  0xc0   : > { %671 = vmatmul.mubr.f32.gmra.mrb[76].mxu0 %v320_v0 }
  0xc1   : > { %676 = vmatprep.mubr.f32.mxu0 %v3597_v7 }
  0xc4   : > { %677 = vmatmul.mubr.f32.gmra.mrb[78].mxu0 %v321_v1 }
  0xc5   : > { %682 = vmatprep.mubr.f32.mxu0 %v3597_v7 }
  0xc8   : > { %683 = vmatmul.mubr.f32.gmra.mrb[80].mxu0 %v322_v2 }
  0xc9   : > { %688 = vmatprep.mubr.f32.mxu0 %v3597_v7 }
  0xcc   : > { %689 = vmatmul.mubr.f32.gmra.mrb[82].mxu0 %v323_v3 }
  0xcd   : > { %694 = vmatprep.mubr.f32.mxu0 %v3597_v7 }
  0xd0   : > { %695 = vmatmul.mubr.f32.gmra.mrb[84].mxu0 %v324_v4 }
  0xd1   : > { %700 = vmatprep.mubr.f32.mxu0 %v3597_v7 }
  0xd4   : > { %701 = vmatmul.mubr.f32.gmra.mrb[86].mxu0 %v325_v5 }
  0xd5   : > { %706 = vmatprep.mubr.f32.mxu0 %v3597_v7 }
  0xd8   : > { %707 = vmatmul.mubr.f32.gmra.mrb[88].mxu0 %v326_v6 }
  0xd9   : > { %712 = vmatprep.mubr.f32.mxu0 %v3597_v7 }
  0xdc   : > { %713 = vmatmul.mubr.f32.gmra.mrb[90].mxu0 %v327_v8 }
  0xdd   : > { %718 = vmatprep.mubr.f32.mxu0 %v3597_v7 }
  0xe0   : > { %719 = vmatmul.mubr.f32.gmra.mrb[92].mxu0 %v328_v9 }
  0xe1   : > { %724 = vmatprep.mubr.f32.mxu0 %v3597_v7 }
  0xe4   : > { %725 = vmatmul.mubr.f32.gmra.mrb[94].mxu0 %v329_v10 }
  0xfb   : > { %v444_v11 = vpop.f32.mrb[0].mxu0  ;;  %v3944_v33 = vpop.f32.mrb[0].mxu1 }
  0xfc   : > { %v446_v12 = vpop.f32.mrb[1].mxu0  ;;  %3404 = vmatprep.mubr.f32.mxu1 %v444_v11  ;;  %v734_v35 = vpop.f32.mrb[1].mxu1 }
  0xff   : > { %v450_v13 = vpop.f32.mrb[2].mxu0  ;;  %v3947_v36 = vpop.f32.mrb[2].mxu1 }
 0x100   : > { %v2882_v14 = vpack.c.bf16 %v450_v13, %v444_v11  ;;  %v452_v7 = vpop.f32.mrb[3].mxu0  ;;  %3405 = vmatmul.mubr.f32.vlgmr.msra.gmra.mrb[32].mxu1 %v450_v13  ;;  %v3002_v38 = vpack.c.bf16 %v3947_v36, %v3944_v33  ;;  %v740_v39 = vpop.f32.mrb[3].mxu1 }
 0x101   : > { %v2722_v15 = vpack.c.bf16 %v452_v7, %v446_v12  ;;  %v2842_v41 = vpack.c.bf16 %v740_v39, %v734_v35 }
 0x102   : > { %2883 = vst [vmem:[%s3930_s15] sm:$0xff] %v2882_v14   ;;  %3253 = vst [vmem:[%s3930_s15 + $0xc0] sm:$0xff] %v3002_v38  }
 0x103   : > { %2723 = vst [vmem:[%s3936_s25] sm:$0xff] %v2722_v15   ;;  %v456_v16 = vpop.f32.mrb[4].mxu0  ;;  %3222 = vst [vmem:[%s3936_s25 + $0xc0] sm:$0xff] %v2842_v41   ;;  %v3954_v45 = vpop.f32.mrb[4].mxu1 }
 0x104   : > { %v458_v17 = vpop.f32.mrb[5].mxu0  ;;  %3407 = vmatprep.mubr.f32.mxu1 %v456_v16  ;;  %v746_v47 = vpop.f32.mrb[5].mxu1 }
 0x107   : > { %v462_v18 = vpop.f32.mrb[6].mxu0  ;;  %v3957_v48 = vpop.f32.mrb[6].mxu1 }
 0x108   : > { %v2887_v19 = vpack.c.bf16 %v462_v18, %v456_v16  ;;  %v464_v20 = vpop.f32.mrb[7].mxu0  ;;  %3408 = vmatmul.mubr.f32.gmra.mrb[34].mxu1 %v462_v18  ;;  %v3007_v50 = vpack.c.bf16 %v3957_v48, %v3954_v45  ;;  %v752_v51 = vpop.f32.mrb[7].mxu1 }
 0x109   : > { %v2727_v21 = vpack.c.bf16 %v464_v20, %v458_v17  ;;  %v2847_v53 = vpack.c.bf16 %v752_v51, %v746_v47 }
 0x10a   : > { %3230 = vst [vmem:[%s3930_s15 + $0x8] sm:$0xff] %v2887_v19   ;;  %3254 = vst [vmem:[%s3930_s15 + $0xc8] sm:$0xff] %v3007_v50  }
 0x10b   : > { %3199 = vst [vmem:[%s3936_s25 + $0x8] sm:$0xff] %v2727_v21   ;;  %v468_v22 = vpop.f32.mrb[8].mxu0  ;;  %3223 = vst [vmem:[%s3936_s25 + $0xc8] sm:$0xff] %v2847_v53   ;;  %v3964_v57 = vpop.f32.mrb[8].mxu1 }
 0x10c   : > { %v470_v23 = vpop.f32.mrb[9].mxu0  ;;  %3410 = vmatprep.mubr.f32.mxu1 %v468_v22  ;;  %v758_v59 = vpop.f32.mrb[9].mxu1 }
 0x10f   : > { %v474_v24 = vpop.f32.mrb[10].mxu0  ;;  %v3967_v60 = vpop.f32.mrb[10].mxu1 }
 0x110   : > { %v2892_v25 = vpack.c.bf16 %v474_v24, %v468_v22  ;;  %v476_v26 = vpop.f32.mrb[11].mxu0  ;;  %3411 = vmatmul.mubr.f32.gmra.mrb[36].mxu1 %v474_v24  ;;  %v3012_v62 = vpack.c.bf16 %v3967_v60, %v3964_v57  ;;  %v764_v63 = vpop.f32.mrb[11].mxu1 }
 0x111   : > { %v2732_v27 = vpack.c.bf16 %v476_v26, %v470_v23  ;;  %v2852_v1 = vpack.c.bf16 %v764_v63, %v758_v59 }
 0x112   : > { %3231 = vst [vmem:[%s3930_s15 + $0x10] sm:$0xff] %v2892_v25   ;;  %3255 = vst [vmem:[%s3930_s15 + $0xd0] sm:$0xff] %v3012_v62  }
 0x113   : > { %3200 = vst [vmem:[%s3936_s25 + $0x10] sm:$0xff] %v2732_v27   ;;  %v480_v28 = vpop.f32.mrb[12].mxu0  ;;  %3224 = vst [vmem:[%s3936_s25 + $0xd0] sm:$0xff] %v2852_v1   ;;  %v3974_v5 = vpop.f32.mrb[12].mxu1 }
 0x114   : > { %v482_v29 = vpop.f32.mrb[13].mxu0  ;;  %3413 = vmatprep.mubr.f32.mxu1 %v480_v28  ;;  %v770_v8 = vpop.f32.mrb[13].mxu1 }
 0x117   : > { %v486_v30 = vpop.f32.mrb[14].mxu0  ;;  %v3977_v9 = vpop.f32.mrb[14].mxu1 }
 0x118   : > { %v2897_v31 = vpack.c.bf16 %v486_v30, %v480_v28  ;;  %v488_v32 = vpop.f32.mrb[15].mxu0  ;;  %3414 = vmatmul.mubr.f32.gmra.mrb[38].mxu1 %v486_v30  ;;  %v3017_v11 = vpack.c.bf16 %v3977_v9, %v3974_v5  ;;  %v776_v12 = vpop.f32.mrb[15].mxu1 }
 0x119   : > { %v2737_v34 = vpack.c.bf16 %v488_v32, %v482_v29  ;;  %v2857_v14 = vpack.c.bf16 %v776_v12, %v770_v8 }
 0x11a   : > { %3232 = vst [vmem:[%s3930_s15 + $0x18] sm:$0xff] %v2897_v31   ;;  %3256 = vst [vmem:[%s3930_s15 + $0xd8] sm:$0xff] %v3017_v11  }
 0x11b   : > { %3201 = vst [vmem:[%s3936_s25 + $0x18] sm:$0xff] %v2737_v34   ;;  %v492_v37 = vpop.f32.mrb[16].mxu0  ;;  %3225 = vst [vmem:[%s3936_s25 + $0xd8] sm:$0xff] %v2857_v14   ;;  %v3984_v17 = vpop.f32.mrb[16].mxu1 }
 0x11c   : > { %v494_v40 = vpop.f32.mrb[17].mxu0  ;;  %3416 = vmatprep.mubr.f32.mxu1 %v492_v37  ;;  %v782_v19 = vpop.f32.mrb[17].mxu1 }
 0x11f   : > { %v498_v42 = vpop.f32.mrb[18].mxu0  ;;  %v3987_v20 = vpop.f32.mrb[18].mxu1 }
 0x120   : > { %v2902_v43 = vpack.c.bf16 %v498_v42, %v492_v37  ;;  %v500_v44 = vpop.f32.mrb[19].mxu0  ;;  %3417 = vmatmul.mubr.f32.gmra.mrb[40].mxu1 %v498_v42  ;;  %v3022_v22 = vpack.c.bf16 %v3987_v20, %v3984_v17  ;;  %v788_v23 = vpop.f32.mrb[19].mxu1 }
 0x121   : > { %v2742_v46 = vpack.c.bf16 %v500_v44, %v494_v40  ;;  %v2862_v25 = vpack.c.bf16 %v788_v23, %v782_v19 }
 0x122   : > { %3233 = vst [vmem:[%s3930_s15 + $0x20] sm:$0xff] %v2902_v43   ;;  %3257 = vst [vmem:[%s3930_s15 + $0xe0] sm:$0xff] %v3022_v22  }
 0x123   : > { %3202 = vst [vmem:[%s3936_s25 + $0x20] sm:$0xff] %v2742_v46   ;;  %v504_v49 = vpop.f32.mrb[20].mxu0  ;;  %v3993_v26 = vpop.f32.mrb[20].mxu1  ;;  %3226 = vst [vmem:[%s3936_s25 + $0xe0] sm:$0xff] %v2862_v25  }
 0x124   : > { %v506_v52 = vpop.f32.mrb[21].mxu0  ;;  %3419 = vmatprep.mubr.f32.mxu1 %v504_v49  ;;  %v794_v30 = vpop.f32.mrb[21].mxu1 }
 0x127   : > { %v510_v54 = vpop.f32.mrb[22].mxu0  ;;  %v3996_v32 = vpop.f32.mrb[22].mxu1 }
 0x128   : > { %v2907_v55 = vpack.c.bf16 %v510_v54, %v504_v49  ;;  %v512_v56 = vpop.f32.mrb[23].mxu0  ;;  %3420 = vmatmul.mubr.f32.gmra.mrb[42].mxu1 %v510_v54  ;;  %v3027_v34 = vpack.c.bf16 %v3996_v32, %v3993_v26  ;;  %v800_v35 = vpop.f32.mrb[23].mxu1 }
 0x129   : > { %v2747_v58 = vpack.c.bf16 %v512_v56, %v506_v52  ;;  %v2867_v38 = vpack.c.bf16 %v800_v35, %v794_v30 }
 0x12a   : > { %3234 = vst [vmem:[%s3930_s15 + $0x28] sm:$0xff] %v2907_v55   ;;  %3258 = vst [vmem:[%s3930_s15 + $0xe8] sm:$0xff] %v3027_v34  }
 0x12b   : > { %3203 = vst [vmem:[%s3936_s25 + $0x28] sm:$0xff] %v2747_v58   ;;  %v516_v61 = vpop.f32.mrb[24].mxu0  ;;  %3227 = vst [vmem:[%s3936_s25 + $0xe8] sm:$0xff] %v2867_v38   ;;  %v4004_v40 = vpop.f32.mrb[24].mxu1 }
 0x12c   : > { %v518_v0 = vpop.f32.mrb[25].mxu0  ;;  %3422 = vmatprep.mubr.f32.mxu1 %v516_v61  ;;  %v806_v44 = vpop.f32.mrb[25].mxu1 }
 0x12f   : > { %v522_v2 = vpop.f32.mrb[26].mxu0  ;;  %v4006_v47 = vpop.f32.mrb[26].mxu1 }
 0x130   : > { %v2912_v3 = vpack.c.bf16 %v522_v2, %v516_v61  ;;  %v524_v4 = vpop.f32.mrb[27].mxu0  ;;  %3423 = vmatmul.mubr.f32.gmra.mrb[44].mxu1 %v522_v2  ;;  %v3032_v49 = vpack.c.bf16 %v4006_v47, %v4004_v40  ;;  %v812_v50 = vpop.f32.mrb[27].mxu1 }
 0x131   : > { %v2752_v6 = vpack.c.bf16 %v524_v4, %v518_v0  ;;  %v2872_v52 = vpack.c.bf16 %v812_v50, %v806_v44 }
 0x132   : > { %3235 = vst [vmem:[%s3930_s15 + $0x30] sm:$0xff] %v2912_v3   ;;  %3259 = vst [vmem:[%s3930_s15 + $0xf0] sm:$0xff] %v3032_v49  }
 0x133   : > { %3204 = vst [vmem:[%s3936_s25 + $0x30] sm:$0xff] %v2752_v6   ;;  %v528_v10 = vpop.f32.mrb[28].mxu0  ;;  %3228 = vst [vmem:[%s3936_s25 + $0xf0] sm:$0xff] %v2872_v52   ;;  %v4014_v54 = vpop.f32.mrb[28].mxu1 }
 0x134   : > { %v530_v13 = vpop.f32.mrb[29].mxu0  ;;  %3425 = vmatprep.mubr.f32.mxu1 %v528_v10  ;;  %v818_v55 = vpop.f32.mrb[29].mxu1 }
 0x137   : > { %v534_v7 = vpop.f32.mrb[30].mxu0  ;;  %v4016_v61 = vpop.f32.mrb[30].mxu1 }
 0x138   : > { %v2917_v15 = vpack.c.bf16 %v534_v7, %v528_v10  ;;  %v536_v16 = vpop.f32.mrb[31].mxu0  ;;  %3426 = vmatmul.mubr.f32.gmra.mrb[46].mxu1 %v534_v7  ;;  %v3037_v63 = vpack.c.bf16 %v4016_v61, %v4014_v54  ;;  %v824_v0 = vpop.f32.mrb[31].mxu1 }
 0x139   : > { %v2757_v18 = vpack.c.bf16 %v536_v16, %v530_v13  ;;  %v2877_v1 = vpack.c.bf16 %v824_v0, %v818_v55 }
 0x13a   : > { %3236 = vst [vmem:[%s3930_s15 + $0x38] sm:$0xff] %v2917_v15   ;;  %3260 = vst [vmem:[%s3930_s15 + $0xf8] sm:$0xff] %v3037_v63  }
 0x13b   : > { %3205 = vst [vmem:[%s3936_s25 + $0x38] sm:$0xff] %v2757_v18   ;;  %v540_v21 = vpop.f32.mrb[32].mxu0  ;;  %3229 = vst [vmem:[%s3936_s25 + $0xf8] sm:$0xff] %v2877_v1  }
 0x13c   : > { %v542_v24 = vpop.f32.mrb[33].mxu0  ;;  %3428 = vmatprep.mubr.f32.mxu1 %v540_v21 }
 0x13f   : > { %v546_v27 = vpop.f32.mrb[34].mxu0 }
 0x140   : > { %v2922_v28 = vpack.c.bf16 %v546_v27, %v540_v21  ;;  %v548_v29 = vpop.f32.mrb[35].mxu0  ;;  %3429 = vmatmul.mubr.f32.gmra.mrb[48].mxu1 %v546_v27 }
 0x141   : > { %v2762_v31 = vpack.c.bf16 %v548_v29, %v542_v24 }
 0x142   : > { %3237 = vst [vmem:[%s3930_s15 + $0x40] sm:$0xff] %v2922_v28  }
 0x143   : > { %3206 = vst [vmem:[%s3936_s25 + $0x40] sm:$0xff] %v2762_v31   ;;  %v552_v37 = vpop.f32.mrb[36].mxu0 }
 0x144   : > { %v554_v39 = vpop.f32.mrb[37].mxu0  ;;  %3431 = vmatprep.mubr.f32.mxu1 %v552_v37 }
 0x147   : > { %v558_v41 = vpop.f32.mrb[38].mxu0 }
 0x148   : > { %v2927_v42 = vpack.c.bf16 %v558_v41, %v552_v37  ;;  %v560_v43 = vpop.f32.mrb[39].mxu0  ;;  %3432 = vmatmul.mubr.f32.gmra.mrb[50].mxu1 %v558_v41 }
 0x149   : > { %v2767_v46 = vpack.c.bf16 %v560_v43, %v554_v39 }
 0x14a   : > { %3238 = vst [vmem:[%s3930_s15 + $0x48] sm:$0xff] %v2927_v42  }
 0x14b   : > { %3207 = vst [vmem:[%s3936_s25 + $0x48] sm:$0xff] %v2767_v46   ;;  %v564_v51 = vpop.f32.mrb[40].mxu0 }
 0x14c   : > { %v566_v53 = vpop.f32.mrb[41].mxu0  ;;  %3434 = vmatprep.mubr.f32.mxu1 %v564_v51 }
 0x14f   : > { %v570_v56 = vpop.f32.mrb[42].mxu0 }
 0x150   : > { %v2932_v58 = vpack.c.bf16 %v570_v56, %v564_v51  ;;  %v572_v59 = vpop.f32.mrb[43].mxu0  ;;  %3435 = vmatmul.mubr.f32.gmra.mrb[52].mxu1 %v570_v56 }
 0x151   : > { %v2772_v62 = vpack.c.bf16 %v572_v59, %v566_v53 }
 0x152   : > { %3239 = vst [vmem:[%s3930_s15 + $0x50] sm:$0xff] %v2932_v58  }
 0x153   : > { %3208 = vst [vmem:[%s3936_s25 + $0x50] sm:$0xff] %v2772_v62   ;;  %v576_v2 = vpop.f32.mrb[44].mxu0 }
 0x154   : > { %v578_v3 = vpop.f32.mrb[45].mxu0  ;;  %3437 = vmatprep.mubr.f32.mxu1 %v576_v2 }
 0x157   : > { %v582_v4 = vpop.f32.mrb[46].mxu0 }
 0x158   : > { %v2937_v6 = vpack.c.bf16 %v582_v4, %v576_v2  ;;  %v584_v8 = vpop.f32.mrb[47].mxu0  ;;  %3438 = vmatmul.mubr.f32.gmra.mrb[54].mxu1 %v582_v4 }
 0x159   : > { %v2777_v10 = vpack.c.bf16 %v584_v8, %v578_v3 }
 0x15a   : > { %3240 = vst [vmem:[%s3930_s15 + $0x58] sm:$0xff] %v2937_v6  }
 0x15b   : > { %3209 = vst [vmem:[%s3936_s25 + $0x58] sm:$0xff] %v2777_v10   ;;  %v588_v11 = vpop.f32.mrb[48].mxu0 }
 0x15c   : > { %v590_v12 = vpop.f32.mrb[49].mxu0  ;;  %3440 = vmatprep.mubr.f32.mxu1 %v588_v11 }
 0x15f   : > { %v594_v13 = vpop.f32.mrb[50].mxu0 }
 0x160   : > { %v2942_v14 = vpack.c.bf16 %v594_v13, %v588_v11  ;;  %v596_v7 = vpop.f32.mrb[51].mxu0  ;;  %3441 = vmatmul.mubr.f32.gmra.mrb[56].mxu1 %v594_v13 }
 0x161   : > { %v2782_v15 = vpack.c.bf16 %v596_v7, %v590_v12 }
 0x162   : > { %3241 = vst [vmem:[%s3930_s15 + $0x60] sm:$0xff] %v2942_v14  }
 0x163   : > { %3210 = vst [vmem:[%s3936_s25 + $0x60] sm:$0xff] %v2782_v15   ;;  %v600_v16 = vpop.f32.mrb[52].mxu0 }
 0x164   : > { %v602_v18 = vpop.f32.mrb[53].mxu0  ;;  %3443 = vmatprep.mubr.f32.mxu1 %v600_v16 }
 0x167   : > { %v606_v19 = vpop.f32.mrb[54].mxu0 }
 0x168   : > { %v2947_v21 = vpack.c.bf16 %v606_v19, %v600_v16  ;;  %v608_v22 = vpop.f32.mrb[55].mxu0  ;;  %3444 = vmatmul.mubr.f32.gmra.mrb[58].mxu1 %v606_v19 }
 0x169   : > { %v2787_v23 = vpack.c.bf16 %v608_v22, %v602_v18 }
 0x16a   : > { %3242 = vst [vmem:[%s3930_s15 + $0x68] sm:$0xff] %v2947_v21  }
 0x16b   : > { %3211 = vst [vmem:[%s3936_s25 + $0x68] sm:$0xff] %v2787_v23   ;;  %v612_v24 = vpop.f32.mrb[56].mxu0 }
 0x16c   : > { %v614_v25 = vpop.f32.mrb[57].mxu0  ;;  %3446 = vmatprep.mubr.f32.mxu1 %v612_v24 }
 0x16f   : > { %v618_v27 = vpop.f32.mrb[58].mxu0 }
 0x170   : > { %v2952_v28 = vpack.c.bf16 %v618_v27, %v612_v24  ;;  %v620_v29 = vpop.f32.mrb[59].mxu0  ;;  %3447 = vmatmul.mubr.f32.gmra.mrb[60].mxu1 %v618_v27 }
 0x171   : > { %v2792_v30 = vpack.c.bf16 %v620_v29, %v614_v25 }
 0x172   : > { %3243 = vst [vmem:[%s3930_s15 + $0x70] sm:$0xff] %v2952_v28  }
 0x173   : > { %3212 = vst [vmem:[%s3936_s25 + $0x70] sm:$0xff] %v2792_v30   ;;  %v624_v31 = vpop.f32.mrb[60].mxu0 }
 0x174   : > { %v626_v34 = vpop.f32.mrb[61].mxu0  ;;  %3449 = vmatprep.mubr.f32.mxu1 %v624_v31 }
 0x177   : > { %v630_v35 = vpop.f32.mrb[62].mxu0 }
 0x178   : > { %v2957_v37 = vpack.c.bf16 %v630_v35, %v624_v31  ;;  %v632_v38 = vpop.f32.mrb[63].mxu0  ;;  %3450 = vmatmul.mubr.f32.gmra.mrb[62].mxu1 %v630_v35 }
 0x179   : > { %v2797_v39 = vpack.c.bf16 %v632_v38, %v626_v34 }
 0x17a   : > { %3244 = vst [vmem:[%s3930_s15 + $0x78] sm:$0xff] %v2957_v37  }
 0x17b   : > { %3213 = vst [vmem:[%s3936_s25 + $0x78] sm:$0xff] %v2797_v39   ;;  %v636_v41 = vpop.f32.mrb[64].mxu0 }
 0x17c   : > { %v638_v42 = vpop.f32.mrb[65].mxu0  ;;  %3452 = vmatprep.mubr.f32.mxu1 %v636_v41 }
 0x17f   : > { %v642_v43 = vpop.f32.mrb[66].mxu0 }
 0x180   : > { %v2962_v44 = vpack.c.bf16 %v642_v43, %v636_v41  ;;  %v644_v46 = vpop.f32.mrb[67].mxu0  ;;  %3453 = vmatmul.mubr.f32.gmra.mrb[64].mxu1 %v642_v43 }
 0x181   : > { %v2802_v49 = vpack.c.bf16 %v644_v46, %v638_v42 }
 0x182   : > { %3245 = vst [vmem:[%s3930_s15 + $0x80] sm:$0xff] %v2962_v44  }
 0x183   : > { %3214 = vst [vmem:[%s3936_s25 + $0x80] sm:$0xff] %v2802_v49   ;;  %v648_v50 = vpop.f32.mrb[68].mxu0 }
 0x184   : > { %v650_v51 = vpop.f32.mrb[69].mxu0  ;;  %3455 = vmatprep.mubr.f32.mxu1 %v648_v50 }
 0x187   : > { %v654_v52 = vpop.f32.mrb[70].mxu0 }
 0x188   : > { %v2967_v53 = vpack.c.bf16 %v654_v52, %v648_v50  ;;  %v656_v55 = vpop.f32.mrb[71].mxu0  ;;  %3456 = vmatmul.mubr.f32.gmra.mrb[66].mxu1 %v654_v52 }
 0x189   : > { %v2807_v56 = vpack.c.bf16 %v656_v55, %v650_v51 }
 0x18a   : > { %3246 = vst [vmem:[%s3930_s15 + $0x88] sm:$0xff] %v2967_v53  }
 0x18b   : > { %3215 = vst [vmem:[%s3936_s25 + $0x88] sm:$0xff] %v2807_v56   ;;  %v660_v58 = vpop.f32.mrb[72].mxu0 }
 0x18c   : > { %v662_v59 = vpop.f32.mrb[73].mxu0  ;;  %3458 = vmatprep.mubr.f32.mxu1 %v660_v58 }
 0x18f   : > { %v666_v62 = vpop.f32.mrb[74].mxu0 }
 0x190   : > { %v2972_v63 = vpack.c.bf16 %v666_v62, %v660_v58  ;;  %v668_v0 = vpop.f32.mrb[75].mxu0  ;;  %3459 = vmatmul.mubr.f32.gmra.mrb[68].mxu1 %v666_v62 }
 0x191   : > { %v2812_v1 = vpack.c.bf16 %v668_v0, %v662_v59 }
 0x192   : > { %3247 = vst [vmem:[%s3930_s15 + $0x90] sm:$0xff] %v2972_v63  }
 0x193   : > { %3216 = vst [vmem:[%s3936_s25 + $0x90] sm:$0xff] %v2812_v1   ;;  %v672_v2 = vpop.f32.mrb[76].mxu0 }
 0x194   : > { %v674_v3 = vpop.f32.mrb[77].mxu0  ;;  %3461 = vmatprep.mubr.f32.mxu1 %v672_v2 }
 0x197   : > { %v678_v4 = vpop.f32.mrb[78].mxu0 }
 0x198   : > { %v2977_v6 = vpack.c.bf16 %v678_v4, %v672_v2  ;;  %v680_v8 = vpop.f32.mrb[79].mxu0  ;;  %3462 = vmatmul.mubr.f32.gmra.mrb[70].mxu1 %v678_v4 }
 0x199   : > { %v2817_v10 = vpack.c.bf16 %v680_v8, %v674_v3 }
 0x19a   : > { %3248 = vst [vmem:[%s3930_s15 + $0x98] sm:$0xff] %v2977_v6  }
 0x19b   : > { %3217 = vst [vmem:[%s3936_s25 + $0x98] sm:$0xff] %v2817_v10   ;;  %v684_v11 = vpop.f32.mrb[80].mxu0 }
 0x19c   : > { %v686_v12 = vpop.f32.mrb[81].mxu0  ;;  %3464 = vmatprep.mubr.f32.mxu1 %v684_v11 }
 0x19f   : > { %v690_v13 = vpop.f32.mrb[82].mxu0 }
 0x1a0   : > { %v2982_v14 = vpack.c.bf16 %v690_v13, %v684_v11  ;;  %v692_v7 = vpop.f32.mrb[83].mxu0  ;;  %3465 = vmatmul.mubr.f32.gmra.mrb[72].mxu1 %v690_v13 }
 0x1a1   : > { %v2822_v15 = vpack.c.bf16 %v692_v7, %v686_v12 }
 0x1a2   : > { %3249 = vst [vmem:[%s3930_s15 + $0xa0] sm:$0xff] %v2982_v14  }
 0x1a3   : > { %3218 = vst [vmem:[%s3936_s25 + $0xa0] sm:$0xff] %v2822_v15   ;;  %v696_v16 = vpop.f32.mrb[84].mxu0 }
 0x1a4   : > { %v698_v18 = vpop.f32.mrb[85].mxu0  ;;  %3467 = vmatprep.mubr.f32.mxu1 %v696_v16 }
 0x1a7   : > { %v702_v19 = vpop.f32.mrb[86].mxu0 }
 0x1a8   : > { %v2987_v21 = vpack.c.bf16 %v702_v19, %v696_v16  ;;  %v704_v22 = vpop.f32.mrb[87].mxu0  ;;  %3468 = vmatmul.mubr.f32.gmra.mrb[74].mxu1 %v702_v19 }
 0x1a9   : > { %v2827_v23 = vpack.c.bf16 %v704_v22, %v698_v18 }
 0x1aa   : > { %3250 = vst [vmem:[%s3930_s15 + $0xa8] sm:$0xff] %v2987_v21  }
 0x1ab   : > { %3219 = vst [vmem:[%s3936_s25 + $0xa8] sm:$0xff] %v2827_v23   ;;  %v708_v24 = vpop.f32.mrb[88].mxu0 }
 0x1ac   : > { %v710_v25 = vpop.f32.mrb[89].mxu0  ;;  %3470 = vmatprep.mubr.f32.mxu1 %v708_v24 }
 0x1af   : > { %v714_v27 = vpop.f32.mrb[90].mxu0 }
 0x1b0   : > { %v2992_v28 = vpack.c.bf16 %v714_v27, %v708_v24  ;;  %v716_v29 = vpop.f32.mrb[91].mxu0  ;;  %3471 = vmatmul.mubr.f32.gmra.mrb[76].mxu1 %v714_v27 }
 0x1b1   : > { %v2832_v30 = vpack.c.bf16 %v716_v29, %v710_v25 }
 0x1b2   : > { %3251 = vst [vmem:[%s3930_s15 + $0xb0] sm:$0xff] %v2992_v28  }
 0x1b3   : > { %3220 = vst [vmem:[%s3936_s25 + $0xb0] sm:$0xff] %v2832_v30   ;;  %v720_v31 = vpop.f32.mrb[92].mxu0 }
 0x1b4   : > { %v722_v34 = vpop.f32.mrb[93].mxu0  ;;  %3473 = vmatprep.mubr.f32.mxu1 %v720_v31 }
 0x1b7   : > { %v726_v35 = vpop.f32.mrb[94].mxu0 }
 0x1b8   : > { %v2997_v37 = vpack.c.bf16 %v726_v35, %v720_v31  ;;  %v728_v38 = vpop.f32.mrb[95].mxu0  ;;  %3474 = vmatmul.mubr.f32.gmra.mrb[78].mxu1 %v726_v35 }
 0x1b9   : > { %v2837_v39 = vpack.c.bf16 %v728_v38, %v722_v34  ;;  %3476 = vmatprep.mubr.f32.mxu1 %v3944_v33  ;;  %v4066_v33 = vld [vmem:[%s4179_s3] ss:$0 sm:$0xff] }
 0x1ba   : > { %3252 = vst [vmem:[%s3930_s15 + $0xb8] sm:$0xff] %v2997_v37  }
 0x1bb   : > { %3221 = vst [vmem:[%s3936_s25 + $0xb8] sm:$0xff] %v2837_v39  }
 0x1bc   : > { %3477 = vmatmul.mubr.f32.gmra.mrb[80].mxu1 %v3947_v36 }
 0x1bd   : > { %3479 = vmatprep.mubr.f32.mxu1 %v3954_v45 }
 0x1c0   : > { %3480 = vmatmul.mubr.f32.gmra.mrb[82].mxu1 %v3957_v48 }
 0x1c1   : > { %3482 = vmatprep.mubr.f32.mxu1 %v3964_v57 }
 0x1c4   : > { %3483 = vmatmul.mubr.f32.gmra.mrb[84].mxu1 %v3967_v60 }
 0x1c5   : > { %3485 = vmatprep.mubr.f32.mxu1 %v3974_v5 }
 0x1c8   : > { %3486 = vmatmul.mubr.f32.gmra.mrb[86].mxu1 %v3977_v9 }
 0x1c9   : > { %3488 = vmatprep.mubr.f32.mxu1 %v3984_v17 }
 0x1cc   : > { %3489 = vmatmul.mubr.f32.gmra.mrb[88].mxu1 %v3987_v20 }
 0x1cd   : > { %3491 = vmatprep.mubr.f32.mxu1 %v3993_v26 }
 0x1d0   : > { %3492 = vmatmul.mubr.f32.gmra.mrb[90].mxu1 %v3996_v32 }
 0x1d1   : > { %3494 = vmatprep.mubr.f32.mxu1 %v4004_v40 }
 0x1d3   : > { %v3406_v36 = vpop.f32.mrb[32].mxu1 }
 0x1d4   : > { %v1562_v45 = vadd.f32 %v3406_v36, %v4066_v33  ;;  %v1556_v48 = vpop.f32.mrb[33].mxu1  ;;  %3495 = vmatmul.mubr.f32.gmra.mrb[92].mxu1 %v4006_v47 }
 0x1d5   : > { %v1557_v57 = vadd.f32 %v4066_v33, %v1556_v48  ;;  %3497 = vmatprep.mubr.f32.mxu1 %v4014_v54 }
 0x1d7   : > { %v3042_v60 = vpack.c.bf16 %v1562_v45, %v1557_v57 }
 0x1d8   : > { %3498 = vmatmul.mubr.f32.gmra.mrb[94].mxu1 %v4016_v61 }
 0x1d9   : > { %3043 = vst [vmem:[%s4076_s24] sm:$0xff] %v3042_v60  }
 0x1db   : > { %v3409_v5 = vpop.f32.mrb[34].mxu1 }
 0x1dc   : > { %v1572_v9 = vadd.f32 %v3409_v5, %v4066_v33  ;;  %v1566_v17 = vpop.f32.mrb[35].mxu1 }
 0x1dd   : > { %v1567_v20 = vadd.f32 %v4066_v33, %v1566_v17 }
 0x1df   : > { %v3047_v26 = vpack.c.bf16 %v1572_v9, %v1567_v20 }
 0x1e1   : > { %3261 = vst [vmem:[%s4076_s24 + $0x8] sm:$0xff] %v3047_v26  }
 0x1e3   : > { %v3412_v32 = vpop.f32.mrb[36].mxu1 }
 0x1e4   : > { %v1582_v40 = vadd.f32 %v3412_v32, %v4066_v33  ;;  %v1576_v47 = vpop.f32.mrb[37].mxu1 }
 0x1e5   : > { %v1577_v54 = vadd.f32 %v4066_v33, %v1576_v47 }
 0x1e7   : > { %v3052_v41 = vpack.c.bf16 %v1582_v40, %v1577_v54 }
 0x1e9   : > { %3262 = vst [vmem:[%s4076_s24 + $0x10] sm:$0xff] %v3052_v41  }
 0x1eb   : > { %v3415_v61 = vpop.f32.mrb[38].mxu1 }
 0x1ec   : > { %v1592_v42 = vadd.f32 %v3415_v61, %v4066_v33  ;;  %v1586_v43 = vpop.f32.mrb[39].mxu1 }
 0x1ed   : > { %v1587_v44 = vadd.f32 %v4066_v33, %v1586_v43 }
 0x1ef   : > { %v3057_v46 = vpack.c.bf16 %v1592_v42, %v1587_v44 }
 0x1f1   : > { %3263 = vst [vmem:[%s4076_s24 + $0x18] sm:$0xff] %v3057_v46  }
 0x1f3   : > { %v3418_v49 = vpop.f32.mrb[40].mxu1 }
 0x1f4   : > { %v1602_v50 = vadd.f32 %v3418_v49, %v4066_v33  ;;  %v1596_v51 = vpop.f32.mrb[41].mxu1 }
 0x1f5   : > { %v1597_v52 = vadd.f32 %v4066_v33, %v1596_v51 }
 0x1f7   : > { %v3062_v53 = vpack.c.bf16 %v1602_v50, %v1597_v52 }
 0x1f9   : > { %3264 = vst [vmem:[%s4076_s24 + $0x20] sm:$0xff] %v3062_v53  }
 0x1fb   : > { %v3421_v55 = vpop.f32.mrb[42].mxu1 }
 0x1fc   : > { %v1612_v56 = vadd.f32 %v3421_v55, %v4066_v33  ;;  %v1606_v58 = vpop.f32.mrb[43].mxu1 }
 0x1fd   : > { %v1607_v59 = vadd.f32 %v4066_v33, %v1606_v58 }
 0x1ff   : > { %v3067_v62 = vpack.c.bf16 %v1612_v56, %v1607_v59 }
 0x201   : > { %3265 = vst [vmem:[%s4076_s24 + $0x28] sm:$0xff] %v3067_v62  }
 0x203   : > { %v3424_v63 = vpop.f32.mrb[44].mxu1 }
 0x204   : > { %v1622_v0 = vadd.f32 %v3424_v63, %v4066_v33  ;;  %v1616_v1 = vpop.f32.mrb[45].mxu1 }
 0x205   : > { %v1617_v2 = vadd.f32 %v4066_v33, %v1616_v1 }
 0x207   : > { %v3072_v3 = vpack.c.bf16 %v1622_v0, %v1617_v2 }
 0x209   : > { %3266 = vst [vmem:[%s4076_s24 + $0x30] sm:$0xff] %v3072_v3  }
 0x20b   : > { %v3427_v4 = vpop.f32.mrb[46].mxu1 }
 0x20c   : > { %v1632_v6 = vadd.f32 %v3427_v4, %v4066_v33  ;;  %v1626_v8 = vpop.f32.mrb[47].mxu1 }
 0x20d   : > { %v1627_v10 = vadd.f32 %v4066_v33, %v1626_v8 }
 0x20f   : > { %v3077_v11 = vpack.c.bf16 %v1632_v6, %v1627_v10 }
 0x211   : > { %3267 = vst [vmem:[%s4076_s24 + $0x38] sm:$0xff] %v3077_v11  }
 0x213   : > { %v3430_v12 = vpop.f32.mrb[48].mxu1 }
 0x214   : > { %v1642_v13 = vadd.f32 %v3430_v12, %v4066_v33  ;;  %v1636_v14 = vpop.f32.mrb[49].mxu1 }
 0x215   : > { %v1637_v7 = vadd.f32 %v4066_v33, %v1636_v14 }
 0x217   : > { %v3082_v15 = vpack.c.bf16 %v1642_v13, %v1637_v7 }
 0x219   : > { %3268 = vst [vmem:[%s4076_s24 + $0x40] sm:$0xff] %v3082_v15  }
 0x21b   : > { %v3433_v16 = vpop.f32.mrb[50].mxu1 }
 0x21c   : > { %v1652_v18 = vadd.f32 %v3433_v16, %v4066_v33  ;;  %v1646_v19 = vpop.f32.mrb[51].mxu1 }
 0x21d   : > { %v1647_v21 = vadd.f32 %v4066_v33, %v1646_v19 }
 0x21f   : > { %v3087_v22 = vpack.c.bf16 %v1652_v18, %v1647_v21 }
 0x221   : > { %3269 = vst [vmem:[%s4076_s24 + $0x48] sm:$0xff] %v3087_v22  }
 0x223   : > { %v3436_v23 = vpop.f32.mrb[52].mxu1 }
 0x224   : > { %v1662_v24 = vadd.f32 %v3436_v23, %v4066_v33  ;;  %v1656_v25 = vpop.f32.mrb[53].mxu1 }
 0x225   : > { %v1657_v27 = vadd.f32 %v4066_v33, %v1656_v25 }
 0x227   : > { %v3092_v28 = vpack.c.bf16 %v1662_v24, %v1657_v27 }
 0x229   : > { %3270 = vst [vmem:[%s4076_s24 + $0x50] sm:$0xff] %v3092_v28  }
 0x22b   : > { %v3439_v29 = vpop.f32.mrb[54].mxu1 }
 0x22c   : > { %v1672_v30 = vadd.f32 %v3439_v29, %v4066_v33  ;;  %v1666_v31 = vpop.f32.mrb[55].mxu1 }
 0x22d   : > { %v1667_v34 = vadd.f32 %v4066_v33, %v1666_v31 }
 0x22f   : > { %v3097_v35 = vpack.c.bf16 %v1672_v30, %v1667_v34 }
 0x231   : > { %3271 = vst [vmem:[%s4076_s24 + $0x58] sm:$0xff] %v3097_v35  }
 0x233   : > { %v3442_v37 = vpop.f32.mrb[56].mxu1 }
 0x234   : > { %v1682_v38 = vadd.f32 %v3442_v37, %v4066_v33  ;;  %v1676_v39 = vpop.f32.mrb[57].mxu1 }
 0x235   : > { %v1677_v36 = vadd.f32 %v4066_v33, %v1676_v39 }
 0x237   : > { %v3102_v45 = vpack.c.bf16 %v1682_v38, %v1677_v36 }
 0x239   : > { %3272 = vst [vmem:[%s4076_s24 + $0x60] sm:$0xff] %v3102_v45  }
 0x23b   : > { %v3445_v48 = vpop.f32.mrb[58].mxu1 }
 0x23c   : > { %v1692_v57 = vadd.f32 %v3445_v48, %v4066_v33  ;;  %v1686_v60 = vpop.f32.mrb[59].mxu1 }
 0x23d   : > { %v1687_v5 = vadd.f32 %v4066_v33, %v1686_v60 }
 0x23f   : > { %v3107_v9 = vpack.c.bf16 %v1692_v57, %v1687_v5 }
 0x241   : > { %3273 = vst [vmem:[%s4076_s24 + $0x68] sm:$0xff] %v3107_v9  }
 0x243   : > { %v3448_v17 = vpop.f32.mrb[60].mxu1 }
 0x244   : > { %v1702_v20 = vadd.f32 %v3448_v17, %v4066_v33  ;;  %v1696_v26 = vpop.f32.mrb[61].mxu1 }
 0x245   : > { %v1697_v32 = vadd.f32 %v4066_v33, %v1696_v26 }
 0x247   : > { %v3112_v40 = vpack.c.bf16 %v1702_v20, %v1697_v32 }
 0x249   : > { %3274 = vst [vmem:[%s4076_s24 + $0x70] sm:$0xff] %v3112_v40  }
 0x24b   : > { %v3451_v47 = vpop.f32.mrb[62].mxu1 }
 0x24c   : > { %v1712_v54 = vadd.f32 %v3451_v47, %v4066_v33  ;;  %v1706_v41 = vpop.f32.mrb[63].mxu1 }
 0x24d   : > { %v1707_v61 = vadd.f32 %v4066_v33, %v1706_v41 }
 0x24f   : > { %v3117_v42 = vpack.c.bf16 %v1712_v54, %v1707_v61 }
 0x251   : > { %3275 = vst [vmem:[%s4076_s24 + $0x78] sm:$0xff] %v3117_v42  }
 0x253   : > { %v3454_v43 = vpop.f32.mrb[64].mxu1 }
 0x254   : > { %v1722_v44 = vadd.f32 %v3454_v43, %v4066_v33  ;;  %v1716_v46 = vpop.f32.mrb[65].mxu1 }
 0x255   : > { %v1717_v49 = vadd.f32 %v4066_v33, %v1716_v46 }
 0x257   : > { %v3122_v50 = vpack.c.bf16 %v1722_v44, %v1717_v49 }
 0x259   : > { %3276 = vst [vmem:[%s4076_s24 + $0x80] sm:$0xff] %v3122_v50  }
 0x25b   : > { %v3457_v51 = vpop.f32.mrb[66].mxu1 }
 0x25c   : > { %v1732_v52 = vadd.f32 %v3457_v51, %v4066_v33  ;;  %v1726_v53 = vpop.f32.mrb[67].mxu1 }
 0x25d   : > { %v1727_v55 = vadd.f32 %v4066_v33, %v1726_v53 }
 0x25f   : > { %v3127_v56 = vpack.c.bf16 %v1732_v52, %v1727_v55 }
 0x261   : > { %3277 = vst [vmem:[%s4076_s24 + $0x88] sm:$0xff] %v3127_v56  }
 0x263   : > { %v3460_v58 = vpop.f32.mrb[68].mxu1 }
 0x264   : > { %v1742_v59 = vadd.f32 %v3460_v58, %v4066_v33  ;;  %v1736_v62 = vpop.f32.mrb[69].mxu1 }
 0x265   : > { %v1737_v63 = vadd.f32 %v4066_v33, %v1736_v62 }
 0x267   : > { %v3132_v0 = vpack.c.bf16 %v1742_v59, %v1737_v63 }
 0x269   : > { %3278 = vst [vmem:[%s4076_s24 + $0x90] sm:$0xff] %v3132_v0  }
 0x26b   : > { %v3463_v1 = vpop.f32.mrb[70].mxu1 }
 0x26c   : > { %v1752_v2 = vadd.f32 %v3463_v1, %v4066_v33  ;;  %v1746_v3 = vpop.f32.mrb[71].mxu1 }
 0x26d   : > { %v1747_v4 = vadd.f32 %v4066_v33, %v1746_v3 }
 0x26f   : > { %v3137_v6 = vpack.c.bf16 %v1752_v2, %v1747_v4 }
 0x271   : > { %3279 = vst [vmem:[%s4076_s24 + $0x98] sm:$0xff] %v3137_v6  }
 0x273   : > { %v3466_v8 = vpop.f32.mrb[72].mxu1 }
 0x274   : > { %v1762_v10 = vadd.f32 %v3466_v8, %v4066_v33  ;;  %v1756_v11 = vpop.f32.mrb[73].mxu1 }
 0x275   : > { %v1757_v12 = vadd.f32 %v4066_v33, %v1756_v11 }
 0x277   : > { %v3142_v13 = vpack.c.bf16 %v1762_v10, %v1757_v12 }
 0x279   : > { %3280 = vst [vmem:[%s4076_s24 + $0xa0] sm:$0xff] %v3142_v13  }
 0x27b   : > { %v3469_v14 = vpop.f32.mrb[74].mxu1 }
 0x27c   : > { %v1772_v7 = vadd.f32 %v3469_v14, %v4066_v33  ;;  %v1766_v15 = vpop.f32.mrb[75].mxu1 }
 0x27d   : > { %v1767_v16 = vadd.f32 %v4066_v33, %v1766_v15 }
 0x27f   : > { %v3147_v18 = vpack.c.bf16 %v1772_v7, %v1767_v16 }
 0x281   : > { %3281 = vst [vmem:[%s4076_s24 + $0xa8] sm:$0xff] %v3147_v18  }
 0x283   : > { %v3472_v19 = vpop.f32.mrb[76].mxu1 }
 0x284   : > { %v1782_v21 = vadd.f32 %v3472_v19, %v4066_v33  ;;  %v1776_v22 = vpop.f32.mrb[77].mxu1 }
 0x285   : > { %v1777_v23 = vadd.f32 %v4066_v33, %v1776_v22 }
 0x287   : > { %v3152_v24 = vpack.c.bf16 %v1782_v21, %v1777_v23 }
 0x289   : > { %3282 = vst [vmem:[%s4076_s24 + $0xb0] sm:$0xff] %v3152_v24  }
 0x28b   : > { %v3475_v25 = vpop.f32.mrb[78].mxu1 }
 0x28c   : > { %v1792_v27 = vadd.f32 %v3475_v25, %v4066_v33  ;;  %v1786_v28 = vpop.f32.mrb[79].mxu1 }
 0x28d   : > { %v1787_v29 = vadd.f32 %v4066_v33, %v1786_v28 }
 0x28f   : > { %v3157_v30 = vpack.c.bf16 %v1792_v27, %v1787_v29  ;;  %v3478_v31 = vpop.f32.mrb[80].mxu1 }
 0x290   : > { %v1802_v34 = vadd.f32 %v3478_v31, %v4066_v33  ;;  %v1796_v35 = vpop.f32.mrb[81].mxu1 }
 0x291   : > { %3283 = vst [vmem:[%s4076_s24 + $0xb8] sm:$0xff] %v3157_v30   ;;  %v1797_v37 = vadd.f32 %v4066_v33, %v1796_v35 }
 0x293   : > { %v3162_v38 = vpack.c.bf16 %v1802_v34, %v1797_v37  ;;  %v3481_v39 = vpop.f32.mrb[82].mxu1 }
 0x294   : > { %v1812_v36 = vadd.f32 %v3481_v39, %v4066_v33  ;;  %v1806_v45 = vpop.f32.mrb[83].mxu1 }
 0x295   : > { %3284 = vst [vmem:[%s4076_s24 + $0xc0] sm:$0xff] %v3162_v38   ;;  %v1807_v48 = vadd.f32 %v4066_v33, %v1806_v45 }
 0x297   : > { %v3167_v57 = vpack.c.bf16 %v1812_v36, %v1807_v48  ;;  %v3484_v60 = vpop.f32.mrb[84].mxu1 }
 0x298   : > { %v1822_v5 = vadd.f32 %v3484_v60, %v4066_v33  ;;  %v1816_v9 = vpop.f32.mrb[85].mxu1 }
 0x299   : > { %3285 = vst [vmem:[%s4076_s24 + $0xc8] sm:$0xff] %v3167_v57   ;;  %v1817_v17 = vadd.f32 %v4066_v33, %v1816_v9 }
 0x29b   : > { %v3172_v20 = vpack.c.bf16 %v1822_v5, %v1817_v17  ;;  %v3487_v26 = vpop.f32.mrb[86].mxu1 }
 0x29c   : > { %v1832_v32 = vadd.f32 %v3487_v26, %v4066_v33  ;;  %v1826_v40 = vpop.f32.mrb[87].mxu1 }
 0x29d   : > { %3286 = vst [vmem:[%s4076_s24 + $0xd0] sm:$0xff] %v3172_v20   ;;  %v1827_v47 = vadd.f32 %v4066_v33, %v1826_v40 }
 0x29f   : > { %v3177_v54 = vpack.c.bf16 %v1832_v32, %v1827_v47  ;;  %v3490_v41 = vpop.f32.mrb[88].mxu1 }
 0x2a0   : > { %v1842_v61 = vadd.f32 %v3490_v41, %v4066_v33  ;;  %v1836_v42 = vpop.f32.mrb[89].mxu1 }
 0x2a1   : > { %3287 = vst [vmem:[%s4076_s24 + $0xd8] sm:$0xff] %v3177_v54   ;;  %v1837_v43 = vadd.f32 %v4066_v33, %v1836_v42 }
 0x2a3   : > { %v3182_v44 = vpack.c.bf16 %v1842_v61, %v1837_v43  ;;  %v3493_v46 = vpop.f32.mrb[90].mxu1 }
 0x2a4   : > { %v1852_v49 = vadd.f32 %v3493_v46, %v4066_v33  ;;  %v1846_v50 = vpop.f32.mrb[91].mxu1 }
 0x2a5   : > { %3288 = vst [vmem:[%s4076_s24 + $0xe0] sm:$0xff] %v3182_v44   ;;  %v1847_v51 = vadd.f32 %v4066_v33, %v1846_v50 }
 0x2a7   : > { %v3187_v52 = vpack.c.bf16 %v1852_v49, %v1847_v51  ;;  %v3496_v53 = vpop.f32.mrb[92].mxu1 }
 0x2a8   : > { %v1862_v55 = vadd.f32 %v3496_v53, %v4066_v33  ;;  %v1856_v56 = vpop.f32.mrb[93].mxu1 }
 0x2a9   : > { %3289 = vst [vmem:[%s4076_s24 + $0xe8] sm:$0xff] %v3187_v52   ;;  %v1857_v58 = vadd.f32 %v4066_v33, %v1856_v56 }
 0x2ab   : > { %v3192_v59 = vpack.c.bf16 %v1862_v55, %v1857_v58  ;;  %v3499_v62 = vpop.f32.mrb[94].mxu1 }
 0x2ac   : > { %v1872_v63 = vadd.f32 %v3499_v62, %v4066_v33  ;;  %v1866_v0 = vpop.f32.mrb[95].mxu1 }
 0x2ad   : > { %3290 = vst [vmem:[%s4076_s24 + $0xf0] sm:$0xff] %v3192_v59   ;;  %v1867_v1 = vadd.f32 %v4066_v33, %v1866_v0 }
 0x2af   : > { %v3197_v2 = vpack.c.bf16 %v1872_v63, %v1867_v1 }
 0x2b1   : > { %3291 = vst [vmem:[%s4076_s24 + $0xf8] sm:$0xff] %v3197_v2  }
 0x2b2 PF: > { %s17_s21 = sadd.s32 1, %s3595_s21  }
 0x2b3   : > { %p14_p4 = scmp.ge.s32.totalorder %s17_s21, 4  }
 0x2b5   :  { %16 = sbr.rel (!%p14_p4) target bundleno = 1 (0x1), region = 90 }

// kernel: gcn_forward.7
= control target key start
LH: loop header
LB: loop body
LE: loop exit
PB: predicated region body
PF: predicated region fallthrough
CT: control target
= control target key end

     0   :  { %s8394_s0 = inlined_call_operand.vmem [shape: bf16[1024,1024], index: 0, kind: input, shape index: {}]   ;;  %s8395_s1 = inlined_call_operand.vmem [shape: bf16[1024,128], index: 1, kind: input, shape index: {}]   ;;  %s8396_s2 = inlined_call_operand.vmem [shape: f32[1,128], index: 2, kind: input, shape index: {}]   ;;  %s8397_s3 = inlined_call_operand.vmem [shape: bf16[1024,128], index: 3, kind: input, shape index: {}]   ;;  %s8398_s4 = inlined_call_operand.vmem [shape: bf16[1024,128], index: 4, kind: input, shape index: {}]   ;;  %s8399_s5 = inlined_call_operand.vmem [shape: f32[128,128], index: 5, kind: input, shape index: {}]   ;;  %s8400_s6 = inlined_call_operand.vmem [shape: f32[1,128], index: 6, kind: input, shape index: {}]   ;;  %s8401_s7 = inlined_call_operand.vmem [shape: f32[128,128], index: 7, kind: input, shape index: {}]   ;;  %s8402_s8 = inlined_call_operand.vmem [shape: f32[1,128], index: 8, kind: input, shape index: {}]   ;;  %s8403_s9 = inlined_call_operand.vmem [shape: f32[1024,128], index: 9, kind: output, shape index: {}]  }
   0x1   :  { %8481 = sst [smem:[#allocation77_spill]] %s8394_s0 }
   0x2   :  { %s6345_s30 = smov 0   ;;  %s6347_s10 = smov 0  }
   0x3   :  { %s6349_s11 = smov 0   ;;  %s6351_s12 = smov 0  }
   0x4   :  { %s6353_s13 = smov 0   ;;  %s6355_s14 = smov 0  }
   0x5   :  { %s6357_s15 = smov 0  }
   0x6 LB: > { %8482 = sst [smem:[#allocation4_spill]] %s6287_s14  ;;  %s28_s16 = sadd.s32 1, %s6283_s13  ;;  %s6291_s15 = sphi %s6357_s15, %s19_s15   ;;  %s6287_s14 = sphi %s6355_s14, %s8797_s14   ;;  %s6283_s13 = sphi %s6353_s13, %s8801_s13   ;;  %s6279_s12 = sphi %s6351_s12, %s8795_s12   ;;  %s6275_s11 = sphi %s6349_s11, %s8800_s11   ;;  %s6271_s10 = sphi %s6347_s10, %s8799_s10   ;;  %s6267_s30 = sphi %s6345_s30, %s8798_s30  }
   0x7   : > { %p29_p0 = scmp.ge.s32.totalorder %s28_s16, 2  ;;  %s31_s17 = sadd.s32 1, %s6287_s14 }
   0x8   : > { %p47_p1 = scmp.ne.s32.totalorder %s6271_s10, %s6267_s30  ;;  %p48_p2 = scmp.eq.s32.totalorder %s6291_s15, 0 }
   0x9   : > { %s8803_s16 = smov (%p29_p0, %s28_s16), 0  ;;  %s8805_s17 = smov (!%p29_p0, %s31_s17), %s6287_s14 }
   0xa   : > { %8483 = sst [smem:[#allocation5_spill]] %s8803_s16  ;;  %p49_p3 = por %p48_p2, %p47_p1 }
   0xb   : > { %p33_p4 = scmp.ge.s32.totalorder %s8805_s17, 2  ;;  %s36_s18 = ssub.s32 %s6283_s13, %s8803_s16 }
   0xc   : > { %s40_s21 = sadd.s32 1, %s6271_s10  ;;  %p4651_p6 = scmp.ge.s32.totalorder %s6291_s15, 4 }
   0xd   : > { %s8807_s17 = smov (%p33_p4, %s8805_s17), 0 }
   0xe   : > { %8484 = sst [smem:[#allocation6_spill]] %s8807_s17  ;;  %s35_s19 = ssub.s32 %s6287_s14, %s8807_s17 }
   0xf   : > { %s37_s20 = sor.u32 %s36_s18, %s35_s19  ;;  %297 = sbr.rel (%p4651_p6) target bundleno = 96 (0x60), region = 36 }
  0x10   : > { %p38_p5 = scmp.eq.s32.totalorder %s37_s20, 0 }
  0x12   : > { %s6396_s22 = scalar_select %p38_p5, %s6271_s10, %s40_s21  }
  0x16   : > { %300 = sbr.rel (!%p49_p3) target bundleno = 96 (0x60), region = 40  ;;  %s302_s23 = sand.u32 (%p49_p3), 1, %s6271_s10  }
  0x17   : > { %s4654_s24 = sshll.u32 (%p49_p3), %s6283_s13, 2  ;;  %s4652_s25 = sshll.u32 (%p49_p3), %s302_s23, 10 }
  0x18   : > { %s4898_s26 = sshll.u32 (%p49_p3), %s6287_s14, 9  ;;  %s8485_s0 = sld [smem:[#allocation77_spill]] (%p49_p3) }
  0x19   : > { %s308_s27 = sadd.s32 (%p49_p3), %s4898_s26, %s4654_s24  ;;  %s6410_s19 = scalar_lea.vmem (%p49_p3), [#allocation3], %s4652_s25 }
  0x1a   : > { %s4656_s28 = sshll.u32 (%p49_p3), %s308_s27, 2 }
  0x1e   : > { %s6405_s18 = scalar_lea.vmem %s8485_s0, %s4656_s28 }
  0x1f   : > { %v323_v0 = vld [vmem:[%s6405_s18] sm:$0xff]  ;;  %v325_v1 = vld [vmem:[%s6405_s18 + $0x8] sm:$0xff] }
  0x20   : > { %v327_v2 = vld [vmem:[%s6405_s18 + $0x20] sm:$0xff]  ;;  %324 = vst [vmem:[%s6410_s19] sm:$0xff] %v323_v0  ;;  %326 = vst [vmem:[%s6410_s19 + $0x8] sm:$0xff] %v325_v1  ;;  %v329_v3 = vld [vmem:[%s6405_s18 + $0x28] sm:$0xff] }
  0x21   : > { %328 = vst [vmem:[%s6410_s19 + $0x10] sm:$0xff] %v327_v2  ;;  %v331_v4 = vld [vmem:[%s6405_s18 + $0x40] sm:$0xff]  ;;  %v333_v5 = vld [vmem:[%s6405_s18 + $0x48] sm:$0xff]  ;;  %330 = vst [vmem:[%s6410_s19 + $0x18] sm:$0xff] %v329_v3 }
  0x22   : > { %332 = vst [vmem:[%s6410_s19 + $0x20] sm:$0xff] %v331_v4  ;;  %334 = vst [vmem:[%s6410_s19 + $0x28] sm:$0xff] %v333_v5  ;;  %v335_v6 = vld [vmem:[%s6405_s18 + $0x60] sm:$0xff]  ;;  %v337_v7 = vld [vmem:[%s6405_s18 + $0x68] sm:$0xff] }
  0x23   : > { %v339_v8 = vld [vmem:[%s6405_s18 + $0x80] sm:$0xff]  ;;  %336 = vst [vmem:[%s6410_s19 + $0x30] sm:$0xff] %v335_v6  ;;  %338 = vst [vmem:[%s6410_s19 + $0x38] sm:$0xff] %v337_v7  ;;  %v341_v9 = vld [vmem:[%s6405_s18 + $0x88] sm:$0xff] }
  0x24   : > { %340 = vst [vmem:[%s6410_s19 + $0x40] sm:$0xff] %v339_v8  ;;  %v343_v10 = vld [vmem:[%s6405_s18 + $0xa0] sm:$0xff]  ;;  %v345_v11 = vld [vmem:[%s6405_s18 + $0xa8] sm:$0xff]  ;;  %342 = vst [vmem:[%s6410_s19 + $0x48] sm:$0xff] %v341_v9 }
  0x25   : > { %344 = vst [vmem:[%s6410_s19 + $0x50] sm:$0xff] %v343_v10  ;;  %346 = vst [vmem:[%s6410_s19 + $0x58] sm:$0xff] %v345_v11  ;;  %v347_v12 = vld [vmem:[%s6405_s18 + $0xc0] sm:$0xff]  ;;  %v349_v13 = vld [vmem:[%s6405_s18 + $0xc8] sm:$0xff] }
  0x26   : > { %v351_v14 = vld [vmem:[%s6405_s18 + $0xe0] sm:$0xff]  ;;  %348 = vst [vmem:[%s6410_s19 + $0x60] sm:$0xff] %v347_v12  ;;  %350 = vst [vmem:[%s6410_s19 + $0x68] sm:$0xff] %v349_v13  ;;  %v353_v15 = vld [vmem:[%s6405_s18 + $0xe8] sm:$0xff] }
  0x27   : > { %352 = vst [vmem:[%s6410_s19 + $0x70] sm:$0xff] %v351_v14  ;;  %v355_v16 = vld [vmem:[%s6405_s18 + $0x100] sm:$0xff]  ;;  %v357_v17 = vld [vmem:[%s6405_s18 + $0x108] sm:$0xff]  ;;  %354 = vst [vmem:[%s6410_s19 + $0x78] sm:$0xff] %v353_v15 }
  0x28   : > { %356 = vst [vmem:[%s6410_s19 + $0x80] sm:$0xff] %v355_v16  ;;  %358 = vst [vmem:[%s6410_s19 + $0x88] sm:$0xff] %v357_v17  ;;  %v359_v18 = vld [vmem:[%s6405_s18 + $0x120] sm:$0xff]  ;;  %v361_v19 = vld [vmem:[%s6405_s18 + $0x128] sm:$0xff] }
  0x29   : > { %v363_v20 = vld [vmem:[%s6405_s18 + $0x140] sm:$0xff]  ;;  %360 = vst [vmem:[%s6410_s19 + $0x90] sm:$0xff] %v359_v18  ;;  %362 = vst [vmem:[%s6410_s19 + $0x98] sm:$0xff] %v361_v19  ;;  %v365_v21 = vld [vmem:[%s6405_s18 + $0x148] sm:$0xff] }
  0x2a   : > { %364 = vst [vmem:[%s6410_s19 + $0xa0] sm:$0xff] %v363_v20  ;;  %v367_v22 = vld [vmem:[%s6405_s18 + $0x160] sm:$0xff]  ;;  %v369_v23 = vld [vmem:[%s6405_s18 + $0x168] sm:$0xff]  ;;  %366 = vst [vmem:[%s6410_s19 + $0xa8] sm:$0xff] %v365_v21 }
  0x2b   : > { %368 = vst [vmem:[%s6410_s19 + $0xb0] sm:$0xff] %v367_v22  ;;  %370 = vst [vmem:[%s6410_s19 + $0xb8] sm:$0xff] %v369_v23  ;;  %v371_v24 = vld [vmem:[%s6405_s18 + $0x180] sm:$0xff]  ;;  %v373_v25 = vld [vmem:[%s6405_s18 + $0x188] sm:$0xff] }
  0x2c   : > { %v375_v26 = vld [vmem:[%s6405_s18 + $0x1a0] sm:$0xff]  ;;  %372 = vst [vmem:[%s6410_s19 + $0xc0] sm:$0xff] %v371_v24  ;;  %374 = vst [vmem:[%s6410_s19 + $0xc8] sm:$0xff] %v373_v25  ;;  %v377_v27 = vld [vmem:[%s6405_s18 + $0x1a8] sm:$0xff] }
  0x2d   : > { %376 = vst [vmem:[%s6410_s19 + $0xd0] sm:$0xff] %v375_v26  ;;  %v379_v28 = vld [vmem:[%s6405_s18 + $0x1c0] sm:$0xff]  ;;  %v381_v29 = vld [vmem:[%s6405_s18 + $0x1c8] sm:$0xff]  ;;  %378 = vst [vmem:[%s6410_s19 + $0xd8] sm:$0xff] %v377_v27 }
  0x2e   : > { %380 = vst [vmem:[%s6410_s19 + $0xe0] sm:$0xff] %v379_v28  ;;  %382 = vst [vmem:[%s6410_s19 + $0xe8] sm:$0xff] %v381_v29  ;;  %v383_v30 = vld [vmem:[%s6405_s18 + $0x1e0] sm:$0xff]  ;;  %v385_v31 = vld [vmem:[%s6405_s18 + $0x1e8] sm:$0xff] }
  0x2f   : > { %v387_v32 = vld [vmem:[%s6405_s18 + $0x200] sm:$0xff]  ;;  %384 = vst [vmem:[%s6410_s19 + $0xf0] sm:$0xff] %v383_v30  ;;  %386 = vst [vmem:[%s6410_s19 + $0xf8] sm:$0xff] %v385_v31  ;;  %v389_v33 = vld [vmem:[%s6405_s18 + $0x208] sm:$0xff] }
  0x30   : > { %388 = vst [vmem:[%s6410_s19 + $0x100] sm:$0xff] %v387_v32  ;;  %v391_v34 = vld [vmem:[%s6405_s18 + $0x220] sm:$0xff]  ;;  %v393_v35 = vld [vmem:[%s6405_s18 + $0x228] sm:$0xff]  ;;  %390 = vst [vmem:[%s6410_s19 + $0x108] sm:$0xff] %v389_v33 }
  0x31   : > { %392 = vst [vmem:[%s6410_s19 + $0x110] sm:$0xff] %v391_v34  ;;  %394 = vst [vmem:[%s6410_s19 + $0x118] sm:$0xff] %v393_v35  ;;  %v395_v36 = vld [vmem:[%s6405_s18 + $0x240] sm:$0xff]  ;;  %v397_v37 = vld [vmem:[%s6405_s18 + $0x248] sm:$0xff] }
  0x32   : > { %v399_v38 = vld [vmem:[%s6405_s18 + $0x260] sm:$0xff]  ;;  %396 = vst [vmem:[%s6410_s19 + $0x120] sm:$0xff] %v395_v36  ;;  %398 = vst [vmem:[%s6410_s19 + $0x128] sm:$0xff] %v397_v37  ;;  %v401_v39 = vld [vmem:[%s6405_s18 + $0x268] sm:$0xff] }
  0x33   : > { %400 = vst [vmem:[%s6410_s19 + $0x130] sm:$0xff] %v399_v38  ;;  %v403_v40 = vld [vmem:[%s6405_s18 + $0x280] sm:$0xff]  ;;  %v405_v41 = vld [vmem:[%s6405_s18 + $0x288] sm:$0xff]  ;;  %402 = vst [vmem:[%s6410_s19 + $0x138] sm:$0xff] %v401_v39 }
  0x34   : > { %404 = vst [vmem:[%s6410_s19 + $0x140] sm:$0xff] %v403_v40  ;;  %406 = vst [vmem:[%s6410_s19 + $0x148] sm:$0xff] %v405_v41  ;;  %v407_v42 = vld [vmem:[%s6405_s18 + $0x2a0] sm:$0xff]  ;;  %v409_v43 = vld [vmem:[%s6405_s18 + $0x2a8] sm:$0xff] }
  0x35   : > { %v411_v44 = vld [vmem:[%s6405_s18 + $0x2c0] sm:$0xff]  ;;  %408 = vst [vmem:[%s6410_s19 + $0x150] sm:$0xff] %v407_v42  ;;  %410 = vst [vmem:[%s6410_s19 + $0x158] sm:$0xff] %v409_v43  ;;  %v413_v45 = vld [vmem:[%s6405_s18 + $0x2c8] sm:$0xff] }
  0x36   : > { %412 = vst [vmem:[%s6410_s19 + $0x160] sm:$0xff] %v411_v44  ;;  %v415_v46 = vld [vmem:[%s6405_s18 + $0x2e0] sm:$0xff]  ;;  %v417_v47 = vld [vmem:[%s6405_s18 + $0x2e8] sm:$0xff]  ;;  %414 = vst [vmem:[%s6410_s19 + $0x168] sm:$0xff] %v413_v45 }
  0x37   : > { %416 = vst [vmem:[%s6410_s19 + $0x170] sm:$0xff] %v415_v46  ;;  %418 = vst [vmem:[%s6410_s19 + $0x178] sm:$0xff] %v417_v47  ;;  %v419_v48 = vld [vmem:[%s6405_s18 + $0x300] sm:$0xff]  ;;  %v421_v49 = vld [vmem:[%s6405_s18 + $0x308] sm:$0xff] }
  0x38   : > { %v423_v50 = vld [vmem:[%s6405_s18 + $0x320] sm:$0xff]  ;;  %420 = vst [vmem:[%s6410_s19 + $0x180] sm:$0xff] %v419_v48  ;;  %422 = vst [vmem:[%s6410_s19 + $0x188] sm:$0xff] %v421_v49  ;;  %v425_v51 = vld [vmem:[%s6405_s18 + $0x328] sm:$0xff] }
  0x39   : > { %424 = vst [vmem:[%s6410_s19 + $0x190] sm:$0xff] %v423_v50  ;;  %v427_v52 = vld [vmem:[%s6405_s18 + $0x340] sm:$0xff]  ;;  %v429_v53 = vld [vmem:[%s6405_s18 + $0x348] sm:$0xff]  ;;  %426 = vst [vmem:[%s6410_s19 + $0x198] sm:$0xff] %v425_v51 }
  0x3a   : > { %428 = vst [vmem:[%s6410_s19 + $0x1a0] sm:$0xff] %v427_v52  ;;  %430 = vst [vmem:[%s6410_s19 + $0x1a8] sm:$0xff] %v429_v53  ;;  %v431_v54 = vld [vmem:[%s6405_s18 + $0x360] sm:$0xff]  ;;  %v433_v55 = vld [vmem:[%s6405_s18 + $0x368] sm:$0xff] }
  0x3b   : > { %v435_v56 = vld [vmem:[%s6405_s18 + $0x380] sm:$0xff]  ;;  %432 = vst [vmem:[%s6410_s19 + $0x1b0] sm:$0xff] %v431_v54  ;;  %434 = vst [vmem:[%s6410_s19 + $0x1b8] sm:$0xff] %v433_v55  ;;  %v437_v57 = vld [vmem:[%s6405_s18 + $0x388] sm:$0xff] }
  0x3c   : > { %436 = vst [vmem:[%s6410_s19 + $0x1c0] sm:$0xff] %v435_v56  ;;  %v439_v58 = vld [vmem:[%s6405_s18 + $0x3a0] sm:$0xff]  ;;  %v441_v59 = vld [vmem:[%s6405_s18 + $0x3a8] sm:$0xff]  ;;  %438 = vst [vmem:[%s6410_s19 + $0x1c8] sm:$0xff] %v437_v57 }
  0x3d   : > { %440 = vst [vmem:[%s6410_s19 + $0x1d0] sm:$0xff] %v439_v58  ;;  %442 = vst [vmem:[%s6410_s19 + $0x1d8] sm:$0xff] %v441_v59  ;;  %v443_v60 = vld [vmem:[%s6405_s18 + $0x3c0] sm:$0xff]  ;;  %v445_v61 = vld [vmem:[%s6405_s18 + $0x3c8] sm:$0xff] }
  0x3e   : > { %v447_v62 = vld [vmem:[%s6405_s18 + $0x3e0] sm:$0xff]  ;;  %444 = vst [vmem:[%s6410_s19 + $0x1e0] sm:$0xff] %v443_v60  ;;  %446 = vst [vmem:[%s6410_s19 + $0x1e8] sm:$0xff] %v445_v61  ;;  %v449_v63 = vld [vmem:[%s6405_s18 + $0x3e8] sm:$0xff] }
  0x3f   : > { %448 = vst [vmem:[%s6410_s19 + $0x1f0] sm:$0xff] %v447_v62  ;;  %v451_v0 = vld [vmem:[%s6405_s18 + $0x400] sm:$0xff]  ;;  %v453_v1 = vld [vmem:[%s6405_s18 + $0x408] sm:$0xff]  ;;  %450 = vst [vmem:[%s6410_s19 + $0x1f8] sm:$0xff] %v449_v63 }
  0x40   : > { %452 = vst [vmem:[%s6410_s19 + $0x200] sm:$0xff] %v451_v0  ;;  %454 = vst [vmem:[%s6410_s19 + $0x208] sm:$0xff] %v453_v1  ;;  %v455_v2 = vld [vmem:[%s6405_s18 + $0x420] sm:$0xff]  ;;  %v457_v3 = vld [vmem:[%s6405_s18 + $0x428] sm:$0xff] }
  0x41   : > { %v459_v4 = vld [vmem:[%s6405_s18 + $0x440] sm:$0xff]  ;;  %456 = vst [vmem:[%s6410_s19 + $0x210] sm:$0xff] %v455_v2  ;;  %458 = vst [vmem:[%s6410_s19 + $0x218] sm:$0xff] %v457_v3  ;;  %v461_v5 = vld [vmem:[%s6405_s18 + $0x448] sm:$0xff] }
  0x42   : > { %460 = vst [vmem:[%s6410_s19 + $0x220] sm:$0xff] %v459_v4  ;;  %v463_v6 = vld [vmem:[%s6405_s18 + $0x460] sm:$0xff]  ;;  %v465_v7 = vld [vmem:[%s6405_s18 + $0x468] sm:$0xff]  ;;  %462 = vst [vmem:[%s6410_s19 + $0x228] sm:$0xff] %v461_v5 }
  0x43   : > { %464 = vst [vmem:[%s6410_s19 + $0x230] sm:$0xff] %v463_v6  ;;  %466 = vst [vmem:[%s6410_s19 + $0x238] sm:$0xff] %v465_v7  ;;  %v467_v8 = vld [vmem:[%s6405_s18 + $0x480] sm:$0xff]  ;;  %v469_v9 = vld [vmem:[%s6405_s18 + $0x488] sm:$0xff] }
  0x44   : > { %v471_v10 = vld [vmem:[%s6405_s18 + $0x4a0] sm:$0xff]  ;;  %468 = vst [vmem:[%s6410_s19 + $0x240] sm:$0xff] %v467_v8  ;;  %470 = vst [vmem:[%s6410_s19 + $0x248] sm:$0xff] %v469_v9  ;;  %v473_v11 = vld [vmem:[%s6405_s18 + $0x4a8] sm:$0xff] }
  0x45   : > { %472 = vst [vmem:[%s6410_s19 + $0x250] sm:$0xff] %v471_v10  ;;  %v475_v12 = vld [vmem:[%s6405_s18 + $0x4c0] sm:$0xff]  ;;  %v477_v13 = vld [vmem:[%s6405_s18 + $0x4c8] sm:$0xff]  ;;  %474 = vst [vmem:[%s6410_s19 + $0x258] sm:$0xff] %v473_v11 }
  0x46   : > { %476 = vst [vmem:[%s6410_s19 + $0x260] sm:$0xff] %v475_v12  ;;  %478 = vst [vmem:[%s6410_s19 + $0x268] sm:$0xff] %v477_v13  ;;  %v479_v14 = vld [vmem:[%s6405_s18 + $0x4e0] sm:$0xff]  ;;  %v481_v15 = vld [vmem:[%s6405_s18 + $0x4e8] sm:$0xff] }
  0x47   : > { %v483_v16 = vld [vmem:[%s6405_s18 + $0x500] sm:$0xff]  ;;  %480 = vst [vmem:[%s6410_s19 + $0x270] sm:$0xff] %v479_v14  ;;  %482 = vst [vmem:[%s6410_s19 + $0x278] sm:$0xff] %v481_v15  ;;  %v485_v17 = vld [vmem:[%s6405_s18 + $0x508] sm:$0xff] }
  0x48   : > { %484 = vst [vmem:[%s6410_s19 + $0x280] sm:$0xff] %v483_v16  ;;  %v487_v18 = vld [vmem:[%s6405_s18 + $0x520] sm:$0xff]  ;;  %v489_v19 = vld [vmem:[%s6405_s18 + $0x528] sm:$0xff]  ;;  %486 = vst [vmem:[%s6410_s19 + $0x288] sm:$0xff] %v485_v17 }
  0x49   : > { %488 = vst [vmem:[%s6410_s19 + $0x290] sm:$0xff] %v487_v18  ;;  %490 = vst [vmem:[%s6410_s19 + $0x298] sm:$0xff] %v489_v19  ;;  %v491_v20 = vld [vmem:[%s6405_s18 + $0x540] sm:$0xff]  ;;  %v493_v21 = vld [vmem:[%s6405_s18 + $0x548] sm:$0xff] }
  0x4a   : > { %v495_v22 = vld [vmem:[%s6405_s18 + $0x560] sm:$0xff]  ;;  %492 = vst [vmem:[%s6410_s19 + $0x2a0] sm:$0xff] %v491_v20  ;;  %494 = vst [vmem:[%s6410_s19 + $0x2a8] sm:$0xff] %v493_v21  ;;  %v497_v23 = vld [vmem:[%s6405_s18 + $0x568] sm:$0xff] }
  0x4b   : > { %496 = vst [vmem:[%s6410_s19 + $0x2b0] sm:$0xff] %v495_v22  ;;  %v499_v24 = vld [vmem:[%s6405_s18 + $0x580] sm:$0xff]  ;;  %v501_v25 = vld [vmem:[%s6405_s18 + $0x588] sm:$0xff]  ;;  %498 = vst [vmem:[%s6410_s19 + $0x2b8] sm:$0xff] %v497_v23 }
  0x4c   : > { %500 = vst [vmem:[%s6410_s19 + $0x2c0] sm:$0xff] %v499_v24  ;;  %502 = vst [vmem:[%s6410_s19 + $0x2c8] sm:$0xff] %v501_v25  ;;  %v503_v26 = vld [vmem:[%s6405_s18 + $0x5a0] sm:$0xff]  ;;  %v505_v27 = vld [vmem:[%s6405_s18 + $0x5a8] sm:$0xff] }
  0x4d   : > { %v507_v28 = vld [vmem:[%s6405_s18 + $0x5c0] sm:$0xff]  ;;  %504 = vst [vmem:[%s6410_s19 + $0x2d0] sm:$0xff] %v503_v26  ;;  %506 = vst [vmem:[%s6410_s19 + $0x2d8] sm:$0xff] %v505_v27  ;;  %v509_v29 = vld [vmem:[%s6405_s18 + $0x5c8] sm:$0xff] }
  0x4e   : > { %508 = vst [vmem:[%s6410_s19 + $0x2e0] sm:$0xff] %v507_v28  ;;  %v511_v30 = vld [vmem:[%s6405_s18 + $0x5e0] sm:$0xff]  ;;  %v513_v31 = vld [vmem:[%s6405_s18 + $0x5e8] sm:$0xff]  ;;  %510 = vst [vmem:[%s6410_s19 + $0x2e8] sm:$0xff] %v509_v29 }
  0x4f   : > { %512 = vst [vmem:[%s6410_s19 + $0x2f0] sm:$0xff] %v511_v30  ;;  %514 = vst [vmem:[%s6410_s19 + $0x2f8] sm:$0xff] %v513_v31  ;;  %v515_v32 = vld [vmem:[%s6405_s18 + $0x600] sm:$0xff]  ;;  %v517_v33 = vld [vmem:[%s6405_s18 + $0x608] sm:$0xff] }
  0x50   : > { %v519_v34 = vld [vmem:[%s6405_s18 + $0x620] sm:$0xff]  ;;  %516 = vst [vmem:[%s6410_s19 + $0x300] sm:$0xff] %v515_v32  ;;  %518 = vst [vmem:[%s6410_s19 + $0x308] sm:$0xff] %v517_v33  ;;  %v521_v35 = vld [vmem:[%s6405_s18 + $0x628] sm:$0xff] }
  0x51   : > { %520 = vst [vmem:[%s6410_s19 + $0x310] sm:$0xff] %v519_v34  ;;  %v523_v36 = vld [vmem:[%s6405_s18 + $0x640] sm:$0xff]  ;;  %v525_v37 = vld [vmem:[%s6405_s18 + $0x648] sm:$0xff]  ;;  %522 = vst [vmem:[%s6410_s19 + $0x318] sm:$0xff] %v521_v35 }
  0x52   : > { %524 = vst [vmem:[%s6410_s19 + $0x320] sm:$0xff] %v523_v36  ;;  %526 = vst [vmem:[%s6410_s19 + $0x328] sm:$0xff] %v525_v37  ;;  %v527_v38 = vld [vmem:[%s6405_s18 + $0x660] sm:$0xff]  ;;  %v529_v39 = vld [vmem:[%s6405_s18 + $0x668] sm:$0xff] }
  0x53   : > { %v531_v40 = vld [vmem:[%s6405_s18 + $0x680] sm:$0xff]  ;;  %528 = vst [vmem:[%s6410_s19 + $0x330] sm:$0xff] %v527_v38  ;;  %530 = vst [vmem:[%s6410_s19 + $0x338] sm:$0xff] %v529_v39  ;;  %v533_v41 = vld [vmem:[%s6405_s18 + $0x688] sm:$0xff] }
  0x54   : > { %532 = vst [vmem:[%s6410_s19 + $0x340] sm:$0xff] %v531_v40  ;;  %v535_v42 = vld [vmem:[%s6405_s18 + $0x6a0] sm:$0xff]  ;;  %v537_v43 = vld [vmem:[%s6405_s18 + $0x6a8] sm:$0xff]  ;;  %534 = vst [vmem:[%s6410_s19 + $0x348] sm:$0xff] %v533_v41 }
  0x55   : > { %536 = vst [vmem:[%s6410_s19 + $0x350] sm:$0xff] %v535_v42  ;;  %538 = vst [vmem:[%s6410_s19 + $0x358] sm:$0xff] %v537_v43  ;;  %v539_v44 = vld [vmem:[%s6405_s18 + $0x6c0] sm:$0xff]  ;;  %v541_v45 = vld [vmem:[%s6405_s18 + $0x6c8] sm:$0xff] }
  0x56   : > { %v543_v46 = vld [vmem:[%s6405_s18 + $0x6e0] sm:$0xff]  ;;  %540 = vst [vmem:[%s6410_s19 + $0x360] sm:$0xff] %v539_v44  ;;  %542 = vst [vmem:[%s6410_s19 + $0x368] sm:$0xff] %v541_v45  ;;  %v545_v47 = vld [vmem:[%s6405_s18 + $0x6e8] sm:$0xff] }
  0x57   : > { %544 = vst [vmem:[%s6410_s19 + $0x370] sm:$0xff] %v543_v46  ;;  %v547_v48 = vld [vmem:[%s6405_s18 + $0x700] sm:$0xff]  ;;  %v549_v49 = vld [vmem:[%s6405_s18 + $0x708] sm:$0xff]  ;;  %546 = vst [vmem:[%s6410_s19 + $0x378] sm:$0xff] %v545_v47 }
  0x58   : > { %548 = vst [vmem:[%s6410_s19 + $0x380] sm:$0xff] %v547_v48  ;;  %550 = vst [vmem:[%s6410_s19 + $0x388] sm:$0xff] %v549_v49  ;;  %v551_v50 = vld [vmem:[%s6405_s18 + $0x720] sm:$0xff]  ;;  %v553_v51 = vld [vmem:[%s6405_s18 + $0x728] sm:$0xff] }
  0x59   : > { %v555_v52 = vld [vmem:[%s6405_s18 + $0x740] sm:$0xff]  ;;  %552 = vst [vmem:[%s6410_s19 + $0x390] sm:$0xff] %v551_v50  ;;  %554 = vst [vmem:[%s6410_s19 + $0x398] sm:$0xff] %v553_v51  ;;  %v557_v53 = vld [vmem:[%s6405_s18 + $0x748] sm:$0xff] }
  0x5a   : > { %556 = vst [vmem:[%s6410_s19 + $0x3a0] sm:$0xff] %v555_v52  ;;  %v559_v54 = vld [vmem:[%s6405_s18 + $0x760] sm:$0xff]  ;;  %v561_v55 = vld [vmem:[%s6405_s18 + $0x768] sm:$0xff]  ;;  %558 = vst [vmem:[%s6410_s19 + $0x3a8] sm:$0xff] %v557_v53 }
  0x5b   : > { %560 = vst [vmem:[%s6410_s19 + $0x3b0] sm:$0xff] %v559_v54  ;;  %562 = vst [vmem:[%s6410_s19 + $0x3b8] sm:$0xff] %v561_v55  ;;  %v563_v56 = vld [vmem:[%s6405_s18 + $0x780] sm:$0xff]  ;;  %v565_v57 = vld [vmem:[%s6405_s18 + $0x788] sm:$0xff] }
  0x5c   : > { %v567_v58 = vld [vmem:[%s6405_s18 + $0x7a0] sm:$0xff]  ;;  %564 = vst [vmem:[%s6410_s19 + $0x3c0] sm:$0xff] %v563_v56  ;;  %566 = vst [vmem:[%s6410_s19 + $0x3c8] sm:$0xff] %v565_v57  ;;  %v569_v59 = vld [vmem:[%s6405_s18 + $0x7a8] sm:$0xff] }
  0x5d   : > { %568 = vst [vmem:[%s6410_s19 + $0x3d0] sm:$0xff] %v567_v58  ;;  %v571_v60 = vld [vmem:[%s6405_s18 + $0x7c0] sm:$0xff]  ;;  %v573_v61 = vld [vmem:[%s6405_s18 + $0x7c8] sm:$0xff]  ;;  %570 = vst [vmem:[%s6410_s19 + $0x3d8] sm:$0xff] %v569_v59 }
  0x5e   : > { %572 = vst [vmem:[%s6410_s19 + $0x3e0] sm:$0xff] %v571_v60  ;;  %574 = vst [vmem:[%s6410_s19 + $0x3e8] sm:$0xff] %v573_v61  ;;  %v575_v62 = vld [vmem:[%s6405_s18 + $0x7e0] sm:$0xff]  ;;  %v577_v63 = vld [vmem:[%s6405_s18 + $0x7e8] sm:$0xff] }
  0x5f   : > { %576 = vst [vmem:[%s6410_s19 + $0x3f0] sm:$0xff] %v575_v62  ;;  %578 = vst [vmem:[%s6410_s19 + $0x3f8] sm:$0xff] %v577_v63 }
  0x60 PF: > { %p4657_p7 = scmp.ge.s32.totalorder %s6291_s15, 1  ;;  %p610_p8 = scmp.lt.s32.totalorder %s6291_s15, 5 }
  0x62   : > { %p611_p9 = pnand %p4657_p7, %p610_p8 }
  0x63   : > { %s617_s17 = sand.u32 (!%p611_p9), 1, %s6267_s30   ;;  %s4659_s20 = sshll.u32 (!%p611_p9), %s6275_s11, 6 }
  0x64   : > { %614 = sbr.rel (%p611_p9) target bundleno = 1325 (0x52d), region = 75  ;;  %s4658_s21 = sshll.u32 (!%p611_p9), %s617_s17, 10 }
  0x65   : > { %p670_p10 = scmp.lt.s32.totalorder (!%p611_p9), %s4659_s20, 127  ;;  %s4661_s23 = sshll.u32 (!%p611_p9), %s6279_s12, 6 }
  0x66   : > { %p676_p11 = scmp.lt.s32.totalorder (!%p611_p9), %s4661_s23, 127  ;;  %p4667_p12 = scmp.ne.s32.totalorder (!%p611_p9), %s6275_s11, 0 }
  0x6b   : > { %s8809_s20 = smov (!%p670_p10, %s4659_s20), 127  ;;  %s8811_s23 = smov (!%p676_p11, %s4661_s23), 127 }
  0x6c   : > { %s4660_s24 = sshll.u32 %s8809_s20, 2  ;;  %s4662_s28 = sshll.u32 %s8811_s23, 2  ;;  %v6293_v0 = vmov (!%p4667_p12), 0.0  }
  0x6d   : > { %s6673_s27 = scalar_lea.vmem %s8395_s1, %s4660_s24  ;;  %s4666_s29 = sshll.u32 %s8811_s23, 3  ;;  %698 = vst [vmem:[#allocation2] sm:$0xff] (!%p4667_p12), %v6293_v0  ;;  %699 = vst [vmem:[#allocation2 + $0x8] sm:$0xff] (!%p4667_p12), %v6293_v0 }
  0x6e   : > { %s6678_s0 = scalar_lea.vmem %s8397_s3, %s4662_s28  ;;  %s6683_s12 = scalar_lea.vmem %s8398_s4, %s4662_s28  ;;  %700 = vst [vmem:[#allocation2 + $0x10] sm:$0xff] (!%p4667_p12), %v6293_v0  ;;  %701 = vst [vmem:[#allocation2 + $0x18] sm:$0xff] (!%p4667_p12), %v6293_v0 }
  0x6f   : > { %s6688_s14 = scalar_lea.vmem %s8403_s9, %s4666_s29  ;;  %s6690_s24 = scalar_lea.vmem [#allocation3], %s4658_s21  ;;  %702 = vst [vmem:[#allocation2 + $0x20] sm:$0xff] (!%p4667_p12), %v6293_v0  ;;  %703 = vst [vmem:[#allocation2 + $0x28] sm:$0xff] (!%p4667_p12), %v6293_v0 }
  0x70   : > { %697 = sbr.rel (%p4667_p12) target bundleno = 141 (0x8d), region = 83  ;;  %704 = vst [vmem:[#allocation2 + $0x30] sm:$0xff] (!%p4667_p12), %v6293_v0  ;;  %705 = vst [vmem:[#allocation2 + $0x38] sm:$0xff] (!%p4667_p12), %v6293_v0 }
  0x71   : > { %706 = vst [vmem:[#allocation2 + $0x40] sm:$0xff] (!%p4667_p12), %v6293_v0  ;;  %707 = vst [vmem:[#allocation2 + $0x48] sm:$0xff] (!%p4667_p12), %v6293_v0 }
  0x72   : > { %708 = vst [vmem:[#allocation2 + $0x50] sm:$0xff] (!%p4667_p12), %v6293_v0  ;;  %709 = vst [vmem:[#allocation2 + $0x58] sm:$0xff] (!%p4667_p12), %v6293_v0 }
  0x73   : > { %710 = vst [vmem:[#allocation2 + $0x60] sm:$0xff] (!%p4667_p12), %v6293_v0  ;;  %711 = vst [vmem:[#allocation2 + $0x68] sm:$0xff] (!%p4667_p12), %v6293_v0 }
  0x74   : > { %712 = vst [vmem:[#allocation2 + $0x70] sm:$0xff] (!%p4667_p12), %v6293_v0  ;;  %713 = vst [vmem:[#allocation2 + $0x78] sm:$0xff] (!%p4667_p12), %v6293_v0 }
  0x75   : > { %714 = vst [vmem:[#allocation2 + $0x80] sm:$0xff] (!%p4667_p12), %v6293_v0  ;;  %715 = vst [vmem:[#allocation2 + $0x88] sm:$0xff] (!%p4667_p12), %v6293_v0 }
  0x76   : > { %716 = vst [vmem:[#allocation2 + $0x90] sm:$0xff] (!%p4667_p12), %v6293_v0  ;;  %717 = vst [vmem:[#allocation2 + $0x98] sm:$0xff] (!%p4667_p12), %v6293_v0 }
  0x77   : > { %718 = vst [vmem:[#allocation2 + $0xa0] sm:$0xff] %v6293_v0  ;;  %719 = vst [vmem:[#allocation2 + $0xa8] sm:$0xff] %v6293_v0 }
  0x78   : > { %720 = vst [vmem:[#allocation2 + $0xb0] sm:$0xff] %v6293_v0  ;;  %721 = vst [vmem:[#allocation2 + $0xb8] sm:$0xff] %v6293_v0 }
  0x79   : > { %722 = vst [vmem:[#allocation2 + $0xc0] sm:$0xff] %v6293_v0  ;;  %723 = vst [vmem:[#allocation2 + $0xc8] sm:$0xff] %v6293_v0 }
  0x7a   : > { %724 = vst [vmem:[#allocation2 + $0xd0] sm:$0xff] %v6293_v0  ;;  %725 = vst [vmem:[#allocation2 + $0xd8] sm:$0xff] %v6293_v0 }
  0x7b   : > { %726 = vst [vmem:[#allocation2 + $0xe0] sm:$0xff] %v6293_v0  ;;  %727 = vst [vmem:[#allocation2 + $0xe8] sm:$0xff] %v6293_v0 }
  0x7c   : > { %728 = vst [vmem:[#allocation2 + $0xf0] sm:$0xff] %v6293_v0  ;;  %729 = vst [vmem:[#allocation2 + $0xf8] sm:$0xff] %v6293_v0 }
  0x7d   : > { %730 = vst [vmem:[#allocation2 + $0x100] sm:$0xff] %v6293_v0  ;;  %731 = vst [vmem:[#allocation2 + $0x108] sm:$0xff] %v6293_v0 }
  0x7e   : > { %732 = vst [vmem:[#allocation2 + $0x110] sm:$0xff] %v6293_v0  ;;  %733 = vst [vmem:[#allocation2 + $0x118] sm:$0xff] %v6293_v0 }
  0x7f   : > { %734 = vst [vmem:[#allocation2 + $0x120] sm:$0xff] %v6293_v0  ;;  %735 = vst [vmem:[#allocation2 + $0x128] sm:$0xff] %v6293_v0 }
  0x80   : > { %736 = vst [vmem:[#allocation2 + $0x130] sm:$0xff] %v6293_v0  ;;  %737 = vst [vmem:[#allocation2 + $0x138] sm:$0xff] %v6293_v0 }
  0x81   : > { %738 = vst [vmem:[#allocation2 + $0x140] sm:$0xff] %v6293_v0  ;;  %739 = vst [vmem:[#allocation2 + $0x148] sm:$0xff] %v6293_v0 }
  0x82   : > { %740 = vst [vmem:[#allocation2 + $0x150] sm:$0xff] %v6293_v0  ;;  %741 = vst [vmem:[#allocation2 + $0x158] sm:$0xff] %v6293_v0 }
  0x83   : > { %742 = vst [vmem:[#allocation2 + $0x160] sm:$0xff] %v6293_v0  ;;  %743 = vst [vmem:[#allocation2 + $0x168] sm:$0xff] %v6293_v0 }
  0x84   : > { %744 = vst [vmem:[#allocation2 + $0x170] sm:$0xff] %v6293_v0  ;;  %745 = vst [vmem:[#allocation2 + $0x178] sm:$0xff] %v6293_v0 }
  0x85   : > { %746 = vst [vmem:[#allocation2 + $0x180] sm:$0xff] %v6293_v0  ;;  %747 = vst [vmem:[#allocation2 + $0x188] sm:$0xff] %v6293_v0 }
  0x86   : > { %748 = vst [vmem:[#allocation2 + $0x190] sm:$0xff] %v6293_v0  ;;  %749 = vst [vmem:[#allocation2 + $0x198] sm:$0xff] %v6293_v0 }
  0x87   : > { %750 = vst [vmem:[#allocation2 + $0x1a0] sm:$0xff] %v6293_v0  ;;  %751 = vst [vmem:[#allocation2 + $0x1a8] sm:$0xff] %v6293_v0 }
  0x88   : > { %752 = vst [vmem:[#allocation2 + $0x1b0] sm:$0xff] %v6293_v0  ;;  %753 = vst [vmem:[#allocation2 + $0x1b8] sm:$0xff] %v6293_v0 }
  0x89   : > { %754 = vst [vmem:[#allocation2 + $0x1c0] sm:$0xff] %v6293_v0  ;;  %755 = vst [vmem:[#allocation2 + $0x1c8] sm:$0xff] %v6293_v0 }
  0x8a   : > { %756 = vst [vmem:[#allocation2 + $0x1d0] sm:$0xff] %v6293_v0  ;;  %757 = vst [vmem:[#allocation2 + $0x1d8] sm:$0xff] %v6293_v0 }
  0x8b   : > { %758 = vst [vmem:[#allocation2 + $0x1e0] sm:$0xff] %v6293_v0  ;;  %759 = vst [vmem:[#allocation2 + $0x1e8] sm:$0xff] %v6293_v0 }
  0x8c   : > { %760 = vst [vmem:[#allocation2 + $0x1f0] sm:$0xff] %v6293_v0  ;;  %761 = vst [vmem:[#allocation2 + $0x1f8] sm:$0xff] %v6293_v0 }
  0x8d PF: > { %v5755_v1 = vld [vmem:[%s6673_s27] sm:$0xff]   ;;  %v6294_v2 = vmov 0   ;;  %v5757_v4 = vld [vmem:[%s6673_s27 + $0x8] sm:$0xff]   ;;  %v5759_v6 = vld [vmem:[%s6673_s27 + $0x10] sm:$0xff]   ;;  %p4828_p13 = scmp.ne.s32.totalorder %s6275_s11, 1 }
  0x8e   : > { %1850 = vmatprep.subr.bf16.mxu0 %v6294_v2  ;;  %2139 = vmatprep.subr.bf16.mxu1 %v6294_v2  ;;  %v5756_v3 = vld [vmem:[%s6673_s27 + $0x80] sm:$0xff]   ;;  %v5758_v5 = vld [vmem:[%s6673_s27 + $0x88] sm:$0xff]   ;;  %v5760_v7 = vld [vmem:[%s6673_s27 + $0x90] sm:$0xff]  }
  0x8f   : > { %1851 = vmatpush1.bf16.msra.mxu0 %v5755_v1  ;;  %2140 = vmatpush1.bf16.msra.mxu1 %v5756_v3  ;;  %v5761_v8 = vld [vmem:[%s6673_s27 + $0x18] sm:$0xff]   ;;  %v5763_v10 = vld [vmem:[%s6673_s27 + $0x20] sm:$0xff]   ;;  %v5765_v12 = vld [vmem:[%s6673_s27 + $0x28] sm:$0xff]  }
  0x90   : > { %1852 = vmatprep.subr.bf16.mxu0 %v6294_v2  ;;  %2141 = vmatprep.subr.bf16.mxu1 %v6294_v2  ;;  %v5762_v9 = vld [vmem:[%s6673_s27 + $0x98] sm:$0xff]   ;;  %v5764_v11 = vld [vmem:[%s6673_s27 + $0xa0] sm:$0xff]   ;;  %v5766_v13 = vld [vmem:[%s6673_s27 + $0xa8] sm:$0xff]  }
  0x91   : > { %v5767_v14 = vld [vmem:[%s6673_s27 + $0x30] sm:$0xff]   ;;  %v5769_v16 = vld [vmem:[%s6673_s27 + $0x38] sm:$0xff]   ;;  %v5771_v18 = vld [vmem:[%s6673_s27 + $0x40] sm:$0xff]  }
  0x92   : > { %v5768_v15 = vld [vmem:[%s6673_s27 + $0xb0] sm:$0xff]   ;;  %v5770_v17 = vld [vmem:[%s6673_s27 + $0xb8] sm:$0xff]   ;;  %v5772_v19 = vld [vmem:[%s6673_s27 + $0xc0] sm:$0xff]  }
  0x93   : > { %1853 = vmatpush1.bf16.msra.mxu0 %v5757_v4  ;;  %2142 = vmatpush1.bf16.msra.mxu1 %v5758_v5  ;;  %v5789_v20 = vld [vmem:[%s6690_s24 + $0x4] ss:$16 sps:$4 sm:$0xff]   ;;  %v5773_v21 = vld [vmem:[%s6673_s27 + $0x48] sm:$0xff]   ;;  %v5777_v26 = vld [vmem:[%s6673_s27 + $0x58] sm:$0xff]  }
  0x94   : > { %1854 = vmatprep.subr.bf16.mxu0 %v6294_v2  ;;  %2143 = vmatprep.subr.bf16.mxu1 %v6294_v2  ;;  %v5792_v22 = vld [vmem:[%s6690_s24 + $0xc] ss:$16 sps:$4 sm:$0xff]   ;;  %v5775_v24 = vld [vmem:[%s6673_s27 + $0x50] sm:$0xff]   ;;  %v5779_v28 = vld [vmem:[%s6673_s27 + $0x60] sm:$0xff]  }
  0x95   : > { %v5774_v23 = vld [vmem:[%s6673_s27 + $0xc8] sm:$0xff]   ;;  %1882 = vmatprep.mubr.bf16.mxu0 %v5789_v20  ;;  %2171 = vmatprep.mubr.bf16.mxu1 %v5792_v22  ;;  %v5776_v25 = vld [vmem:[%s6673_s27 + $0xd0] sm:$0xff]   ;;  %v5778_v27 = vld [vmem:[%s6673_s27 + $0xd8] sm:$0xff]  }
  0x96   : > { %v5780_v29 = vld [vmem:[%s6673_s27 + $0xe0] sm:$0xff]   ;;  %v5781_v30 = vld [vmem:[%s6673_s27 + $0x68] sm:$0xff]   ;;  %v5783_v32 = vld [vmem:[%s6673_s27 + $0x70] sm:$0xff]  }
  0x97   : > { %1855 = vmatpush1.bf16.msra.mxu0 %v5759_v6  ;;  %2144 = vmatpush1.bf16.msra.mxu1 %v5760_v7  ;;  %v5782_v31 = vld [vmem:[%s6673_s27 + $0xe8] sm:$0xff]   ;;  %v5784_v33 = vld [vmem:[%s6673_s27 + $0xf0] sm:$0xff]   ;;  %v5785_v34 = vld [vmem:[%s6673_s27 + $0x78] sm:$0xff]  }
  0x98   : > { %1856 = vmatprep.subr.bf16.mxu0 %v6294_v2  ;;  %2145 = vmatprep.subr.bf16.mxu1 %v6294_v2  ;;  %v5786_v35 = vld [vmem:[%s6673_s27 + $0xf8] sm:$0xff]   ;;  %v5787_v36 = vld [vmem:[%s6690_s24] ss:$16 sps:$4 sm:$0xff]   ;;  %v5793_v38 = vld [vmem:[%s6690_s24 + $0x24] ss:$16 sps:$4 sm:$0xff]  }
  0x99   : > { %v5790_v37 = vld [vmem:[%s6690_s24 + $0x8] ss:$16 sps:$4 sm:$0xff]   ;;  %v5795_v39 = vld [vmem:[%s6690_s24 + $0x2c] ss:$16 sps:$4 sm:$0xff]   ;;  %v5797_v40 = vld [vmem:[%s6690_s24 + $0x20] ss:$16 sps:$4 sm:$0xff]  }
  0x9a   : > { %v5798_v41 = vld [vmem:[%s6690_s24 + $0x28] ss:$16 sps:$4 sm:$0xff]   ;;  %v5799_v42 = vld [vmem:[%s6690_s24 + $0x44] ss:$16 sps:$4 sm:$0xff]   ;;  %v5801_v43 = vld [vmem:[%s6690_s24 + $0x4c] ss:$16 sps:$4 sm:$0xff]  }
  0x9b   : > { %1857 = vmatpush1.bf16.msra.mxu0 %v5761_v8  ;;  %2146 = vmatpush1.bf16.msra.mxu1 %v5762_v9  ;;  %v5803_v44 = vld [vmem:[%s6690_s24 + $0x40] ss:$16 sps:$4 sm:$0xff]   ;;  %v5804_v45 = vld [vmem:[%s6690_s24 + $0x48] ss:$16 sps:$4 sm:$0xff]   ;;  %v5805_v46 = vld [vmem:[%s6690_s24 + $0x64] ss:$16 sps:$4 sm:$0xff]  }
  0x9c   : > { %1858 = vmatprep.subr.bf16.mxu0 %v6294_v2  ;;  %2147 = vmatprep.subr.bf16.mxu1 %v6294_v2  ;;  %v5807_v47 = vld [vmem:[%s6690_s24 + $0x6c] ss:$16 sps:$4 sm:$0xff]   ;;  %v5809_v48 = vld [vmem:[%s6690_s24 + $0x60] ss:$16 sps:$4 sm:$0xff]   ;;  %v5810_v49 = vld [vmem:[%s6690_s24 + $0x68] ss:$16 sps:$4 sm:$0xff]  }
  0x9d   : > { %v5811_v50 = vld [vmem:[%s6690_s24 + $0x84] ss:$16 sps:$4 sm:$0xff]   ;;  %v5813_v51 = vld [vmem:[%s6690_s24 + $0x8c] ss:$16 sps:$4 sm:$0xff]   ;;  %v5815_v52 = vld [vmem:[%s6690_s24 + $0x80] ss:$16 sps:$4 sm:$0xff]  }
  0x9e   : > { %v5816_v53 = vld [vmem:[%s6690_s24 + $0x88] ss:$16 sps:$4 sm:$0xff]   ;;  %v5817_v54 = vld [vmem:[%s6690_s24 + $0xa4] ss:$16 sps:$4 sm:$0xff]   ;;  %v5819_v55 = vld [vmem:[%s6690_s24 + $0xac] ss:$16 sps:$4 sm:$0xff]  }
  0x9f   : > { %1859 = vmatpush1.bf16.msra.mxu0 %v5763_v10  ;;  %2148 = vmatpush1.bf16.msra.mxu1 %v5764_v11  ;;  %v5821_v56 = vld [vmem:[%s6690_s24 + $0xa0] ss:$16 sps:$4 sm:$0xff]   ;;  %v5822_v57 = vld [vmem:[%s6690_s24 + $0xa8] ss:$16 sps:$4 sm:$0xff]   ;;  %v5823_v58 = vld [vmem:[%s6690_s24 + $0xc4] ss:$16 sps:$4 sm:$0xff]  }
  0xa0   : > { %1860 = vmatprep.subr.bf16.mxu0 %v6294_v2  ;;  %2149 = vmatprep.subr.bf16.mxu1 %v6294_v2  ;;  %v5825_v59 = vld [vmem:[%s6690_s24 + $0xcc] ss:$16 sps:$4 sm:$0xff]   ;;  %v5827_v60 = vld [vmem:[%s6690_s24 + $0xc0] ss:$16 sps:$4 sm:$0xff]   ;;  %v5828_v61 = vld [vmem:[%s6690_s24 + $0xc8] ss:$16 sps:$4 sm:$0xff]  }
  0xa1   : > { %v5829_v62 = vld [vmem:[%s6690_s24 + $0xe4] ss:$16 sps:$4 sm:$0xff]   ;;  %v5831_v63 = vld [vmem:[%s6690_s24 + $0xec] ss:$16 sps:$4 sm:$0xff]   ;;  %v5833_v0 = vld [vmem:[%s6690_s24 + $0xe0] ss:$16 sps:$4 sm:$0xff]  }
  0xa2   : > { %v5834_v1 = vld [vmem:[%s6690_s24 + $0xe8] ss:$16 sps:$4 sm:$0xff]   ;;  %v5837_v3 = vld [vmem:[%s6690_s24 + $0x10c] ss:$16 sps:$4 sm:$0xff]   ;;  %v5839_v4 = vld [vmem:[%s6690_s24 + $0x100] ss:$16 sps:$4 sm:$0xff]  }
  0xa3   : > { %1861 = vmatpush1.bf16.msra.mxu0 %v5765_v12  ;;  %2150 = vmatpush1.bf16.msra.mxu1 %v5766_v13  ;;  %v5840_v5 = vld [vmem:[%s6690_s24 + $0x108] ss:$16 sps:$4 sm:$0xff]   ;;  %v5841_v6 = vld [vmem:[%s6690_s24 + $0x124] ss:$16 sps:$4 sm:$0xff]   ;;  %v5843_v7 = vld [vmem:[%s6690_s24 + $0x12c] ss:$16 sps:$4 sm:$0xff]  }
  0xa4   : > { %1862 = vmatprep.subr.bf16.mxu0 %v6294_v2  ;;  %2151 = vmatprep.subr.bf16.mxu1 %v6294_v2  ;;  %v5845_v8 = vld [vmem:[%s6690_s24 + $0x120] ss:$16 sps:$4 sm:$0xff]   ;;  %v5846_v9 = vld [vmem:[%s6690_s24 + $0x128] ss:$16 sps:$4 sm:$0xff]   ;;  %v5847_v10 = vld [vmem:[%s6690_s24 + $0x144] ss:$16 sps:$4 sm:$0xff]  }
  0xa5   : > { %v5849_v11 = vld [vmem:[%s6690_s24 + $0x14c] ss:$16 sps:$4 sm:$0xff]   ;;  %v5851_v12 = vld [vmem:[%s6690_s24 + $0x140] ss:$16 sps:$4 sm:$0xff]   ;;  %v5852_v13 = vld [vmem:[%s6690_s24 + $0x148] ss:$16 sps:$4 sm:$0xff]  }
  0xa6   : > { %v5863_v20 = vld [vmem:[%s6690_s24 + $0x180] ss:$16 sps:$4 sm:$0xff]   ;;  %v5865_v22 = vld [vmem:[%s6690_s24 + $0x1a4] ss:$16 sps:$4 sm:$0xff]  }
  0xa7   : > { %1863 = vmatpush1.bf16.msra.mxu0 %v5767_v14  ;;  %2152 = vmatpush1.bf16.msra.mxu1 %v5768_v15  ;;  %v5853_v14 = vld [vmem:[%s6690_s24 + $0x164] ss:$16 sps:$4 sm:$0xff]   ;;  %v5855_v15 = vld [vmem:[%s6690_s24 + $0x16c] ss:$16 sps:$4 sm:$0xff]  }
  0xa8   : > { %1864 = vmatprep.subr.bf16.mxu0 %v6294_v2  ;;  %2153 = vmatprep.subr.bf16.mxu1 %v6294_v2 }
  0xab   : > { %1865 = vmatpush1.bf16.msra.mxu0 %v5769_v16  ;;  %2154 = vmatpush1.bf16.msra.mxu1 %v5770_v17  ;;  %v5857_v16 = vld [vmem:[%s6690_s24 + $0x160] ss:$16 sps:$4 sm:$0xff]   ;;  %v5858_v17 = vld [vmem:[%s6690_s24 + $0x168] ss:$16 sps:$4 sm:$0xff]  }
  0xac   : > { %1866 = vmatprep.subr.bf16.mxu0 %v6294_v2  ;;  %2155 = vmatprep.subr.bf16.mxu1 %v6294_v2 }
  0xaf   : > { %1867 = vmatpush1.bf16.msra.mxu0 %v5771_v18  ;;  %2156 = vmatpush1.bf16.msra.mxu1 %v5772_v19  ;;  %v5859_v18 = vld [vmem:[%s6690_s24 + $0x184] ss:$16 sps:$4 sm:$0xff]   ;;  %v5861_v19 = vld [vmem:[%s6690_s24 + $0x18c] ss:$16 sps:$4 sm:$0xff]  }
  0xb0   : > { %1868 = vmatprep.subr.bf16.mxu0 %v6294_v2  ;;  %2157 = vmatprep.subr.bf16.mxu1 %v6294_v2 }
  0xb3   : > { %1869 = vmatpush1.bf16.msra.mxu0 %v5773_v21  ;;  %2158 = vmatpush1.bf16.msra.mxu1 %v5774_v23  ;;  %v5864_v21 = vld [vmem:[%s6690_s24 + $0x188] ss:$16 sps:$4 sm:$0xff]   ;;  %v5867_v23 = vld [vmem:[%s6690_s24 + $0x1ac] ss:$16 sps:$4 sm:$0xff]  }
  0xb4   : > { %1870 = vmatprep.subr.bf16.mxu0 %v6294_v2  ;;  %2159 = vmatprep.subr.bf16.mxu1 %v6294_v2 }
  0xb7   : > { %1871 = vmatpush1.bf16.msra.mxu0 %v5775_v24  ;;  %2160 = vmatpush1.bf16.msra.mxu1 %v5776_v25  ;;  %v5869_v24 = vld [vmem:[%s6690_s24 + $0x1a0] ss:$16 sps:$4 sm:$0xff]   ;;  %v5870_v25 = vld [vmem:[%s6690_s24 + $0x1a8] ss:$16 sps:$4 sm:$0xff]  }
  0xb8   : > { %1872 = vmatprep.subr.bf16.mxu0 %v6294_v2  ;;  %2161 = vmatprep.subr.bf16.mxu1 %v6294_v2 }
  0xbb   : > { %1873 = vmatpush1.bf16.msra.mxu0 %v5777_v26  ;;  %2162 = vmatpush1.bf16.msra.mxu1 %v5778_v27  ;;  %v5871_v26 = vld [vmem:[%s6690_s24 + $0x1c4] ss:$16 sps:$4 sm:$0xff]   ;;  %v5873_v27 = vld [vmem:[%s6690_s24 + $0x1cc] ss:$16 sps:$4 sm:$0xff]  }
  0xbc   : > { %1874 = vmatprep.subr.bf16.mxu0 %v6294_v2  ;;  %2163 = vmatprep.subr.bf16.mxu1 %v6294_v2 }
  0xbf   : > { %1875 = vmatpush1.bf16.msra.mxu0 %v5779_v28  ;;  %2164 = vmatpush1.bf16.msra.mxu1 %v5780_v29  ;;  %v5875_v28 = vld [vmem:[%s6690_s24 + $0x1c0] ss:$16 sps:$4 sm:$0xff]   ;;  %v5876_v29 = vld [vmem:[%s6690_s24 + $0x1c8] ss:$16 sps:$4 sm:$0xff]  }
  0xc0   : > { %1876 = vmatprep.subr.bf16.mxu0 %v6294_v2  ;;  %2165 = vmatprep.subr.bf16.mxu1 %v6294_v2 }
  0xc3   : > { %1877 = vmatpush1.bf16.msra.mxu0 %v5781_v30  ;;  %2166 = vmatpush1.bf16.msra.mxu1 %v5782_v31  ;;  %v5877_v30 = vld [vmem:[%s6690_s24 + $0x1e4] ss:$16 sps:$4 sm:$0xff]   ;;  %v5879_v31 = vld [vmem:[%s6690_s24 + $0x1ec] ss:$16 sps:$4 sm:$0xff]  }
  0xc4   : > { %1878 = vmatprep.subr.bf16.mxu0 %v6294_v2  ;;  %2167 = vmatprep.subr.bf16.mxu1 %v6294_v2 }
  0xc7   : > { %1879 = vmatpush1.bf16.msra.mxu0 %v5783_v32  ;;  %2168 = vmatpush1.bf16.msra.mxu1 %v5784_v33  ;;  %v5881_v32 = vld [vmem:[%s6690_s24 + $0x1e0] ss:$16 sps:$4 sm:$0xff]   ;;  %v5882_v33 = vld [vmem:[%s6690_s24 + $0x1e8] ss:$16 sps:$4 sm:$0xff]  }
  0xc8   : > { %1880 = vmatprep.subr.bf16.mxu0 %v6294_v2  ;;  %2169 = vmatprep.subr.bf16.mxu1 %v6294_v2  ;;  %v5835_v2 = vld [vmem:[%s6690_s24 + $0x104] ss:$16 sps:$4 sm:$0xff]  }
  0xcb   : > { %1881 = vmatpush1.bf16.msra.mxu0 %v5785_v34  ;;  %2170 = vmatpush1.bf16.msra.mxu1 %v5786_v35  ;;  %v5883_v34 = vld [vmem:[%s6690_s24 + $0x204] ss:$16 sps:$4 sm:$0xff]   ;;  %v5885_v35 = vld [vmem:[%s6690_s24 + $0x20c] ss:$16 sps:$4 sm:$0xff]  }
  0xce   : > { %1883 = vmatmul.mubr.bf16.vlgmr.msra.gmra.mrb[0].mxu0 %v5787_v36  ;;  %2172 = vmatmul.mubr.bf16.vlgmr.msra.gmra.mrb[0].mxu1 %v5790_v37  ;;  %v5887_v36 = vld [vmem:[%s6690_s24 + $0x200] ss:$16 sps:$4 sm:$0xff]   ;;  %v5888_v37 = vld [vmem:[%s6690_s24 + $0x208] ss:$16 sps:$4 sm:$0xff]  }
  0xcf   : > { %1890 = vmatprep.mubr.bf16.mxu0 %v5793_v38  ;;  %2179 = vmatprep.mubr.bf16.mxu1 %v5795_v39  ;;  %v5889_v38 = vld [vmem:[%s6690_s24 + $0x224] ss:$16 sps:$4 sm:$0xff]   ;;  %v5891_v39 = vld [vmem:[%s6690_s24 + $0x22c] ss:$16 sps:$4 sm:$0xff]  }
  0xd6   : > { %1891 = vmatmul.mubr.bf16.gmra.mrb[4].mxu0 %v5797_v40  ;;  %2180 = vmatmul.mubr.bf16.gmra.mrb[4].mxu1 %v5798_v41  ;;  %v5893_v40 = vld [vmem:[%s6690_s24 + $0x220] ss:$16 sps:$4 sm:$0xff]   ;;  %v5894_v41 = vld [vmem:[%s6690_s24 + $0x228] ss:$16 sps:$4 sm:$0xff]  }
  0xd7   : > { %1898 = vmatprep.mubr.bf16.mxu0 %v5799_v42  ;;  %2187 = vmatprep.mubr.bf16.mxu1 %v5801_v43  ;;  %v5895_v42 = vld [vmem:[%s6690_s24 + $0x244] ss:$16 sps:$4 sm:$0xff]   ;;  %v5897_v43 = vld [vmem:[%s6690_s24 + $0x24c] ss:$16 sps:$4 sm:$0xff]  }
  0xde   : > { %1899 = vmatmul.mubr.bf16.gmra.mrb[8].mxu0 %v5803_v44  ;;  %2188 = vmatmul.mubr.bf16.gmra.mrb[8].mxu1 %v5804_v45  ;;  %v5899_v44 = vld [vmem:[%s6690_s24 + $0x240] ss:$16 sps:$4 sm:$0xff]   ;;  %v5900_v45 = vld [vmem:[%s6690_s24 + $0x248] ss:$16 sps:$4 sm:$0xff]  }
  0xdf   : > { %1906 = vmatprep.mubr.bf16.mxu0 %v5805_v46  ;;  %2195 = vmatprep.mubr.bf16.mxu1 %v5807_v47  ;;  %v5901_v46 = vld [vmem:[%s6690_s24 + $0x264] ss:$16 sps:$4 sm:$0xff]   ;;  %v5903_v47 = vld [vmem:[%s6690_s24 + $0x26c] ss:$16 sps:$4 sm:$0xff]  }
  0xe6   : > { %1907 = vmatmul.mubr.bf16.gmra.mrb[12].mxu0 %v5809_v48  ;;  %2196 = vmatmul.mubr.bf16.gmra.mrb[12].mxu1 %v5810_v49  ;;  %v5905_v48 = vld [vmem:[%s6690_s24 + $0x260] ss:$16 sps:$4 sm:$0xff]   ;;  %v5906_v49 = vld [vmem:[%s6690_s24 + $0x268] ss:$16 sps:$4 sm:$0xff]  }
  0xe7   : > { %1914 = vmatprep.mubr.bf16.mxu0 %v5811_v50  ;;  %2203 = vmatprep.mubr.bf16.mxu1 %v5813_v51  ;;  %v5907_v50 = vld [vmem:[%s6690_s24 + $0x284] ss:$16 sps:$4 sm:$0xff]   ;;  %v5909_v51 = vld [vmem:[%s6690_s24 + $0x28c] ss:$16 sps:$4 sm:$0xff]  }
  0xee   : > { %1915 = vmatmul.mubr.bf16.gmra.mrb[16].mxu0 %v5815_v52  ;;  %2204 = vmatmul.mubr.bf16.gmra.mrb[16].mxu1 %v5816_v53  ;;  %v5911_v52 = vld [vmem:[%s6690_s24 + $0x280] ss:$16 sps:$4 sm:$0xff]   ;;  %v5912_v53 = vld [vmem:[%s6690_s24 + $0x288] ss:$16 sps:$4 sm:$0xff]  }
  0xef   : > { %1922 = vmatprep.mubr.bf16.mxu0 %v5817_v54  ;;  %2211 = vmatprep.mubr.bf16.mxu1 %v5819_v55  ;;  %v5913_v54 = vld [vmem:[%s6690_s24 + $0x2a4] ss:$16 sps:$4 sm:$0xff]   ;;  %v5915_v55 = vld [vmem:[%s6690_s24 + $0x2ac] ss:$16 sps:$4 sm:$0xff]  }
  0xf6   : > { %1923 = vmatmul.mubr.bf16.gmra.mrb[20].mxu0 %v5821_v56  ;;  %2212 = vmatmul.mubr.bf16.gmra.mrb[20].mxu1 %v5822_v57  ;;  %v5917_v56 = vld [vmem:[%s6690_s24 + $0x2a0] ss:$16 sps:$4 sm:$0xff]   ;;  %v5918_v57 = vld [vmem:[%s6690_s24 + $0x2a8] ss:$16 sps:$4 sm:$0xff]  }
  0xf7   : > { %1930 = vmatprep.mubr.bf16.mxu0 %v5823_v58  ;;  %2219 = vmatprep.mubr.bf16.mxu1 %v5825_v59  ;;  %v5919_v58 = vld [vmem:[%s6690_s24 + $0x2c4] ss:$16 sps:$4 sm:$0xff]   ;;  %v5921_v59 = vld [vmem:[%s6690_s24 + $0x2cc] ss:$16 sps:$4 sm:$0xff]  }
  0xfe   : > { %1931 = vmatmul.mubr.bf16.gmra.mrb[24].mxu0 %v5827_v60  ;;  %2220 = vmatmul.mubr.bf16.gmra.mrb[24].mxu1 %v5828_v61  ;;  %v5923_v60 = vld [vmem:[%s6690_s24 + $0x2c0] ss:$16 sps:$4 sm:$0xff]   ;;  %v5924_v61 = vld [vmem:[%s6690_s24 + $0x2c8] ss:$16 sps:$4 sm:$0xff]  }
  0xff   : > { %1938 = vmatprep.mubr.bf16.mxu0 %v5829_v62  ;;  %2227 = vmatprep.mubr.bf16.mxu1 %v5831_v63  ;;  %v5925_v62 = vld [vmem:[%s6690_s24 + $0x2e4] ss:$16 sps:$4 sm:$0xff]   ;;  %v5927_v63 = vld [vmem:[%s6690_s24 + $0x2ec] ss:$16 sps:$4 sm:$0xff]  }
 0x106   : > { %1939 = vmatmul.mubr.bf16.gmra.mrb[28].mxu0 %v5833_v0  ;;  %2228 = vmatmul.mubr.bf16.gmra.mrb[28].mxu1 %v5834_v1  ;;  %v5929_v0 = vld [vmem:[%s6690_s24 + $0x2e0] ss:$16 sps:$4 sm:$0xff]   ;;  %v5930_v1 = vld [vmem:[%s6690_s24 + $0x2e8] ss:$16 sps:$4 sm:$0xff]  }
 0x107   : > { %1946 = vmatprep.mubr.bf16.mxu0 %v5835_v2  ;;  %2235 = vmatprep.mubr.bf16.mxu1 %v5837_v3  ;;  %v5931_v2 = vld [vmem:[%s6690_s24 + $0x304] ss:$16 sps:$4 sm:$0xff]   ;;  %v5933_v3 = vld [vmem:[%s6690_s24 + $0x30c] ss:$16 sps:$4 sm:$0xff]  }
 0x10e   : > { %1947 = vmatmul.mubr.bf16.gmra.mrb[32].mxu0 %v5839_v4  ;;  %2236 = vmatmul.mubr.bf16.gmra.mrb[32].mxu1 %v5840_v5  ;;  %v5935_v4 = vld [vmem:[%s6690_s24 + $0x300] ss:$16 sps:$4 sm:$0xff]   ;;  %v5936_v5 = vld [vmem:[%s6690_s24 + $0x308] ss:$16 sps:$4 sm:$0xff]  }
 0x10f   : > { %1954 = vmatprep.mubr.bf16.mxu0 %v5841_v6  ;;  %2243 = vmatprep.mubr.bf16.mxu1 %v5843_v7  ;;  %v5937_v6 = vld [vmem:[%s6690_s24 + $0x324] ss:$16 sps:$4 sm:$0xff]   ;;  %v5939_v7 = vld [vmem:[%s6690_s24 + $0x32c] ss:$16 sps:$4 sm:$0xff]  }
 0x116   : > { %1955 = vmatmul.mubr.bf16.gmra.mrb[36].mxu0 %v5845_v8  ;;  %2244 = vmatmul.mubr.bf16.gmra.mrb[36].mxu1 %v5846_v9  ;;  %v5941_v8 = vld [vmem:[%s6690_s24 + $0x320] ss:$16 sps:$4 sm:$0xff]   ;;  %v5942_v9 = vld [vmem:[%s6690_s24 + $0x328] ss:$16 sps:$4 sm:$0xff]  }
 0x117   : > { %1962 = vmatprep.mubr.bf16.mxu0 %v5847_v10  ;;  %2251 = vmatprep.mubr.bf16.mxu1 %v5849_v11  ;;  %v5943_v10 = vld [vmem:[%s6690_s24 + $0x344] ss:$16 sps:$4 sm:$0xff]   ;;  %v5945_v11 = vld [vmem:[%s6690_s24 + $0x34c] ss:$16 sps:$4 sm:$0xff]  }
 0x11e   : > { %1963 = vmatmul.mubr.bf16.gmra.mrb[40].mxu0 %v5851_v12  ;;  %2252 = vmatmul.mubr.bf16.gmra.mrb[40].mxu1 %v5852_v13  ;;  %v5947_v12 = vld [vmem:[%s6690_s24 + $0x340] ss:$16 sps:$4 sm:$0xff]   ;;  %v5948_v13 = vld [vmem:[%s6690_s24 + $0x348] ss:$16 sps:$4 sm:$0xff]  }
 0x11f   : > { %1970 = vmatprep.mubr.bf16.mxu0 %v5853_v14  ;;  %2259 = vmatprep.mubr.bf16.mxu1 %v5855_v15  ;;  %v5949_v14 = vld [vmem:[%s6690_s24 + $0x364] ss:$16 sps:$4 sm:$0xff]   ;;  %v5951_v15 = vld [vmem:[%s6690_s24 + $0x36c] ss:$16 sps:$4 sm:$0xff]  }
 0x126   : > { %1971 = vmatmul.mubr.bf16.gmra.mrb[44].mxu0 %v5857_v16  ;;  %2260 = vmatmul.mubr.bf16.gmra.mrb[44].mxu1 %v5858_v17  ;;  %v762_v17 = vld [vmem:[#allocation2] sm:$0xff] }
 0x127   : > { %1978 = vmatprep.mubr.bf16.mxu0 %v5859_v18  ;;  %2267 = vmatprep.mubr.bf16.mxu1 %v5861_v19 }
 0x12e   : > { %1979 = vmatmul.mubr.bf16.gmra.mrb[48].mxu0 %v5863_v20  ;;  %2268 = vmatmul.mubr.bf16.gmra.mrb[48].mxu1 %v5864_v21  ;;  %v5953_v20 = vld [vmem:[%s6690_s24 + $0x360] ss:$16 sps:$4 sm:$0xff]  }
 0x12f   : > { %1986 = vmatprep.mubr.bf16.mxu0 %v5865_v22  ;;  %2275 = vmatprep.mubr.bf16.mxu1 %v5867_v23 }
 0x136   : > { %1987 = vmatmul.mubr.bf16.gmra.mrb[52].mxu0 %v5869_v24  ;;  %2276 = vmatmul.mubr.bf16.gmra.mrb[52].mxu1 %v5870_v25  ;;  %v5954_v24 = vld [vmem:[%s6690_s24 + $0x368] ss:$16 sps:$4 sm:$0xff]   ;;  %v5955_v25 = vld [vmem:[%s6690_s24 + $0x384] ss:$16 sps:$4 sm:$0xff]  }
 0x137   : > { %1994 = vmatprep.mubr.bf16.mxu0 %v5871_v26  ;;  %2283 = vmatprep.mubr.bf16.mxu1 %v5873_v27  ;;  %v763_v26 = vld [vmem:[#allocation2 + $0x8] sm:$0xff] }
 0x13e   : > { %1995 = vmatmul.mubr.bf16.gmra.mrb[56].mxu0 %v5875_v28  ;;  %2284 = vmatmul.mubr.bf16.gmra.mrb[56].mxu1 %v5876_v29  ;;  %v5957_v29 = vld [vmem:[%s6690_s24 + $0x38c] ss:$16 sps:$4 sm:$0xff]  }
 0x13f   : > { %2002 = vmatprep.mubr.bf16.mxu0 %v5877_v30  ;;  %2291 = vmatprep.mubr.bf16.mxu1 %v5879_v31 }
 0x146   : > { %2003 = vmatmul.mubr.bf16.gmra.mrb[60].mxu0 %v5881_v32  ;;  %2292 = vmatmul.mubr.bf16.gmra.mrb[60].mxu1 %v5882_v33 }
 0x147   : > { %2010 = vmatprep.mubr.bf16.mxu0 %v5883_v34  ;;  %2299 = vmatprep.mubr.bf16.mxu1 %v5885_v35  ;;  %v764_v35 = vld [vmem:[#allocation2 + $0x10] sm:$0xff] }
 0x14e   : > { %2011 = vmatmul.mubr.bf16.gmra.mrb[64].mxu0 %v5887_v36  ;;  %2300 = vmatmul.mubr.bf16.gmra.mrb[64].mxu1 %v5888_v37 }
 0x14f   : > { %2018 = vmatprep.mubr.bf16.mxu0 %v5889_v38  ;;  %2307 = vmatprep.mubr.bf16.mxu1 %v5891_v39  ;;  %v5959_v38 = vld [vmem:[%s6690_s24 + $0x380] ss:$16 sps:$4 sm:$0xff]  }
 0x156   : > { %2019 = vmatmul.mubr.bf16.gmra.mrb[68].mxu0 %v5893_v40  ;;  %2308 = vmatmul.mubr.bf16.gmra.mrb[68].mxu1 %v5894_v41 }
 0x157   : > { %2026 = vmatprep.mubr.bf16.mxu0 %v5895_v42  ;;  %2315 = vmatprep.mubr.bf16.mxu1 %v5897_v43  ;;  %v5960_v42 = vld [vmem:[%s6690_s24 + $0x388] ss:$16 sps:$4 sm:$0xff]   ;;  %v5961_v43 = vld [vmem:[%s6690_s24 + $0x3a4] ss:$16 sps:$4 sm:$0xff]  }
 0x15e   : > { %2027 = vmatmul.mubr.bf16.gmra.mrb[72].mxu0 %v5899_v44  ;;  %2316 = vmatmul.mubr.bf16.gmra.mrb[72].mxu1 %v5900_v45  ;;  %v765_v44 = vld [vmem:[#allocation2 + $0x18] sm:$0xff] }
 0x15f   : > { %2034 = vmatprep.mubr.bf16.mxu0 %v5901_v46  ;;  %2323 = vmatprep.mubr.bf16.mxu1 %v5903_v47  ;;  %v5963_v47 = vld [vmem:[%s6690_s24 + $0x3ac] ss:$16 sps:$4 sm:$0xff]  }
 0x166   : > { %2035 = vmatmul.mubr.bf16.gmra.mrb[76].mxu0 %v5905_v48  ;;  %2324 = vmatmul.mubr.bf16.gmra.mrb[76].mxu1 %v5906_v49 }
 0x167   : > { %2042 = vmatprep.mubr.bf16.mxu0 %v5907_v50  ;;  %2331 = vmatprep.mubr.bf16.mxu1 %v5909_v51 }
 0x16e   : > { %2043 = vmatmul.mubr.bf16.gmra.mrb[80].mxu0 %v5911_v52  ;;  %2332 = vmatmul.mubr.bf16.gmra.mrb[80].mxu1 %v5912_v53  ;;  %v766_v53 = vld [vmem:[#allocation2 + $0x20] sm:$0xff] }
 0x16f   : > { %2050 = vmatprep.mubr.bf16.mxu0 %v5913_v54  ;;  %2339 = vmatprep.mubr.bf16.mxu1 %v5915_v55 }
 0x176   : > { %2051 = vmatmul.mubr.bf16.gmra.mrb[84].mxu0 %v5917_v56  ;;  %2340 = vmatmul.mubr.bf16.gmra.mrb[84].mxu1 %v5918_v57  ;;  %v5965_v56 = vld [vmem:[%s6690_s24 + $0x3a0] ss:$16 sps:$4 sm:$0xff]  }
 0x177   : > { %2058 = vmatprep.mubr.bf16.mxu0 %v5919_v58  ;;  %2347 = vmatprep.mubr.bf16.mxu1 %v5921_v59 }
 0x17e   : > { %2059 = vmatmul.mubr.bf16.gmra.mrb[88].mxu0 %v5923_v60  ;;  %2348 = vmatmul.mubr.bf16.gmra.mrb[88].mxu1 %v5924_v61  ;;  %v5966_v60 = vld [vmem:[%s6690_s24 + $0x3a8] ss:$16 sps:$4 sm:$0xff]   ;;  %v5967_v61 = vld [vmem:[%s6690_s24 + $0x3c4] ss:$16 sps:$4 sm:$0xff]  }
 0x17f   : > { %2066 = vmatprep.mubr.bf16.mxu0 %v5925_v62  ;;  %2355 = vmatprep.mubr.bf16.mxu1 %v5927_v63  ;;  %v767_v62 = vld [vmem:[#allocation2 + $0x28] sm:$0xff] }
 0x186   : > { %2067 = vmatmul.mubr.bf16.gmra.mrb[92].mxu0 %v5929_v0  ;;  %2356 = vmatmul.mubr.bf16.gmra.mrb[92].mxu1 %v5930_v1  ;;  %v5969_v1 = vld [vmem:[%s6690_s24 + $0x3cc] ss:$16 sps:$4 sm:$0xff]  }
 0x187   : > { %2074 = vmatprep.mubr.bf16.mxu0 %v5931_v2  ;;  %2363 = vmatprep.mubr.bf16.mxu1 %v5933_v3 }
 0x18e   : > { %2075 = vmatmul.mubr.bf16.gmra.mrb[96].mxu0 %v5935_v4  ;;  %2364 = vmatmul.mubr.bf16.gmra.mrb[96].mxu1 %v5936_v5 }
 0x18f   : > { %2082 = vmatprep.mubr.bf16.mxu0 %v5937_v6  ;;  %2371 = vmatprep.mubr.bf16.mxu1 %v5939_v7  ;;  %v768_v7 = vld [vmem:[#allocation2 + $0x30] sm:$0xff] }
 0x196   : > { %2083 = vmatmul.mubr.bf16.gmra.mrb[100].mxu0 %v5941_v8  ;;  %2372 = vmatmul.mubr.bf16.gmra.mrb[100].mxu1 %v5942_v9 }
 0x197   : > { %2090 = vmatprep.mubr.bf16.mxu0 %v5943_v10  ;;  %2379 = vmatprep.mubr.bf16.mxu1 %v5945_v11  ;;  %v5971_v10 = vld [vmem:[%s6690_s24 + $0x3c0] ss:$16 sps:$4 sm:$0xff]  }
 0x19e   : > { %2091 = vmatmul.mubr.bf16.gmra.mrb[104].mxu0 %v5947_v12  ;;  %2380 = vmatmul.mubr.bf16.gmra.mrb[104].mxu1 %v5948_v13 }
 0x19f   : > { %2098 = vmatprep.mubr.bf16.mxu0 %v5949_v14  ;;  %2387 = vmatprep.mubr.bf16.mxu1 %v5951_v15  ;;  %v5972_v14 = vld [vmem:[%s6690_s24 + $0x3c8] ss:$16 sps:$4 sm:$0xff]   ;;  %v5973_v15 = vld [vmem:[%s6690_s24 + $0x3e4] ss:$16 sps:$4 sm:$0xff]  }
 0x1a1   : > { %v1884_v16 = vpop.f32.mrb[0].mxu0  ;;  %v2173_v18 = vpop.f32.mrb[0].mxu1 }
 0x1a2   : > { %v1886_v19 = vpop.f32.mrb[1].mxu0  ;;  %v2174_v21 = vadd.f32 %v2173_v18, %v1884_v16  ;;  %v2175_v22 = vpop.f32.mrb[1].mxu1  ;;  %v769_v16 = vld [vmem:[#allocation2 + $0x38] sm:$0xff] }
 0x1a3   : > { %v1887_v23 = vpop.f32.mrb[2].mxu0  ;;  %v2176_v27 = vpop.f32.mrb[2].mxu1  ;;  %v5975_v19 = vld [vmem:[%s6690_s24 + $0x3ec] ss:$16 sps:$4 sm:$0xff]  }
 0x1a4   : > { %v1889_v28 = vpop.f32.mrb[3].mxu0  ;;  %v2428_v30 = vadd.f32 %v2174_v21, %v762_v17  ;;  %v2177_v31 = vadd.f32 %v2176_v27, %v1887_v23  ;;  %v2178_v32 = vpop.f32.mrb[3].mxu1 }
 0x1a5   : > { %v5977_v28 = vld [vmem:[%s6690_s24 + $0x3e0] ss:$16 sps:$4 sm:$0xff]   ;;  %v5978_v32 = vld [vmem:[%s6690_s24 + $0x3e8] ss:$16 sps:$4 sm:$0xff]  }
 0x1a6   : > { %2099 = vmatmul.mubr.bf16.gmra.mrb[108].mxu0 %v5953_v20  ;;  %2492 = vst [vmem:[#allocation2] sm:$0xff] %v2428_v30  ;;  %v2429_v33 = vadd.f32 %v2177_v31, %v763_v26  ;;  %2388 = vmatmul.mubr.bf16.gmra.mrb[108].mxu1 %v5954_v24 }
 0x1a7   : > { %2106 = vmatprep.mubr.bf16.mxu0 %v5955_v25  ;;  %2395 = vmatprep.mubr.bf16.mxu1 %v5957_v29  ;;  %v770_v25 = vld [vmem:[#allocation2 + $0x40] sm:$0xff] }
 0x1a8   : > { %2493 = vst [vmem:[#allocation2 + $0x8] sm:$0xff] %v2429_v33  ;;  %v771_v33 = vld [vmem:[#allocation2 + $0x48] sm:$0xff] }
 0x1a9   : > { %v1892_v34 = vpop.f32.mrb[4].mxu0  ;;  %v2181_v36 = vpop.f32.mrb[4].mxu1 }
 0x1aa   : > { %v1894_v37 = vpop.f32.mrb[5].mxu0  ;;  %v2182_v39 = vadd.f32 %v2181_v36, %v1892_v34  ;;  %v2183_v40 = vpop.f32.mrb[5].mxu1 }
 0x1ab   : > { %v1895_v41 = vpop.f32.mrb[6].mxu0  ;;  %v2184_v45 = vpop.f32.mrb[6].mxu1 }
 0x1ac   : > { %v1897_v46 = vpop.f32.mrb[7].mxu0  ;;  %v2430_v48 = vadd.f32 %v2182_v39, %v764_v35  ;;  %v2185_v49 = vadd.f32 %v2184_v45, %v1895_v41  ;;  %v2186_v50 = vpop.f32.mrb[7].mxu1  ;;  %v772_v41 = vld [vmem:[#allocation2 + $0x50] sm:$0xff] }
 0x1ae   : > { %2107 = vmatmul.mubr.bf16.gmra.mrb[112].mxu0 %v5959_v38  ;;  %2494 = vst [vmem:[#allocation2 + $0x10] sm:$0xff] %v2430_v48  ;;  %v2431_v51 = vadd.f32 %v2185_v49, %v765_v44  ;;  %2396 = vmatmul.mubr.bf16.gmra.mrb[112].mxu1 %v5960_v42 }
 0x1af   : > { %2114 = vmatprep.mubr.bf16.mxu0 %v5961_v43  ;;  %2403 = vmatprep.mubr.bf16.mxu1 %v5963_v47  ;;  %v773_v47 = vld [vmem:[#allocation2 + $0x58] sm:$0xff] }
 0x1b0   : > { %2495 = vst [vmem:[#allocation2 + $0x18] sm:$0xff] %v2431_v51 }
 0x1b1   : > { %v1900_v52 = vpop.f32.mrb[8].mxu0  ;;  %v2189_v54 = vpop.f32.mrb[8].mxu1 }
 0x1b2   : > { %v1902_v55 = vpop.f32.mrb[9].mxu0  ;;  %v2190_v57 = vadd.f32 %v2189_v54, %v1900_v52  ;;  %v2191_v58 = vpop.f32.mrb[9].mxu1 }
 0x1b3   : > { %v1903_v59 = vpop.f32.mrb[10].mxu0  ;;  %v2192_v63 = vpop.f32.mrb[10].mxu1  ;;  %v774_v55 = vld [vmem:[#allocation2 + $0x60] sm:$0xff] }
 0x1b4   : > { %v1905_v0 = vpop.f32.mrb[11].mxu0  ;;  %v2432_v2 = vadd.f32 %v2190_v57, %v766_v53  ;;  %v2193_v3 = vadd.f32 %v2192_v63, %v1903_v59  ;;  %v2194_v4 = vpop.f32.mrb[11].mxu1 }
 0x1b6   : > { %2115 = vmatmul.mubr.bf16.gmra.mrb[116].mxu0 %v5965_v56  ;;  %2496 = vst [vmem:[#allocation2 + $0x20] sm:$0xff] %v2432_v2  ;;  %v2433_v5 = vadd.f32 %v2193_v3, %v767_v62  ;;  %2404 = vmatmul.mubr.bf16.gmra.mrb[116].mxu1 %v5966_v60 }
 0x1b7   : > { %2122 = vmatprep.mubr.bf16.mxu0 %v5967_v61  ;;  %2411 = vmatprep.mubr.bf16.mxu1 %v5969_v1  ;;  %v775_v61 = vld [vmem:[#allocation2 + $0x68] sm:$0xff] }
 0x1b8   : > { %2497 = vst [vmem:[#allocation2 + $0x28] sm:$0xff] %v2433_v5  ;;  %v776_v5 = vld [vmem:[#allocation2 + $0x70] sm:$0xff] }
 0x1b9   : > { %v1908_v6 = vpop.f32.mrb[12].mxu0  ;;  %v2197_v8 = vpop.f32.mrb[12].mxu1 }
 0x1ba   : > { %v1910_v9 = vpop.f32.mrb[13].mxu0  ;;  %v2198_v11 = vadd.f32 %v2197_v8, %v1908_v6  ;;  %v2199_v12 = vpop.f32.mrb[13].mxu1 }
 0x1bb   : > { %v1911_v13 = vpop.f32.mrb[14].mxu0  ;;  %v2200_v17 = vpop.f32.mrb[14].mxu1 }
 0x1bc   : > { %v1913_v18 = vpop.f32.mrb[15].mxu0  ;;  %v2434_v20 = vadd.f32 %v2198_v11, %v768_v7  ;;  %v2201_v21 = vadd.f32 %v2200_v17, %v1911_v13  ;;  %v2202_v22 = vpop.f32.mrb[15].mxu1  ;;  %v777_v11 = vld [vmem:[#allocation2 + $0x78] sm:$0xff] }
 0x1be   : > { %2123 = vmatmul.mubr.bf16.gmra.mrb[120].mxu0 %v5971_v10  ;;  %2498 = vst [vmem:[#allocation2 + $0x30] sm:$0xff] %v2434_v20  ;;  %v2435_v23 = vadd.f32 %v2201_v21, %v769_v16  ;;  %2412 = vmatmul.mubr.bf16.gmra.mrb[120].mxu1 %v5972_v14 }
 0x1bf   : > { %2130 = vmatprep.mubr.bf16.mxu0 %v5973_v15  ;;  %2419 = vmatprep.mubr.bf16.mxu1 %v5975_v19  ;;  %v778_v19 = vld [vmem:[#allocation2 + $0x80] sm:$0xff] }
 0x1c0   : > { %2499 = vst [vmem:[#allocation2 + $0x38] sm:$0xff] %v2435_v23 }
 0x1c1   : > { %v1916_v24 = vpop.f32.mrb[16].mxu0  ;;  %v2205_v26 = vpop.f32.mrb[16].mxu1 }
 0x1c2   : > { %v1918_v27 = vpop.f32.mrb[17].mxu0  ;;  %v2206_v29 = vadd.f32 %v2205_v26, %v1916_v24  ;;  %v2207_v30 = vpop.f32.mrb[17].mxu1 }
 0x1c3   : > { %v1919_v31 = vpop.f32.mrb[18].mxu0  ;;  %v2208_v34 = vpop.f32.mrb[18].mxu1 }
 0x1c4   : > { %v1921_v35 = vpop.f32.mrb[19].mxu0  ;;  %v2436_v36 = vadd.f32 %v2206_v29, %v770_v25  ;;  %v2209_v37 = vadd.f32 %v2208_v34, %v1919_v31  ;;  %v2210_v38 = vpop.f32.mrb[19].mxu1  ;;  %v779_v25 = vld [vmem:[#allocation2 + $0x88] sm:$0xff] }
 0x1c6   : > { %2131 = vmatmul.mubr.bf16.gmra.mrb[124].mxu0 %v5977_v28  ;;  %2500 = vst [vmem:[#allocation2 + $0x40] sm:$0xff] %v2436_v36  ;;  %v2437_v39 = vadd.f32 %v2209_v37, %v771_v33  ;;  %2420 = vmatmul.mubr.bf16.gmra.mrb[124].mxu1 %v5978_v32  ;;  %v780_v33 = vld [vmem:[#allocation2 + $0x90] sm:$0xff] }
 0x1c8   : > { %2501 = vst [vmem:[#allocation2 + $0x48] sm:$0xff] %v2437_v39  ;;  %v781_v39 = vld [vmem:[#allocation2 + $0x98] sm:$0xff] }
 0x1c9   : > { %v1924_v40 = vpop.f32.mrb[20].mxu0  ;;  %v2213_v42 = vpop.f32.mrb[20].mxu1 }
 0x1ca   : > { %v1926_v43 = vpop.f32.mrb[21].mxu0  ;;  %v2214_v44 = vadd.f32 %v2213_v42, %v1924_v40  ;;  %v2215_v45 = vpop.f32.mrb[21].mxu1 }
 0x1cb   : > { %v1927_v46 = vpop.f32.mrb[22].mxu0  ;;  %v2216_v48 = vpop.f32.mrb[22].mxu1 }
 0x1cc   : > { %v1929_v49 = vpop.f32.mrb[23].mxu0  ;;  %v2438_v50 = vadd.f32 %v2214_v44, %v772_v41  ;;  %v2217_v51 = vadd.f32 %v2216_v48, %v1927_v46  ;;  %v2218_v52 = vpop.f32.mrb[23].mxu1 }
 0x1ce   : > { %2502 = vst [vmem:[#allocation2 + $0x50] sm:$0xff] %v2438_v50  ;;  %v2439_v53 = vadd.f32 %v2217_v51, %v773_v47  ;;  %v782_v47 = vld [vmem:[#allocation2 + $0xa0] sm:$0xff] }
 0x1d0   : > { %2503 = vst [vmem:[#allocation2 + $0x58] sm:$0xff] %v2439_v53  ;;  %v783_v53 = vld [vmem:[#allocation2 + $0xa8] sm:$0xff] }
 0x1d1   : > { %v1932_v54 = vpop.f32.mrb[24].mxu0  ;;  %v2221_v56 = vpop.f32.mrb[24].mxu1 }
 0x1d2   : > { %v1934_v57 = vpop.f32.mrb[25].mxu0  ;;  %v2222_v58 = vadd.f32 %v2221_v56, %v1932_v54  ;;  %v2223_v59 = vpop.f32.mrb[25].mxu1 }
 0x1d3   : > { %v1935_v60 = vpop.f32.mrb[26].mxu0  ;;  %v2224_v62 = vpop.f32.mrb[26].mxu1 }
 0x1d4   : > { %v1937_v63 = vpop.f32.mrb[27].mxu0  ;;  %v2440_v0 = vadd.f32 %v2222_v58, %v774_v55  ;;  %v2225_v1 = vadd.f32 %v2224_v62, %v1935_v60  ;;  %v2226_v2 = vpop.f32.mrb[27].mxu1 }
 0x1d6   : > { %2504 = vst [vmem:[#allocation2 + $0x60] sm:$0xff] %v2440_v0  ;;  %v2441_v3 = vadd.f32 %v2225_v1, %v775_v61  ;;  %v784_v61 = vld [vmem:[#allocation2 + $0xb0] sm:$0xff] }
 0x1d8   : > { %2505 = vst [vmem:[#allocation2 + $0x68] sm:$0xff] %v2441_v3  ;;  %v785_v3 = vld [vmem:[#allocation2 + $0xb8] sm:$0xff] }
 0x1d9   : > { %v1940_v4 = vpop.f32.mrb[28].mxu0  ;;  %v2229_v6 = vpop.f32.mrb[28].mxu1 }
 0x1da   : > { %v1942_v7 = vpop.f32.mrb[29].mxu0  ;;  %v2230_v8 = vadd.f32 %v2229_v6, %v1940_v4  ;;  %v2231_v9 = vpop.f32.mrb[29].mxu1 }
 0x1db   : > { %v1943_v10 = vpop.f32.mrb[30].mxu0  ;;  %v2232_v12 = vpop.f32.mrb[30].mxu1 }
 0x1dc   : > { %v1945_v13 = vpop.f32.mrb[31].mxu0  ;;  %v2442_v14 = vadd.f32 %v2230_v8, %v776_v5  ;;  %v2233_v15 = vadd.f32 %v2232_v12, %v1943_v10  ;;  %v2234_v16 = vpop.f32.mrb[31].mxu1 }
 0x1de   : > { %2506 = vst [vmem:[#allocation2 + $0x70] sm:$0xff] %v2442_v14  ;;  %v2443_v17 = vadd.f32 %v2233_v15, %v777_v11  ;;  %v786_v11 = vld [vmem:[#allocation2 + $0xc0] sm:$0xff] }
 0x1e0   : > { %2507 = vst [vmem:[#allocation2 + $0x78] sm:$0xff] %v2443_v17  ;;  %v787_v17 = vld [vmem:[#allocation2 + $0xc8] sm:$0xff] }
 0x1e1   : > { %v1948_v18 = vpop.f32.mrb[32].mxu0  ;;  %v2237_v20 = vpop.f32.mrb[32].mxu1 }
 0x1e2   : > { %v1950_v21 = vpop.f32.mrb[33].mxu0  ;;  %v2238_v22 = vadd.f32 %v2237_v20, %v1948_v18  ;;  %v2239_v23 = vpop.f32.mrb[33].mxu1 }
 0x1e3   : > { %v1951_v24 = vpop.f32.mrb[34].mxu0  ;;  %v2240_v26 = vpop.f32.mrb[34].mxu1 }
 0x1e4   : > { %v1953_v27 = vpop.f32.mrb[35].mxu0  ;;  %v2444_v28 = vadd.f32 %v2238_v22, %v778_v19  ;;  %v2241_v29 = vadd.f32 %v2240_v26, %v1951_v24  ;;  %v2242_v30 = vpop.f32.mrb[35].mxu1 }
 0x1e6   : > { %2508 = vst [vmem:[#allocation2 + $0x80] sm:$0xff] %v2444_v28  ;;  %v2445_v31 = vadd.f32 %v2241_v29, %v779_v25  ;;  %v788_v25 = vld [vmem:[#allocation2 + $0xd0] sm:$0xff] }
 0x1e8   : > { %2509 = vst [vmem:[#allocation2 + $0x88] sm:$0xff] %v2445_v31  ;;  %v789_v31 = vld [vmem:[#allocation2 + $0xd8] sm:$0xff] }
 0x1e9   : > { %v1956_v32 = vpop.f32.mrb[36].mxu0  ;;  %v2245_v34 = vpop.f32.mrb[36].mxu1 }
 0x1ea   : > { %v1958_v35 = vpop.f32.mrb[37].mxu0  ;;  %v2246_v36 = vadd.f32 %v2245_v34, %v1956_v32  ;;  %v2247_v37 = vpop.f32.mrb[37].mxu1 }
 0x1eb   : > { %v1959_v38 = vpop.f32.mrb[38].mxu0  ;;  %v2248_v40 = vpop.f32.mrb[38].mxu1 }
 0x1ec   : > { %v1961_v41 = vpop.f32.mrb[39].mxu0  ;;  %v2446_v42 = vadd.f32 %v2246_v36, %v780_v33  ;;  %v2249_v43 = vadd.f32 %v2248_v40, %v1959_v38  ;;  %v2250_v44 = vpop.f32.mrb[39].mxu1 }
 0x1ee   : > { %2510 = vst [vmem:[#allocation2 + $0x90] sm:$0xff] %v2446_v42  ;;  %v2447_v45 = vadd.f32 %v2249_v43, %v781_v39  ;;  %v790_v39 = vld [vmem:[#allocation2 + $0xe0] sm:$0xff] }
 0x1f0   : > { %2511 = vst [vmem:[#allocation2 + $0x98] sm:$0xff] %v2447_v45  ;;  %v791_v45 = vld [vmem:[#allocation2 + $0xe8] sm:$0xff] }
 0x1f1   : > { %v1964_v46 = vpop.f32.mrb[40].mxu0  ;;  %v2253_v48 = vpop.f32.mrb[40].mxu1 }
 0x1f2   : > { %v1966_v49 = vpop.f32.mrb[41].mxu0  ;;  %v2254_v50 = vadd.f32 %v2253_v48, %v1964_v46  ;;  %v2255_v51 = vpop.f32.mrb[41].mxu1 }
 0x1f3   : > { %v1967_v52 = vpop.f32.mrb[42].mxu0  ;;  %v2256_v54 = vpop.f32.mrb[42].mxu1 }
 0x1f4   : > { %v1969_v55 = vpop.f32.mrb[43].mxu0  ;;  %v2448_v56 = vadd.f32 %v2254_v50, %v782_v47  ;;  %v2257_v57 = vadd.f32 %v2256_v54, %v1967_v52  ;;  %v2258_v58 = vpop.f32.mrb[43].mxu1 }
 0x1f6   : > { %2512 = vst [vmem:[#allocation2 + $0xa0] sm:$0xff] %v2448_v56  ;;  %v2449_v59 = vadd.f32 %v2257_v57, %v783_v53  ;;  %v792_v53 = vld [vmem:[#allocation2 + $0xf0] sm:$0xff] }
 0x1f8   : > { %2513 = vst [vmem:[#allocation2 + $0xa8] sm:$0xff] %v2449_v59  ;;  %v793_v59 = vld [vmem:[#allocation2 + $0xf8] sm:$0xff] }
 0x1f9   : > { %v1972_v60 = vpop.f32.mrb[44].mxu0  ;;  %v2261_v62 = vpop.f32.mrb[44].mxu1 }
 0x1fa   : > { %v1974_v63 = vpop.f32.mrb[45].mxu0  ;;  %v2262_v0 = vadd.f32 %v2261_v62, %v1972_v60  ;;  %v2263_v1 = vpop.f32.mrb[45].mxu1 }
 0x1fb   : > { %v1975_v2 = vpop.f32.mrb[46].mxu0  ;;  %v2264_v4 = vpop.f32.mrb[46].mxu1 }
 0x1fc   : > { %v1977_v5 = vpop.f32.mrb[47].mxu0  ;;  %v2450_v6 = vadd.f32 %v2262_v0, %v784_v61  ;;  %v2265_v7 = vadd.f32 %v2264_v4, %v1975_v2  ;;  %v2266_v8 = vpop.f32.mrb[47].mxu1 }
 0x1fe   : > { %2514 = vst [vmem:[#allocation2 + $0xb0] sm:$0xff] %v2450_v6  ;;  %v2451_v9 = vadd.f32 %v2265_v7, %v785_v3  ;;  %v794_v3 = vld [vmem:[#allocation2 + $0x100] sm:$0xff] }
 0x200   : > { %2515 = vst [vmem:[#allocation2 + $0xb8] sm:$0xff] %v2451_v9  ;;  %v795_v9 = vld [vmem:[#allocation2 + $0x108] sm:$0xff] }
 0x201   : > { %v1980_v10 = vpop.f32.mrb[48].mxu0  ;;  %v2269_v12 = vpop.f32.mrb[48].mxu1 }
 0x202   : > { %v1982_v13 = vpop.f32.mrb[49].mxu0  ;;  %v2270_v14 = vadd.f32 %v2269_v12, %v1980_v10  ;;  %v2271_v15 = vpop.f32.mrb[49].mxu1 }
 0x203   : > { %v1983_v16 = vpop.f32.mrb[50].mxu0  ;;  %v2272_v18 = vpop.f32.mrb[50].mxu1 }
 0x204   : > { %v1985_v19 = vpop.f32.mrb[51].mxu0  ;;  %v2452_v20 = vadd.f32 %v2270_v14, %v786_v11  ;;  %v2273_v21 = vadd.f32 %v2272_v18, %v1983_v16  ;;  %v2274_v22 = vpop.f32.mrb[51].mxu1 }
 0x206   : > { %2516 = vst [vmem:[#allocation2 + $0xc0] sm:$0xff] %v2452_v20  ;;  %v2453_v23 = vadd.f32 %v2273_v21, %v787_v17  ;;  %v796_v17 = vld [vmem:[#allocation2 + $0x110] sm:$0xff] }
 0x208   : > { %2517 = vst [vmem:[#allocation2 + $0xc8] sm:$0xff] %v2453_v23  ;;  %v797_v23 = vld [vmem:[#allocation2 + $0x118] sm:$0xff] }
 0x209   : > { %v1988_v24 = vpop.f32.mrb[52].mxu0  ;;  %v2277_v26 = vpop.f32.mrb[52].mxu1 }
 0x20a   : > { %v1990_v27 = vpop.f32.mrb[53].mxu0  ;;  %v2278_v28 = vadd.f32 %v2277_v26, %v1988_v24  ;;  %v2279_v29 = vpop.f32.mrb[53].mxu1 }
 0x20b   : > { %v1991_v30 = vpop.f32.mrb[54].mxu0  ;;  %v2280_v32 = vpop.f32.mrb[54].mxu1 }
 0x20c   : > { %v1993_v33 = vpop.f32.mrb[55].mxu0  ;;  %v2454_v34 = vadd.f32 %v2278_v28, %v788_v25  ;;  %v2281_v35 = vadd.f32 %v2280_v32, %v1991_v30  ;;  %v2282_v36 = vpop.f32.mrb[55].mxu1 }
 0x20e   : > { %2518 = vst [vmem:[#allocation2 + $0xd0] sm:$0xff] %v2454_v34  ;;  %v2455_v37 = vadd.f32 %v2281_v35, %v789_v31  ;;  %v798_v31 = vld [vmem:[#allocation2 + $0x120] sm:$0xff] }
 0x210   : > { %2519 = vst [vmem:[#allocation2 + $0xd8] sm:$0xff] %v2455_v37  ;;  %v799_v37 = vld [vmem:[#allocation2 + $0x128] sm:$0xff] }
 0x211   : > { %v1996_v38 = vpop.f32.mrb[56].mxu0  ;;  %v2285_v40 = vpop.f32.mrb[56].mxu1 }
 0x212   : > { %v1998_v41 = vpop.f32.mrb[57].mxu0  ;;  %v2286_v42 = vadd.f32 %v2285_v40, %v1996_v38  ;;  %v2287_v43 = vpop.f32.mrb[57].mxu1 }
 0x213   : > { %v1999_v44 = vpop.f32.mrb[58].mxu0  ;;  %v2288_v46 = vpop.f32.mrb[58].mxu1 }
 0x214   : > { %v2001_v47 = vpop.f32.mrb[59].mxu0  ;;  %v2456_v48 = vadd.f32 %v2286_v42, %v790_v39  ;;  %v2289_v49 = vadd.f32 %v2288_v46, %v1999_v44  ;;  %v2290_v50 = vpop.f32.mrb[59].mxu1 }
 0x216   : > { %2520 = vst [vmem:[#allocation2 + $0xe0] sm:$0xff] %v2456_v48  ;;  %v2457_v51 = vadd.f32 %v2289_v49, %v791_v45  ;;  %v800_v45 = vld [vmem:[#allocation2 + $0x130] sm:$0xff] }
 0x218   : > { %2521 = vst [vmem:[#allocation2 + $0xe8] sm:$0xff] %v2457_v51  ;;  %v801_v51 = vld [vmem:[#allocation2 + $0x138] sm:$0xff] }
 0x219   : > { %v2004_v52 = vpop.f32.mrb[60].mxu0  ;;  %v2293_v54 = vpop.f32.mrb[60].mxu1 }
 0x21a   : > { %v2006_v55 = vpop.f32.mrb[61].mxu0  ;;  %v2294_v56 = vadd.f32 %v2293_v54, %v2004_v52  ;;  %v2295_v57 = vpop.f32.mrb[61].mxu1 }
 0x21b   : > { %v2007_v58 = vpop.f32.mrb[62].mxu0  ;;  %v2296_v60 = vpop.f32.mrb[62].mxu1 }
 0x21c   : > { %v2009_v61 = vpop.f32.mrb[63].mxu0  ;;  %v2458_v62 = vadd.f32 %v2294_v56, %v792_v53  ;;  %v2297_v63 = vadd.f32 %v2296_v60, %v2007_v58  ;;  %v2298_v0 = vpop.f32.mrb[63].mxu1 }
 0x21e   : > { %2522 = vst [vmem:[#allocation2 + $0xf0] sm:$0xff] %v2458_v62  ;;  %v2459_v1 = vadd.f32 %v2297_v63, %v793_v59  ;;  %v802_v59 = vld [vmem:[#allocation2 + $0x140] sm:$0xff] }
 0x220   : > { %2523 = vst [vmem:[#allocation2 + $0xf8] sm:$0xff] %v2459_v1  ;;  %v803_v1 = vld [vmem:[#allocation2 + $0x148] sm:$0xff] }
 0x221   : > { %v2012_v2 = vpop.f32.mrb[64].mxu0  ;;  %v2301_v4 = vpop.f32.mrb[64].mxu1 }
 0x222   : > { %v2014_v5 = vpop.f32.mrb[65].mxu0  ;;  %v2302_v6 = vadd.f32 %v2301_v4, %v2012_v2  ;;  %v2303_v7 = vpop.f32.mrb[65].mxu1 }
 0x223   : > { %v2015_v8 = vpop.f32.mrb[66].mxu0  ;;  %v2304_v10 = vpop.f32.mrb[66].mxu1 }
 0x224   : > { %v2017_v11 = vpop.f32.mrb[67].mxu0  ;;  %v2460_v12 = vadd.f32 %v2302_v6, %v794_v3  ;;  %v2305_v13 = vadd.f32 %v2304_v10, %v2015_v8  ;;  %v2306_v14 = vpop.f32.mrb[67].mxu1 }
 0x226   : > { %2524 = vst [vmem:[#allocation2 + $0x100] sm:$0xff] %v2460_v12  ;;  %v2461_v15 = vadd.f32 %v2305_v13, %v795_v9  ;;  %v804_v9 = vld [vmem:[#allocation2 + $0x150] sm:$0xff] }
 0x228   : > { %2525 = vst [vmem:[#allocation2 + $0x108] sm:$0xff] %v2461_v15  ;;  %v805_v15 = vld [vmem:[#allocation2 + $0x158] sm:$0xff] }
 0x229   : > { %v2020_v16 = vpop.f32.mrb[68].mxu0  ;;  %v2309_v18 = vpop.f32.mrb[68].mxu1 }
 0x22a   : > { %v2022_v19 = vpop.f32.mrb[69].mxu0  ;;  %v2310_v20 = vadd.f32 %v2309_v18, %v2020_v16  ;;  %v2311_v21 = vpop.f32.mrb[69].mxu1 }
 0x22b   : > { %v2023_v22 = vpop.f32.mrb[70].mxu0  ;;  %v2312_v24 = vpop.f32.mrb[70].mxu1 }
 0x22c   : > { %v2025_v25 = vpop.f32.mrb[71].mxu0  ;;  %v2462_v26 = vadd.f32 %v2310_v20, %v796_v17  ;;  %v2313_v27 = vadd.f32 %v2312_v24, %v2023_v22  ;;  %v2314_v28 = vpop.f32.mrb[71].mxu1 }
 0x22e   : > { %2526 = vst [vmem:[#allocation2 + $0x110] sm:$0xff] %v2462_v26  ;;  %v2463_v29 = vadd.f32 %v2313_v27, %v797_v23  ;;  %v806_v23 = vld [vmem:[#allocation2 + $0x160] sm:$0xff] }
 0x230   : > { %2527 = vst [vmem:[#allocation2 + $0x118] sm:$0xff] %v2463_v29  ;;  %v807_v29 = vld [vmem:[#allocation2 + $0x168] sm:$0xff] }
 0x231   : > { %v2028_v30 = vpop.f32.mrb[72].mxu0  ;;  %v2317_v32 = vpop.f32.mrb[72].mxu1 }
 0x232   : > { %v2030_v33 = vpop.f32.mrb[73].mxu0  ;;  %v2318_v34 = vadd.f32 %v2317_v32, %v2028_v30  ;;  %v2319_v35 = vpop.f32.mrb[73].mxu1 }
 0x233   : > { %v2031_v36 = vpop.f32.mrb[74].mxu0  ;;  %v2320_v38 = vpop.f32.mrb[74].mxu1 }
 0x234   : > { %v2033_v39 = vpop.f32.mrb[75].mxu0  ;;  %v2464_v40 = vadd.f32 %v2318_v34, %v798_v31  ;;  %v2321_v41 = vadd.f32 %v2320_v38, %v2031_v36  ;;  %v2322_v42 = vpop.f32.mrb[75].mxu1 }
 0x236   : > { %2528 = vst [vmem:[#allocation2 + $0x120] sm:$0xff] %v2464_v40  ;;  %v2465_v43 = vadd.f32 %v2321_v41, %v799_v37  ;;  %v808_v37 = vld [vmem:[#allocation2 + $0x170] sm:$0xff] }
 0x238   : > { %2529 = vst [vmem:[#allocation2 + $0x128] sm:$0xff] %v2465_v43  ;;  %v809_v43 = vld [vmem:[#allocation2 + $0x178] sm:$0xff] }
 0x239   : > { %v2036_v44 = vpop.f32.mrb[76].mxu0  ;;  %v2325_v46 = vpop.f32.mrb[76].mxu1 }
 0x23a   : > { %v2038_v47 = vpop.f32.mrb[77].mxu0  ;;  %v2326_v48 = vadd.f32 %v2325_v46, %v2036_v44  ;;  %v2327_v49 = vpop.f32.mrb[77].mxu1 }
 0x23b   : > { %v2039_v50 = vpop.f32.mrb[78].mxu0  ;;  %v2328_v52 = vpop.f32.mrb[78].mxu1 }
 0x23c   : > { %v2041_v53 = vpop.f32.mrb[79].mxu0  ;;  %v2466_v54 = vadd.f32 %v2326_v48, %v800_v45  ;;  %v2329_v55 = vadd.f32 %v2328_v52, %v2039_v50  ;;  %v2330_v56 = vpop.f32.mrb[79].mxu1 }
 0x23e   : > { %2530 = vst [vmem:[#allocation2 + $0x130] sm:$0xff] %v2466_v54  ;;  %v2467_v57 = vadd.f32 %v2329_v55, %v801_v51  ;;  %v810_v51 = vld [vmem:[#allocation2 + $0x180] sm:$0xff] }
 0x240   : > { %2531 = vst [vmem:[#allocation2 + $0x138] sm:$0xff] %v2467_v57  ;;  %v811_v57 = vld [vmem:[#allocation2 + $0x188] sm:$0xff] }
 0x241   : > { %v2044_v58 = vpop.f32.mrb[80].mxu0  ;;  %v2333_v60 = vpop.f32.mrb[80].mxu1 }
 0x242   : > { %v2046_v61 = vpop.f32.mrb[81].mxu0  ;;  %v2334_v62 = vadd.f32 %v2333_v60, %v2044_v58  ;;  %v2335_v63 = vpop.f32.mrb[81].mxu1 }
 0x243   : > { %v2047_v0 = vpop.f32.mrb[82].mxu0  ;;  %v2336_v2 = vpop.f32.mrb[82].mxu1 }
 0x244   : > { %v2049_v3 = vpop.f32.mrb[83].mxu0  ;;  %v2468_v4 = vadd.f32 %v2334_v62, %v802_v59  ;;  %v2337_v5 = vadd.f32 %v2336_v2, %v2047_v0  ;;  %v2338_v6 = vpop.f32.mrb[83].mxu1 }
 0x246   : > { %2532 = vst [vmem:[#allocation2 + $0x140] sm:$0xff] %v2468_v4  ;;  %v2469_v7 = vadd.f32 %v2337_v5, %v803_v1  ;;  %v812_v1 = vld [vmem:[#allocation2 + $0x190] sm:$0xff] }
 0x248   : > { %2533 = vst [vmem:[#allocation2 + $0x148] sm:$0xff] %v2469_v7  ;;  %v813_v7 = vld [vmem:[#allocation2 + $0x198] sm:$0xff] }
 0x249   : > { %v2052_v8 = vpop.f32.mrb[84].mxu0  ;;  %v2341_v10 = vpop.f32.mrb[84].mxu1 }
 0x24a   : > { %v2054_v11 = vpop.f32.mrb[85].mxu0  ;;  %v2342_v12 = vadd.f32 %v2341_v10, %v2052_v8  ;;  %v2343_v13 = vpop.f32.mrb[85].mxu1 }
 0x24b   : > { %v2055_v14 = vpop.f32.mrb[86].mxu0  ;;  %v2344_v16 = vpop.f32.mrb[86].mxu1 }
 0x24c   : > { %v2057_v17 = vpop.f32.mrb[87].mxu0  ;;  %v2470_v18 = vadd.f32 %v2342_v12, %v804_v9  ;;  %v2345_v19 = vadd.f32 %v2344_v16, %v2055_v14  ;;  %v2346_v20 = vpop.f32.mrb[87].mxu1 }
 0x24e   : > { %2534 = vst [vmem:[#allocation2 + $0x150] sm:$0xff] %v2470_v18  ;;  %v2471_v21 = vadd.f32 %v2345_v19, %v805_v15  ;;  %v814_v15 = vld [vmem:[#allocation2 + $0x1a0] sm:$0xff] }
 0x250   : > { %2535 = vst [vmem:[#allocation2 + $0x158] sm:$0xff] %v2471_v21  ;;  %v815_v21 = vld [vmem:[#allocation2 + $0x1a8] sm:$0xff] }
 0x251   : > { %v2060_v22 = vpop.f32.mrb[88].mxu0  ;;  %v2349_v24 = vpop.f32.mrb[88].mxu1 }
 0x252   : > { %v2062_v25 = vpop.f32.mrb[89].mxu0  ;;  %v2350_v26 = vadd.f32 %v2349_v24, %v2060_v22  ;;  %v2351_v27 = vpop.f32.mrb[89].mxu1 }
 0x253   : > { %v2063_v28 = vpop.f32.mrb[90].mxu0  ;;  %v2352_v30 = vpop.f32.mrb[90].mxu1 }
 0x254   : > { %v2065_v31 = vpop.f32.mrb[91].mxu0  ;;  %v2472_v32 = vadd.f32 %v2350_v26, %v806_v23  ;;  %v2353_v33 = vadd.f32 %v2352_v30, %v2063_v28  ;;  %v2354_v34 = vpop.f32.mrb[91].mxu1 }
 0x256   : > { %2536 = vst [vmem:[#allocation2 + $0x160] sm:$0xff] %v2472_v32  ;;  %v2473_v35 = vadd.f32 %v2353_v33, %v807_v29  ;;  %v816_v29 = vld [vmem:[#allocation2 + $0x1b0] sm:$0xff] }
 0x258   : > { %2537 = vst [vmem:[#allocation2 + $0x168] sm:$0xff] %v2473_v35  ;;  %v817_v35 = vld [vmem:[#allocation2 + $0x1b8] sm:$0xff] }
 0x259   : > { %v2068_v36 = vpop.f32.mrb[92].mxu0  ;;  %v2357_v38 = vpop.f32.mrb[92].mxu1 }
 0x25a   : > { %v2070_v39 = vpop.f32.mrb[93].mxu0  ;;  %v2358_v40 = vadd.f32 %v2357_v38, %v2068_v36  ;;  %v2359_v41 = vpop.f32.mrb[93].mxu1 }
 0x25b   : > { %v2071_v42 = vpop.f32.mrb[94].mxu0  ;;  %v2360_v44 = vpop.f32.mrb[94].mxu1 }
 0x25c   : > { %v2073_v45 = vpop.f32.mrb[95].mxu0  ;;  %v2474_v46 = vadd.f32 %v2358_v40, %v808_v37  ;;  %v2361_v47 = vadd.f32 %v2360_v44, %v2071_v42  ;;  %v2362_v48 = vpop.f32.mrb[95].mxu1 }
 0x25e   : > { %2538 = vst [vmem:[#allocation2 + $0x170] sm:$0xff] %v2474_v46  ;;  %v2475_v49 = vadd.f32 %v2361_v47, %v809_v43  ;;  %v818_v43 = vld [vmem:[#allocation2 + $0x1c0] sm:$0xff] }
 0x260   : > { %2539 = vst [vmem:[#allocation2 + $0x178] sm:$0xff] %v2475_v49  ;;  %v819_v49 = vld [vmem:[#allocation2 + $0x1c8] sm:$0xff] }
 0x261   : > { %v2076_v50 = vpop.f32.mrb[96].mxu0  ;;  %v2365_v52 = vpop.f32.mrb[96].mxu1 }
 0x262   : > { %v2078_v53 = vpop.f32.mrb[97].mxu0  ;;  %v2366_v54 = vadd.f32 %v2365_v52, %v2076_v50  ;;  %v2367_v55 = vpop.f32.mrb[97].mxu1 }
 0x263   : > { %v2079_v56 = vpop.f32.mrb[98].mxu0  ;;  %v2368_v58 = vpop.f32.mrb[98].mxu1 }
 0x264   : > { %v2081_v59 = vpop.f32.mrb[99].mxu0  ;;  %v2476_v60 = vadd.f32 %v2366_v54, %v810_v51  ;;  %v2369_v61 = vadd.f32 %v2368_v58, %v2079_v56  ;;  %v2370_v62 = vpop.f32.mrb[99].mxu1 }
 0x266   : > { %2540 = vst [vmem:[#allocation2 + $0x180] sm:$0xff] %v2476_v60  ;;  %v2477_v63 = vadd.f32 %v2369_v61, %v811_v57  ;;  %v820_v57 = vld [vmem:[#allocation2 + $0x1d0] sm:$0xff] }
 0x268   : > { %2541 = vst [vmem:[#allocation2 + $0x188] sm:$0xff] %v2477_v63  ;;  %v821_v63 = vld [vmem:[#allocation2 + $0x1d8] sm:$0xff] }
 0x269   : > { %v2084_v0 = vpop.f32.mrb[100].mxu0  ;;  %v2373_v2 = vpop.f32.mrb[100].mxu1 }
 0x26a   : > { %v2086_v3 = vpop.f32.mrb[101].mxu0  ;;  %v2374_v4 = vadd.f32 %v2373_v2, %v2084_v0  ;;  %v2375_v5 = vpop.f32.mrb[101].mxu1 }
 0x26b   : > { %v2087_v6 = vpop.f32.mrb[102].mxu0  ;;  %v2376_v8 = vpop.f32.mrb[102].mxu1 }
 0x26c   : > { %v2089_v9 = vpop.f32.mrb[103].mxu0  ;;  %v2478_v10 = vadd.f32 %v2374_v4, %v812_v1  ;;  %v2377_v11 = vadd.f32 %v2376_v8, %v2087_v6  ;;  %v2378_v12 = vpop.f32.mrb[103].mxu1 }
 0x26e   : > { %2542 = vst [vmem:[#allocation2 + $0x190] sm:$0xff] %v2478_v10  ;;  %v2479_v13 = vadd.f32 %v2377_v11, %v813_v7  ;;  %v822_v7 = vld [vmem:[#allocation2 + $0x1e0] sm:$0xff] }
 0x270   : > { %2543 = vst [vmem:[#allocation2 + $0x198] sm:$0xff] %v2479_v13  ;;  %v823_v13 = vld [vmem:[#allocation2 + $0x1e8] sm:$0xff] }
 0x271   : > { %v2092_v14 = vpop.f32.mrb[104].mxu0  ;;  %v2381_v16 = vpop.f32.mrb[104].mxu1 }
 0x272   : > { %v2094_v17 = vpop.f32.mrb[105].mxu0  ;;  %v2382_v18 = vadd.f32 %v2381_v16, %v2092_v14  ;;  %v2383_v19 = vpop.f32.mrb[105].mxu1 }
 0x273   : > { %v2095_v20 = vpop.f32.mrb[106].mxu0  ;;  %v2384_v22 = vpop.f32.mrb[106].mxu1 }
 0x274   : > { %v2097_v23 = vpop.f32.mrb[107].mxu0  ;;  %v2480_v24 = vadd.f32 %v2382_v18, %v814_v15  ;;  %v2385_v25 = vadd.f32 %v2384_v22, %v2095_v20  ;;  %v2386_v26 = vpop.f32.mrb[107].mxu1 }
 0x276   : > { %2544 = vst [vmem:[#allocation2 + $0x1a0] sm:$0xff] %v2480_v24  ;;  %v2481_v27 = vadd.f32 %v2385_v25, %v815_v21  ;;  %v824_v21 = vld [vmem:[#allocation2 + $0x1f0] sm:$0xff] }
 0x278   : > { %2545 = vst [vmem:[#allocation2 + $0x1a8] sm:$0xff] %v2481_v27  ;;  %v825_v27 = vld [vmem:[#allocation2 + $0x1f8] sm:$0xff] }
 0x279   : > { %v2100_v28 = vpop.f32.mrb[108].mxu0  ;;  %v2389_v30 = vpop.f32.mrb[108].mxu1 }
 0x27a   : > { %v2102_v31 = vpop.f32.mrb[109].mxu0  ;;  %v2390_v32 = vadd.f32 %v2389_v30, %v2100_v28  ;;  %v2391_v33 = vpop.f32.mrb[109].mxu1 }
 0x27b   : > { %v2103_v34 = vpop.f32.mrb[110].mxu0  ;;  %v2392_v36 = vpop.f32.mrb[110].mxu1 }
 0x27c   : > { %v2105_v37 = vpop.f32.mrb[111].mxu0  ;;  %v2482_v38 = vadd.f32 %v2390_v32, %v816_v29  ;;  %v2393_v39 = vadd.f32 %v2392_v36, %v2103_v34  ;;  %v2394_v40 = vpop.f32.mrb[111].mxu1 }
 0x27e   : > { %2546 = vst [vmem:[#allocation2 + $0x1b0] sm:$0xff] %v2482_v38  ;;  %v2483_v41 = vadd.f32 %v2393_v39, %v817_v35 }
 0x280   : > { %2547 = vst [vmem:[#allocation2 + $0x1b8] sm:$0xff] %v2483_v41 }
 0x281   : > { %v2108_v42 = vpop.f32.mrb[112].mxu0  ;;  %v2397_v44 = vpop.f32.mrb[112].mxu1 }
 0x282   : > { %v2110_v45 = vpop.f32.mrb[113].mxu0  ;;  %v2398_v46 = vadd.f32 %v2397_v44, %v2108_v42  ;;  %v2399_v47 = vpop.f32.mrb[113].mxu1 }
 0x283   : > { %v2111_v48 = vpop.f32.mrb[114].mxu0  ;;  %v2400_v50 = vpop.f32.mrb[114].mxu1 }
 0x284   : > { %v2113_v51 = vpop.f32.mrb[115].mxu0  ;;  %v2484_v52 = vadd.f32 %v2398_v46, %v818_v43  ;;  %v2401_v53 = vadd.f32 %v2400_v50, %v2111_v48  ;;  %v2402_v54 = vpop.f32.mrb[115].mxu1 }
 0x286   : > { %2548 = vst [vmem:[#allocation2 + $0x1c0] sm:$0xff] %v2484_v52  ;;  %v2485_v55 = vadd.f32 %v2401_v53, %v819_v49 }
 0x288   : > { %2549 = vst [vmem:[#allocation2 + $0x1c8] sm:$0xff] %v2485_v55 }
 0x289   : > { %v2116_v56 = vpop.f32.mrb[116].mxu0  ;;  %v2405_v58 = vpop.f32.mrb[116].mxu1 }
 0x28a   : > { %v2118_v59 = vpop.f32.mrb[117].mxu0  ;;  %v2406_v60 = vadd.f32 %v2405_v58, %v2116_v56  ;;  %v2407_v61 = vpop.f32.mrb[117].mxu1 }
 0x28b   : > { %v2119_v62 = vpop.f32.mrb[118].mxu0  ;;  %v2408_v0 = vpop.f32.mrb[118].mxu1 }
 0x28c   : > { %v2121_v1 = vpop.f32.mrb[119].mxu0  ;;  %v2486_v2 = vadd.f32 %v2406_v60, %v820_v57  ;;  %v2409_v3 = vadd.f32 %v2408_v0, %v2119_v62  ;;  %v2410_v4 = vpop.f32.mrb[119].mxu1 }
 0x28e   : > { %2550 = vst [vmem:[#allocation2 + $0x1d0] sm:$0xff] %v2486_v2  ;;  %v2487_v5 = vadd.f32 %v2409_v3, %v821_v63 }
 0x290   : > { %2551 = vst [vmem:[#allocation2 + $0x1d8] sm:$0xff] %v2487_v5 }
 0x291   : > { %v2124_v6 = vpop.f32.mrb[120].mxu0  ;;  %v2413_v8 = vpop.f32.mrb[120].mxu1 }
 0x292   : > { %v2126_v9 = vpop.f32.mrb[121].mxu0  ;;  %v2414_v10 = vadd.f32 %v2413_v8, %v2124_v6  ;;  %v2415_v11 = vpop.f32.mrb[121].mxu1 }
 0x293   : > { %v2127_v12 = vpop.f32.mrb[122].mxu0  ;;  %v2416_v14 = vpop.f32.mrb[122].mxu1 }
 0x294   : > { %v2129_v15 = vpop.f32.mrb[123].mxu0  ;;  %v2488_v16 = vadd.f32 %v2414_v10, %v822_v7  ;;  %v2417_v17 = vadd.f32 %v2416_v14, %v2127_v12  ;;  %v2418_v18 = vpop.f32.mrb[123].mxu1 }
 0x296   : > { %2552 = vst [vmem:[#allocation2 + $0x1e0] sm:$0xff] %v2488_v16  ;;  %v2489_v19 = vadd.f32 %v2417_v17, %v823_v13 }
 0x298   : > { %2553 = vst [vmem:[#allocation2 + $0x1e8] sm:$0xff] %v2489_v19 }
 0x299   : > { %v2132_v20 = vpop.f32.mrb[124].mxu0  ;;  %v2421_v22 = vpop.f32.mrb[124].mxu1 }
 0x29a   : > { %v2134_v23 = vpop.f32.mrb[125].mxu0  ;;  %v2422_v24 = vadd.f32 %v2421_v22, %v2132_v20  ;;  %v2423_v25 = vpop.f32.mrb[125].mxu1  ;;  %2559 = sbr.rel (%p4828_p13) target bundleno = 1325 (0x52d), region = 87 }
 0x29b   : > { %v2135_v26 = vpop.f32.mrb[126].mxu0  ;;  %v2424_v28 = vpop.f32.mrb[126].mxu1 }
 0x29c   : > { %v2137_v29 = vpop.f32.mrb[127].mxu0  ;;  %v2490_v30 = vadd.f32 %v2422_v24, %v824_v21  ;;  %v2425_v31 = vadd.f32 %v2424_v28, %v2135_v26  ;;  %v2426_v32 = vpop.f32.mrb[127].mxu1 }
 0x29e   : > { %2554 = vst [vmem:[#allocation2 + $0x1f0] sm:$0xff] %v2490_v30  ;;  %v2491_v33 = vadd.f32 %v2425_v31, %v825_v27 }
 0x2a0   : > { %2555 = vst [vmem:[#allocation2 + $0x1f8] sm:$0xff] %v2491_v33 }
 0x2a1   : > { %v2823_v34 = vld [vmem:[%s8399_s5] sm:$0xff]  ;;  %v2824_v35 = vld [vmem:[%s8399_s5 + $0x8] sm:$0xff]  ;;  %v2825_v36 = vld [vmem:[%s8399_s5 + $0x10] sm:$0xff] }
 0x2a2   : > { %v5633_v37 = vpack.c.bf16 %v2824_v35, %v2823_v34  ;;  %v2826_v38 = vld [vmem:[%s8399_s5 + $0x18] sm:$0xff]  ;;  %v2827_v40 = vld [vmem:[%s8399_s5 + $0x20] sm:$0xff]  ;;  %v2828_v41 = vld [vmem:[%s8399_s5 + $0x28] sm:$0xff] }
 0x2a3   : > { %v5637_v39 = vpack.c.bf16 %v2826_v38, %v2825_v36  ;;  %v5641_v42 = vpack.c.bf16 %v2828_v41, %v2827_v40  ;;  %v2560_v43 = vld [vmem:[#allocation2] sm:$0xff]  ;;  %v2829_v45 = vld [vmem:[%s8399_s5 + $0x30] sm:$0xff]  ;;  %v2830_v46 = vld [vmem:[%s8399_s5 + $0x38] sm:$0xff] }
 0x2a4   : > { %5634 = vmatprep.subr.bf16.mxu0 %v5633_v37  ;;  %v6971_v44 = vld [vmem:[%s8396_s2] ss:$0 sm:$0xff]  ;;  %v5645_v48 = vpack.c.bf16 %v2830_v46, %v2829_v45  ;;  %v2832_v50 = vld [vmem:[%s8399_s5 + $0x48] sm:$0xff]  ;;  %v2833_v52 = vld [vmem:[%s8399_s5 + $0x50] sm:$0xff] }
 0x2a5   : > { %5636 = vmatpush3.bf16.msra.mxu0 %v5633_v37  ;;  %v6980_v47 = vadd.f32 %v6971_v44, %v2560_v43  ;;  %v2831_v49 = vld [vmem:[%s8399_s5 + $0x40] sm:$0xff]  ;;  %v2834_v53 = vld [vmem:[%s8399_s5 + $0x58] sm:$0xff]  ;;  %v2836_v56 = vld [vmem:[%s8399_s5 + $0x68] sm:$0xff] }
 0x2a6   : > { %5638 = vmatprep.subr.bf16.mxu0 %v5637_v39  ;;  %v5649_v51 = vpack.c.bf16 %v2832_v50, %v2831_v49  ;;  %v5653_v54 = vpack.c.bf16 %v2834_v53, %v2833_v52  ;;  %v2835_v55 = vld [vmem:[%s8399_s5 + $0x60] sm:$0xff]  ;;  %v2837_v58 = vld [vmem:[%s8399_s5 + $0x70] sm:$0xff]  ;;  %v2838_v59 = vld [vmem:[%s8399_s5 + $0x78] sm:$0xff] }
 0x2a7   : > { %8486 = vst [vmem:[#allocation7_spill] sm:$0xff] %v6980_v47  ;;  %5409 = vmatprep.mubr.f32.mxu0 %v6980_v47  ;;  %v5657_v57 = vpack.c.bf16 %v2836_v56, %v2835_v55  ;;  %v5661_v60 = vpack.c.bf16 %v2838_v59, %v2837_v58  ;;  %v2561_v61 = vld [vmem:[#allocation2 + $0x8] sm:$0xff]  ;;  %v2562_v62 = vld [vmem:[#allocation2 + $0x10] sm:$0xff]  ;;  %v2563_v1 = vld [vmem:[#allocation2 + $0x18] sm:$0xff] }
 0x2a8   : > { %v7008_v63 = vadd.f32 %v6971_v44, %v2561_v61  ;;  %v7011_v0 = vadd.f32 %v6971_v44, %v2562_v62  ;;  %v2564_v2 = vld [vmem:[#allocation2 + $0x20] sm:$0xff]  ;;  %v7015_v3 = vadd.f32 %v6971_v44, %v2563_v1  ;;  %v2565_v5 = vld [vmem:[#allocation2 + $0x28] sm:$0xff]  ;;  %v2566_v6 = vld [vmem:[#allocation2 + $0x30] sm:$0xff] }
 0x2a9   : > { %5640 = vmatpush3.bf16.msra.mxu0 %v5637_v39  ;;  %v7019_v4 = vadd.f32 %v6971_v44, %v2564_v2  ;;  %v7023_v7 = vadd.f32 %v6971_v44, %v2565_v5  ;;  %v7027_v8 = vadd.f32 %v6971_v44, %v2566_v6  ;;  %v2567_v9 = vld [vmem:[#allocation2 + $0x38] sm:$0xff]  ;;  %v2568_v10 = vld [vmem:[#allocation2 + $0x40] sm:$0xff]  ;;  %v2569_v13 = vld [vmem:[#allocation2 + $0x48] sm:$0xff] }
 0x2aa   : > { %5642 = vmatprep.subr.bf16.mxu0 %v5641_v42  ;;  %8487 = vst [vmem:[#allocation8_spill] sm:$0xff] %v7008_v63  ;;  %v7031_v11 = vadd.f32 %v6971_v44, %v2567_v9  ;;  %v7035_v12 = vadd.f32 %v6971_v44, %v2568_v10  ;;  %v2570_v14 = vld [vmem:[#allocation2 + $0x50] sm:$0xff]  ;;  %v7039_v15 = vadd.f32 %v6971_v44, %v2569_v13  ;;  %v2571_v17 = vld [vmem:[#allocation2 + $0x58] sm:$0xff]  ;;  %v2572_v18 = vld [vmem:[#allocation2 + $0x60] sm:$0xff] }
 0x2ab   : > { %v7043_v16 = vadd.f32 %v6971_v44, %v2570_v14  ;;  %v7047_v19 = vadd.f32 %v6971_v44, %v2571_v17  ;;  %v7051_v20 = vadd.f32 %v6971_v44, %v2572_v18  ;;  %v2573_v21 = vld [vmem:[#allocation2 + $0x68] sm:$0xff]  ;;  %v2574_v22 = vld [vmem:[#allocation2 + $0x70] sm:$0xff]  ;;  %v2575_v25 = vld [vmem:[#allocation2 + $0x78] sm:$0xff] }
 0x2ac   : > { %v7055_v23 = vadd.f32 %v6971_v44, %v2573_v21  ;;  %v7059_v24 = vadd.f32 %v6971_v44, %v2574_v22  ;;  %v2576_v26 = vld [vmem:[#allocation2 + $0x80] sm:$0xff]  ;;  %v7063_v27 = vadd.f32 %v6971_v44, %v2575_v25  ;;  %v2577_v29 = vld [vmem:[#allocation2 + $0x88] sm:$0xff]  ;;  %v2578_v30 = vld [vmem:[#allocation2 + $0x90] sm:$0xff] }
 0x2ad   : > { %5644 = vmatpush3.bf16.msra.mxu0 %v5641_v42  ;;  %v7067_v28 = vadd.f32 %v6971_v44, %v2576_v26  ;;  %v7071_v31 = vadd.f32 %v6971_v44, %v2577_v29  ;;  %v7075_v32 = vadd.f32 %v6971_v44, %v2578_v30  ;;  %v2579_v33 = vld [vmem:[#allocation2 + $0x98] sm:$0xff]  ;;  %v2580_v34 = vld [vmem:[#allocation2 + $0xa0] sm:$0xff]  ;;  %v2581_v37 = vld [vmem:[#allocation2 + $0xa8] sm:$0xff] }
 0x2ae   : > { %5646 = vmatprep.subr.bf16.mxu0 %v5645_v48  ;;  %v7079_v35 = vadd.f32 %v6971_v44, %v2579_v33  ;;  %v7083_v36 = vadd.f32 %v6971_v44, %v2580_v34  ;;  %v2582_v38 = vld [vmem:[#allocation2 + $0xb0] sm:$0xff]  ;;  %v7087_v39 = vadd.f32 %v6971_v44, %v2581_v37  ;;  %v2583_v41 = vld [vmem:[#allocation2 + $0xb8] sm:$0xff]  ;;  %v2584_v42 = vld [vmem:[#allocation2 + $0xc0] sm:$0xff] }
 0x2af   : > { %v7091_v40 = vadd.f32 %v6971_v44, %v2582_v38  ;;  %v7095_v43 = vadd.f32 %v6971_v44, %v2583_v41  ;;  %v7099_v45 = vadd.f32 %v6971_v44, %v2584_v42  ;;  %v2585_v46 = vld [vmem:[#allocation2 + $0xc8] sm:$0xff]  ;;  %v2588_v52 = vld [vmem:[#allocation2 + $0xe0] sm:$0xff]  ;;  %v2590_v56 = vld [vmem:[#allocation2 + $0xf0] sm:$0xff] }
 0x2b0   : > { %v7103_v49 = vadd.f32 %v6971_v44, %v2585_v46  ;;  %v2589_v55 = vld [vmem:[#allocation2 + $0xe8] sm:$0xff]  ;;  %v7123_v58 = vadd.f32 %v6971_v44, %v2590_v56  ;;  %v2591_v59 = vld [vmem:[#allocation2 + $0xf8] sm:$0xff]  ;;  %v2594_v2 = vld [vmem:[#allocation2 + $0x110] sm:$0xff] }
 0x2b1   : > { %5648 = vmatpush3.bf16.msra.mxu0 %v5645_v48  ;;  %v2586_v48 = vld [vmem:[#allocation2 + $0xd0] sm:$0xff]  ;;  %v7127_v61 = vadd.f32 %v6971_v44, %v2591_v59  ;;  %v2593_v1 = vld [vmem:[#allocation2 + $0x108] sm:$0xff]  ;;  %v7139_v6 = vadd.f32 %v6971_v44, %v2594_v2  ;;  %v2595_v9 = vld [vmem:[#allocation2 + $0x118] sm:$0xff] }
 0x2b2   : > { %5650 = vmatprep.subr.bf16.mxu0 %v5649_v51  ;;  %v7107_v50 = vadd.f32 %v6971_v44, %v2586_v48  ;;  %v7135_v5 = vadd.f32 %v6971_v44, %v2593_v1  ;;  %v2596_v10 = vld [vmem:[#allocation2 + $0x120] sm:$0xff]  ;;  %v7143_v13 = vadd.f32 %v6971_v44, %v2595_v9  ;;  %v2597_v17 = vld [vmem:[#allocation2 + $0x128] sm:$0xff]  ;;  %v2598_v18 = vld [vmem:[#allocation2 + $0x130] sm:$0xff] }
 0x2b3   : > { %v7147_v14 = vadd.f32 %v6971_v44, %v2596_v10  ;;  %v7151_v21 = vadd.f32 %v6971_v44, %v2597_v17  ;;  %v7155_v22 = vadd.f32 %v6971_v44, %v2598_v18  ;;  %v2599_v25 = vld [vmem:[#allocation2 + $0x138] sm:$0xff]  ;;  %v2600_v26 = vld [vmem:[#allocation2 + $0x140] sm:$0xff]  ;;  %v2601_v33 = vld [vmem:[#allocation2 + $0x148] sm:$0xff] }
 0x2b4   : > { %v7159_v29 = vadd.f32 %v6971_v44, %v2599_v25  ;;  %v7163_v30 = vadd.f32 %v6971_v44, %v2600_v26  ;;  %v2602_v34 = vld [vmem:[#allocation2 + $0x150] sm:$0xff]  ;;  %v7167_v37 = vadd.f32 %v6971_v44, %v2601_v33  ;;  %v2603_v41 = vld [vmem:[#allocation2 + $0x158] sm:$0xff]  ;;  %v2604_v42 = vld [vmem:[#allocation2 + $0x160] sm:$0xff] }
 0x2b5   : > { %5652 = vmatpush3.bf16.msra.mxu0 %v5649_v51  ;;  %v2587_v51 = vld [vmem:[#allocation2 + $0xd8] sm:$0xff]  ;;  %v7171_v38 = vadd.f32 %v6971_v44, %v2602_v34  ;;  %v7175_v46 = vadd.f32 %v6971_v44, %v2603_v41  ;;  %v7179_v48 = vadd.f32 %v6971_v44, %v2604_v42  ;;  %v4064_v1 = vld [vmem:[%s8401_s7 + $0x8] sm:$0xff]  ;;  %v2608_v2 = vld [vmem:[#allocation2 + $0x180] sm:$0xff] }
 0x2b6   : > { %5654 = vmatprep.subr.bf16.mxu0 %v5653_v54  ;;  %v7111_v53 = vadd.f32 %v6971_v44, %v2587_v51  ;;  %v2605_v51 = vld [vmem:[#allocation2 + $0x168] sm:$0xff]  ;;  %v2607_v59 = vld [vmem:[#allocation2 + $0x178] sm:$0xff]  ;;  %v7201_v17 = vadd.f32 %v6971_v44, %v2608_v2  ;;  %v4065_v25 = vld [vmem:[%s8401_s7 + $0x10] sm:$0xff] }
 0x2b7   : > { %v7197_v10 = vadd.f32 %v6971_v44, %v2607_v59  ;;  %v2609_v18 = vld [vmem:[#allocation2 + $0x188] sm:$0xff]  ;;  %v4066_v26 = vld [vmem:[%s8401_s7 + $0x18] sm:$0xff]  ;;  %v2610_v33 = vld [vmem:[#allocation2 + $0x190] sm:$0xff] }
 0x2b8   : > { %v5669_v34 = vpack.c.bf16 %v4066_v26, %v4065_v25  ;;  %v7211_v41 = vadd.f32 %v6971_v44, %v2609_v18  ;;  %v7215_v42 = vadd.f32 %v6971_v44, %v2610_v33  ;;  %v4067_v59 = vld [vmem:[%s8401_s7 + $0x20] sm:$0xff]  ;;  %v2613_v18 = vld [vmem:[#allocation2 + $0x1a8] sm:$0xff]  ;;  %v2614_v25 = vld [vmem:[#allocation2 + $0x1b0] sm:$0xff] }
 0x2b9   : > { %5656 = vmatpush3.bf16.msra.mxu0 %v5653_v54  ;;  %v7115_v54 = vadd.f32 %v6971_v44, %v2588_v52  ;;  %v2606_v52 = vld [vmem:[#allocation2 + $0x170] sm:$0xff]  ;;  %v4070_v33 = vld [vmem:[%s8401_s7 + $0x38] sm:$0xff] }
 0x2ba   : > { %5658 = vmatprep.subr.bf16.mxu0 %v5657_v57  ;;  %v7187_v56 = vadd.f32 %v6971_v44, %v2606_v52  ;;  %8488 = vst [vmem:[#allocation9_spill] sm:$0xff] %v7211_v41  ;;  %8489 = vst [vmem:[#allocation10_spill] sm:$0xff] %v7215_v42  ;;  %v2612_v52 = vld [vmem:[#allocation2 + $0x1a0] sm:$0xff]  ;;  %v4069_v26 = vld [vmem:[%s8401_s7 + $0x30] sm:$0xff] }
 0x2bd   : > { %5660 = vmatpush3.bf16.msra.mxu0 %v5657_v57  ;;  %v7119_v57 = vadd.f32 %v6971_v44, %v2589_v55  ;;  %v7183_v55 = vadd.f32 %v6971_v44, %v2605_v51  ;;  %v2611_v51 = vld [vmem:[#allocation2 + $0x198] sm:$0xff] }
 0x2be   : > { %5662 = vmatprep.subr.bf16.mxu0 %v5661_v60 }
 0x2c1   : > { %5664 = vmatpush3.bf16.msra.mxu0 %v5661_v60  ;;  %v2592_v60 = vld [vmem:[#allocation2 + $0x100] sm:$0xff] }
 0x2c2   : > { %v7131_v62 = vadd.f32 %v6971_v44, %v2592_v60  ;;  %v4063_v60 = vld [vmem:[%s8401_s7] sm:$0xff] }
 0x2c3   : > { %v5665_v9 = vpack.c.bf16 %v4064_v1, %v4063_v60  ;;  %v4068_v60 = vld [vmem:[%s8401_s7 + $0x28] sm:$0xff]  ;;  %v7225_v1 = vadd.f32 %v6971_v44, %v2611_v51  ;;  %v5677_v51 = vpack.c.bf16 %v4070_v33, %v4069_v26 }
 0x2c4   : > { %5410 = vmatmul.mubr.f32.vlgmr.msra.gmra.mrb[0].mxu0 %v7008_v63  ;;  %v5673_v2 = vpack.c.bf16 %v4068_v60, %v4067_v59  ;;  %v2615_v59 = vld [vmem:[#allocation2 + $0x1b8] sm:$0xff]  ;;  %v2616_v60 = vld [vmem:[#allocation2 + $0x1c0] sm:$0xff]  ;;  %v4072_v63 = vld [vmem:[%s8401_s7 + $0x48] sm:$0xff] }
 0x2c5   : > { %5412 = vmatprep.mubr.f32.mxu0 %v7011_v0  ;;  %5666 = vmatprep.subr.bf16.mxu1 %v5665_v9  ;;  %8490 = vst [vmem:[#allocation11_spill] sm:$0xff] %v7225_v1  ;;  %v2617_v33 = vld [vmem:[#allocation2 + $0x1c8] sm:$0xff] }
 0x2c6   : > { %5668 = vmatpush3.bf16.msra.mxu1 %v5665_v9  ;;  %v7229_v9 = vadd.f32 %v6971_v44, %v2612_v52  ;;  %v7243_v52 = vadd.f32 %v6971_v44, %v2614_v25  ;;  %v7257_v25 = vadd.f32 %v6971_v44, %v2616_v60 }
 0x2c7   : > { %5670 = vmatprep.subr.bf16.mxu1 %v5669_v34 }
 0x2c8   : > { %5413 = vmatmul.mubr.f32.gmra.mrb[2].mxu0 %v7015_v3  ;;  %8491 = vst [vmem:[#allocation12_spill] sm:$0xff] %v7229_v9  ;;  %8493 = vst [vmem:[#allocation14_spill] sm:$0xff] %v7243_v52 }
 0x2c9   : > { %5415 = vmatprep.mubr.f32.mxu0 %v7019_v4  ;;  %8495 = vst [vmem:[#allocation16_spill] sm:$0xff] %v7257_v25 }
 0x2ca   : > { %5672 = vmatpush3.bf16.msra.mxu1 %v5669_v34  ;;  %v7239_v34 = vadd.f32 %v6971_v44, %v2613_v18  ;;  %v7253_v18 = vadd.f32 %v6971_v44, %v2615_v59 }
 0x2cb   : > { %5674 = vmatprep.subr.bf16.mxu1 %v5673_v2 }
 0x2cc   : > { %5416 = vmatmul.mubr.f32.gmra.mrb[4].mxu0 %v7023_v7  ;;  %8492 = vst [vmem:[#allocation13_spill] sm:$0xff] %v7239_v34  ;;  %8494 = vst [vmem:[#allocation15_spill] sm:$0xff] %v7253_v18 }
 0x2cd   : > { %5418 = vmatprep.mubr.f32.mxu0 %v7027_v8 }
 0x2ce   : > { %5676 = vmatpush3.bf16.msra.mxu1 %v5673_v2  ;;  %v4071_v2 = vld [vmem:[%s8401_s7 + $0x40] sm:$0xff] }
 0x2cf   : > { %5678 = vmatprep.subr.bf16.mxu1 %v5677_v51  ;;  %v5681_v26 = vpack.c.bf16 %v4072_v63, %v4071_v2  ;;  %v7267_v63 = vadd.f32 %v6971_v44, %v2617_v33  ;;  %v2619_v2 = vld [vmem:[#allocation2 + $0x1d8] sm:$0xff] }
 0x2d0   : > { %5419 = vmatmul.mubr.f32.gmra.mrb[6].mxu0 %v7031_v11 }
 0x2d1   : > { %5421 = vmatprep.mubr.f32.mxu0 %v7035_v12  ;;  %8496 = vst [vmem:[#allocation17_spill] sm:$0xff] %v7267_v63 }
 0x2d2   : > { %5680 = vmatpush3.bf16.msra.mxu1 %v5677_v51  ;;  %v2618_v51 = vld [vmem:[#allocation2 + $0x1d0] sm:$0xff] }
 0x2d3   : > { %5682 = vmatprep.subr.bf16.mxu1 %v5681_v26  ;;  %v7271_v60 = vadd.f32 %v6971_v44, %v2618_v51  ;;  %v2621_v51 = vld [vmem:[#allocation2 + $0x1e8] sm:$0xff] }
 0x2d4   : > { %5422 = vmatmul.mubr.f32.gmra.mrb[8].mxu0 %v7039_v15 }
 0x2d5   : > { %5424 = vmatprep.mubr.f32.mxu0 %v7043_v16  ;;  %8497 = vst [vmem:[#allocation18_spill] sm:$0xff] %v7271_v60 }
 0x2d6   : > { %5684 = vmatpush3.bf16.msra.mxu1 %v5681_v26  ;;  %v2620_v26 = vld [vmem:[#allocation2 + $0x1e0] sm:$0xff] }
 0x2d7   : > { %v7285_v33 = vadd.f32 %v6971_v44, %v2620_v26 }
 0x2d8   : > { %5425 = vmatmul.mubr.f32.gmra.mrb[10].mxu0 %v7047_v19 }
 0x2d9   : > { %5427 = vmatprep.mubr.f32.mxu0 %v7051_v20  ;;  %8499 = vst [vmem:[#allocation20_spill] sm:$0xff] %v7285_v33 }
 0x2dc   : > { %5428 = vmatmul.mubr.f32.gmra.mrb[12].mxu0 %v7055_v23 }
 0x2dd   : > { %5430 = vmatprep.mubr.f32.mxu0 %v7059_v24 }
 0x2e0   : > { %5431 = vmatmul.mubr.f32.gmra.mrb[14].mxu0 %v7063_v27 }
 0x2e1   : > { %5433 = vmatprep.mubr.f32.mxu0 %v7067_v28 }
 0x2e4   : > { %5434 = vmatmul.mubr.f32.gmra.mrb[16].mxu0 %v7071_v31 }
 0x2e5   : > { %5436 = vmatprep.mubr.f32.mxu0 %v7075_v32 }
 0x2e8   : > { %5437 = vmatmul.mubr.f32.gmra.mrb[18].mxu0 %v7079_v35 }
 0x2e9   : > { %5439 = vmatprep.mubr.f32.mxu0 %v7083_v36 }
 0x2ec   : > { %5440 = vmatmul.mubr.f32.gmra.mrb[20].mxu0 %v7087_v39 }
 0x2ed   : > { %5442 = vmatprep.mubr.f32.mxu0 %v7091_v40 }
 0x2f0   : > { %5443 = vmatmul.mubr.f32.gmra.mrb[22].mxu0 %v7095_v43 }
 0x2f1   : > { %5445 = vmatprep.mubr.f32.mxu0 %v7099_v45 }
 0x2f4   : > { %5446 = vmatmul.mubr.f32.gmra.mrb[24].mxu0 %v7103_v49 }
 0x2f5   : > { %5448 = vmatprep.mubr.f32.mxu0 %v7107_v50 }
 0x2f8   : > { %5449 = vmatmul.mubr.f32.gmra.mrb[26].mxu0 %v7111_v53 }
 0x2f9   : > { %5451 = vmatprep.mubr.f32.mxu0 %v7115_v54 }
 0x2fc   : > { %5452 = vmatmul.mubr.f32.gmra.mrb[28].mxu0 %v7119_v57 }
 0x2fd   : > { %5454 = vmatprep.mubr.f32.mxu0 %v7123_v58 }
 0x300   : > { %5455 = vmatmul.mubr.f32.gmra.mrb[30].mxu0 %v7127_v61 }
 0x301   : > { %5457 = vmatprep.mubr.f32.mxu0 %v7131_v62 }
 0x304   : > { %5458 = vmatmul.mubr.f32.gmra.mrb[32].mxu0 %v7135_v5 }
 0x305   : > { %5460 = vmatprep.mubr.f32.mxu0 %v7139_v6 }
 0x308   : > { %5461 = vmatmul.mubr.f32.gmra.mrb[34].mxu0 %v7143_v13 }
 0x309   : > { %5463 = vmatprep.mubr.f32.mxu0 %v7147_v14 }
 0x30c   : > { %5464 = vmatmul.mubr.f32.gmra.mrb[36].mxu0 %v7151_v21 }
 0x30d   : > { %5466 = vmatprep.mubr.f32.mxu0 %v7155_v22 }
 0x310   : > { %5467 = vmatmul.mubr.f32.gmra.mrb[38].mxu0 %v7159_v29 }
 0x311   : > { %5469 = vmatprep.mubr.f32.mxu0 %v7163_v30 }
 0x314   : > { %5470 = vmatmul.mubr.f32.gmra.mrb[40].mxu0 %v7167_v37 }
 0x315   : > { %5472 = vmatprep.mubr.f32.mxu0 %v7171_v38 }
 0x318   : > { %5473 = vmatmul.mubr.f32.gmra.mrb[42].mxu0 %v7175_v46 }
 0x319   : > { %5475 = vmatprep.mubr.f32.mxu0 %v7179_v48 }
 0x31c   : > { %5476 = vmatmul.mubr.f32.gmra.mrb[44].mxu0 %v7183_v55 }
 0x31d   : > { %5478 = vmatprep.mubr.f32.mxu0 %v7187_v56 }
 0x320   : > { %5479 = vmatmul.mubr.f32.gmra.mrb[46].mxu0 %v7197_v10 }
 0x321   : > { %5481 = vmatprep.mubr.f32.mxu0 %v7201_v17 }
 0x324   : > { %5482 = vmatmul.mubr.f32.gmra.mrb[48].mxu0 %v7211_v41 }
 0x325   : > { %5484 = vmatprep.mubr.f32.mxu0 %v7215_v42 }
 0x328   : > { %5485 = vmatmul.mubr.f32.gmra.mrb[50].mxu0 %v7225_v1  ;;  %v7345_v1 = vld [vmem:[%s6678_s0 + $0x40] sm:$0xff]  }
 0x329   : > { %5487 = vmatprep.mubr.f32.mxu0 %v7229_v9  ;;  %v4073_v9 = vld [vmem:[%s8401_s7 + $0x50] sm:$0xff]  ;;  %8508 = vst [vmem:[#allocation28_spill] sm:$0xff] %v7345_v1 }
 0x32c   : > { %5488 = vmatmul.mubr.f32.gmra.mrb[52].mxu0 %v7239_v34  ;;  %v4074_v34 = vld [vmem:[%s8401_s7 + $0x58] sm:$0xff] }
 0x32d   : > { %5490 = vmatprep.mubr.f32.mxu0 %v7243_v52  ;;  %v5685_v59 = vpack.c.bf16 %v4074_v34, %v4073_v9  ;;  %v4075_v52 = vld [vmem:[%s8401_s7 + $0x60] sm:$0xff]  ;;  %v7281_v9 = vadd.f32 %v6971_v44, %v2619_v2  ;;  %v4078_v2 = vld [vmem:[%s8401_s7 + $0x78] sm:$0xff] }
 0x32f   : > { %5686 = vmatprep.subr.bf16.mxu1 %v5685_v59  ;;  %8498 = vst [vmem:[#allocation19_spill] sm:$0xff] %v7281_v9 }
 0x330   : > { %5491 = vmatmul.mubr.f32.gmra.mrb[54].mxu0 %v7253_v18  ;;  %5688 = vmatpush3.bf16.msra.mxu1 %v5685_v59  ;;  %v4076_v18 = vld [vmem:[%s8401_s7 + $0x68] sm:$0xff]  ;;  %v2622_v59 = vld [vmem:[#allocation2 + $0x1f0] sm:$0xff] }
 0x331   : > { %5493 = vmatprep.mubr.f32.mxu0 %v7257_v25  ;;  %v5689_v34 = vpack.c.bf16 %v4076_v18, %v4075_v52  ;;  %v4077_v25 = vld [vmem:[%s8401_s7 + $0x70] sm:$0xff]  ;;  %v7295_v52 = vadd.f32 %v6971_v44, %v2621_v51  ;;  %v7299_v26 = vadd.f32 %v6971_v44, %v2622_v59 }
 0x332   : > { %v5693_v18 = vpack.c.bf16 %v4078_v2, %v4077_v25  ;;  %v7308_v25 = vld [vmem:[%s6678_s0 + $0x8] sm:$0xff]   ;;  %v7313_v2 = vld [vmem:[%s6678_s0 + $0x10] sm:$0xff]  }
 0x333   : > { %5690 = vmatprep.subr.bf16.mxu1 %v5689_v34  ;;  %8500 = vst [vmem:[#allocation21_spill] sm:$0xff] %v7295_v52  ;;  %8501 = vst [vmem:[#allocation22_spill] sm:$0xff] %v7299_v26  ;;  %v8424_v51 = vunpack.c.l.bf16 %v7308_v25  ;;  %v8511_v41 = vunpack.c.h.bf16 %v7313_v2 }
 0x334   : > { %5494 = vmatmul.mubr.f32.gmra.mrb[56].mxu0 %v7267_v63  ;;  %5692 = vmatpush3.bf16.msra.mxu1 %v5689_v34  ;;  %v2623_v34 = vld [vmem:[#allocation2 + $0x1f8] sm:$0xff]  ;;  %8503 = vst [vmem:[#allocation24_spill] sm:$0xff] %v7308_v25 }
 0x335   : > { %5496 = vmatprep.mubr.f32.mxu0 %v7271_v60  ;;  %5694 = vmatprep.subr.bf16.mxu1 %v5693_v18  ;;  %v7335_v59 = vsub.f32 %v7011_v0, %v8424_v51  ;;  %v8507_v60 = vunpack.c.h.bf16 %v7308_v25  ;;  %v7352_v51 = vld [vmem:[%s6678_s0 + $0x48] sm:$0xff]   ;;  %v7366_v0 = vsub.f32 %v7023_v7, %v8511_v41  ;;  %v7383_v41 = vld [vmem:[%s6678_s0 + $0x50] sm:$0xff]  }
 0x336   : > { %8509 = vst [vmem:[#allocation29_spill] sm:$0xff] %v7352_v51 }
 0x337   : > { %v7340_v63 = vsub.f32 %v7015_v3, %v8507_v60 }
 0x338   : > { %5497 = vmatmul.mubr.f32.gmra.mrb[58].mxu0 %v7281_v9  ;;  %5696 = vmatpush3.bf16.msra.mxu1 %v5693_v18  ;;  %v7303_v9 = vadd.f32 %v6971_v44, %v2623_v34  ;;  %v7319_v18 = vld [vmem:[%s6678_s0 + $0x20] sm:$0xff]   ;;  %v7322_v44 = vld [vmem:[%s6678_s0 + $0x28] sm:$0xff]  }
 0x339   : > { %5499 = vmatprep.mubr.f32.mxu0 %v7285_v33  ;;  %v7316_v33 = vld [vmem:[%s6678_s0 + $0x18] sm:$0xff]   ;;  %8505 = vst [vmem:[#allocation26_spill] sm:$0xff] %v7322_v44  ;;  %v8514_v25 = vunpack.c.l.bf16 %v7319_v18  ;;  %v8517_v7 = vunpack.c.h.bf16 %v7322_v44 }
 0x33a   : > { %8502 = vst [vmem:[#allocation23_spill] sm:$0xff] %v7303_v9  ;;  %8504 = vst [vmem:[#allocation25_spill] sm:$0xff] %v7316_v33  ;;  %v8512_v3 = vunpack.c.l.bf16 %v7316_v33  ;;  %v8513_v34 = vunpack.c.h.bf16 %v7316_v33  ;;  %v7406_v33 = vld [vmem:[%s6678_s0 + $0x58] sm:$0xff]  }
 0x33b   : > { %v7388_v60 = vsub.f32 %v7035_v12, %v8514_v25  ;;  %8518 = vst [vmem:[#allocation30_spill] sm:$0xff] %v7406_v33 }
 0x33c   : > { %5500 = vmatmul.mubr.f32.gmra.mrb[60].mxu0 %v7295_v52  ;;  %v7330_v52 = vld [vmem:[%s6678_s0 + $0x38] sm:$0xff]   ;;  %v7373_v47 = vsub.f32 %v7027_v8, %v8512_v3  ;;  %v8515_v8 = vunpack.c.h.bf16 %v7319_v18 }
 0x33d   : > { %5502 = vmatprep.mubr.f32.mxu0 %v7299_v26  ;;  %v7327_v26 = vld [vmem:[%s6678_s0 + $0x30] sm:$0xff]   ;;  %8506 = vst [vmem:[#allocation27_spill] sm:$0xff] %v7330_v52 }
 0x33e   : > { %v7393_v3 = vsub.f32 %v7039_v15, %v8515_v8  ;;  %v8519_v12 = vunpack.c.l.bf16 %v7327_v26  ;;  %v8520_v15 = vunpack.c.h.bf16 %v7327_v26 }
 0x340   : > { %5503 = vmatmul.mubr.f32.gmra.mrb[62].mxu0 %v7303_v9  ;;  %v8510_v9 = vunpack.c.l.bf16 %v7313_v2  ;;  %v7411_v25 = vsub.f32 %v7051_v20, %v8519_v12  ;;  %v7416_v8 = vsub.f32 %v7055_v23, %v8520_v15  ;;  %v7432_v20 = vld [vmem:[%s6678_s0 + $0x68] sm:$0xff]   ;;  %v8527_v12 = vunpack.c.l.bf16 %v7345_v1 }
 0x341   : > { %8526 = vst [vmem:[#allocation34_spill] sm:$0xff] %v7432_v20  ;;  %v8529_v15 = vunpack.c.h.bf16 %v7345_v1 }
 0x342   : > { %v7361_v42 = vsub.f32 %v7019_v4, %v8510_v9  ;;  %v7378_v4 = vsub.f32 %v7031_v11, %v8513_v34  ;;  %v8516_v11 = vunpack.c.l.bf16 %v7322_v44  ;;  %v7403_v9 = vsub.f32 %v7047_v19, %v8517_v7  ;;  %v7429_v44 = vld [vmem:[%s6678_s0 + $0x60] sm:$0xff]  }
 0x343   : > { %v8523_v19 = vunpack.c.h.bf16 %v7330_v52  ;;  %8525 = vst [vmem:[#allocation33_spill] sm:$0xff] %v7429_v44  ;;  %v7437_v23 = vsub.f32 %v7067_v28, %v8527_v12  ;;  %v8533_v28 = vunpack.c.h.bf16 %v7352_v51 }
 0x344   : > { %v7398_v34 = vsub.f32 %v7043_v16, %v8516_v11  ;;  %v8521_v16 = vunpack.c.l.bf16 %v7330_v52  ;;  %v7450_v52 = vld [vmem:[%s6678_s0 + $0x78] sm:$0xff]  }
 0x345   : > { %v7426_v7 = vsub.f32 %v7063_v27, %v8523_v19  ;;  %8528 = vst [vmem:[#allocation35_spill] sm:$0xff] %v7437_v23  ;;  %v7447_v19 = vld [vmem:[%s6678_s0 + $0x70] sm:$0xff]   ;;  %8531 = vst [vmem:[#allocation37_spill] sm:$0xff] %v7450_v52  ;;  %v7460_v12 = vsub.f32 %v7079_v35, %v8533_v28  ;;  %v8536_v27 = vunpack.c.l.bf16 %v7383_v41  ;;  %v8537_v23 = vunpack.c.h.bf16 %v7383_v41 }
 0x346   : > { %v7421_v11 = vsub.f32 %v7059_v24, %v8521_v16  ;;  %v7442_v24 = vsub.f32 %v7071_v31, %v8529_v15  ;;  %8530 = vst [vmem:[#allocation36_spill] sm:$0xff] %v7447_v19  ;;  %v7465_v16 = vld [vmem:[%s6678_s0 + $0x80] sm:$0xff]   ;;  %v8538_v35 = vunpack.c.l.bf16 %v7406_v33  ;;  %v8539_v15 = vunpack.c.h.bf16 %v7406_v33  ;;  %v7526_v33 = vld [vmem:[%s6678_s0 + $0x98] sm:$0xff]  }
 0x347   : > { %8524 = vst [vmem:[#allocation32_spill] sm:$0xff] %v7426_v7  ;;  %8534 = vst [vmem:[#allocation38_spill] sm:$0xff] %v7465_v16  ;;  %v7481_v1 = vsub.f32 %v7083_v36, %v8536_v27 }
 0x348   : > { %8522 = vst [vmem:[#allocation31_spill] sm:$0xff] %v7421_v11  ;;  %v8532_v11 = vunpack.c.l.bf16 %v7352_v51  ;;  %v7493_v31 = vsub.f32 %v7091_v40, %v8538_v35  ;;  %v7498_v36 = vsub.f32 %v7095_v43, %v8539_v15  ;;  %v8541_v51 = vunpack.c.l.bf16 %v7429_v44  ;;  %8548 = vst [vmem:[#allocation44_spill] sm:$0xff] %v7526_v33 }
 0x349   : > { %v8543_v40 = vunpack.c.h.bf16 %v7429_v44  ;;  %v8544_v43 = vunpack.c.l.bf16 %v7432_v20 }
 0x34a   : > { %v7455_v7 = vsub.f32 %v7075_v32, %v8532_v11  ;;  %v7472_v11 = vld [vmem:[%s6678_s0 + $0x88] sm:$0xff]   ;;  %v7486_v32 = vsub.f32 %v7087_v39, %v8537_v23  ;;  %v7503_v23 = vld [vmem:[%s6678_s0 + $0x90] sm:$0xff]   ;;  %v7508_v28 = vsub.f32 %v7099_v45, %v8541_v51  ;;  %v8546_v39 = vunpack.c.h.bf16 %v7432_v20  ;;  %v7549_v20 = vld [vmem:[%s6678_s0 + $0xa0] sm:$0xff]  }
 0x34b   : > { %8535 = vst [vmem:[#allocation39_spill] sm:$0xff] %v7472_v11  ;;  %8540 = vst [vmem:[#allocation40_spill] sm:$0xff] %v7503_v23  ;;  %v7513_v35 = vsub.f32 %v7103_v49, %v8543_v40  ;;  %v7518_v15 = vsub.f32 %v7107_v50, %v8544_v43  ;;  %v8549_v45 = vunpack.c.l.bf16 %v7447_v19  ;;  %v8551_v49 = vunpack.c.h.bf16 %v7447_v19  ;;  %v7800_v19 = vld [vmem:[%s6683_s12 + $0xa0] sm:$0xff]  }
 0x34c   : > { %8542 = vst [vmem:[#allocation41_spill] sm:$0xff] %v7508_v28  ;;  %v7523_v27 = vsub.f32 %v7111_v53, %v8546_v39  ;;  %v8553_v50 = vunpack.c.l.bf16 %v7450_v52  ;;  %v8555_v53 = vunpack.c.h.bf16 %v7450_v52  ;;  %8557 = vst [vmem:[#allocation49_spill] sm:$0xff] %v7549_v20  ;;  %v7570_v52 = vld [vmem:[%s6678_s0 + $0xb8] sm:$0xff]  }
 0x34d   : > { %8545 = vst [vmem:[#allocation42_spill] sm:$0xff] %v7518_v15  ;;  %v7531_v51 = vsub.f32 %v7115_v54, %v8549_v45  ;;  %v7536_v40 = vsub.f32 %v7119_v57, %v8551_v49  ;;  %v7552_v54 = vld [vmem:[%s6678_s0 + $0xa8] sm:$0xff]   ;;  %v8559_v45 = vunpack.c.l.bf16 %v7465_v16  ;;  %v8561_v49 = vunpack.c.h.bf16 %v7465_v16  ;;  %8564 = vst [vmem:[#allocation54_spill] sm:$0xff] %v7570_v52 }
 0x34e   : > { %8547 = vst [vmem:[#allocation43_spill] sm:$0xff] %v7523_v27  ;;  %v7541_v43 = vsub.f32 %v7123_v58, %v8553_v50  ;;  %v7546_v39 = vsub.f32 %v7127_v61, %v8555_v53  ;;  %8558 = vst [vmem:[#allocation50_spill] sm:$0xff] %v7552_v54  ;;  %v7567_v53 = vld [vmem:[%s6678_s0 + $0xb0] sm:$0xff]   ;;  %v7585_v50 = vld [vmem:[%s6678_s0 + $0xc0] sm:$0xff]   ;;  %v8571_v61 = vunpack.c.l.bf16 %v7503_v23 }
 0x34f   : > { %8550 = vst [vmem:[#allocation45_spill] sm:$0xff] %v7531_v51  ;;  %8552 = vst [vmem:[#allocation46_spill] sm:$0xff] %v7536_v40  ;;  %v7557_v57 = vsub.f32 %v7131_v62, %v8559_v45  ;;  %v7562_v58 = vsub.f32 %v7135_v5, %v8561_v49  ;;  %v8567_v62 = vunpack.c.h.bf16 %v7472_v11  ;;  %v8577_v5 = vunpack.c.h.bf16 %v7526_v33 }
 0x350   : > { %8554 = vst [vmem:[#allocation47_spill] sm:$0xff] %v7541_v43  ;;  %8556 = vst [vmem:[#allocation48_spill] sm:$0xff] %v7546_v39  ;;  %v8565_v43 = vunpack.c.l.bf16 %v7472_v11  ;;  %v7601_v16 = vsub.f32 %v7147_v14, %v8571_v61  ;;  %v4900_v11 = vld [vmem:[%s6683_s12] sm:$0xff]  }
 0x351   : > { %8560 = vst [vmem:[#allocation51_spill] sm:$0xff] %v7557_v57  ;;  %8562 = vst [vmem:[#allocation52_spill] sm:$0xff] %v7562_v58  ;;  %v7580_v45 = vsub.f32 %v7143_v13, %v8567_v62  ;;  %v8573_v58 = vunpack.c.h.bf16 %v7503_v23  ;;  %v8575_v62 = vunpack.c.l.bf16 %v7526_v33  ;;  %v7618_v14 = vsub.f32 %v7159_v29, %v8577_v5  ;;  %v5155_v33 = vld [vmem:[%s6683_s12 + $0x8] sm:$0xff]  }
 0x352   : > { %8563 = vst [vmem:[#allocation53_spill] sm:$0xff] %v7567_v53  ;;  %v7575_v39 = vsub.f32 %v7139_v6, %v8565_v43  ;;  %8569 = vst [vmem:[#allocation57_spill] sm:$0xff] %v7585_v50  ;;  %v7592_v43 = vld [vmem:[%s6678_s0 + $0xc8] sm:$0xff]   ;;  %v8580_v13 = vunpack.c.l.bf16 %v7549_v20  ;;  %v8584_v29 = vunpack.c.l.bf16 %v7552_v54 }
 0x353   : > { %8568 = vst [vmem:[#allocation56_spill] sm:$0xff] %v7580_v45  ;;  %8570 = vst [vmem:[#allocation58_spill] sm:$0xff] %v7592_v43  ;;  %v7606_v6 = vsub.f32 %v7151_v21, %v8573_v58  ;;  %v7613_v49 = vsub.f32 %v7155_v22, %v8575_v62  ;;  %v7623_v58 = vld [vmem:[%s6678_s0 + $0xd0] sm:$0xff]   ;;  %v8582_v22 = vunpack.c.h.bf16 %v7549_v20  ;;  %v8586_v21 = vunpack.c.h.bf16 %v7552_v54  ;;  %v7761_v45 = vld [vmem:[%s6683_s12 + $0x68] sm:$0xff]  }
 0x354   : > { %8566 = vst [vmem:[#allocation55_spill] sm:$0xff] %v7575_v39  ;;  %8572 = vst [vmem:[#allocation59_spill] sm:$0xff] %v7601_v16  ;;  %v7629_v23 = vsub.f32 %v7163_v30, %v8580_v13  ;;  %v7639_v5 = vsub.f32 %v7171_v38, %v8584_v29  ;;  %v8588_v30 = vunpack.c.l.bf16 %v7567_v53  ;;  %v8590_v20 = vunpack.c.h.bf16 %v7567_v53  ;;  %v7668_v29 = vld [vmem:[%s6683_s12 + $0x10] sm:$0xff]   ;;  %v7756_v16 = vld [vmem:[%s6683_s12 + $0x60] sm:$0xff]  }
 0x355   : > { %8574 = vst [vmem:[#allocation60_spill] sm:$0xff] %v7606_v6  ;;  %8576 = vst [vmem:[#allocation61_spill] sm:$0xff] %v7613_v49  ;;  %v7634_v62 = vsub.f32 %v7167_v37, %v8582_v22  ;;  %v7644_v61 = vsub.f32 %v7175_v46, %v8586_v21  ;;  %v8592_v38 = vunpack.c.l.bf16 %v7570_v52  ;;  %v8594_v46 = vunpack.c.h.bf16 %v7570_v52  ;;  %v7766_v49 = vld [vmem:[%s6683_s12 + $0x70] sm:$0xff]   ;;  %v7783_v57 = vld [vmem:[%s6683_s12 + $0x88] sm:$0xff]  }
 0x356   : > { %8578 = vst [vmem:[#allocation62_spill] sm:$0xff] %v7618_v14  ;;  %8579 = vst [vmem:[#allocation63_spill] sm:$0xff] %v7623_v58  ;;  %v7650_v13 = vsub.f32 %v7179_v48, %v8588_v30  ;;  %v7655_v37 = vsub.f32 %v7183_v55, %v8590_v20  ;;  %v7671_v48 = vld [vmem:[%s6678_s0] sm:$0xff]   ;;  %v8596_v30 = vunpack.c.l.bf16 %v7585_v50  ;;  %v8598_v20 = vunpack.c.h.bf16 %v7585_v50  ;;  %v7788_v54 = vld [vmem:[%s6683_s12 + $0x90] sm:$0xff]  }
 0x357   : > { %8581 = vst [vmem:[#allocation64_spill] sm:$0xff] %v7629_v23  ;;  %8583 = vst [vmem:[#allocation65_spill] sm:$0xff] %v7634_v62  ;;  %v7660_v22 = vsub.f32 %v7187_v56, %v8592_v38  ;;  %v7665_v21 = vsub.f32 %v7197_v10, %v8594_v46  ;;  %v8599_v56 = vld [vmem:[#allocation9_spill] sm:$0xff]  ;;  %v4902_v10 = vunpack.c.h.bf16 %v4900_v11  ;;  %v7685_v46 = vld [vmem:[%s6683_s12 + $0x18] sm:$0xff]   ;;  %v8601_v53 = vunpack.c.l.bf16 %v7592_v43 }
 0x358   : > { %8585 = vst [vmem:[#allocation66_spill] sm:$0xff] %v7639_v5  ;;  %8587 = vst [vmem:[#allocation67_spill] sm:$0xff] %v7644_v61  ;;  %v7676_v55 = vsub.f32 %v7201_v17, %v8596_v30  ;;  %v7681_v38 = vsub.f32 %v8599_v56, %v8598_v20  ;;  %v8604_v17 = vunpack.c.h.bf16 %v7592_v43  ;;  %v8605_v30 = vld [vmem:[#allocation11_spill] sm:$0xff]  ;;  %v4901_v50 = vunpack.c.l.bf16 %v4900_v11  ;;  %v7701_v56 = vld [vmem:[%s6683_s12 + $0x28] sm:$0xff]  }
 0x359   : > { %8589 = vst [vmem:[#allocation68_spill] sm:$0xff] %v7650_v13  ;;  %8591 = vst [vmem:[#allocation69_spill] sm:$0xff] %v7655_v37  ;;  %v4906_v20 = vunpack.c.h.bf16 %v5155_v33  ;;  %v4905_v52 = vunpack.c.l.bf16 %v5155_v33  ;;  %v4910_v58 = vunpack.c.h.bf16 %v7668_v29  ;;  %v7708_v13 = vld [vmem:[%s6683_s12 + $0x38] sm:$0xff]   ;;  %v7715_v11 = vld [vmem:[%s8400_s6] ss:$0 sm:$0xff]  ;;  %v4909_v33 = vunpack.c.l.bf16 %v7668_v29 }
 0x35a   : > { %8593 = vst [vmem:[#allocation70_spill] sm:$0xff] %v7660_v22  ;;  %8595 = vst [vmem:[#allocation71_spill] sm:$0xff] %v7665_v21  ;;  %v7688_v22 = vld [vmem:[%s6683_s12 + $0x20] sm:$0xff]   ;;  %v8602_v21 = vld [vmem:[#allocation10_spill] sm:$0xff]  ;;  %v8607_v61 = vunpack.c.l.bf16 %v7671_v48  ;;  %v8614_v40 = vunpack.c.l.bf16 %v7685_v46 }
 0x35b   : > { %8597 = vst [vmem:[#allocation72_spill] sm:$0xff] %v7676_v55  ;;  %8600 = vst [vmem:[#allocation9_spill] sm:$0xff] %v7681_v38  ;;  %v7693_v37 = vsub.f32 %v8602_v21, %v8601_v53  ;;  %v7698_v55 = vsub.f32 %v8605_v30, %v8604_v17  ;;  %v7705_v38 = vld [vmem:[%s6683_s12 + $0x30] sm:$0xff]   ;;  %v7725_v5 = vld [vmem:[%s6683_s12 + $0x40] sm:$0xff]  }
 0x35c   : > { %v7728_v62 = vld [vmem:[%s6683_s12 + $0x48] sm:$0xff]   ;;  %v7749_v30 = vld [vmem:[%s6683_s12 + $0x58] sm:$0xff]  }
 0x35d   : > { %8603 = vst [vmem:[#allocation10_spill] sm:$0xff] %v7693_v37  ;;  %8606 = vst [vmem:[#allocation11_spill] sm:$0xff] %v7698_v55  ;;  %v8608_v55 = vld [vmem:[#allocation7_spill] sm:$0xff] }
 0x35e   : > { %v7741_v23 = vsub.f32 %v8608_v55, %v8607_v61  ;;  %8611 = vst [vmem:[#allocation7_spill] sm:$0xff] %v7800_v19 }
 0x397   : > { %v5411_v43 = vpop.f32.mrb[0].mxu0 }
 0x398   : > { %v3225_v37 = vadd.f32 %v5411_v43, %v4902_v10  ;;  %v2905_v53 = vpop.f32.mrb[1].mxu0  ;;  %v7734_v10 = vld [vmem:[%s6683_s12 + $0x50] sm:$0xff]  }
 0x399   : > { %v3224_v29 = vadd.f32 %v4901_v50, %v2905_v53  ;;  %v8609_v50 = vunpack.c.h.bf16 %v7671_v48  ;;  %v8610_v53 = vld [vmem:[#allocation8_spill] sm:$0xff] }
 0x39a   : > { %v3296_v21 = vadd.f32 %v7715_v11, %v3225_v37  ;;  %v7778_v37 = vld [vmem:[%s6683_s12 + $0x80] sm:$0xff]  }
 0x39b   : > { %v7746_v17 = vsub.f32 %v8610_v53, %v8609_v50  ;;  %v3295_v43 = vadd.f32 %v7715_v11, %v3224_v29  ;;  %v5414_v14 = vpop.f32.mrb[2].mxu0  ;;  %v7772_v53 = vld [vmem:[%s6683_s12 + $0x78] sm:$0xff]  }
 0x39c   : > { %v4832_v61 = vmul.f32 -1.442695, %v3296_v21  ;;  %v3227_v55 = vadd.f32 %v5414_v14, %v4906_v20  ;;  %v2915_v6 = vpop.f32.mrb[3].mxu0  ;;  %v7794_v21 = vld [vmem:[%s6683_s12 + $0x98] sm:$0xff]  }
 0x39d   : > { %v4831_v29 = vmul.f32 -1.442695, %v3295_v43  ;;  %v3226_v39 = vadd.f32 %v4905_v52, %v2915_v6 }
 0x39e   : > { %5979 = vpow2.f32 %v4832_v61  ;;  %v3298_v14 = vadd.f32 %v7715_v11, %v3227_v55 }
 0x39f   : > { %5981 = vpow2.f32 %v4831_v29  ;;  %v3297_v52 = vadd.f32 %v7715_v11, %v3226_v39  ;;  %v5417_v6 = vpop.f32.mrb[4].mxu0 }
 0x3a0   : > { %v4834_v61 = vmul.f32 -1.442695, %v3298_v14  ;;  %v3229_v55 = vadd.f32 %v5417_v6, %v4910_v58  ;;  %v2925_v50 = vpop.f32.mrb[5].mxu0 }
 0x3a1   : > { %v4833_v29 = vmul.f32 -1.442695, %v3297_v52  ;;  %v3228_v39 = vadd.f32 %v4909_v33, %v2925_v50 }
 0x3a2   : > { %5983 = vpow2.f32 %v4834_v61  ;;  %v3300_v58 = vadd.f32 %v7715_v11, %v3229_v55  ;;  %v8612_v55 = vunpack.c.h.bf16 %v7685_v46  ;;  %v8617_v46 = vunpack.c.l.bf16 %v7688_v22 }
 0x3a3   : > { %5985 = vpow2.f32 %v4833_v29  ;;  %v3299_v33 = vadd.f32 %v7715_v11, %v3228_v39  ;;  %v5420_v50 = vpop.f32.mrb[6].mxu0  ;;  %v7807_v29 = vld [vmem:[%s6683_s12 + $0xa8] sm:$0xff]  }
 0x3a4   : > { %v4836_v61 = vmul.f32 -1.442695, %v3300_v58  ;;  %v3231_v20 = vadd.f32 %v5420_v50, %v8612_v55  ;;  %v2935_v14 = vpop.f32.mrb[7].mxu0  ;;  %8613 = vst [vmem:[#allocation8_spill] sm:$0xff] %v7807_v29  ;;  %v7814_v58 = vld [vmem:[%s6683_s12 + $0xb0] sm:$0xff]  }
 0x3a5   : > { %v4835_v39 = vmul.f32 -1.442695, %v3299_v33  ;;  %v3230_v52 = vadd.f32 %v8614_v40, %v2935_v14  ;;  %v7823_v14 = vld [vmem:[%s6683_s12 + $0xb8] sm:$0xff]  }
 0x3a6   : > { %5987 = vpow2.f32 %v4836_v61  ;;  %v3302_v50 = vadd.f32 %v7715_v11, %v3231_v20  ;;  %8615 = vst [vmem:[#allocation73_spill] sm:$0xff] %v7823_v14  ;;  %v8616_v61 = vunpack.c.h.bf16 %v7688_v22 }
 0x3a7   : > { %5989 = vpow2.f32 %v4835_v39  ;;  %v3301_v33 = vadd.f32 %v7715_v11, %v3230_v52  ;;  %v5423_v6 = vpop.f32.mrb[8].mxu0  ;;  %v7830_v39 = vld [vmem:[%s6683_s12 + $0xc0] sm:$0xff]  }
 0x3a8   : > { %v5980_v15 = vpop.eup %5979  ;;  %v4838_v43 = vmul.f32 -1.442695, %v3302_v50  ;;  %v3233_v27 = vadd.f32 %v5423_v6, %v8616_v61  ;;  %v2945_v20 = vpop.f32.mrb[9].mxu0 }
 0x3a9   : > { %v5982_v52 = vpop.eup %5981  ;;  %v3552_v44 = vadd.f32 1.0, %v5980_v15  ;;  %v4837_v40 = vmul.f32 -1.442695, %v3301_v33  ;;  %v3232_v28 = vadd.f32 %v8617_v46, %v2945_v20  ;;  %v7841_v33 = vld [vmem:[%s6683_s12 + $0xc8] sm:$0xff]   ;;  %v8619_v20 = vunpack.c.h.bf16 %v7701_v56 }
 0x3aa   : > { %v3551_v50 = vadd.f32 1.0, %v5982_v52  ;;  %5991 = vpow2.f32 %v4838_v43  ;;  %v3304_v6 = vadd.f32 %v7715_v11, %v3233_v27  ;;  %8618 = vst [vmem:[#allocation74_spill] sm:$0xff] %v7841_v33  ;;  %v8621_v15 = vunpack.c.l.bf16 %v7701_v56 }
 0x3ab   : > { %5993 = vrcp.f32 %v3552_v44  ;;  %v3303_v51 = vadd.f32 %v7715_v11, %v3232_v28  ;;  %v5426_v55 = vpop.f32.mrb[10].mxu0  ;;  %v7847_v44 = vld [vmem:[%s6683_s12 + $0xd0] sm:$0xff]  }
 0x3ac   : > { %v5984_v22 = vpop.eup %5983  ;;  %5995 = vrcp.f32 %v3551_v50  ;;  %v4840_v46 = vmul.f32 -1.442695, %v3304_v6  ;;  %v3235_v43 = vadd.f32 %v5426_v55, %v8619_v20  ;;  %v2955_v52 = vpop.f32.mrb[11].mxu0  ;;  %8620 = vst [vmem:[#allocation75_spill] sm:$0xff] %v7847_v44 }
 0x3ad   : > { %v5986_v28 = vpop.eup %5985  ;;  %v3554_v61 = vadd.f32 1.0, %v5984_v22  ;;  %5997 = vpow2.f32 %v4837_v40  ;;  %v4839_v29 = vmul.f32 -1.442695, %v3303_v51  ;;  %v3234_v19 = vadd.f32 %v8621_v15, %v2955_v52  ;;  %v7857_v40 = vld [vmem:[%s6683_s12 + $0xd8] sm:$0xff]  }
 0x3ae   : > { %v3553_v14 = vadd.f32 1.0, %v5986_v28  ;;  %5999 = vpow2.f32 %v4840_v46  ;;  %v3306_v50 = vadd.f32 %v7715_v11, %v3235_v43  ;;  %v8622_v15 = vunpack.c.h.bf16 %v7705_v38 }
 0x3af   : > { %6001 = vrcp.f32 %v3554_v61  ;;  %v3305_v6 = vadd.f32 %v7715_v11, %v3234_v19  ;;  %v5429_v20 = vpop.f32.mrb[12].mxu0  ;;  %v7863_v61 = vld [vmem:[%s6683_s12 + $0xe0] sm:$0xff]   ;;  %v8624_v22 = vunpack.c.l.bf16 %v7705_v38 }
 0x3b0   : > { %v5988_v51 = vpop.eup %5987  ;;  %6003 = vrcp.f32 %v3553_v14  ;;  %v4842_v56 = vmul.f32 -1.442695, %v3306_v50  ;;  %v3237_v46 = vadd.f32 %v5429_v20, %v8622_v15  ;;  %v2965_v52 = vpop.f32.mrb[13].mxu0  ;;  %8623 = vst [vmem:[#allocation76_spill] sm:$0xff] %v7863_v61 }
 0x3b1   : > { %v5990_v19 = vpop.eup %5989  ;;  %v3556_v28 = vadd.f32 1.0, %v5988_v51  ;;  %6005 = vpow2.f32 %v4839_v29  ;;  %v4841_v27 = vmul.f32 -1.442695, %v3305_v6  ;;  %v3236_v55 = vadd.f32 %v8624_v22, %v2965_v52  ;;  %v7873_v51 = vld [vmem:[%s6683_s12 + $0xe8] sm:$0xff]  }
 0x3b2   : > { %v3555_v33 = vadd.f32 1.0, %v5990_v19  ;;  %6007 = vpow2.f32 %v4842_v56  ;;  %v3308_v14 = vadd.f32 %v7715_v11, %v3237_v46  ;;  %v8625_v6 = vunpack.c.h.bf16 %v7708_v13 }
 0x3b3   : > { %6009 = vrcp.f32 %v3556_v28  ;;  %v3307_v20 = vadd.f32 %v7715_v11, %v3236_v55  ;;  %v5432_v15 = vpop.f32.mrb[14].mxu0  ;;  %v8626_v28 = vunpack.c.l.bf16 %v7708_v13 }
 0x3b4   : > { %v5992_v29 = vpop.eup %5991  ;;  %6011 = vrcp.f32 %v3555_v33  ;;  %v4844_v38 = vmul.f32 -1.442695, %v3308_v14  ;;  %v3239_v22 = vadd.f32 %v5432_v15, %v8625_v6  ;;  %v2975_v56 = vpop.f32.mrb[15].mxu0 }
 0x3b5   : > { %v5994_v52 = vpop.eup %5993  ;;  %v3558_v19 = vadd.f32 1.0, %v5992_v29  ;;  %6013 = vpow2.f32 %v4841_v27  ;;  %v4843_v55 = vmul.f32 -1.442695, %v3307_v20  ;;  %v3238_v43 = vadd.f32 %v8626_v28, %v2975_v56 }
 0x3b6   : > { %v5996_v50 = vpop.eup %5995  ;;  %6015 = vpow2.f32 %v4844_v38  ;;  %v3310_v44 = vadd.f32 %v7715_v11, %v3239_v22  ;;  %v3936_v33 = vmul.f32 %v5994_v52, %v7746_v17  ;;  %v8627_v56 = vunpack.c.h.bf16 %v7725_v5  ;;  %v7889_v17 = vld [vmem:[%s6683_s12 + $0xf0] sm:$0xff]  }
 0x3b7   : > { %v5998_v15 = vpop.eup %5997  ;;  %6017 = vrcp.f32 %v3558_v19  ;;  %v3309_v6 = vadd.f32 %v7715_v11, %v3238_v43  ;;  %v5435_v46 = vpop.f32.mrb[16].mxu0  ;;  %v3935_v27 = vmul.f32 %v5996_v50, %v7741_v23  ;;  %v8628_v43 = vunpack.c.l.bf16 %v7725_v5 }
 0x3b8   : > { %v6000_v13 = vpop.eup %5999  ;;  %v3557_v29 = vadd.f32 1.0, %v5998_v15  ;;  %6019 = vpow2.f32 %v4843_v55  ;;  %v4846_v38 = vmul.f32 -1.442695, %v3310_v44  ;;  %v3241_v22 = vadd.f32 %v5435_v46, %v8627_v56  ;;  %v2985_v28 = vpop.f32.mrb[17].mxu0 }
 0x3b9   : > { %v6002_v52 = vpop.eup %6001  ;;  %v3560_v14 = vadd.f32 1.0, %v6000_v13  ;;  %v4845_v19 = vmul.f32 -1.442695, %v3309_v6  ;;  %v3240_v61 = vadd.f32 %v8628_v43, %v2985_v28  ;;  %v8629_v23 = vunpack.c.l.bf16 %v7671_v48 }
 0x3ba   : > { %v6004_v20 = vpop.eup %6003  ;;  %6021 = vrcp.f32 %v3557_v29  ;;  %v3312_v55 = vadd.f32 %v7715_v11, %v3241_v22  ;;  %v8630_v44 = vunpack.c.h.bf16 %v7671_v48  ;;  %v3938_v46 = vmul.f32 %v6002_v52, %v7340_v63 }
 0x3bb   : > { %v3999_v50 = vadd.f32 %v8629_v23, %v3935_v27  ;;  %v6006_v56 = vpop.eup %6005  ;;  %6023 = vrcp.f32 %v3560_v14  ;;  %v3311_v13 = vadd.f32 %v7715_v11, %v3240_v61  ;;  %v5438_v6 = vpop.f32.mrb[18].mxu0  ;;  %v3937_v5 = vmul.f32 %v6004_v20, %v7335_v59  ;;  %v8633_v20 = vld [vmem:[#allocation24_spill] sm:$0xff] }
 0x3bc   : > { %v4000_v15 = vadd.f32 %v8630_v44, %v3936_v33  ;;  %v5022_v28 = vunpack.c.h.bf16 %v7889_v17  ;;  %v6008_v27 = vpop.eup %6007  ;;  %v3559_v43 = vadd.f32 1.0, %v6006_v56  ;;  %6025 = vpow2.f32 %v4846_v38  ;;  %v2995_v33 = vpop.f32.mrb[19].mxu0 }
 0x3bd   : > { %5537 = vmatprep.mubr.f32.mxu1 %v3999_v50  ;;  %v4848_v29 = vmul.f32 -1.442695, %v3312_v55  ;;  %v8631_v22 = vunpack.c.h.bf16 %v7728_v62  ;;  %v6010_v63 = vpop.eup %6009  ;;  %v3562_v52 = vadd.f32 1.0, %v6008_v27  ;;  %6027 = vpow2.f32 %v4845_v19 }
 0x3be   : > { %5538 = vmatmul.mubr.f32.vlgmr.msra.gmra.mrb[0].mxu1 %v4000_v15  ;;  %v4847_v14 = vmul.f32 -1.442695, %v3311_v13  ;;  %v8632_v61 = vunpack.c.l.bf16 %v7728_v62  ;;  %v6012_v50 = vpop.eup %6011  ;;  %6029 = vrcp.f32 %v3559_v43  ;;  %v8634_v44 = vunpack.c.l.bf16 %v8633_v20 }
 0x3bf   : > { %v3243_v48 = vadd.f32 %v5438_v6, %v8631_v22  ;;  %v8635_v55 = vunpack.c.h.bf16 %v8633_v20  ;;  %v6014_v6 = vpop.eup %6013  ;;  %6031 = vrcp.f32 %v3562_v52  ;;  %v5441_v27 = vpop.f32.mrb[20].mxu0  ;;  %v3939_v19 = vmul.f32 %v6012_v50, %v7361_v42 }
 0x3c0   : > { %v3242_v23 = vadd.f32 %v8632_v61, %v2995_v33  ;;  %v4001_v38 = vadd.f32 %v8634_v44, %v3937_v5  ;;  %v3940_v62 = vmul.f32 %v6010_v63, %v7366_v0  ;;  %v6016_v13 = vpop.eup %6015  ;;  %v3561_v22 = vadd.f32 1.0, %v6014_v6  ;;  %v3005_v5 = vpop.f32.mrb[21].mxu0 }
 0x3c1   : > { %v3314_v59 = vadd.f32 %v7715_v11, %v3243_v48  ;;  %v4002_v56 = vadd.f32 %v8635_v55, %v3938_v46  ;;  %6033 = vpow2.f32 %v4848_v29  ;;  %v8636_v48 = vunpack.c.h.bf16 %v7734_v10  ;;  %v6018_v61 = vpop.eup %6017 }
 0x3c2   : > { %v3313_v15 = vadd.f32 %v7715_v11, %v3242_v23  ;;  %5540 = vmatprep.mubr.f32.mxu1 %v4001_v38  ;;  %v3564_v46 = vadd.f32 1.0, %v6016_v13  ;;  %6035 = vpow2.f32 %v4847_v14  ;;  %v8637_v23 = vunpack.c.l.bf16 %v7734_v10  ;;  %v6020_v42 = vpop.eup %6019 }
 0x3c3   : > { %v4850_v43 = vmul.f32 -1.442695, %v3314_v59  ;;  %v3245_v33 = vadd.f32 %v5441_v27, %v8636_v48  ;;  %5541 = vmatmul.mubr.f32.gmra.mrb[2].mxu1 %v4002_v56  ;;  %6037 = vrcp.f32 %v3561_v22  ;;  %v8638_v29 = vunpack.c.l.bf16 %v7313_v2  ;;  %v5444_v14 = vpop.f32.mrb[22].mxu0 }
 0x3c4   : > { %v4849_v52 = vmul.f32 -1.442695, %v3313_v15  ;;  %v3244_v20 = vadd.f32 %v8637_v23, %v3005_v5  ;;  %v8639_v50 = vunpack.c.h.bf16 %v7313_v2  ;;  %6039 = vrcp.f32 %v3564_v46  ;;  %v6022_v10 = vpop.eup %6021  ;;  %v3015_v27 = vpop.f32.mrb[23].mxu0 }
 0x3c5   : > { %v3316_v0 = vadd.f32 %v7715_v11, %v3245_v33  ;;  %v4003_v63 = vadd.f32 %v8638_v29, %v3939_v19  ;;  %v3563_v44 = vadd.f32 1.0, %v6020_v42  ;;  %v3942_v55 = vmul.f32 %v6018_v61, %v7378_v4  ;;  %v6024_v13 = vpop.eup %6023  ;;  %v8642_v33 = vld [vmem:[#allocation25_spill] sm:$0xff] }
 0x3c6   : > { %v4004_v59 = vadd.f32 %v8639_v50, %v3940_v62  ;;  %v3315_v38 = vadd.f32 %v7715_v11, %v3244_v20  ;;  %6041 = vpow2.f32 %v4850_v43  ;;  %v8640_v6 = vunpack.c.h.bf16 %v7749_v30  ;;  %v6026_v4 = vpop.eup %6025 }
 0x3c7   : > { %v4852_v56 = vmul.f32 -1.442695, %v3316_v0  ;;  %5543 = vmatprep.mubr.f32.mxu1 %v4003_v63  ;;  %v5021_v19 = vunpack.c.l.bf16 %v7889_v17  ;;  %6043 = vrcp.f32 %v3563_v44  ;;  %v8641_v62 = vunpack.c.l.bf16 %v7749_v30  ;;  %v6028_v23 = vpop.eup %6027  ;;  %v5447_v0 = vpop.f32.mrb[24].mxu0 }
 0x3c8   : > { %v3247_v15 = vadd.f32 %v5444_v14, %v8640_v6  ;;  %v4851_v2 = vmul.f32 -1.442695, %v3315_v38  ;;  %5544 = vmatmul.mubr.f32.gmra.mrb[4].mxu1 %v4004_v59  ;;  %v3941_v48 = vmul.f32 %v6022_v10, %v7373_v47  ;;  %6045 = vpow2.f32 %v4849_v52  ;;  %v6030_v63 = vpop.eup %6029  ;;  %v3025_v44 = vpop.f32.mrb[25].mxu0 }
 0x3c9   : > { %v3246_v22 = vadd.f32 %v8641_v62, %v3015_v27  ;;  %v8643_v5 = vunpack.c.h.bf16 %v8642_v33  ;;  %v3944_v46 = vmul.f32 %v6024_v13, %v7393_v3  ;;  %v3566_v20 = vadd.f32 1.0, %v6026_v4  ;;  %v6032_v38 = vpop.eup %6031 }
 0x3ca   : > { %v3318_v43 = vadd.f32 %v7715_v11, %v3247_v15  ;;  %6047 = vpow2.f32 %v4852_v56  ;;  %v8644_v30 = vunpack.c.l.bf16 %v8642_v33  ;;  %v3565_v47 = vadd.f32 1.0, %v6028_v23 }
 0x3cb   : > { %v4006_v61 = vadd.f32 %v8643_v5, %v3942_v55  ;;  %v3317_v42 = vadd.f32 %v7715_v11, %v3246_v22  ;;  %6049 = vpow2.f32 %v4851_v2  ;;  %v8645_v50 = vunpack.c.h.bf16 %v7756_v16  ;;  %v6034_v56 = vpop.eup %6033 }
 0x3cc   : > { %v4005_v29 = vadd.f32 %v8644_v30, %v3941_v48  ;;  %v4854_v52 = vmul.f32 -1.442695, %v3318_v43  ;;  %6051 = vrcp.f32 %v3566_v20  ;;  %v8646_v14 = vunpack.c.l.bf16 %v7756_v16  ;;  %v6036_v2 = vpop.eup %6035  ;;  %v5450_v48 = vpop.f32.mrb[26].mxu0 }
 0x3cd   : > { %v3249_v59 = vadd.f32 %v5447_v0, %v8645_v50  ;;  %v4853_v3 = vmul.f32 -1.442695, %v3317_v42  ;;  %v3943_v10 = vmul.f32 %v6030_v63, %v7388_v60  ;;  %6053 = vrcp.f32 %v3565_v47  ;;  %v6038_v60 = vpop.eup %6037  ;;  %v3035_v23 = vpop.f32.mrb[27].mxu0 }
 0x3ce   : > { %5546 = vmatprep.mubr.f32.mxu1 %v4005_v29  ;;  %v3248_v55 = vadd.f32 %v8646_v14, %v3025_v44  ;;  %v8647_v15 = vunpack.c.h.bf16 %v7319_v18  ;;  %v3946_v13 = vmul.f32 %v6032_v38, %v7403_v9  ;;  %v3568_v62 = vadd.f32 1.0, %v6034_v56  ;;  %v8651_v29 = vld [vmem:[#allocation26_spill] sm:$0xff] }
 0x3cf   : > { %v3320_v6 = vadd.f32 %v7715_v11, %v3249_v59  ;;  %5547 = vmatmul.mubr.f32.gmra.mrb[6].mxu1 %v4006_v61  ;;  %6055 = vpow2.f32 %v4854_v52  ;;  %v8648_v16 = vunpack.c.l.bf16 %v7319_v18  ;;  %v3567_v43 = vadd.f32 1.0, %v6036_v2  ;;  %v5453_v38 = vpop.f32.mrb[28].mxu0 }
 0x3d0   : > { %v4008_v27 = vadd.f32 %v8647_v15, %v3944_v46  ;;  %v3319_v22 = vadd.f32 %v7715_v11, %v3248_v55  ;;  %6057 = vpow2.f32 %v4853_v3  ;;  %v8649_v5 = vunpack.c.h.bf16 %v7761_v45  ;;  %v6040_v46 = vpop.eup %6039  ;;  %v3045_v56 = vpop.f32.mrb[29].mxu0 }
 0x3d1   : > { %v4007_v4 = vadd.f32 %v8648_v16, %v3943_v10  ;;  %v4856_v33 = vmul.f32 -1.442695, %v3320_v6  ;;  %6059 = vrcp.f32 %v3568_v62  ;;  %v8650_v20 = vunpack.c.l.bf16 %v7761_v45  ;;  %v6042_v30 = vpop.eup %6041 }
 0x3d2   : > { %v3251_v61 = vadd.f32 %v5450_v48, %v8649_v5  ;;  %v4855_v9 = vmul.f32 -1.442695, %v3319_v22  ;;  %v3945_v0 = vmul.f32 %v6038_v60, %v7398_v34  ;;  %6061 = vrcp.f32 %v3567_v43  ;;  %v6044_v50 = vpop.eup %6043 }
 0x3d3   : > { %5549 = vmatprep.mubr.f32.mxu1 %v4007_v4  ;;  %v3250_v42 = vadd.f32 %v8650_v20, %v3035_v23  ;;  %v8652_v63 = vunpack.c.h.bf16 %v8651_v29  ;;  %v3948_v52 = vmul.f32 %v6040_v46, %v7416_v8  ;;  %v3570_v59 = vadd.f32 1.0, %v6042_v30  ;;  %v6046_v34 = vpop.eup %6045 }
 0x3d4   : > { %v3322_v18 = vadd.f32 %v7715_v11, %v3251_v61  ;;  %5550 = vmatmul.mubr.f32.gmra.mrb[8].mxu1 %v4008_v27  ;;  %6063 = vpow2.f32 %v4856_v33  ;;  %v8653_v45 = vunpack.c.l.bf16 %v8651_v29  ;;  %v8654_v55 = vunpack.c.h.bf16 %v7766_v49  ;;  %v6048_v15 = vpop.eup %6047  ;;  %v5456_v33 = vpop.f32.mrb[30].mxu0 }
 0x3d5   : > { %v4010_v47 = vadd.f32 %v8652_v63, %v3946_v13  ;;  %v3321_v44 = vadd.f32 %v7715_v11, %v3250_v42  ;;  %6065 = vpow2.f32 %v4855_v9  ;;  %v3947_v6 = vmul.f32 %v6044_v50, %v7411_v25  ;;  %v6050_v62 = vpop.eup %6049  ;;  %v3055_v20 = vpop.f32.mrb[31].mxu0  ;;  %v8659_v42 = vld [vmem:[#allocation32_spill] sm:$0xff] }
 0x3d6   : > { %v4009_v3 = vadd.f32 %v8653_v45, %v3945_v0  ;;  %v4858_v14 = vmul.f32 -1.442695, %v3322_v18  ;;  %v3253_v10 = vadd.f32 %v5453_v38, %v8654_v55  ;;  %6067 = vrcp.f32 %v3570_v59  ;;  %v6052_v60 = vpop.eup %6051 }
 0x3d7   : > { %v3569_v8 = vadd.f32 1.0, %v6046_v34  ;;  %v4857_v27 = vmul.f32 -1.442695, %v3321_v44  ;;  %v8655_v13 = vunpack.c.l.bf16 %v7766_v49  ;;  %v3572_v22 = vadd.f32 1.0, %v6048_v15  ;;  %v6054_v49 = vpop.eup %6053  ;;  %v8662_v44 = vld [vmem:[#allocation27_spill] sm:$0xff]  ;;  %v5459_v55 = vpop.f32.mrb[32].mxu0 }
 0x3d8   : > { %5552 = vmatprep.mubr.f32.mxu1 %v4009_v3  ;;  %6069 = vpow2.f32 %v4858_v14  ;;  %v3324_v48 = vadd.f32 %v7715_v11, %v3253_v10  ;;  %v8656_v16 = vunpack.c.l.bf16 %v7327_v26  ;;  %v3571_v25 = vadd.f32 1.0, %v6050_v62 }
 0x3d9   : > { %v3252_v2 = vadd.f32 %v8655_v13, %v3045_v56  ;;  %5553 = vmatmul.mubr.f32.gmra.mrb[10].mxu1 %v4010_v47  ;;  %6071 = vrcp.f32 %v3569_v8  ;;  %v8657_v5 = vunpack.c.h.bf16 %v7327_v26  ;;  %v8658_v46 = vunpack.c.h.bf16 %v7772_v53  ;;  %v6056_v30 = vpop.eup %6055  ;;  %v8661_v47 = vld [vmem:[#allocation31_spill] sm:$0xff] }
 0x3da   : > { %v4011_v4 = vadd.f32 %v8656_v16, %v3947_v6  ;;  %6073 = vrcp.f32 %v3572_v22  ;;  %v4860_v23 = vmul.f32 -1.442695, %v3324_v48  ;;  %v3950_v0 = vmul.f32 %v6052_v60, %v8659_v42  ;;  %v6058_v26 = vpop.eup %6057  ;;  %v8667_v16 = vld [vmem:[#allocation35_spill] sm:$0xff] }
 0x3db   : > { %v3323_v43 = vadd.f32 %v7715_v11, %v3252_v2  ;;  %v4012_v61 = vadd.f32 %v8657_v5, %v3948_v52  ;;  %v3255_v9 = vadd.f32 %v5456_v33, %v8658_v46  ;;  %6075 = vrcp.f32 %v3571_v25  ;;  %v6060_v3 = vpop.eup %6059  ;;  %v8668_v33 = vld [vmem:[#allocation28_spill] sm:$0xff] }
 0x3dc   : > { %5555 = vmatprep.mubr.f32.mxu1 %v4011_v4  ;;  %v8660_v29 = vunpack.c.l.bf16 %v7772_v53  ;;  %v3949_v50 = vmul.f32 %v6054_v49, %v8661_v47  ;;  %v3574_v52 = vadd.f32 1.0, %v6056_v30  ;;  %6077 = vpow2.f32 %v4857_v27  ;;  %v6062_v56 = vpop.eup %6061  ;;  %v3065_v27 = vpop.f32.mrb[33].mxu0 }
 0x3dd   : > { %v4859_v18 = vmul.f32 -1.442695, %v3323_v43  ;;  %v3326_v59 = vadd.f32 %v7715_v11, %v3255_v9  ;;  %5556 = vmatmul.mubr.f32.gmra.mrb[12].mxu1 %v4012_v61  ;;  %v8663_v38 = vunpack.c.h.bf16 %v8662_v44  ;;  %v3573_v34 = vadd.f32 1.0, %v6058_v26  ;;  %v5462_v46 = vpop.f32.mrb[34].mxu0 }
 0x3de   : > { %v3254_v63 = vadd.f32 %v8660_v29, %v3055_v20  ;;  %6079 = vpow2.f32 %v4860_v23  ;;  %v8664_v53 = vunpack.c.l.bf16 %v8662_v44  ;;  %v8665_v15 = vunpack.c.h.bf16 %v7778_v37  ;;  %v6064_v2 = vpop.eup %6063  ;;  %v7998_v20 = vld [vmem:[%s6683_s12 + $0xf8] sm:$0xff]   ;;  %v3075_v29 = vpop.f32.mrb[35].mxu0 }
 0x3df   : > { %v4014_v45 = vadd.f32 %v8663_v38, %v3950_v0  ;;  %6081 = vrcp.f32 %v3574_v52  ;;  %v4862_v6 = vmul.f32 -1.442695, %v3326_v59  ;;  %v3952_v13 = vmul.f32 %v6060_v3, %v7442_v24  ;;  %v6066_v60 = vpop.eup %6065 }
 0x3e0   : > { %v3325_v14 = vadd.f32 %v7715_v11, %v3254_v63  ;;  %v4013_v10 = vadd.f32 %v8664_v53, %v3949_v50  ;;  %v3257_v8 = vadd.f32 %v5459_v55, %v8665_v15  ;;  %6083 = vrcp.f32 %v3573_v34  ;;  %v6068_v24 = vpop.eup %6067  ;;  %v8673_v55 = vld [vmem:[#allocation29_spill] sm:$0xff] }
 0x3e1   : > { %v8666_v22 = vunpack.c.l.bf16 %v7778_v37  ;;  %v3951_v4 = vmul.f32 %v6062_v56, %v8667_v16  ;;  %v3576_v25 = vadd.f32 1.0, %v6064_v2  ;;  %6085 = vpow2.f32 %v4859_v18 }
 0x3e2   : > { %v4861_v62 = vmul.f32 -1.442695, %v3325_v14  ;;  %5558 = vmatprep.mubr.f32.mxu1 %v4013_v10  ;;  %v3328_v43 = vadd.f32 %v7715_v11, %v3257_v8  ;;  %v8669_v5 = vunpack.c.h.bf16 %v8668_v33  ;;  %v3575_v49 = vadd.f32 1.0, %v6066_v60  ;;  %v6070_v42 = vpop.eup %6069  ;;  %v5465_v14 = vpop.f32.mrb[36].mxu0 }
 0x3e3   : > { %v3256_v48 = vadd.f32 %v8666_v22, %v3065_v27  ;;  %5559 = vmatmul.mubr.f32.gmra.mrb[14].mxu1 %v4014_v45  ;;  %6087 = vpow2.f32 %v4862_v6  ;;  %v8670_v37 = vunpack.c.l.bf16 %v8668_v33  ;;  %v8671_v30 = vunpack.c.h.bf16 %v7783_v57  ;;  %v6072_v47 = vpop.eup %6071 }
 0x3e4   : > { %v4016_v61 = vadd.f32 %v8669_v5, %v3952_v13  ;;  %6089 = vrcp.f32 %v3576_v25  ;;  %v4864_v0 = vmul.f32 -1.442695, %v3328_v43  ;;  %v3954_v63 = vmul.f32 %v6068_v24, %v7460_v12  ;;  %v6074_v44 = vpop.eup %6073  ;;  %v3085_v13 = vpop.f32.mrb[37].mxu0 }
 0x3e5   : > { %v3327_v23 = vadd.f32 %v7715_v11, %v3256_v48  ;;  %v4015_v9 = vadd.f32 %v8670_v37, %v3951_v4  ;;  %v3259_v18 = vadd.f32 %v5462_v46, %v8671_v30  ;;  %6091 = vrcp.f32 %v3575_v49  ;;  %v6076_v34 = vpop.eup %6075  ;;  %v5468_v5 = vpop.f32.mrb[38].mxu0 }
 0x3e6   : > { %v3578_v50 = vadd.f32 1.0, %v6070_v42  ;;  %v8672_v52 = vunpack.c.l.bf16 %v7783_v57  ;;  %6093 = vpow2.f32 %v4861_v62  ;;  %v3953_v45 = vmul.f32 %v6072_v47, %v7455_v7  ;;  %v6078_v56 = vpop.eup %6077  ;;  %v3095_v42 = vpop.f32.mrb[39].mxu0 }
 0x3e7   : > { %v4863_v26 = vmul.f32 -1.442695, %v3327_v23  ;;  %5561 = vmatprep.mubr.f32.mxu1 %v4015_v9  ;;  %v3330_v38 = vadd.f32 %v7715_v11, %v3259_v18  ;;  %v5026_v3 = vunpack.c.h.bf16 %v7998_v20  ;;  %v8674_v53 = vunpack.c.h.bf16 %v8673_v55 }
 0x3e8   : > { %v3258_v59 = vadd.f32 %v8672_v52, %v3075_v29  ;;  %5562 = vmatmul.mubr.f32.gmra.mrb[16].mxu1 %v4016_v61  ;;  %6095 = vrcp.f32 %v3578_v50  ;;  %v3956_v57 = vmul.f32 %v6074_v44, %v7486_v32  ;;  %v8675_v15 = vunpack.c.h.bf16 %v7788_v54  ;;  %v6080_v2 = vpop.eup %6079  ;;  %v8682_v44 = vld [vmem:[#allocation30_spill] sm:$0xff] }
 0x3e9   : > { %v4018_v10 = vadd.f32 %v8674_v53, %v3954_v63  ;;  %6097 = vpow2.f32 %v4864_v0  ;;  %v4866_v6 = vmul.f32 -1.442695, %v3330_v38  ;;  %v8676_v7 = vunpack.c.l.bf16 %v8673_v55  ;;  %v6082_v4 = vpop.eup %6081 }
 0x3ea   : > { %v3329_v12 = vadd.f32 %v7715_v11, %v3258_v59  ;;  %v3261_v8 = vadd.f32 %v5465_v14, %v8675_v15  ;;  %v3577_v62 = vadd.f32 1.0, %v6078_v56  ;;  %6099 = vpow2.f32 %v4863_v26  ;;  %v6084_v43 = vpop.eup %6083  ;;  %v5471_v59 = vpop.f32.mrb[40].mxu0  ;;  %v8684_v14 = vld [vmem:[#allocation7_spill] sm:$0xff] }
 0x3eb   : > { %v4017_v27 = vadd.f32 %v8676_v7, %v3953_v45  ;;  %v8677_v48 = vunpack.c.l.bf16 %v7788_v54  ;;  %v3580_v60 = vadd.f32 1.0, %v6080_v2  ;;  %6101 = vpow2.f32 %v4866_v6  ;;  %v6086_v49 = vpop.eup %6085 }
 0x3ec   : > { %v4865_v22 = vmul.f32 -1.442695, %v3329_v12  ;;  %v3332_v32 = vadd.f32 %v7715_v11, %v3261_v8  ;;  %v3955_v25 = vmul.f32 %v6076_v34, %v7481_v1  ;;  %6103 = vrcp.f32 %v3577_v62  ;;  %v8689_v62 = vld [vmem:[#allocation33_spill] sm:$0xff] }
 0x3ed   : > { %v3260_v16 = vadd.f32 %v8677_v48, %v3085_v13  ;;  %5564 = vmatprep.mubr.f32.mxu1 %v4017_v27  ;;  %v8678_v61 = vunpack.c.h.bf16 %v7383_v41  ;;  %v3958_v54 = vmul.f32 %v6082_v4, %v7498_v36  ;;  %6105 = vrcp.f32 %v3580_v60  ;;  %v6088_v0 = vpop.eup %6087  ;;  %v8688_v13 = vld [vmem:[#allocation41_spill] sm:$0xff] }
 0x3ee   : > { %5565 = vmatmul.mubr.f32.gmra.mrb[18].mxu1 %v4018_v10  ;;  %v4868_v23 = vmul.f32 -1.442695, %v3332_v32  ;;  %v8679_v46 = vunpack.c.h.bf16 %v7794_v21  ;;  %v8680_v9 = vunpack.c.l.bf16 %v7383_v41  ;;  %v3579_v30 = vadd.f32 1.0, %v6086_v49  ;;  %v6090_v47 = vpop.eup %6089 }
 0x3ef   : > { %v3331_v33 = vadd.f32 %v7715_v11, %v3260_v16  ;;  %v4020_v24 = vadd.f32 %v8678_v61, %v3956_v57  ;;  %6107 = vpow2.f32 %v4865_v22  ;;  %v8681_v29 = vunpack.c.l.bf16 %v7794_v21  ;;  %v6092_v52 = vpop.eup %6091  ;;  %v3105_v57 = vpop.f32.mrb[41].mxu0 }
 0x3f0   : > { %v3263_v37 = vadd.f32 %v5468_v5, %v8679_v46  ;;  %v4019_v1 = vadd.f32 %v8680_v9, %v3955_v25  ;;  %v3582_v50 = vadd.f32 1.0, %v6088_v0  ;;  %6109 = vpow2.f32 %v4868_v23  ;;  %v6094_v34 = vpop.eup %6093  ;;  %v5474_v32 = vpop.f32.mrb[42].mxu0  ;;  %v8691_v25 = vld [vmem:[#allocation43_spill] sm:$0xff] }
 0x3f1   : > { %v4867_v18 = vmul.f32 -1.442695, %v3331_v33  ;;  %v3262_v63 = vadd.f32 %v8681_v29, %v3095_v42  ;;  %v3957_v26 = vmul.f32 %v6084_v43, %v7493_v31  ;;  %6111 = vrcp.f32 %v3579_v30  ;;  %v3115_v23 = vpop.f32.mrb[43].mxu0 }
 0x3f2   : > { %v3334_v36 = vadd.f32 %v7715_v11, %v3263_v37  ;;  %5567 = vmatprep.mubr.f32.mxu1 %v4019_v1  ;;  %v8683_v38 = vunpack.c.h.bf16 %v8682_v44  ;;  %v3960_v21 = vmul.f32 %v6090_v47, %v7513_v35  ;;  %6113 = vrcp.f32 %v3582_v50  ;;  %v6096_v56 = vpop.eup %6095 }
 0x3f3   : > { %v3333_v41 = vadd.f32 %v7715_v11, %v3262_v63  ;;  %5568 = vmatmul.mubr.f32.gmra.mrb[20].mxu1 %v4020_v24  ;;  %v8685_v55 = vunpack.c.h.bf16 %v8684_v14  ;;  %v8686_v10 = vunpack.c.l.bf16 %v8682_v44  ;;  %v3581_v6 = vadd.f32 1.0, %v6094_v34  ;;  %v6098_v27 = vpop.eup %6097  ;;  %v8692_v24 = vld [vmem:[#allocation8_spill] sm:$0xff]  ;;  %v8696_v63 = vld [vmem:[#allocation42_spill] sm:$0xff]  ;;  %v8063_v34 = vld [vmem:[%s8400_s6] ss:$0 sm:$0xff] }
 0x3f4   : > { %v4022_v45 = vadd.f32 %v8683_v38, %v3958_v54  ;;  %v4870_v12 = vmul.f32 -1.442695, %v3334_v36  ;;  %6115 = vpow2.f32 %v4867_v18  ;;  %v8687_v8 = vunpack.c.l.bf16 %v8684_v14  ;;  %v6100_v16 = vpop.eup %6099  ;;  %v5477_v36 = vpop.f32.mrb[44].mxu0 }
 0x3f5   : > { %v3265_v53 = vadd.f32 %v5471_v59, %v8685_v55  ;;  %v4021_v31 = vadd.f32 %v8686_v10, %v3957_v26  ;;  %v4869_v15 = vmul.f32 -1.442695, %v3333_v41  ;;  %v3959_v2 = vmul.f32 %v6092_v52, %v8688_v13  ;;  %v6102_v33 = vpop.eup %6101  ;;  %v8697_v26 = vld [vmem:[#allocation34_spill] sm:$0xff]  ;;  %v3125_v14 = vpop.f32.mrb[45].mxu0 }
 0x3f6   : > { %v3264_v7 = vadd.f32 %v8687_v8, %v3105_v57  ;;  %6117 = vpow2.f32 %v4870_v12  ;;  %v8690_v22 = vunpack.c.h.bf16 %v8689_v62  ;;  %v3584_v4 = vadd.f32 1.0, %v6098_v27  ;;  %v6104_v46 = vpop.eup %6103  ;;  %v8699_v59 = vld [vmem:[#allocation46_spill] sm:$0xff]  ;;  %v8703_v27 = vld [vmem:[#allocation45_spill] sm:$0xff] }
 0x3f7   : > { %v3336_v35 = vadd.f32 %v7715_v11, %v3265_v53  ;;  %5570 = vmatprep.mubr.f32.mxu1 %v4021_v31  ;;  %6119 = vrcp.f32 %v3581_v6  ;;  %v3962_v43 = vmul.f32 %v6096_v56, %v8691_v25  ;;  %v3583_v5 = vadd.f32 1.0, %v6100_v16  ;;  %v6106_v0 = vpop.eup %6105 }
 0x3f8   : > { %v4024_v48 = vadd.f32 %v8690_v22, %v3960_v21  ;;  %v3335_v60 = vadd.f32 %v7715_v11, %v3264_v7  ;;  %5571 = vmatmul.mubr.f32.gmra.mrb[22].mxu1 %v4022_v45  ;;  %6121 = vpow2.f32 %v4869_v15  ;;  %v8693_v54 = vunpack.c.h.bf16 %v8692_v24  ;;  %v8704_v22 = vld [vmem:[#allocation36_spill] sm:$0xff] }
 0x3f9   : > { %v4872_v61 = vmul.f32 -1.442695, %v3336_v35  ;;  %6123 = vrcp.f32 %v3584_v4  ;;  %v3586_v37 = vadd.f32 1.0, %v6102_v33  ;;  %v8694_v1 = vunpack.c.l.bf16 %v8689_v62  ;;  %v6108_v50 = vpop.eup %6107  ;;  %v5480_v62 = vpop.f32.mrb[46].mxu0  ;;  %v8706_v4 = vld [vmem:[#allocation48_spill] sm:$0xff] }
 0x3fa   : > { %v3267_v49 = vadd.f32 %v5474_v32, %v8693_v54  ;;  %v4871_v9 = vmul.f32 -1.442695, %v3335_v60  ;;  %6125 = vrcp.f32 %v3583_v5  ;;  %v8695_v18 = vunpack.c.l.bf16 %v8692_v24  ;;  %v6110_v45 = vpop.eup %6109 }
 0x3fb   : > { %v4023_v42 = vadd.f32 %v8694_v1, %v3959_v2  ;;  %v3961_v47 = vmul.f32 %v6104_v46, %v8696_v63  ;;  %6127 = vrcp.f32 %v3586_v37  ;;  %v8698_v52 = vunpack.c.h.bf16 %v8697_v26  ;;  %v6112_v55 = vpop.eup %6111  ;;  %v8711_v63 = vld [vmem:[#allocation47_spill] sm:$0xff] }
 0x3fc   : > { %v3338_v30 = vadd.f32 %v7715_v11, %v3267_v49  ;;  %v3266_v29 = vadd.f32 %v8695_v18, %v3115_v23  ;;  %v3964_v44 = vmul.f32 %v6106_v0, %v8699_v59  ;;  %v5025_v38 = vunpack.c.l.bf16 %v7998_v20  ;;  %v6114_v6 = vpop.eup %6113  ;;  %v8766_v20 = vld [vmem:[#allocation70_spill] sm:$0xff] }
 0x3fd   : > { %5573 = vmatprep.mubr.f32.mxu1 %v4023_v42  ;;  %v4026_v41 = vadd.f32 %v8698_v52, %v3962_v43  ;;  %v3585_v21 = vadd.f32 1.0, %v6108_v50  ;;  %6129 = vpow2.f32 %v4872_v61  ;;  %v3588_v53 = vadd.f32 1.0, %v6110_v45  ;;  %v3135_v61 = vpop.f32.mrb[47].mxu0  ;;  %v8712_v50 = vld [vmem:[#allocation37_spill] sm:$0xff] }
 0x3fe   : > { %v4874_v11 = vmul.f32 -1.442695, %v3338_v30  ;;  %v3337_v12 = vadd.f32 %v8063_v34, %v3266_v29  ;;  %5574 = vmatmul.mubr.f32.gmra.mrb[24].mxu1 %v4024_v48  ;;  %6131 = vpow2.f32 %v4871_v9  ;;  %v8700_v10 = vunpack.c.h.bf16 %v7814_v58  ;;  %v6116_v13 = vpop.eup %6115  ;;  %v5483_v29 = vpop.f32.mrb[48].mxu0 }
 0x3ff   : > { %v8701_v57 = vunpack.c.l.bf16 %v8697_v26  ;;  %6133 = vrcp.f32 %v3585_v21  ;;  %v8702_v8 = vunpack.c.l.bf16 %v7814_v58  ;;  %v3963_v35 = vmul.f32 %v6112_v55, %v8703_v27  ;;  %v8707_v58 = vld [vmem:[#allocation73_spill] sm:$0xff]  ;;  %v3145_v21 = vpop.f32.mrb[49].mxu0 }
 0x400   : > { %v3269_v31 = vadd.f32 %v5477_v36, %v8700_v10  ;;  %v4873_v15 = vmul.f32 -1.442695, %v3337_v12  ;;  %6135 = vrcp.f32 %v3588_v53  ;;  %v8705_v48 = vunpack.c.h.bf16 %v8704_v22  ;;  %v6118_v32 = vpop.eup %6117  ;;  %v8717_v10 = vld [vmem:[#allocation51_spill] sm:$0xff] }
 0x401   : > { %v4025_v56 = vadd.f32 %v8701_v57, %v3961_v47  ;;  %v3268_v7 = vadd.f32 %v8702_v8, %v3125_v14  ;;  %v3966_v60 = vmul.f32 %v6114_v6, %v8706_v4  ;;  %v3587_v25 = vadd.f32 1.0, %v6116_v13  ;;  %v6120_v24 = vpop.eup %6119  ;;  %v5486_v13 = vpop.f32.mrb[50].mxu0  ;;  %v8721_v4 = vld [vmem:[#allocation74_spill] sm:$0xff] }
 0x402   : > { %v3340_v2 = vadd.f32 %v8063_v34, %v3269_v31  ;;  %v4028_v16 = vadd.f32 %v8705_v48, %v3964_v44  ;;  %6137 = vpow2.f32 %v4874_v11  ;;  %v8708_v33 = vunpack.c.h.bf16 %v8707_v58  ;;  %v6122_v37 = vpop.eup %6121 }
 0x403   : > { %5576 = vmatprep.mubr.f32.mxu1 %v4025_v56  ;;  %v3339_v43 = vadd.f32 %v8063_v34, %v3268_v7  ;;  %v3590_v54 = vadd.f32 1.0, %v6118_v32  ;;  %6139 = vpow2.f32 %v4873_v15  ;;  %v8709_v23 = vunpack.c.l.bf16 %v8704_v22  ;;  %v6124_v30 = vpop.eup %6123  ;;  %v8718_v15 = vld [vmem:[#allocation52_spill] sm:$0xff] }
 0x404   : > { %5577 = vmatmul.mubr.f32.gmra.mrb[26].mxu1 %v4026_v41  ;;  %v3271_v5 = vadd.f32 %v5480_v62, %v8708_v33  ;;  %v4876_v49 = vmul.f32 -1.442695, %v3340_v2  ;;  %6141 = vrcp.f32 %v3587_v25  ;;  %v8710_v42 = vunpack.c.l.bf16 %v8707_v58  ;;  %v6126_v52 = vpop.eup %6125  ;;  %v8719_v2 = vld [vmem:[#allocation38_spill] sm:$0xff]  ;;  %v3155_v25 = vpop.f32.mrb[51].mxu0 }
 0x405   : > { %v4027_v46 = vadd.f32 %v8709_v23, %v3963_v35  ;;  %v4875_v9 = vmul.f32 -1.442695, %v3339_v43  ;;  %6143 = vrcp.f32 %v3590_v54  ;;  %v3589_v18 = vadd.f32 1.0, %v6122_v37  ;;  %v6128_v11 = vpop.eup %6127  ;;  %v8725_v23 = vld [vmem:[#allocation55_spill] sm:$0xff]  ;;  %v8726_v37 = vld [vmem:[#allocation56_spill] sm:$0xff] }
 0x406   : > { %v3342_v1 = vadd.f32 %v8063_v34, %v3271_v5  ;;  %v3270_v0 = vadd.f32 %v8710_v42, %v3135_v61  ;;  %v3965_v47 = vmul.f32 %v6120_v24, %v8711_v63  ;;  %v8713_v36 = vunpack.c.h.bf16 %v8712_v50 }
 0x407   : > { %5579 = vmatprep.mubr.f32.mxu1 %v4027_v46  ;;  %6145 = vpow2.f32 %v4876_v49  ;;  %v8714_v44 = vunpack.c.h.bf16 %v7830_v39  ;;  %v8715_v12 = vunpack.c.l.bf16 %v8712_v50  ;;  %v8716_v55 = vunpack.c.l.bf16 %v7830_v39  ;;  %v6130_v57 = vpop.eup %6129 }
 0x408   : > { %v4030_v26 = vadd.f32 %v8713_v36, %v3966_v60  ;;  %v4878_v41 = vmul.f32 -1.442695, %v3342_v1  ;;  %v3341_v59 = vadd.f32 %v8063_v34, %v3270_v0  ;;  %5580 = vmatmul.mubr.f32.gmra.mrb[28].mxu1 %v4028_v16  ;;  %6147 = vrcp.f32 %v3589_v18  ;;  %v6132_v7 = vpop.eup %6131  ;;  %v8727_v18 = vld [vmem:[#allocation60_spill] sm:$0xff]  ;;  %v8728_v36 = vld [vmem:[#allocation75_spill] sm:$0xff] }
 0x409   : > { %v3273_v45 = vadd.f32 %v5483_v29, %v8714_v44  ;;  %v4029_v14 = vadd.f32 %v8715_v12, %v3965_v47  ;;  %v3272_v53 = vadd.f32 %v8716_v55, %v3145_v21  ;;  %v3967_v31 = vmul.f32 %v6126_v52, %v8717_v10  ;;  %v6134_v22 = vpop.eup %6133 }
 0x40a   : > { %6149 = vpow2.f32 %v4875_v9  ;;  %v4877_v56 = vmul.f32 -1.442695, %v3341_v59  ;;  %v3968_v8 = vmul.f32 %v6124_v30, %v8718_v15  ;;  %v3592_v27 = vadd.f32 1.0, %v6130_v57  ;;  %v6136_v43 = vpop.eup %6135  ;;  %v5489_v30 = vpop.f32.mrb[52].mxu0  ;;  %v8734_v57 = vld [vmem:[#allocation59_spill] sm:$0xff] }
 0x40b   : > { %v3344_v6 = vadd.f32 %v8063_v34, %v3273_v45  ;;  %6151 = vpow2.f32 %v4878_v41  ;;  %5582 = vmatprep.mubr.f32.mxu1 %v4029_v14  ;;  %v3343_v35 = vadd.f32 %v8063_v34, %v3272_v53  ;;  %v8720_v62 = vunpack.c.l.bf16 %v8719_v2  ;;  %v3165_v41 = vpop.f32.mrb[53].mxu0  ;;  %v8730_v45 = vld [vmem:[#allocation39_spill] sm:$0xff] }
 0x40c   : > { %v3591_v48 = vadd.f32 1.0, %v6132_v7  ;;  %6153 = vpow2.f32 %v4877_v56  ;;  %5583 = vmatmul.mubr.f32.gmra.mrb[30].mxu1 %v4030_v26  ;;  %v8722_v60 = vunpack.c.h.bf16 %v8721_v4  ;;  %v8723_v33 = vunpack.c.l.bf16 %v8721_v4  ;;  %v6138_v54 = vpop.eup %6137  ;;  %v5492_v7 = vpop.f32.mrb[54].mxu0 }
 0x40d   : > { %v4031_v39 = vadd.f32 %v8720_v62, %v3967_v31  ;;  %v4880_v16 = vmul.f32 -1.442695, %v3344_v6  ;;  %6155 = vrcp.f32 %v3592_v27  ;;  %v4879_v58 = vmul.f32 -1.442695, %v3343_v35  ;;  %v6140_v1 = vpop.eup %6139  ;;  %v8735_v27 = vld [vmem:[#allocation40_spill] sm:$0xff]  ;;  %v3175_v4 = vpop.f32.mrb[55].mxu0 }
 0x40e   : > { %v3275_v32 = vadd.f32 %v5486_v13, %v8722_v60  ;;  %v3274_v5 = vadd.f32 %v8723_v33, %v3155_v25  ;;  %v8724_v61 = vunpack.c.h.bf16 %v8719_v2  ;;  %6157 = vrcp.f32 %v3591_v48  ;;  %v6142_v63 = vpop.eup %6141 }
 0x40f   : > { %5585 = vmatprep.mubr.f32.mxu1 %v4031_v39  ;;  %v3969_v46 = vmul.f32 %v6134_v22, %v8725_v23  ;;  %v3970_v9 = vmul.f32 %v6128_v11, %v8726_v37  ;;  %v3594_v42 = vadd.f32 1.0, %v6138_v54  ;;  %6159 = vpow2.f32 %v4880_v16  ;;  %v6144_v59 = vpop.eup %6143  ;;  %v5495_v37 = vpop.f32.mrb[56].mxu0 }
 0x410   : > { %v4032_v24 = vadd.f32 %v8724_v61, %v3968_v8  ;;  %v3346_v49 = vadd.f32 %v8063_v34, %v3275_v32  ;;  %v3345_v0 = vadd.f32 %v8063_v34, %v3274_v5  ;;  %v3972_v29 = vmul.f32 %v6136_v43, %v8727_v18 }
 0x411   : > { %v3593_v47 = vadd.f32 1.0, %v6140_v1  ;;  %6161 = vpow2.f32 %v4879_v58  ;;  %v8729_v26 = vunpack.c.h.bf16 %v8728_v36  ;;  %v8731_v21 = vunpack.c.l.bf16 %v8730_v45  ;;  %v6146_v55 = vpop.eup %6145 }
 0x412   : > { %v4882_v50 = vmul.f32 -1.442695, %v3346_v49  ;;  %5586 = vmatmul.mubr.f32.gmra.mrb[32].mxu1 %v4032_v24  ;;  %6163 = vrcp.f32 %v3594_v42  ;;  %v4881_v44 = vmul.f32 -1.442695, %v3345_v0  ;;  %v8732_v12 = vunpack.c.l.bf16 %v8728_v36  ;;  %v6148_v6 = vpop.eup %6147  ;;  %v8740_v24 = vld [vmem:[#allocation61_spill] sm:$0xff]  ;;  %v8742_v0 = vld [vmem:[#allocation76_spill] sm:$0xff] }
 0x413   : > { %v3277_v52 = vadd.f32 %v5489_v30, %v8729_v26  ;;  %v4033_v11 = vadd.f32 %v8731_v21, %v3969_v46  ;;  %6165 = vrcp.f32 %v3593_v47  ;;  %v8733_v10 = vunpack.c.h.bf16 %v8730_v45 }
 0x414   : > { %v3276_v14 = vadd.f32 %v8732_v12, %v3165_v41  ;;  %v3971_v56 = vmul.f32 %v6142_v63, %v8734_v57  ;;  %v3596_v15 = vadd.f32 1.0, %v6146_v55  ;;  %6167 = vpow2.f32 %v4882_v50  ;;  %v6150_v2 = vpop.eup %6149  ;;  %v3185_v50 = vpop.f32.mrb[57].mxu0  ;;  %v8748_v12 = vld [vmem:[#allocation64_spill] sm:$0xff]  ;;  %v8749_v57 = vld [vmem:[#allocation65_spill] sm:$0xff] }
 0x415   : > { %v3348_v53 = vadd.f32 %v8063_v34, %v3277_v52  ;;  %v4034_v31 = vadd.f32 %v8733_v10, %v3970_v9  ;;  %5588 = vmatprep.mubr.f32.mxu1 %v4033_v11  ;;  %v8736_v35 = vunpack.c.h.bf16 %v8735_v27  ;;  %6169 = vpow2.f32 %v4881_v44  ;;  %v6152_v60 = vpop.eup %6151  ;;  %v8741_v9 = vld [vmem:[#allocation62_spill] sm:$0xff] }
 0x416   : > { %v3347_v8 = vadd.f32 %v8063_v34, %v3276_v14  ;;  %v8737_v39 = vunpack.c.h.bf16 %v7857_v40  ;;  %v8738_v48 = vunpack.c.l.bf16 %v8735_v27  ;;  %6171 = vrcp.f32 %v3596_v15  ;;  %v6154_v33 = vpop.eup %6153  ;;  %v8751_v27 = vld [vmem:[#allocation49_spill] sm:$0xff] }
 0x417   : > { %v4036_v13 = vadd.f32 %v8736_v35, %v3972_v29  ;;  %v4884_v62 = vmul.f32 -1.442695, %v3348_v53  ;;  %5589 = vmatmul.mubr.f32.gmra.mrb[34].mxu1 %v4034_v31  ;;  %v3595_v32 = vadd.f32 1.0, %v6150_v2  ;;  %v8739_v43 = vunpack.c.l.bf16 %v7857_v40  ;;  %v6156_v49 = vpop.eup %6155  ;;  %v8744_v29 = vld [vmem:[#allocation44_spill] sm:$0xff]  ;;  %v5498_v31 = vpop.f32.mrb[58].mxu0 }
 0x418   : > { %v3279_v22 = vadd.f32 %v5492_v7, %v8737_v39  ;;  %v4035_v16 = vadd.f32 %v8738_v48, %v3971_v56  ;;  %v4883_v25 = vmul.f32 -1.442695, %v3347_v8  ;;  %v3598_v5 = vadd.f32 1.0, %v6152_v60  ;;  %v6158_v42 = vpop.eup %6157  ;;  %v3195_v2 = vpop.f32.mrb[59].mxu0 }
 0x419   : > { %v3278_v58 = vadd.f32 %v8739_v43, %v3175_v4  ;;  %6173 = vpow2.f32 %v4884_v62  ;;  %v3973_v54 = vmul.f32 %v6148_v6, %v8740_v24  ;;  %v3597_v23 = vadd.f32 1.0, %v6154_v33  ;;  %v6160_v36 = vpop.eup %6159  ;;  %v8755_v43 = vld [vmem:[#allocation66_spill] sm:$0xff]  ;;  %v5501_v24 = vpop.f32.mrb[60].mxu0 }
 0x41a   : > { %v3350_v61 = vadd.f32 %v8063_v34, %v3279_v22  ;;  %5591 = vmatprep.mubr.f32.mxu1 %v4035_v16  ;;  %6175 = vrcp.f32 %v3595_v32  ;;  %v3974_v1 = vmul.f32 %v6144_v59, %v8741_v9  ;;  %v8743_v30 = vunpack.c.h.bf16 %v8742_v0 }
 0x41b   : > { %v3349_v46 = vadd.f32 %v8063_v34, %v3278_v58  ;;  %6177 = vrcp.f32 %v3598_v5  ;;  %5592 = vmatmul.mubr.f32.gmra.mrb[36].mxu1 %v4036_v13  ;;  %v8745_v63 = vunpack.c.l.bf16 %v8744_v29  ;;  %v8746_v52 = vunpack.c.l.bf16 %v8742_v0  ;;  %v6162_v45 = vpop.eup %6161 }
 0x41c   : > { %v4886_v40 = vmul.f32 -1.442695, %v3350_v61  ;;  %v3281_v18 = vadd.f32 %v5495_v37, %v8743_v30  ;;  %6179 = vrcp.f32 %v3597_v23  ;;  %v8747_v44 = vunpack.c.h.bf16 %v8744_v29  ;;  %v6164_v55 = vpop.eup %6163  ;;  %v8757_v37 = vld [vmem:[#allocation50_spill] sm:$0xff] }
 0x41d   : > { %v4037_v47 = vadd.f32 %v8745_v63, %v3973_v54  ;;  %v4885_v26 = vmul.f32 -1.442695, %v3349_v46  ;;  %v3280_v41 = vadd.f32 %v8746_v52, %v3185_v50  ;;  %v3600_v21 = vadd.f32 1.0, %v6160_v36  ;;  %v6166_v6 = vpop.eup %6165  ;;  %v8756_v54 = vld [vmem:[#allocation67_spill] sm:$0xff] }
 0x41e   : > { %v4038_v59 = vadd.f32 %v8747_v44, %v3974_v1  ;;  %6181 = vpow2.f32 %v4883_v25  ;;  %v3352_v11 = vadd.f32 %v8063_v34, %v3281_v18  ;;  %v3975_v14 = vmul.f32 %v6158_v42, %v8748_v12  ;;  %v6168_v62 = vpop.eup %6167  ;;  %v3205_v42 = vpop.f32.mrb[61].mxu0  ;;  %v8761_v44 = vld [vmem:[#allocation69_spill] sm:$0xff] }
 0x41f   : > { %5594 = vmatprep.mubr.f32.mxu1 %v4037_v47  ;;  %v3599_v53 = vadd.f32 1.0, %v6162_v45  ;;  %6183 = vpow2.f32 %v4886_v40  ;;  %v3351_v10 = vadd.f32 %v8063_v34, %v3280_v41  ;;  %v3976_v56 = vmul.f32 %v6156_v49, %v8749_v57  ;;  %v6170_v60 = vpop.eup %6169  ;;  %v5504_v41 = vpop.f32.mrb[62].mxu0  ;;  %v8762_v45 = vld [vmem:[#allocation71_spill] sm:$0xff]  ;;  %v8763_v12 = vld [vmem:[#allocation53_spill] sm:$0xff] }
 0x420   : > { %6185 = vrcp.f32 %v3600_v21  ;;  %v4888_v15 = vmul.f32 -1.442695, %v3352_v11  ;;  %5595 = vmatmul.mubr.f32.gmra.mrb[38].mxu1 %v4038_v59  ;;  %v8750_v8 = vunpack.c.h.bf16 %v7873_v51  ;;  %v8752_v35 = vunpack.c.l.bf16 %v8751_v27  ;;  %v6172_v33 = vpop.eup %6171 }
 0x421   : > { %6187 = vrcp.f32 %v3599_v53  ;;  %v4887_v39 = vmul.f32 -1.442695, %v3351_v10  ;;  %v8753_v22 = vunpack.c.l.bf16 %v7873_v51  ;;  %v8754_v16 = vunpack.c.h.bf16 %v8751_v27  ;;  %v3215_v53 = vpop.f32.mrb[63].mxu0 }
 0x422   : > { %v3283_v7 = vadd.f32 %v5498_v31, %v8750_v8  ;;  %v4039_v13 = vadd.f32 %v8752_v35, %v3975_v14  ;;  %v3602_v32 = vadd.f32 1.0, %v6168_v62  ;;  %6189 = vpow2.f32 %v4885_v26  ;;  %v8182_v35 = vld [vmem:[%s6678_s0 + $0xd0] sm:$0xff]  }
 0x423   : > { %v3282_v48 = vadd.f32 %v8753_v22, %v3195_v2  ;;  %v4040_v4 = vadd.f32 %v8754_v16, %v3976_v56  ;;  %v3977_v58 = vmul.f32 %v6166_v6, %v8755_v43  ;;  %v3601_v5 = vadd.f32 1.0, %v6170_v60  ;;  %v6174_v49 = vpop.eup %6173  ;;  %v8767_v22 = vld [vmem:[#allocation54_spill] sm:$0xff] }
 0x424   : > { %v3354_v25 = vadd.f32 %v8063_v34, %v3283_v7  ;;  %5597 = vmatprep.mubr.f32.mxu1 %v4039_v13  ;;  %6191 = vpow2.f32 %v4888_v15  ;;  %v3978_v51 = vmul.f32 %v6164_v55, %v8756_v54  ;;  %v3285_v46 = vadd.f32 %v5501_v24, %v5022_v28  ;;  %v6176_v40 = vpop.eup %6175  ;;  %v8760_v28 = vld [vmem:[#allocation68_spill] sm:$0xff]  ;;  %v8771_v24 = vld [vmem:[#allocation57_spill] sm:$0xff] }
 0x425   : > { %v3353_v61 = vadd.f32 %v8063_v34, %v3282_v48  ;;  %6193 = vrcp.f32 %v3602_v32  ;;  %5598 = vmatmul.mubr.f32.gmra.mrb[40].mxu1 %v4040_v4  ;;  %v8758_v9 = vunpack.c.l.bf16 %v8757_v37  ;;  %v3604_v0 = vadd.f32 1.0, %v6174_v49  ;;  %v6178_v29 = vpop.eup %6177  ;;  %v8769_v4 = vld [vmem:[#allocation72_spill] sm:$0xff]  ;;  %v8773_v49 = vld [vmem:[#allocation9_spill] sm:$0xff] }
 0x426   : > { %v4890_v23 = vmul.f32 -1.442695, %v3354_v25  ;;  %6195 = vrcp.f32 %v3601_v5  ;;  %v3284_v18 = vadd.f32 %v5021_v19, %v3205_v42  ;;  %v3356_v63 = vadd.f32 %v8063_v34, %v3285_v46  ;;  %v6180_v26 = vpop.eup %6179  ;;  %v8191_v25 = vld [vmem:[%s6678_s0 + $0xd8] sm:$0xff]  }
 0x427   : > { %v4041_v1 = vadd.f32 %v8758_v9, %v3977_v58  ;;  %v4889_v30 = vmul.f32 -1.442695, %v3353_v61  ;;  %6197 = vpow2.f32 %v4887_v39  ;;  %v8759_v47 = vunpack.c.h.bf16 %v8757_v37 }
 0x428   : > { %v3979_v36 = vmul.f32 %v6176_v40, %v8760_v28  ;;  %6199 = vrcp.f32 %v3604_v0  ;;  %v3355_v52 = vadd.f32 %v8063_v34, %v3284_v18  ;;  %v3980_v59 = vmul.f32 %v6172_v33, %v8761_v44  ;;  %v6182_v19 = vpop.eup %6181  ;;  %v8775_v0 = vld [vmem:[#allocation63_spill] sm:$0xff]  ;;  %v8777_v18 = vld [vmem:[#allocation12_spill] sm:$0xff]  ;;  %v8780_v44 = vld [vmem:[#allocation58_spill] sm:$0xff] }
 0x429   : > { %5600 = vmatprep.mubr.f32.mxu1 %v4041_v1  ;;  %v4042_v50 = vadd.f32 %v8759_v47, %v3978_v51  ;;  %v3982_v17 = vmul.f32 %v6178_v29, %v8762_v45  ;;  %6201 = vpow2.f32 %v4890_v23  ;;  %v4892_v21 = vmul.f32 -1.442695, %v3356_v63  ;;  %v6184_v10 = vpop.eup %6183  ;;  %v8774_v1 = vld [vmem:[#allocation10_spill] sm:$0xff]  ;;  %v8205_v47 = vld [vmem:[%s6678_s0 + $0xe0] sm:$0xff]  }
 0x42a   : > { %v3287_v11 = vadd.f32 %v5504_v41, %v5026_v3  ;;  %v8764_v14 = vunpack.c.l.bf16 %v8763_v12  ;;  %v3603_v31 = vadd.f32 1.0, %v6182_v19  ;;  %6203 = vpow2.f32 %v4889_v30  ;;  %v6186_v6 = vpop.eup %6185 }
 0x42b   : > { %5601 = vmatmul.mubr.f32.gmra.mrb[42].mxu1 %v4042_v50  ;;  %v4891_v57 = vmul.f32 -1.442695, %v3355_v52  ;;  %v3286_v56 = vadd.f32 %v5025_v38, %v3215_v53  ;;  %v3606_v15 = vadd.f32 1.0, %v6184_v10  ;;  %6205 = vpow2.f32 %v4892_v21  ;;  %v6188_v27 = vpop.eup %6187 }
 0x42c   : > { %v4043_v55 = vadd.f32 %v8764_v14, %v3979_v36  ;;  %v3358_v8 = vadd.f32 %v8063_v34, %v3287_v11  ;;  %v8765_v3 = vunpack.c.h.bf16 %v8763_v12  ;;  %v5134_v13 = vunpack.c.h.bf16 %v8182_v35  ;;  %v6190_v62 = vpop.eup %6189  ;;  %v8778_v36 = vld [vmem:[#allocation13_spill] sm:$0xff]  ;;  %v8783_v14 = vld [vmem:[#allocation14_spill] sm:$0xff] }
 0x42d   : > { %6207 = vrcp.f32 %v3603_v31  ;;  %v3357_v2 = vadd.f32 %v8063_v34, %v3286_v56  ;;  %v3981_v38 = vmul.f32 %v6180_v26, %v8766_v20  ;;  %v8768_v48 = vunpack.c.h.bf16 %v8767_v22 }
 0x42e   : > { %5603 = vmatprep.mubr.f32.mxu1 %v4043_v55  ;;  %v4044_v7 = vadd.f32 %v8765_v3, %v3980_v59  ;;  %6209 = vrcp.f32 %v3606_v15  ;;  %v4894_v39 = vmul.f32 -1.442695, %v3358_v8  ;;  %v3983_v60 = vmul.f32 %v6188_v27, %v8769_v4  ;;  %v6192_v32 = vpop.eup %6191  ;;  %v8220_v15 = vld [vmem:[%s6678_s0 + $0xe8] sm:$0xff]  }
 0x42f   : > { %v4046_v16 = vadd.f32 %v8768_v48, %v3982_v17  ;;  %v3605_v43 = vadd.f32 1.0, %v6190_v62  ;;  %6211 = vpow2.f32 %v4891_v57  ;;  %v4893_v58 = vmul.f32 -1.442695, %v3357_v2  ;;  %v6194_v5 = vpop.eup %6193  ;;  %v8782_v17 = vld [vmem:[#allocation11_spill] sm:$0xff] }
 0x430   : > { %5604 = vmatmul.mubr.f32.gmra.mrb[44].mxu1 %v4044_v7  ;;  %v8770_v33 = vunpack.c.l.bf16 %v8767_v22  ;;  %v3608_v61 = vadd.f32 1.0, %v6192_v32  ;;  %6213 = vpow2.f32 %v4894_v39  ;;  %v8772_v54 = vunpack.c.l.bf16 %v8771_v24  ;;  %v6196_v46 = vpop.eup %6195  ;;  %v8784_v57 = vld [vmem:[#allocation15_spill] sm:$0xff]  ;;  %v8786_v39 = vld [vmem:[#allocation16_spill] sm:$0xff] }
 0x431   : > { %v3984_v23 = vmul.f32 %v6186_v6, %v8773_v49  ;;  %6215 = vrcp.f32 %v3605_v43  ;;  %v6198_v37 = vpop.eup %6197  ;;  %v5137_v9 = vunpack.c.l.bf16 %v8191_v25  ;;  %v3985_v42 = vmul.f32 %v6196_v46, %v8774_v1  ;;  %v8789_v1 = vld [vmem:[#allocation18_spill] sm:$0xff] }
 0x432   : > { %v4045_v34 = vadd.f32 %v8770_v33, %v3981_v38  ;;  %v4047_v51 = vadd.f32 %v8772_v54, %v3983_v60  ;;  %6217 = vrcp.f32 %v3608_v61  ;;  %v6200_v40 = vpop.eup %6199  ;;  %v8776_v30 = vunpack.c.l.bf16 %v8775_v0  ;;  %v5215_v33 = vld [vmem:[%s6678_s0 + $0xf0] sm:$0xff]  }
 0x433   : > { %v5138_v63 = vunpack.c.h.bf16 %v8191_v25  ;;  %v3607_v50 = vadd.f32 1.0, %v6198_v37  ;;  %6219 = vpow2.f32 %v4893_v58  ;;  %v6202_v28 = vpop.eup %6201  ;;  %v3924_v26 = vsub.f32 %v8778_v36, %v5134_v13  ;;  %v8788_v25 = vld [vmem:[#allocation17_spill] sm:$0xff]  ;;  %v8791_v36 = vld [vmem:[#allocation20_spill] sm:$0xff] }
 0x434   : > { %5606 = vmatprep.mubr.f32.mxu1 %v4045_v34  ;;  %v3923_v29 = vsub.f32 %v8777_v18, %v8776_v30  ;;  %v8779_v52 = vunpack.c.h.bf16 %v8771_v24  ;;  %v8781_v59 = vunpack.c.l.bf16 %v8780_v44  ;;  %v3986_v19 = vmul.f32 %v6194_v5, %v8782_v17  ;;  %v6204_v21 = vpop.eup %6203  ;;  %v5216_v18 = vld [vmem:[%s6678_s0 + $0xf8] sm:$0xff]  }
 0x435   : > { %5607 = vmatmul.mubr.f32.gmra.mrb[46].mxu1 %v4046_v16  ;;  %6221 = vrcp.f32 %v3607_v50  ;;  %v3610_v11 = vadd.f32 1.0, %v6202_v28  ;;  %v6206_v12 = vpop.eup %6205  ;;  %v3925_v55 = vsub.f32 %v8783_v14, %v5137_v9  ;;  %v5141_v53 = vunpack.c.l.bf16 %v8205_v47 }
 0x436   : > { %5609 = vmatprep.mubr.f32.mxu1 %v4047_v51  ;;  %v4048_v41 = vadd.f32 %v8779_v52, %v3984_v23  ;;  %v4049_v45 = vadd.f32 %v8781_v59, %v3985_v42  ;;  %v3609_v10 = vadd.f32 1.0, %v6204_v21  ;;  %v3926_v56 = vsub.f32 %v8784_v57, %v5138_v63 }
 0x437   : > { %v6208_v31 = vpop.eup %6207  ;;  %v5142_v6 = vunpack.c.h.bf16 %v8205_v47  ;;  %6223 = vrcp.f32 %v3610_v11  ;;  %v3612_v8 = vadd.f32 1.0, %v6206_v12  ;;  %v8785_v7 = vunpack.c.h.bf16 %v8780_v44 }
 0x438   : > { %v6210_v3 = vpop.eup %6209  ;;  %6225 = vrcp.f32 %v3609_v10  ;;  %v3987_v2 = vmul.f32 %v6208_v31, %v3923_v29  ;;  %v3988_v20 = vmul.f32 %v6200_v40, %v3924_v26  ;;  %v3927_v22 = vsub.f32 %v8786_v39, %v5141_v53  ;;  %v8790_v40 = vld [vmem:[#allocation19_spill] sm:$0xff] }
 0x439   : > { %5610 = vmatmul.mubr.f32.gmra.mrb[48].mxu1 %v4048_v41  ;;  %v4050_v27 = vadd.f32 %v8785_v7, %v3986_v19  ;;  %v6212_v38 = vpop.eup %6211  ;;  %v5145_v48 = vunpack.c.l.bf16 %v8220_v15  ;;  %v8787_v4 = vmov %v8776_v30  ;;  %v3928_v43 = vsub.f32 %v8788_v25, %v5142_v6  ;;  %v8792_v41 = vld [vmem:[#allocation21_spill] sm:$0xff] }
 0x43a   : > { %5612 = vmatprep.mubr.f32.mxu1 %v4049_v45  ;;  %v6214_v62 = vpop.eup %6213  ;;  %v3611_v16 = vadd.f32 1.0, %v6212_v38  ;;  %v4051_v60 = vadd.f32 %v8787_v4, %v3987_v2  ;;  %v5146_v58 = vunpack.c.h.bf16 %v8220_v15  ;;  %6227 = vrcp.f32 %v3612_v8  ;;  %v8243_v2 = vld [vmem:[%s8402_s8] ss:$0 sm:$0xff] }
 0x43b   : > { %v6216_v32 = vpop.eup %6215  ;;  %v3614_v34 = vadd.f32 1.0, %v6214_v62  ;;  %v4052_v61 = vadd.f32 %v5134_v13, %v3988_v20  ;;  %v3990_v54 = vmul.f32 %v6210_v3, %v3926_v56  ;;  %v5149_v49 = vunpack.c.l.bf16 %v5215_v33 }
 0x43c   : > { %v6218_v5 = vpop.eup %6217  ;;  %6229 = vrcp.f32 %v3611_v16  ;;  %v3989_v24 = vmul.f32 %v6216_v32, %v3925_v55  ;;  %v3929_v42 = vsub.f32 %v8789_v1, %v5145_v48  ;;  %v3930_v0 = vsub.f32 %v8790_v40, %v5146_v58  ;;  %v8794_v55 = vld [vmem:[#allocation23_spill] sm:$0xff] }
 0x43d   : > { %5613 = vmatmul.mubr.f32.gmra.mrb[50].mxu1 %v4050_v27  ;;  %v6220_v51 = vpop.eup %6219  ;;  %v5150_v30 = vunpack.c.h.bf16 %v5215_v33  ;;  %6231 = vrcp.f32 %v3614_v34  ;;  %v4054_v29 = vadd.f32 %v5138_v63, %v3990_v54  ;;  %v3992_v13 = vmul.f32 %v6218_v5, %v3928_v43  ;;  %v8793_v63 = vld [vmem:[#allocation22_spill] sm:$0xff] }
 0x43e   : > { %5615 = vmatprep.mubr.f32.mxu1 %v4051_v60  ;;  %v3613_v23 = vadd.f32 1.0, %v6220_v51  ;;  %v4053_v46 = vadd.f32 %v5137_v9, %v3989_v24  ;;  %v3931_v26 = vsub.f32 %v8791_v36, %v5149_v49  ;;  %v5153_v9 = vunpack.c.l.bf16 %v5216_v18 }
 0x43f   : > { %v6222_v37 = vpop.eup %6221  ;;  %v3932_v44 = vsub.f32 %v8792_v41, %v5150_v30  ;;  %v5154_v59 = vunpack.c.h.bf16 %v5216_v18  ;;  %v4056_v45 = vadd.f32 %v5142_v6, %v3992_v13 }
 0x440   : > { %6233 = vrcp.f32 %v3613_v23  ;;  %v3991_v35 = vmul.f32 %v6222_v37, %v3927_v22  ;;  %v3933_v12 = vsub.f32 %v8793_v63, %v5153_v9 }
 0x441   : > { %5616 = vmatmul.mubr.f32.gmra.mrb[52].mxu1 %v4052_v61  ;;  %v6224_v47 = vpop.eup %6223 }
 0x442   : > { %5618 = vmatprep.mubr.f32.mxu1 %v4053_v46  ;;  %v6226_v50 = vpop.eup %6225  ;;  %v4055_v28 = vadd.f32 %v5141_v53, %v3991_v35  ;;  %v3994_v17 = vmul.f32 %v6224_v47, %v3930_v0  ;;  %v3934_v53 = vsub.f32 %v8794_v55, %v5154_v59 }
 0x443   : > { %v3993_v52 = vmul.f32 %v6226_v50, %v3929_v42 }
 0x444   : > { %v6228_v19 = vpop.eup %6227  ;;  %v4058_v10 = vadd.f32 %v5146_v58, %v3994_v17 }
 0x445   : > { %5619 = vmatmul.mubr.f32.gmra.mrb[54].mxu1 %v4054_v29  ;;  %v4057_v21 = vadd.f32 %v5145_v48, %v3993_v52  ;;  %v3996_v31 = vmul.f32 %v6228_v19, %v3932_v44 }
 0x446   : > { %5621 = vmatprep.mubr.f32.mxu1 %v4055_v28  ;;  %v6230_v11 = vpop.eup %6229 }
 0x447   : > { %v3995_v14 = vmul.f32 %v6230_v11, %v3931_v26  ;;  %v6232_v57 = vpop.eup %6231  ;;  %v4060_v8 = vadd.f32 %v5150_v30, %v3996_v31 }
 0x448   : > { %v3998_v3 = vmul.f32 %v6232_v57, %v3934_v53 }
 0x449   : > { %5622 = vmatmul.mubr.f32.gmra.mrb[56].mxu1 %v4056_v45  ;;  %v4059_v56 = vadd.f32 %v5149_v49, %v3995_v14 }
 0x44a   : > { %5624 = vmatprep.mubr.f32.mxu1 %v4057_v21  ;;  %v6234_v15 = vpop.eup %6233  ;;  %v4062_v27 = vadd.f32 %v5154_v59, %v3998_v3 }
 0x44b   : > { %v3997_v6 = vmul.f32 %v6234_v15, %v3933_v12 }
 0x44d   : > { %5625 = vmatmul.mubr.f32.gmra.mrb[58].mxu1 %v4058_v10  ;;  %v4061_v7 = vadd.f32 %v5153_v9, %v3997_v6 }
 0x44e   : > { %5627 = vmatprep.mubr.f32.mxu1 %v4059_v56 }
 0x451   : > { %5628 = vmatmul.mubr.f32.gmra.mrb[60].mxu1 %v4060_v8 }
 0x452   : > { %5630 = vmatprep.mubr.f32.mxu1 %v4061_v7 }
 0x455   : > { %5631 = vmatmul.mubr.f32.gmra.mrb[62].mxu1 %v4062_v27 }
 0x491   : > { %v5539_v20 = vpop.f32.mrb[0].mxu1 }
 0x492   : > { %v4158_v38 = vadd.f32 %v5539_v20, %v8243_v2  ;;  %v4152_v62 = vpop.f32.mrb[1].mxu1 }
 0x493   : > { %v4153_v39 = vadd.f32 %v8243_v2, %v4152_v62 }
 0x494   : > { %4472 = vst [vmem:[%s6688_s14 + $0x8] sm:$0xff] %v4158_v38 }
 0x495   : > { %4471 = vst [vmem:[%s6688_s14] sm:$0xff] %v4153_v39 }
 0x496   : > { %v5542_v22 = vpop.f32.mrb[2].mxu1 }
 0x497   : > { %v4168_v48 = vadd.f32 %v5542_v22, %v8243_v2  ;;  %v4162_v16 = vpop.f32.mrb[3].mxu1 }
 0x498   : > { %v4163_v4 = vadd.f32 %v8243_v2, %v4162_v16 }
 0x499   : > { %4474 = vst [vmem:[%s6688_s14 + $0x18] sm:$0xff] %v4168_v48 }
 0x49a   : > { %4473 = vst [vmem:[%s6688_s14 + $0x10] sm:$0xff] %v4163_v4 }
 0x49b   : > { %v5545_v60 = vpop.f32.mrb[4].mxu1 }
 0x49c   : > { %v4178_v32 = vadd.f32 %v5545_v60, %v8243_v2  ;;  %v4172_v25 = vpop.f32.mrb[5].mxu1 }
 0x49d   : > { %v4173_v43 = vadd.f32 %v8243_v2, %v4172_v25 }
 0x49e   : > { %4476 = vst [vmem:[%s6688_s14 + $0x28] sm:$0xff] %v4178_v32 }
 0x49f   : > { %4475 = vst [vmem:[%s6688_s14 + $0x20] sm:$0xff] %v4173_v43 }
 0x4a2   : > { %v5548_v58 = vpop.f32.mrb[6].mxu1 }
 0x4a3   : > { %v4188_v33 = vadd.f32 %v5548_v58, %v8243_v2  ;;  %v4182_v34 = vpop.f32.mrb[7].mxu1 }
 0x4a4   : > { %v4183_v5 = vadd.f32 %v8243_v2, %v4182_v34 }
 0x4a5   : > { %4478 = vst [vmem:[%s6688_s14 + $0x38] sm:$0xff] %v4188_v33 }
 0x4a6   : > { %4477 = vst [vmem:[%s6688_s14 + $0x30] sm:$0xff] %v4183_v5 }
 0x4a7   : > { %v5551_v61 = vpop.f32.mrb[8].mxu1 }
 0x4a8   : > { %v4198_v24 = vadd.f32 %v5551_v61, %v8243_v2  ;;  %v4192_v54 = vpop.f32.mrb[9].mxu1 }
 0x4a9   : > { %v4193_v51 = vadd.f32 %v8243_v2, %v4192_v54 }
 0x4aa   : > { %4480 = vst [vmem:[%s6688_s14 + $0x48] sm:$0xff] %v4198_v24 }
 0x4ab   : > { %4479 = vst [vmem:[%s6688_s14 + $0x40] sm:$0xff] %v4193_v51 }
 0x4ac   : > { %v5554_v49 = vpop.f32.mrb[10].mxu1 }
 0x4ad   : > { %v4208_v23 = vadd.f32 %v5554_v49, %v8243_v2  ;;  %v4202_v46 = vpop.f32.mrb[11].mxu1 }
 0x4ae   : > { %v4203_v37 = vadd.f32 %v8243_v2, %v4202_v46 }
 0x4af   : > { %4482 = vst [vmem:[%s6688_s14 + $0x58] sm:$0xff] %v4208_v23 }
 0x4b0   : > { %4481 = vst [vmem:[%s6688_s14 + $0x50] sm:$0xff] %v4203_v37  ;;  %v5557_v1 = vpop.f32.mrb[12].mxu1 }
 0x4b1   : > { %v4218_v42 = vadd.f32 %v5557_v1, %v8243_v2  ;;  %v4212_v40 = vpop.f32.mrb[13].mxu1 }
 0x4b2   : > { %v4213_v0 = vadd.f32 %v8243_v2, %v4212_v40 }
 0x4b3   : > { %4484 = vst [vmem:[%s6688_s14 + $0x68] sm:$0xff] %v4218_v42 }
 0x4b4   : > { %4483 = vst [vmem:[%s6688_s14 + $0x60] sm:$0xff] %v4213_v0 }
 0x4b6   : > { %v5560_v30 = vpop.f32.mrb[14].mxu1 }
 0x4b7   : > { %v4228_v18 = vadd.f32 %v5560_v30, %v8243_v2  ;;  %v4222_v29 = vpop.f32.mrb[15].mxu1 }
 0x4b8   : > { %v4223_v35 = vadd.f32 %v8243_v2, %v4222_v29 }
 0x4b9   : > { %4486 = vst [vmem:[%s6688_s14 + $0x78] sm:$0xff] %v4228_v18 }
 0x4ba   : > { %4485 = vst [vmem:[%s6688_s14 + $0x70] sm:$0xff] %v4223_v35 }
 0x4bb   : > { %v5563_v13 = vpop.f32.mrb[16].mxu1 }
 0x4bc   : > { %v4238_v47 = vadd.f32 %v5563_v13, %v8243_v2  ;;  %v4232_v50 = vpop.f32.mrb[17].mxu1 }
 0x4bd   : > { %v4233_v28 = vadd.f32 %v8243_v2, %v4232_v50 }
 0x4be   : > { %4488 = vst [vmem:[%s6688_s14 + $0x88] sm:$0xff] %v4238_v47 }
 0x4bf   : > { %4487 = vst [vmem:[%s6688_s14 + $0x80] sm:$0xff] %v4233_v28 }
 0x4c1   : > { %v5566_v36 = vpop.f32.mrb[18].mxu1 }
 0x4c2   : > { %v4248_v26 = vadd.f32 %v5566_v36, %v8243_v2  ;;  %v4242_v9 = vpop.f32.mrb[19].mxu1 }
 0x4c3   : > { %v4243_v52 = vadd.f32 %v8243_v2, %v4242_v9 }
 0x4c4   : > { %4490 = vst [vmem:[%s6688_s14 + $0x98] sm:$0xff] %v4248_v26 }
 0x4c5   : > { %4489 = vst [vmem:[%s6688_s14 + $0x90] sm:$0xff] %v4243_v52 }
 0x4c6   : > { %v5569_v41 = vpop.f32.mrb[20].mxu1 }
 0x4c7   : > { %v4258_v44 = vadd.f32 %v5569_v41, %v8243_v2  ;;  %v4252_v59 = vpop.f32.mrb[21].mxu1 }
 0x4c8   : > { %v4253_v45 = vadd.f32 %v8243_v2, %v4252_v59 }
 0x4c9   : > { %4492 = vst [vmem:[%s6688_s14 + $0xa8] sm:$0xff] %v4258_v44 }
 0x4ca   : > { %4491 = vst [vmem:[%s6688_s14 + $0xa0] sm:$0xff] %v4253_v45 }
 0x4cb   : > { %v5572_v17 = vpop.f32.mrb[22].mxu1 }
 0x4cc   : > { %v4268_v19 = vadd.f32 %v5572_v17, %v8243_v2  ;;  %v4262_v21 = vpop.f32.mrb[23].mxu1 }
 0x4cd   : > { %v4263_v11 = vadd.f32 %v8243_v2, %v4262_v21 }
 0x4ce   : > { %4494 = vst [vmem:[%s6688_s14 + $0xb8] sm:$0xff] %v4268_v19 }
 0x4cf   : > { %4493 = vst [vmem:[%s6688_s14 + $0xb0] sm:$0xff] %v4263_v11 }
 0x4d1   : > { %v5575_v63 = vpop.f32.mrb[24].mxu1 }
 0x4d2   : > { %v4278_v12 = vadd.f32 %v5575_v63, %v8243_v2  ;;  %v4272_v14 = vpop.f32.mrb[25].mxu1 }
 0x4d3   : > { %v4273_v55 = vadd.f32 %v8243_v2, %v4272_v14 }
 0x4d4   : > { %4496 = vst [vmem:[%s6688_s14 + $0xc8] sm:$0xff] %v4278_v12 }
 0x4d5   : > { %4495 = vst [vmem:[%s6688_s14 + $0xc0] sm:$0xff] %v4273_v55 }
 0x4d7   : > { %v5578_v53 = vpop.f32.mrb[26].mxu1 }
 0x4d8   : > { %v4288_v10 = vadd.f32 %v5578_v53, %v8243_v2  ;;  %v4282_v31 = vpop.f32.mrb[27].mxu1 }
 0x4d9   : > { %v4283_v57 = vadd.f32 %v8243_v2, %v4282_v31 }
 0x4da   : > { %4498 = vst [vmem:[%s6688_s14 + $0xd8] sm:$0xff] %v4288_v10 }
 0x4db   : > { %4497 = vst [vmem:[%s6688_s14 + $0xd0] sm:$0xff] %v4283_v57  ;;  %v5581_v56 = vpop.f32.mrb[28].mxu1 }
 0x4dc   : > { %v4298_v15 = vadd.f32 %v5581_v56, %v8243_v2  ;;  %v4292_v6 = vpop.f32.mrb[29].mxu1 }
 0x4dd   : > { %v4293_v8 = vadd.f32 %v8243_v2, %v4292_v6 }
 0x4de   : > { %4500 = vst [vmem:[%s6688_s14 + $0xe8] sm:$0xff] %v4298_v15 }
 0x4df   : > { %4499 = vst [vmem:[%s6688_s14 + $0xe0] sm:$0xff] %v4293_v8  ;;  %v5584_v3 = vpop.f32.mrb[30].mxu1 }
 0x4e0   : > { %v4308_v7 = vadd.f32 %v5584_v3, %v8243_v2  ;;  %v4302_v27 = vpop.f32.mrb[31].mxu1 }
 0x4e1   : > { %v4303_v20 = vadd.f32 %v8243_v2, %v4302_v27 }
 0x4e2   : > { %4502 = vst [vmem:[%s6688_s14 + $0xf8] sm:$0xff] %v4308_v7 }
 0x4e3   : > { %4501 = vst [vmem:[%s6688_s14 + $0xf0] sm:$0xff] %v4303_v20 }
 0x4e5   : > { %v5587_v38 = vpop.f32.mrb[32].mxu1 }
 0x4e6   : > { %v4318_v62 = vadd.f32 %v5587_v38, %v8243_v2  ;;  %v4312_v39 = vpop.f32.mrb[33].mxu1 }
 0x4e7   : > { %v4313_v22 = vadd.f32 %v8243_v2, %v4312_v39 }
 0x4e8   : > { %4504 = vst [vmem:[%s6688_s14 + $0x108] sm:$0xff] %v4318_v62 }
 0x4e9   : > { %4503 = vst [vmem:[%s6688_s14 + $0x100] sm:$0xff] %v4313_v22 }
 0x4ea   : > { %v5590_v48 = vpop.f32.mrb[34].mxu1 }
 0x4eb   : > { %v4328_v16 = vadd.f32 %v5590_v48, %v8243_v2  ;;  %v4322_v4 = vpop.f32.mrb[35].mxu1 }
 0x4ec   : > { %v4323_v60 = vadd.f32 %v8243_v2, %v4322_v4 }
 0x4ed   : > { %4506 = vst [vmem:[%s6688_s14 + $0x118] sm:$0xff] %v4328_v16 }
 0x4ee   : > { %4505 = vst [vmem:[%s6688_s14 + $0x110] sm:$0xff] %v4323_v60  ;;  %v5593_v32 = vpop.f32.mrb[36].mxu1 }
 0x4ef   : > { %v4338_v25 = vadd.f32 %v5593_v32, %v8243_v2  ;;  %v4332_v43 = vpop.f32.mrb[37].mxu1 }
 0x4f0   : > { %v4333_v58 = vadd.f32 %v8243_v2, %v4332_v43 }
 0x4f1   : > { %4508 = vst [vmem:[%s6688_s14 + $0x128] sm:$0xff] %v4338_v25 }
 0x4f2   : > { %4507 = vst [vmem:[%s6688_s14 + $0x120] sm:$0xff] %v4333_v58 }
 0x4f3   : > { %v5596_v33 = vpop.f32.mrb[38].mxu1 }
 0x4f4   : > { %v4348_v34 = vadd.f32 %v5596_v33, %v8243_v2  ;;  %v4342_v5 = vpop.f32.mrb[39].mxu1 }
 0x4f5   : > { %v4343_v61 = vadd.f32 %v8243_v2, %v4342_v5 }
 0x4f6   : > { %4510 = vst [vmem:[%s6688_s14 + $0x138] sm:$0xff] %v4348_v34 }
 0x4f7   : > { %4509 = vst [vmem:[%s6688_s14 + $0x130] sm:$0xff] %v4343_v61 }
 0x4f8   : > { %v5599_v24 = vpop.f32.mrb[40].mxu1 }
 0x4f9   : > { %v4358_v54 = vadd.f32 %v5599_v24, %v8243_v2  ;;  %v4352_v51 = vpop.f32.mrb[41].mxu1 }
 0x4fa   : > { %v4353_v49 = vadd.f32 %v8243_v2, %v4352_v51 }
 0x4fb   : > { %4512 = vst [vmem:[%s6688_s14 + $0x148] sm:$0xff] %v4358_v54 }
 0x4fc   : > { %4511 = vst [vmem:[%s6688_s14 + $0x140] sm:$0xff] %v4353_v49 }
 0x4fe   : > { %v5602_v23 = vpop.f32.mrb[42].mxu1 }
 0x4ff   : > { %v4368_v46 = vadd.f32 %v5602_v23, %v8243_v2  ;;  %v4362_v37 = vpop.f32.mrb[43].mxu1 }
 0x500   : > { %v4363_v1 = vadd.f32 %v8243_v2, %v4362_v37 }
 0x501   : > { %4514 = vst [vmem:[%s6688_s14 + $0x158] sm:$0xff] %v4368_v46 }
 0x502   : > { %4513 = vst [vmem:[%s6688_s14 + $0x150] sm:$0xff] %v4363_v1 }
 0x503   : > { %v5605_v42 = vpop.f32.mrb[44].mxu1 }
 0x504   : > { %v4378_v40 = vadd.f32 %v5605_v42, %v8243_v2  ;;  %v4372_v0 = vpop.f32.mrb[45].mxu1 }
 0x505   : > { %v4373_v30 = vadd.f32 %v8243_v2, %v4372_v0 }
 0x506   : > { %4516 = vst [vmem:[%s6688_s14 + $0x168] sm:$0xff] %v4378_v40 }
 0x507   : > { %4515 = vst [vmem:[%s6688_s14 + $0x160] sm:$0xff] %v4373_v30 }
 0x508   : > { %v5608_v18 = vpop.f32.mrb[46].mxu1 }
 0x509   : > { %v4388_v29 = vadd.f32 %v5608_v18, %v8243_v2  ;;  %v4382_v35 = vpop.f32.mrb[47].mxu1 }
 0x50a   : > { %v4383_v13 = vadd.f32 %v8243_v2, %v4382_v35 }
 0x50b   : > { %4518 = vst [vmem:[%s6688_s14 + $0x178] sm:$0xff] %v4388_v29 }
 0x50c   : > { %4517 = vst [vmem:[%s6688_s14 + $0x170] sm:$0xff] %v4383_v13  ;;  %v5611_v47 = vpop.f32.mrb[48].mxu1 }
 0x50d   : > { %v4398_v50 = vadd.f32 %v5611_v47, %v8243_v2  ;;  %v4392_v28 = vpop.f32.mrb[49].mxu1 }
 0x50e   : > { %v4393_v36 = vadd.f32 %v8243_v2, %v4392_v28 }
 0x50f   : > { %4520 = vst [vmem:[%s6688_s14 + $0x188] sm:$0xff] %v4398_v50 }
 0x510   : > { %4519 = vst [vmem:[%s6688_s14 + $0x180] sm:$0xff] %v4393_v36  ;;  %v5614_v26 = vpop.f32.mrb[50].mxu1 }
 0x511   : > { %v4408_v9 = vadd.f32 %v5614_v26, %v8243_v2  ;;  %v4402_v52 = vpop.f32.mrb[51].mxu1 }
 0x512   : > { %v4403_v41 = vadd.f32 %v8243_v2, %v4402_v52 }
 0x513   : > { %4522 = vst [vmem:[%s6688_s14 + $0x198] sm:$0xff] %v4408_v9 }
 0x514   : > { %4521 = vst [vmem:[%s6688_s14 + $0x190] sm:$0xff] %v4403_v41  ;;  %v5617_v44 = vpop.f32.mrb[52].mxu1 }
 0x515   : > { %v4418_v59 = vadd.f32 %v5617_v44, %v8243_v2  ;;  %v4412_v45 = vpop.f32.mrb[53].mxu1 }
 0x516   : > { %v4413_v17 = vadd.f32 %v8243_v2, %v4412_v45 }
 0x517   : > { %4524 = vst [vmem:[%s6688_s14 + $0x1a8] sm:$0xff] %v4418_v59 }
 0x518   : > { %4523 = vst [vmem:[%s6688_s14 + $0x1a0] sm:$0xff] %v4413_v17  ;;  %v5620_v19 = vpop.f32.mrb[54].mxu1 }
 0x519   : > { %v4428_v21 = vadd.f32 %v5620_v19, %v8243_v2  ;;  %v4422_v11 = vpop.f32.mrb[55].mxu1 }
 0x51a   : > { %v4423_v63 = vadd.f32 %v8243_v2, %v4422_v11 }
 0x51b   : > { %4526 = vst [vmem:[%s6688_s14 + $0x1b8] sm:$0xff] %v4428_v21 }
 0x51c   : > { %4525 = vst [vmem:[%s6688_s14 + $0x1b0] sm:$0xff] %v4423_v63  ;;  %v5623_v12 = vpop.f32.mrb[56].mxu1 }
 0x51d   : > { %v4438_v14 = vadd.f32 %v5623_v12, %v8243_v2  ;;  %v4432_v55 = vpop.f32.mrb[57].mxu1 }
 0x51e   : > { %v4433_v53 = vadd.f32 %v8243_v2, %v4432_v55 }
 0x51f   : > { %4528 = vst [vmem:[%s6688_s14 + $0x1c8] sm:$0xff] %v4438_v14 }
 0x520   : > { %4527 = vst [vmem:[%s6688_s14 + $0x1c0] sm:$0xff] %v4433_v53  ;;  %v5626_v10 = vpop.f32.mrb[58].mxu1 }
 0x521   : > { %v4448_v31 = vadd.f32 %v5626_v10, %v8243_v2  ;;  %v4442_v57 = vpop.f32.mrb[59].mxu1 }
 0x522   : > { %v4443_v56 = vadd.f32 %v8243_v2, %v4442_v57 }
 0x523   : > { %4530 = vst [vmem:[%s6688_s14 + $0x1d8] sm:$0xff] %v4448_v31 }
 0x524   : > { %4529 = vst [vmem:[%s6688_s14 + $0x1d0] sm:$0xff] %v4443_v56  ;;  %v5629_v15 = vpop.f32.mrb[60].mxu1 }
 0x525   : > { %v4458_v6 = vadd.f32 %v5629_v15, %v8243_v2  ;;  %v4452_v8 = vpop.f32.mrb[61].mxu1 }
 0x526   : > { %v4453_v3 = vadd.f32 %v8243_v2, %v4452_v8 }
 0x527   : > { %4532 = vst [vmem:[%s6688_s14 + $0x1e8] sm:$0xff] %v4458_v6 }
 0x528   : > { %4531 = vst [vmem:[%s6688_s14 + $0x1e0] sm:$0xff] %v4453_v3  ;;  %v5632_v7 = vpop.f32.mrb[62].mxu1 }
 0x529   : > { %v4468_v27 = vadd.f32 %v5632_v7, %v8243_v2  ;;  %v4462_v20 = vpop.f32.mrb[63].mxu1 }
 0x52a   : > { %v4463_v38 = vadd.f32 %v8243_v2, %v4462_v20 }
 0x52b   : > { %4534 = vst [vmem:[%s6688_s14 + $0x1f8] sm:$0xff] %v4468_v27 }
 0x52c   : > { %4533 = vst [vmem:[%s6688_s14 + $0x1f0] sm:$0xff] %v4463_v38 }
 0x52d PF: > { %s19_s15 = sadd.s32 1, %s6291_s15   ;;  %s8795_s12 = sld [smem:[#allocation4_spill]] }
 0x52e   : > { %p16_p0 = scmp.ge.s32.totalorder %s19_s15, 6   ;;  %s8796_s19 = sld [smem:[#allocation5_spill]] }
 0x52f   : > { %s8797_s14 = sld [smem:[#allocation6_spill]]  ;;  %s8798_s30 = smov %s6271_s10 }
 0x530   : > { %s8799_s10 = smov %s6396_s22  ;;  %s8800_s11 = smov %s6283_s13 }
 0x531   :  { %18 = sbr.rel (!%p16_p0) target bundleno = 6 (0x6), region = 131 }
 0x534   : > { %s8801_s13 = smov %s8796_s19 }

// kernel: gcn_forward.5
= control target key start
LH: loop header
LB: loop body
LE: loop exit
PB: predicated region body
PF: predicated region fallthrough
CT: control target
= control target key end

     0   :  { %s9105_s0 = inlined_call_operand.vmem [shape: bf16[1024,1024], index: 0, kind: input, shape index: {}]   ;;  %s9106_s1 = inlined_call_operand.vmem [shape: bf16[1024,128], index: 1, kind: input, shape index: {}]   ;;  %s9107_s2 = inlined_call_operand.vmem [shape: f32[1,128], index: 2, kind: input, shape index: {}]   ;;  %s9108_s3 = inlined_call_operand.vmem [shape: bf16[1024,128], index: 3, kind: input, shape index: {}]   ;;  %s9109_s4 = inlined_call_operand.vmem [shape: bf16[1024,128], index: 4, kind: input, shape index: {}]   ;;  %s9110_s5 = inlined_call_operand.vmem [shape: f32[128,128], index: 5, kind: input, shape index: {}]   ;;  %s9111_s6 = inlined_call_operand.vmem [shape: f32[1,128], index: 6, kind: input, shape index: {}]   ;;  %s9112_s7 = inlined_call_operand.vmem [shape: f32[128,128], index: 7, kind: input, shape index: {}]   ;;  %s9113_s8 = inlined_call_operand.vmem [shape: f32[1,128], index: 8, kind: input, shape index: {}]   ;;  %s9114_s9 = inlined_call_operand.vmem [shape: bf16[1024,128], index: 9, kind: output, shape index: {}]  }
   0x1   :  { %9193 = sst [smem:[#allocation79_spill]] %s9105_s0 }
   0x2   :  { %s6984_s30 = smov 0   ;;  %s6986_s10 = smov 0  }
   0x3   :  { %s6988_s11 = smov 0   ;;  %s6990_s12 = smov 0  }
   0x4   :  { %s6992_s13 = smov 0   ;;  %s6994_s14 = smov 0  }
   0x5   :  { %s6996_s15 = smov 0  }
   0x6 LB: > { %s28_s16 = sadd.s32 1, %s6922_s13  ;;  %s31_s17 = sadd.s32 1, %s6926_s14  ;;  %s6930_s15 = sphi %s6996_s15, %s19_s15   ;;  %s6926_s14 = sphi %s6994_s14, %s9524_s14   ;;  %s6922_s13 = sphi %s6992_s13, %s9523_s13   ;;  %s6918_s12 = sphi %s6990_s12, %s9522_s12   ;;  %s6914_s11 = sphi %s6988_s11, %s9521_s11   ;;  %s6910_s10 = sphi %s6986_s10, %s9520_s10   ;;  %s6906_s30 = sphi %s6984_s30, %s9519_s30  }
   0x7   : > { %p29_p0 = scmp.ge.s32.totalorder %s28_s16, 2  ;;  %p47_p1 = scmp.ne.s32.totalorder %s6910_s10, %s6906_s30 }
   0x8   : > { %p48_p2 = scmp.eq.s32.totalorder %s6930_s15, 0  ;;  %s40_s21 = sadd.s32 1, %s6910_s10 }
   0x9   : > { %s9526_s16 = smov (%p29_p0, %s28_s16), 0  ;;  %s9528_s17 = smov (!%p29_p0, %s31_s17), %s6926_s14 }
   0xa   : > { %9194 = sst [smem:[#allocation4_spill]] %s9526_s16  ;;  %p49_p3 = por %p48_p2, %p47_p1 }
   0xb   : > { %p33_p4 = scmp.ge.s32.totalorder %s9528_s17, 2  ;;  %s36_s18 = ssub.s32 %s6922_s13, %s9526_s16 }
   0xc   : > { %p4971_p6 = scmp.ge.s32.totalorder %s6930_s15, 4 }
   0xd   : > { %s9530_s17 = smov (%p33_p4, %s9528_s17), 0 }
   0xe   : > { %9195 = sst [smem:[#allocation5_spill]] %s9530_s17  ;;  %s35_s19 = ssub.s32 %s6926_s14, %s9530_s17 }
   0xf   : > { %s37_s20 = sor.u32 %s36_s18, %s35_s19  ;;  %297 = sbr.rel (%p4971_p6) target bundleno = 96 (0x60), region = 36 }
  0x10   : > { %p38_p5 = scmp.eq.s32.totalorder %s37_s20, 0 }
  0x12   : > { %s7035_s22 = scalar_select %p38_p5, %s6910_s10, %s40_s21  }
  0x16   : > { %300 = sbr.rel (!%p49_p3) target bundleno = 96 (0x60), region = 40  ;;  %s302_s23 = sand.u32 (%p49_p3), 1, %s6910_s10  }
  0x17   : > { %s4974_s24 = sshll.u32 (%p49_p3), %s6922_s13, 2  ;;  %s4972_s25 = sshll.u32 (%p49_p3), %s302_s23, 10 }
  0x18   : > { %s5282_s26 = sshll.u32 (%p49_p3), %s6926_s14, 9  ;;  %s9196_s0 = sld [smem:[#allocation79_spill]] (%p49_p3) }
  0x19   : > { %s308_s27 = sadd.s32 (%p49_p3), %s5282_s26, %s4974_s24  ;;  %s7049_s19 = scalar_lea.vmem (%p49_p3), [#allocation3], %s4972_s25 }
  0x1a   : > { %s4976_s28 = sshll.u32 (%p49_p3), %s308_s27, 2 }
  0x1e   : > { %s7044_s18 = scalar_lea.vmem %s9196_s0, %s4976_s28 }
  0x1f   : > { %v323_v0 = vld [vmem:[%s7044_s18] sm:$0xff]  ;;  %v325_v1 = vld [vmem:[%s7044_s18 + $0x8] sm:$0xff] }
  0x20   : > { %v327_v2 = vld [vmem:[%s7044_s18 + $0x20] sm:$0xff]  ;;  %324 = vst [vmem:[%s7049_s19] sm:$0xff] %v323_v0  ;;  %326 = vst [vmem:[%s7049_s19 + $0x8] sm:$0xff] %v325_v1  ;;  %v329_v3 = vld [vmem:[%s7044_s18 + $0x28] sm:$0xff] }
  0x21   : > { %328 = vst [vmem:[%s7049_s19 + $0x10] sm:$0xff] %v327_v2  ;;  %v331_v4 = vld [vmem:[%s7044_s18 + $0x40] sm:$0xff]  ;;  %v333_v5 = vld [vmem:[%s7044_s18 + $0x48] sm:$0xff]  ;;  %330 = vst [vmem:[%s7049_s19 + $0x18] sm:$0xff] %v329_v3 }
  0x22   : > { %332 = vst [vmem:[%s7049_s19 + $0x20] sm:$0xff] %v331_v4  ;;  %334 = vst [vmem:[%s7049_s19 + $0x28] sm:$0xff] %v333_v5  ;;  %v335_v6 = vld [vmem:[%s7044_s18 + $0x60] sm:$0xff]  ;;  %v337_v7 = vld [vmem:[%s7044_s18 + $0x68] sm:$0xff] }
  0x23   : > { %v339_v8 = vld [vmem:[%s7044_s18 + $0x80] sm:$0xff]  ;;  %336 = vst [vmem:[%s7049_s19 + $0x30] sm:$0xff] %v335_v6  ;;  %338 = vst [vmem:[%s7049_s19 + $0x38] sm:$0xff] %v337_v7  ;;  %v341_v9 = vld [vmem:[%s7044_s18 + $0x88] sm:$0xff] }
  0x24   : > { %340 = vst [vmem:[%s7049_s19 + $0x40] sm:$0xff] %v339_v8  ;;  %v343_v10 = vld [vmem:[%s7044_s18 + $0xa0] sm:$0xff]  ;;  %v345_v11 = vld [vmem:[%s7044_s18 + $0xa8] sm:$0xff]  ;;  %342 = vst [vmem:[%s7049_s19 + $0x48] sm:$0xff] %v341_v9 }
  0x25   : > { %344 = vst [vmem:[%s7049_s19 + $0x50] sm:$0xff] %v343_v10  ;;  %346 = vst [vmem:[%s7049_s19 + $0x58] sm:$0xff] %v345_v11  ;;  %v347_v12 = vld [vmem:[%s7044_s18 + $0xc0] sm:$0xff]  ;;  %v349_v13 = vld [vmem:[%s7044_s18 + $0xc8] sm:$0xff] }
  0x26   : > { %v351_v14 = vld [vmem:[%s7044_s18 + $0xe0] sm:$0xff]  ;;  %348 = vst [vmem:[%s7049_s19 + $0x60] sm:$0xff] %v347_v12  ;;  %350 = vst [vmem:[%s7049_s19 + $0x68] sm:$0xff] %v349_v13  ;;  %v353_v15 = vld [vmem:[%s7044_s18 + $0xe8] sm:$0xff] }
  0x27   : > { %352 = vst [vmem:[%s7049_s19 + $0x70] sm:$0xff] %v351_v14  ;;  %v355_v16 = vld [vmem:[%s7044_s18 + $0x100] sm:$0xff]  ;;  %v357_v17 = vld [vmem:[%s7044_s18 + $0x108] sm:$0xff]  ;;  %354 = vst [vmem:[%s7049_s19 + $0x78] sm:$0xff] %v353_v15 }
  0x28   : > { %356 = vst [vmem:[%s7049_s19 + $0x80] sm:$0xff] %v355_v16  ;;  %358 = vst [vmem:[%s7049_s19 + $0x88] sm:$0xff] %v357_v17  ;;  %v359_v18 = vld [vmem:[%s7044_s18 + $0x120] sm:$0xff]  ;;  %v361_v19 = vld [vmem:[%s7044_s18 + $0x128] sm:$0xff] }
  0x29   : > { %v363_v20 = vld [vmem:[%s7044_s18 + $0x140] sm:$0xff]  ;;  %360 = vst [vmem:[%s7049_s19 + $0x90] sm:$0xff] %v359_v18  ;;  %362 = vst [vmem:[%s7049_s19 + $0x98] sm:$0xff] %v361_v19  ;;  %v365_v21 = vld [vmem:[%s7044_s18 + $0x148] sm:$0xff] }
  0x2a   : > { %364 = vst [vmem:[%s7049_s19 + $0xa0] sm:$0xff] %v363_v20  ;;  %v367_v22 = vld [vmem:[%s7044_s18 + $0x160] sm:$0xff]  ;;  %v369_v23 = vld [vmem:[%s7044_s18 + $0x168] sm:$0xff]  ;;  %366 = vst [vmem:[%s7049_s19 + $0xa8] sm:$0xff] %v365_v21 }
  0x2b   : > { %368 = vst [vmem:[%s7049_s19 + $0xb0] sm:$0xff] %v367_v22  ;;  %370 = vst [vmem:[%s7049_s19 + $0xb8] sm:$0xff] %v369_v23  ;;  %v371_v24 = vld [vmem:[%s7044_s18 + $0x180] sm:$0xff]  ;;  %v373_v25 = vld [vmem:[%s7044_s18 + $0x188] sm:$0xff] }
  0x2c   : > { %v375_v26 = vld [vmem:[%s7044_s18 + $0x1a0] sm:$0xff]  ;;  %372 = vst [vmem:[%s7049_s19 + $0xc0] sm:$0xff] %v371_v24  ;;  %374 = vst [vmem:[%s7049_s19 + $0xc8] sm:$0xff] %v373_v25  ;;  %v377_v27 = vld [vmem:[%s7044_s18 + $0x1a8] sm:$0xff] }
  0x2d   : > { %376 = vst [vmem:[%s7049_s19 + $0xd0] sm:$0xff] %v375_v26  ;;  %v379_v28 = vld [vmem:[%s7044_s18 + $0x1c0] sm:$0xff]  ;;  %v381_v29 = vld [vmem:[%s7044_s18 + $0x1c8] sm:$0xff]  ;;  %378 = vst [vmem:[%s7049_s19 + $0xd8] sm:$0xff] %v377_v27 }
  0x2e   : > { %380 = vst [vmem:[%s7049_s19 + $0xe0] sm:$0xff] %v379_v28  ;;  %382 = vst [vmem:[%s7049_s19 + $0xe8] sm:$0xff] %v381_v29  ;;  %v383_v30 = vld [vmem:[%s7044_s18 + $0x1e0] sm:$0xff]  ;;  %v385_v31 = vld [vmem:[%s7044_s18 + $0x1e8] sm:$0xff] }
  0x2f   : > { %v387_v32 = vld [vmem:[%s7044_s18 + $0x200] sm:$0xff]  ;;  %384 = vst [vmem:[%s7049_s19 + $0xf0] sm:$0xff] %v383_v30  ;;  %386 = vst [vmem:[%s7049_s19 + $0xf8] sm:$0xff] %v385_v31  ;;  %v389_v33 = vld [vmem:[%s7044_s18 + $0x208] sm:$0xff] }
  0x30   : > { %388 = vst [vmem:[%s7049_s19 + $0x100] sm:$0xff] %v387_v32  ;;  %v391_v34 = vld [vmem:[%s7044_s18 + $0x220] sm:$0xff]  ;;  %v393_v35 = vld [vmem:[%s7044_s18 + $0x228] sm:$0xff]  ;;  %390 = vst [vmem:[%s7049_s19 + $0x108] sm:$0xff] %v389_v33 }
  0x31   : > { %392 = vst [vmem:[%s7049_s19 + $0x110] sm:$0xff] %v391_v34  ;;  %394 = vst [vmem:[%s7049_s19 + $0x118] sm:$0xff] %v393_v35  ;;  %v395_v36 = vld [vmem:[%s7044_s18 + $0x240] sm:$0xff]  ;;  %v397_v37 = vld [vmem:[%s7044_s18 + $0x248] sm:$0xff] }
  0x32   : > { %v399_v38 = vld [vmem:[%s7044_s18 + $0x260] sm:$0xff]  ;;  %396 = vst [vmem:[%s7049_s19 + $0x120] sm:$0xff] %v395_v36  ;;  %398 = vst [vmem:[%s7049_s19 + $0x128] sm:$0xff] %v397_v37  ;;  %v401_v39 = vld [vmem:[%s7044_s18 + $0x268] sm:$0xff] }
  0x33   : > { %400 = vst [vmem:[%s7049_s19 + $0x130] sm:$0xff] %v399_v38  ;;  %v403_v40 = vld [vmem:[%s7044_s18 + $0x280] sm:$0xff]  ;;  %v405_v41 = vld [vmem:[%s7044_s18 + $0x288] sm:$0xff]  ;;  %402 = vst [vmem:[%s7049_s19 + $0x138] sm:$0xff] %v401_v39 }
  0x34   : > { %404 = vst [vmem:[%s7049_s19 + $0x140] sm:$0xff] %v403_v40  ;;  %406 = vst [vmem:[%s7049_s19 + $0x148] sm:$0xff] %v405_v41  ;;  %v407_v42 = vld [vmem:[%s7044_s18 + $0x2a0] sm:$0xff]  ;;  %v409_v43 = vld [vmem:[%s7044_s18 + $0x2a8] sm:$0xff] }
  0x35   : > { %v411_v44 = vld [vmem:[%s7044_s18 + $0x2c0] sm:$0xff]  ;;  %408 = vst [vmem:[%s7049_s19 + $0x150] sm:$0xff] %v407_v42  ;;  %410 = vst [vmem:[%s7049_s19 + $0x158] sm:$0xff] %v409_v43  ;;  %v413_v45 = vld [vmem:[%s7044_s18 + $0x2c8] sm:$0xff] }
  0x36   : > { %412 = vst [vmem:[%s7049_s19 + $0x160] sm:$0xff] %v411_v44  ;;  %v415_v46 = vld [vmem:[%s7044_s18 + $0x2e0] sm:$0xff]  ;;  %v417_v47 = vld [vmem:[%s7044_s18 + $0x2e8] sm:$0xff]  ;;  %414 = vst [vmem:[%s7049_s19 + $0x168] sm:$0xff] %v413_v45 }
  0x37   : > { %416 = vst [vmem:[%s7049_s19 + $0x170] sm:$0xff] %v415_v46  ;;  %418 = vst [vmem:[%s7049_s19 + $0x178] sm:$0xff] %v417_v47  ;;  %v419_v48 = vld [vmem:[%s7044_s18 + $0x300] sm:$0xff]  ;;  %v421_v49 = vld [vmem:[%s7044_s18 + $0x308] sm:$0xff] }
  0x38   : > { %v423_v50 = vld [vmem:[%s7044_s18 + $0x320] sm:$0xff]  ;;  %420 = vst [vmem:[%s7049_s19 + $0x180] sm:$0xff] %v419_v48  ;;  %422 = vst [vmem:[%s7049_s19 + $0x188] sm:$0xff] %v421_v49  ;;  %v425_v51 = vld [vmem:[%s7044_s18 + $0x328] sm:$0xff] }
  0x39   : > { %424 = vst [vmem:[%s7049_s19 + $0x190] sm:$0xff] %v423_v50  ;;  %v427_v52 = vld [vmem:[%s7044_s18 + $0x340] sm:$0xff]  ;;  %v429_v53 = vld [vmem:[%s7044_s18 + $0x348] sm:$0xff]  ;;  %426 = vst [vmem:[%s7049_s19 + $0x198] sm:$0xff] %v425_v51 }
  0x3a   : > { %428 = vst [vmem:[%s7049_s19 + $0x1a0] sm:$0xff] %v427_v52  ;;  %430 = vst [vmem:[%s7049_s19 + $0x1a8] sm:$0xff] %v429_v53  ;;  %v431_v54 = vld [vmem:[%s7044_s18 + $0x360] sm:$0xff]  ;;  %v433_v55 = vld [vmem:[%s7044_s18 + $0x368] sm:$0xff] }
  0x3b   : > { %v435_v56 = vld [vmem:[%s7044_s18 + $0x380] sm:$0xff]  ;;  %432 = vst [vmem:[%s7049_s19 + $0x1b0] sm:$0xff] %v431_v54  ;;  %434 = vst [vmem:[%s7049_s19 + $0x1b8] sm:$0xff] %v433_v55  ;;  %v437_v57 = vld [vmem:[%s7044_s18 + $0x388] sm:$0xff] }
  0x3c   : > { %436 = vst [vmem:[%s7049_s19 + $0x1c0] sm:$0xff] %v435_v56  ;;  %v439_v58 = vld [vmem:[%s7044_s18 + $0x3a0] sm:$0xff]  ;;  %v441_v59 = vld [vmem:[%s7044_s18 + $0x3a8] sm:$0xff]  ;;  %438 = vst [vmem:[%s7049_s19 + $0x1c8] sm:$0xff] %v437_v57 }
  0x3d   : > { %440 = vst [vmem:[%s7049_s19 + $0x1d0] sm:$0xff] %v439_v58  ;;  %442 = vst [vmem:[%s7049_s19 + $0x1d8] sm:$0xff] %v441_v59  ;;  %v443_v60 = vld [vmem:[%s7044_s18 + $0x3c0] sm:$0xff]  ;;  %v445_v61 = vld [vmem:[%s7044_s18 + $0x3c8] sm:$0xff] }
  0x3e   : > { %v447_v62 = vld [vmem:[%s7044_s18 + $0x3e0] sm:$0xff]  ;;  %444 = vst [vmem:[%s7049_s19 + $0x1e0] sm:$0xff] %v443_v60  ;;  %446 = vst [vmem:[%s7049_s19 + $0x1e8] sm:$0xff] %v445_v61  ;;  %v449_v63 = vld [vmem:[%s7044_s18 + $0x3e8] sm:$0xff] }
  0x3f   : > { %448 = vst [vmem:[%s7049_s19 + $0x1f0] sm:$0xff] %v447_v62  ;;  %v451_v0 = vld [vmem:[%s7044_s18 + $0x400] sm:$0xff]  ;;  %v453_v1 = vld [vmem:[%s7044_s18 + $0x408] sm:$0xff]  ;;  %450 = vst [vmem:[%s7049_s19 + $0x1f8] sm:$0xff] %v449_v63 }
  0x40   : > { %452 = vst [vmem:[%s7049_s19 + $0x200] sm:$0xff] %v451_v0  ;;  %454 = vst [vmem:[%s7049_s19 + $0x208] sm:$0xff] %v453_v1  ;;  %v455_v2 = vld [vmem:[%s7044_s18 + $0x420] sm:$0xff]  ;;  %v457_v3 = vld [vmem:[%s7044_s18 + $0x428] sm:$0xff] }
  0x41   : > { %v459_v4 = vld [vmem:[%s7044_s18 + $0x440] sm:$0xff]  ;;  %456 = vst [vmem:[%s7049_s19 + $0x210] sm:$0xff] %v455_v2  ;;  %458 = vst [vmem:[%s7049_s19 + $0x218] sm:$0xff] %v457_v3  ;;  %v461_v5 = vld [vmem:[%s7044_s18 + $0x448] sm:$0xff] }
  0x42   : > { %460 = vst [vmem:[%s7049_s19 + $0x220] sm:$0xff] %v459_v4  ;;  %v463_v6 = vld [vmem:[%s7044_s18 + $0x460] sm:$0xff]  ;;  %v465_v7 = vld [vmem:[%s7044_s18 + $0x468] sm:$0xff]  ;;  %462 = vst [vmem:[%s7049_s19 + $0x228] sm:$0xff] %v461_v5 }
  0x43   : > { %464 = vst [vmem:[%s7049_s19 + $0x230] sm:$0xff] %v463_v6  ;;  %466 = vst [vmem:[%s7049_s19 + $0x238] sm:$0xff] %v465_v7  ;;  %v467_v8 = vld [vmem:[%s7044_s18 + $0x480] sm:$0xff]  ;;  %v469_v9 = vld [vmem:[%s7044_s18 + $0x488] sm:$0xff] }
  0x44   : > { %v471_v10 = vld [vmem:[%s7044_s18 + $0x4a0] sm:$0xff]  ;;  %468 = vst [vmem:[%s7049_s19 + $0x240] sm:$0xff] %v467_v8  ;;  %470 = vst [vmem:[%s7049_s19 + $0x248] sm:$0xff] %v469_v9  ;;  %v473_v11 = vld [vmem:[%s7044_s18 + $0x4a8] sm:$0xff] }
  0x45   : > { %472 = vst [vmem:[%s7049_s19 + $0x250] sm:$0xff] %v471_v10  ;;  %v475_v12 = vld [vmem:[%s7044_s18 + $0x4c0] sm:$0xff]  ;;  %v477_v13 = vld [vmem:[%s7044_s18 + $0x4c8] sm:$0xff]  ;;  %474 = vst [vmem:[%s7049_s19 + $0x258] sm:$0xff] %v473_v11 }
  0x46   : > { %476 = vst [vmem:[%s7049_s19 + $0x260] sm:$0xff] %v475_v12  ;;  %478 = vst [vmem:[%s7049_s19 + $0x268] sm:$0xff] %v477_v13  ;;  %v479_v14 = vld [vmem:[%s7044_s18 + $0x4e0] sm:$0xff]  ;;  %v481_v15 = vld [vmem:[%s7044_s18 + $0x4e8] sm:$0xff] }
  0x47   : > { %v483_v16 = vld [vmem:[%s7044_s18 + $0x500] sm:$0xff]  ;;  %480 = vst [vmem:[%s7049_s19 + $0x270] sm:$0xff] %v479_v14  ;;  %482 = vst [vmem:[%s7049_s19 + $0x278] sm:$0xff] %v481_v15  ;;  %v485_v17 = vld [vmem:[%s7044_s18 + $0x508] sm:$0xff] }
  0x48   : > { %484 = vst [vmem:[%s7049_s19 + $0x280] sm:$0xff] %v483_v16  ;;  %v487_v18 = vld [vmem:[%s7044_s18 + $0x520] sm:$0xff]  ;;  %v489_v19 = vld [vmem:[%s7044_s18 + $0x528] sm:$0xff]  ;;  %486 = vst [vmem:[%s7049_s19 + $0x288] sm:$0xff] %v485_v17 }
  0x49   : > { %488 = vst [vmem:[%s7049_s19 + $0x290] sm:$0xff] %v487_v18  ;;  %490 = vst [vmem:[%s7049_s19 + $0x298] sm:$0xff] %v489_v19  ;;  %v491_v20 = vld [vmem:[%s7044_s18 + $0x540] sm:$0xff]  ;;  %v493_v21 = vld [vmem:[%s7044_s18 + $0x548] sm:$0xff] }
  0x4a   : > { %v495_v22 = vld [vmem:[%s7044_s18 + $0x560] sm:$0xff]  ;;  %492 = vst [vmem:[%s7049_s19 + $0x2a0] sm:$0xff] %v491_v20  ;;  %494 = vst [vmem:[%s7049_s19 + $0x2a8] sm:$0xff] %v493_v21  ;;  %v497_v23 = vld [vmem:[%s7044_s18 + $0x568] sm:$0xff] }
  0x4b   : > { %496 = vst [vmem:[%s7049_s19 + $0x2b0] sm:$0xff] %v495_v22  ;;  %v499_v24 = vld [vmem:[%s7044_s18 + $0x580] sm:$0xff]  ;;  %v501_v25 = vld [vmem:[%s7044_s18 + $0x588] sm:$0xff]  ;;  %498 = vst [vmem:[%s7049_s19 + $0x2b8] sm:$0xff] %v497_v23 }
  0x4c   : > { %500 = vst [vmem:[%s7049_s19 + $0x2c0] sm:$0xff] %v499_v24  ;;  %502 = vst [vmem:[%s7049_s19 + $0x2c8] sm:$0xff] %v501_v25  ;;  %v503_v26 = vld [vmem:[%s7044_s18 + $0x5a0] sm:$0xff]  ;;  %v505_v27 = vld [vmem:[%s7044_s18 + $0x5a8] sm:$0xff] }
  0x4d   : > { %v507_v28 = vld [vmem:[%s7044_s18 + $0x5c0] sm:$0xff]  ;;  %504 = vst [vmem:[%s7049_s19 + $0x2d0] sm:$0xff] %v503_v26  ;;  %506 = vst [vmem:[%s7049_s19 + $0x2d8] sm:$0xff] %v505_v27  ;;  %v509_v29 = vld [vmem:[%s7044_s18 + $0x5c8] sm:$0xff] }
  0x4e   : > { %508 = vst [vmem:[%s7049_s19 + $0x2e0] sm:$0xff] %v507_v28  ;;  %v511_v30 = vld [vmem:[%s7044_s18 + $0x5e0] sm:$0xff]  ;;  %v513_v31 = vld [vmem:[%s7044_s18 + $0x5e8] sm:$0xff]  ;;  %510 = vst [vmem:[%s7049_s19 + $0x2e8] sm:$0xff] %v509_v29 }
  0x4f   : > { %512 = vst [vmem:[%s7049_s19 + $0x2f0] sm:$0xff] %v511_v30  ;;  %514 = vst [vmem:[%s7049_s19 + $0x2f8] sm:$0xff] %v513_v31  ;;  %v515_v32 = vld [vmem:[%s7044_s18 + $0x600] sm:$0xff]  ;;  %v517_v33 = vld [vmem:[%s7044_s18 + $0x608] sm:$0xff] }
  0x50   : > { %v519_v34 = vld [vmem:[%s7044_s18 + $0x620] sm:$0xff]  ;;  %516 = vst [vmem:[%s7049_s19 + $0x300] sm:$0xff] %v515_v32  ;;  %518 = vst [vmem:[%s7049_s19 + $0x308] sm:$0xff] %v517_v33  ;;  %v521_v35 = vld [vmem:[%s7044_s18 + $0x628] sm:$0xff] }
  0x51   : > { %520 = vst [vmem:[%s7049_s19 + $0x310] sm:$0xff] %v519_v34  ;;  %v523_v36 = vld [vmem:[%s7044_s18 + $0x640] sm:$0xff]  ;;  %v525_v37 = vld [vmem:[%s7044_s18 + $0x648] sm:$0xff]  ;;  %522 = vst [vmem:[%s7049_s19 + $0x318] sm:$0xff] %v521_v35 }
  0x52   : > { %524 = vst [vmem:[%s7049_s19 + $0x320] sm:$0xff] %v523_v36  ;;  %526 = vst [vmem:[%s7049_s19 + $0x328] sm:$0xff] %v525_v37  ;;  %v527_v38 = vld [vmem:[%s7044_s18 + $0x660] sm:$0xff]  ;;  %v529_v39 = vld [vmem:[%s7044_s18 + $0x668] sm:$0xff] }
  0x53   : > { %v531_v40 = vld [vmem:[%s7044_s18 + $0x680] sm:$0xff]  ;;  %528 = vst [vmem:[%s7049_s19 + $0x330] sm:$0xff] %v527_v38  ;;  %530 = vst [vmem:[%s7049_s19 + $0x338] sm:$0xff] %v529_v39  ;;  %v533_v41 = vld [vmem:[%s7044_s18 + $0x688] sm:$0xff] }
  0x54   : > { %532 = vst [vmem:[%s7049_s19 + $0x340] sm:$0xff] %v531_v40  ;;  %v535_v42 = vld [vmem:[%s7044_s18 + $0x6a0] sm:$0xff]  ;;  %v537_v43 = vld [vmem:[%s7044_s18 + $0x6a8] sm:$0xff]  ;;  %534 = vst [vmem:[%s7049_s19 + $0x348] sm:$0xff] %v533_v41 }
  0x55   : > { %536 = vst [vmem:[%s7049_s19 + $0x350] sm:$0xff] %v535_v42  ;;  %538 = vst [vmem:[%s7049_s19 + $0x358] sm:$0xff] %v537_v43  ;;  %v539_v44 = vld [vmem:[%s7044_s18 + $0x6c0] sm:$0xff]  ;;  %v541_v45 = vld [vmem:[%s7044_s18 + $0x6c8] sm:$0xff] }
  0x56   : > { %v543_v46 = vld [vmem:[%s7044_s18 + $0x6e0] sm:$0xff]  ;;  %540 = vst [vmem:[%s7049_s19 + $0x360] sm:$0xff] %v539_v44  ;;  %542 = vst [vmem:[%s7049_s19 + $0x368] sm:$0xff] %v541_v45  ;;  %v545_v47 = vld [vmem:[%s7044_s18 + $0x6e8] sm:$0xff] }
  0x57   : > { %544 = vst [vmem:[%s7049_s19 + $0x370] sm:$0xff] %v543_v46  ;;  %v547_v48 = vld [vmem:[%s7044_s18 + $0x700] sm:$0xff]  ;;  %v549_v49 = vld [vmem:[%s7044_s18 + $0x708] sm:$0xff]  ;;  %546 = vst [vmem:[%s7049_s19 + $0x378] sm:$0xff] %v545_v47 }
  0x58   : > { %548 = vst [vmem:[%s7049_s19 + $0x380] sm:$0xff] %v547_v48  ;;  %550 = vst [vmem:[%s7049_s19 + $0x388] sm:$0xff] %v549_v49  ;;  %v551_v50 = vld [vmem:[%s7044_s18 + $0x720] sm:$0xff]  ;;  %v553_v51 = vld [vmem:[%s7044_s18 + $0x728] sm:$0xff] }
  0x59   : > { %v555_v52 = vld [vmem:[%s7044_s18 + $0x740] sm:$0xff]  ;;  %552 = vst [vmem:[%s7049_s19 + $0x390] sm:$0xff] %v551_v50  ;;  %554 = vst [vmem:[%s7049_s19 + $0x398] sm:$0xff] %v553_v51  ;;  %v557_v53 = vld [vmem:[%s7044_s18 + $0x748] sm:$0xff] }
  0x5a   : > { %556 = vst [vmem:[%s7049_s19 + $0x3a0] sm:$0xff] %v555_v52  ;;  %v559_v54 = vld [vmem:[%s7044_s18 + $0x760] sm:$0xff]  ;;  %v561_v55 = vld [vmem:[%s7044_s18 + $0x768] sm:$0xff]  ;;  %558 = vst [vmem:[%s7049_s19 + $0x3a8] sm:$0xff] %v557_v53 }
  0x5b   : > { %560 = vst [vmem:[%s7049_s19 + $0x3b0] sm:$0xff] %v559_v54  ;;  %562 = vst [vmem:[%s7049_s19 + $0x3b8] sm:$0xff] %v561_v55  ;;  %v563_v56 = vld [vmem:[%s7044_s18 + $0x780] sm:$0xff]  ;;  %v565_v57 = vld [vmem:[%s7044_s18 + $0x788] sm:$0xff] }
  0x5c   : > { %v567_v58 = vld [vmem:[%s7044_s18 + $0x7a0] sm:$0xff]  ;;  %564 = vst [vmem:[%s7049_s19 + $0x3c0] sm:$0xff] %v563_v56  ;;  %566 = vst [vmem:[%s7049_s19 + $0x3c8] sm:$0xff] %v565_v57  ;;  %v569_v59 = vld [vmem:[%s7044_s18 + $0x7a8] sm:$0xff] }
  0x5d   : > { %568 = vst [vmem:[%s7049_s19 + $0x3d0] sm:$0xff] %v567_v58  ;;  %v571_v60 = vld [vmem:[%s7044_s18 + $0x7c0] sm:$0xff]  ;;  %v573_v61 = vld [vmem:[%s7044_s18 + $0x7c8] sm:$0xff]  ;;  %570 = vst [vmem:[%s7049_s19 + $0x3d8] sm:$0xff] %v569_v59 }
  0x5e   : > { %572 = vst [vmem:[%s7049_s19 + $0x3e0] sm:$0xff] %v571_v60  ;;  %574 = vst [vmem:[%s7049_s19 + $0x3e8] sm:$0xff] %v573_v61  ;;  %v575_v62 = vld [vmem:[%s7044_s18 + $0x7e0] sm:$0xff]  ;;  %v577_v63 = vld [vmem:[%s7044_s18 + $0x7e8] sm:$0xff] }
  0x5f   : > { %576 = vst [vmem:[%s7049_s19 + $0x3f0] sm:$0xff] %v575_v62  ;;  %578 = vst [vmem:[%s7049_s19 + $0x3f8] sm:$0xff] %v577_v63 }
  0x60 PF: > { %p4977_p7 = scmp.ge.s32.totalorder %s6930_s15, 1  ;;  %p610_p8 = scmp.lt.s32.totalorder %s6930_s15, 5 }
  0x62   : > { %p611_p9 = pnand %p4977_p7, %p610_p8 }
  0x63   : > { %s617_s17 = sand.u32 (!%p611_p9), 1, %s6906_s30   ;;  %s4979_s20 = sshll.u32 (!%p611_p9), %s6914_s11, 6 }
  0x64   : > { %614 = sbr.rel (%p611_p9) target bundleno = 1342 (0x53e), region = 75  ;;  %s4978_s21 = sshll.u32 (!%p611_p9), %s617_s17, 10 }
  0x65   : > { %p670_p10 = scmp.lt.s32.totalorder (!%p611_p9), %s4979_s20, 127  ;;  %s4981_s23 = sshll.u32 (!%p611_p9), %s6918_s12, 6 }
  0x66   : > { %p676_p11 = scmp.lt.s32.totalorder (!%p611_p9), %s4981_s23, 127  ;;  %s7329_s25 = scalar_lea.vmem (!%p611_p9), [#allocation3], %s4978_s21 }
  0x67   : > { %p4987_p12 = scmp.ne.s32.totalorder (!%p611_p9), %s6914_s11, 0 }
  0x6b   : > { %s9532_s20 = smov (!%p670_p10, %s4979_s20), 127  ;;  %s9534_s23 = smov (!%p676_p11, %s4981_s23), 127 }
  0x6c   : > { %s4980_s24 = sshll.u32 %s9532_s20, 2  ;;  %s4982_s28 = sshll.u32 %s9534_s23, 2  ;;  %v6932_v0 = vmov (!%p4987_p12), 0.0  }
  0x6d   : > { %s7312_s27 = scalar_lea.vmem %s9106_s1, %s4980_s24  ;;  %s7317_s19 = scalar_lea.vmem %s9108_s3, %s4982_s28  ;;  %698 = vst [vmem:[#allocation2] sm:$0xff] (!%p4987_p12), %v6932_v0  ;;  %699 = vst [vmem:[#allocation2 + $0x8] sm:$0xff] (!%p4987_p12), %v6932_v0 }
  0x6e   : > { %s7322_s17 = scalar_lea.vmem %s9109_s4, %s4982_s28  ;;  %s7327_s20 = scalar_lea.vmem %s9114_s9, %s4982_s28  ;;  %700 = vst [vmem:[#allocation2 + $0x10] sm:$0xff] (!%p4987_p12), %v6932_v0  ;;  %701 = vst [vmem:[#allocation2 + $0x18] sm:$0xff] (!%p4987_p12), %v6932_v0 }
  0x6f   : > { %697 = sbr.rel (%p4987_p12) target bundleno = 141 (0x8d), region = 83  ;;  %702 = vst [vmem:[#allocation2 + $0x20] sm:$0xff] (!%p4987_p12), %v6932_v0  ;;  %703 = vst [vmem:[#allocation2 + $0x28] sm:$0xff] (!%p4987_p12), %v6932_v0 }
  0x70   : > { %704 = vst [vmem:[#allocation2 + $0x30] sm:$0xff] (!%p4987_p12), %v6932_v0  ;;  %705 = vst [vmem:[#allocation2 + $0x38] sm:$0xff] (!%p4987_p12), %v6932_v0 }
  0x71   : > { %706 = vst [vmem:[#allocation2 + $0x40] sm:$0xff] (!%p4987_p12), %v6932_v0  ;;  %707 = vst [vmem:[#allocation2 + $0x48] sm:$0xff] (!%p4987_p12), %v6932_v0 }
  0x72   : > { %708 = vst [vmem:[#allocation2 + $0x50] sm:$0xff] (!%p4987_p12), %v6932_v0  ;;  %709 = vst [vmem:[#allocation2 + $0x58] sm:$0xff] (!%p4987_p12), %v6932_v0 }
  0x73   : > { %710 = vst [vmem:[#allocation2 + $0x60] sm:$0xff] (!%p4987_p12), %v6932_v0  ;;  %711 = vst [vmem:[#allocation2 + $0x68] sm:$0xff] (!%p4987_p12), %v6932_v0 }
  0x74   : > { %712 = vst [vmem:[#allocation2 + $0x70] sm:$0xff] (!%p4987_p12), %v6932_v0  ;;  %713 = vst [vmem:[#allocation2 + $0x78] sm:$0xff] (!%p4987_p12), %v6932_v0 }
  0x75   : > { %714 = vst [vmem:[#allocation2 + $0x80] sm:$0xff] (!%p4987_p12), %v6932_v0  ;;  %715 = vst [vmem:[#allocation2 + $0x88] sm:$0xff] (!%p4987_p12), %v6932_v0 }
  0x76   : > { %716 = vst [vmem:[#allocation2 + $0x90] sm:$0xff] %v6932_v0  ;;  %717 = vst [vmem:[#allocation2 + $0x98] sm:$0xff] %v6932_v0 }
  0x77   : > { %718 = vst [vmem:[#allocation2 + $0xa0] sm:$0xff] %v6932_v0  ;;  %719 = vst [vmem:[#allocation2 + $0xa8] sm:$0xff] %v6932_v0 }
  0x78   : > { %720 = vst [vmem:[#allocation2 + $0xb0] sm:$0xff] %v6932_v0  ;;  %721 = vst [vmem:[#allocation2 + $0xb8] sm:$0xff] %v6932_v0 }
  0x79   : > { %722 = vst [vmem:[#allocation2 + $0xc0] sm:$0xff] %v6932_v0  ;;  %723 = vst [vmem:[#allocation2 + $0xc8] sm:$0xff] %v6932_v0 }
  0x7a   : > { %724 = vst [vmem:[#allocation2 + $0xd0] sm:$0xff] %v6932_v0  ;;  %725 = vst [vmem:[#allocation2 + $0xd8] sm:$0xff] %v6932_v0 }
  0x7b   : > { %726 = vst [vmem:[#allocation2 + $0xe0] sm:$0xff] %v6932_v0  ;;  %727 = vst [vmem:[#allocation2 + $0xe8] sm:$0xff] %v6932_v0 }
  0x7c   : > { %728 = vst [vmem:[#allocation2 + $0xf0] sm:$0xff] %v6932_v0  ;;  %729 = vst [vmem:[#allocation2 + $0xf8] sm:$0xff] %v6932_v0 }
  0x7d   : > { %730 = vst [vmem:[#allocation2 + $0x100] sm:$0xff] %v6932_v0  ;;  %731 = vst [vmem:[#allocation2 + $0x108] sm:$0xff] %v6932_v0 }
  0x7e   : > { %732 = vst [vmem:[#allocation2 + $0x110] sm:$0xff] %v6932_v0  ;;  %733 = vst [vmem:[#allocation2 + $0x118] sm:$0xff] %v6932_v0 }
  0x7f   : > { %734 = vst [vmem:[#allocation2 + $0x120] sm:$0xff] %v6932_v0  ;;  %735 = vst [vmem:[#allocation2 + $0x128] sm:$0xff] %v6932_v0 }
  0x80   : > { %736 = vst [vmem:[#allocation2 + $0x130] sm:$0xff] %v6932_v0  ;;  %737 = vst [vmem:[#allocation2 + $0x138] sm:$0xff] %v6932_v0 }
  0x81   : > { %738 = vst [vmem:[#allocation2 + $0x140] sm:$0xff] %v6932_v0  ;;  %739 = vst [vmem:[#allocation2 + $0x148] sm:$0xff] %v6932_v0 }
  0x82   : > { %740 = vst [vmem:[#allocation2 + $0x150] sm:$0xff] %v6932_v0  ;;  %741 = vst [vmem:[#allocation2 + $0x158] sm:$0xff] %v6932_v0 }
  0x83   : > { %742 = vst [vmem:[#allocation2 + $0x160] sm:$0xff] %v6932_v0  ;;  %743 = vst [vmem:[#allocation2 + $0x168] sm:$0xff] %v6932_v0 }
  0x84   : > { %744 = vst [vmem:[#allocation2 + $0x170] sm:$0xff] %v6932_v0  ;;  %745 = vst [vmem:[#allocation2 + $0x178] sm:$0xff] %v6932_v0 }
  0x85   : > { %746 = vst [vmem:[#allocation2 + $0x180] sm:$0xff] %v6932_v0  ;;  %747 = vst [vmem:[#allocation2 + $0x188] sm:$0xff] %v6932_v0 }
  0x86   : > { %748 = vst [vmem:[#allocation2 + $0x190] sm:$0xff] %v6932_v0  ;;  %749 = vst [vmem:[#allocation2 + $0x198] sm:$0xff] %v6932_v0 }
  0x87   : > { %750 = vst [vmem:[#allocation2 + $0x1a0] sm:$0xff] %v6932_v0  ;;  %751 = vst [vmem:[#allocation2 + $0x1a8] sm:$0xff] %v6932_v0 }
  0x88   : > { %752 = vst [vmem:[#allocation2 + $0x1b0] sm:$0xff] %v6932_v0  ;;  %753 = vst [vmem:[#allocation2 + $0x1b8] sm:$0xff] %v6932_v0 }
  0x89   : > { %754 = vst [vmem:[#allocation2 + $0x1c0] sm:$0xff] %v6932_v0  ;;  %755 = vst [vmem:[#allocation2 + $0x1c8] sm:$0xff] %v6932_v0 }
  0x8a   : > { %756 = vst [vmem:[#allocation2 + $0x1d0] sm:$0xff] %v6932_v0  ;;  %757 = vst [vmem:[#allocation2 + $0x1d8] sm:$0xff] %v6932_v0 }
  0x8b   : > { %758 = vst [vmem:[#allocation2 + $0x1e0] sm:$0xff] %v6932_v0  ;;  %759 = vst [vmem:[#allocation2 + $0x1e8] sm:$0xff] %v6932_v0 }
  0x8c   : > { %760 = vst [vmem:[#allocation2 + $0x1f0] sm:$0xff] %v6932_v0  ;;  %761 = vst [vmem:[#allocation2 + $0x1f8] sm:$0xff] %v6932_v0 }
  0x8d PF: > { %v6394_v1 = vld [vmem:[%s7312_s27] sm:$0xff]   ;;  %v6933_v2 = vmov 0   ;;  %v6396_v4 = vld [vmem:[%s7312_s27 + $0x8] sm:$0xff]   ;;  %v6398_v6 = vld [vmem:[%s7312_s27 + $0x10] sm:$0xff]   ;;  %p5148_p13 = scmp.ne.s32.totalorder %s6914_s11, 1 }
  0x8e   : > { %1850 = vmatprep.subr.bf16.mxu0 %v6933_v2  ;;  %2139 = vmatprep.subr.bf16.mxu1 %v6933_v2  ;;  %v6395_v3 = vld [vmem:[%s7312_s27 + $0x80] sm:$0xff]   ;;  %v6397_v5 = vld [vmem:[%s7312_s27 + $0x88] sm:$0xff]   ;;  %v6399_v7 = vld [vmem:[%s7312_s27 + $0x90] sm:$0xff]  }
  0x8f   : > { %1851 = vmatpush1.bf16.msra.mxu0 %v6394_v1  ;;  %2140 = vmatpush1.bf16.msra.mxu1 %v6395_v3  ;;  %v6400_v8 = vld [vmem:[%s7312_s27 + $0x18] sm:$0xff]   ;;  %v6402_v10 = vld [vmem:[%s7312_s27 + $0x20] sm:$0xff]   ;;  %v6404_v12 = vld [vmem:[%s7312_s27 + $0x28] sm:$0xff]  }
  0x90   : > { %1852 = vmatprep.subr.bf16.mxu0 %v6933_v2  ;;  %2141 = vmatprep.subr.bf16.mxu1 %v6933_v2  ;;  %v6401_v9 = vld [vmem:[%s7312_s27 + $0x98] sm:$0xff]   ;;  %v6403_v11 = vld [vmem:[%s7312_s27 + $0xa0] sm:$0xff]   ;;  %v6405_v13 = vld [vmem:[%s7312_s27 + $0xa8] sm:$0xff]  }
  0x91   : > { %v6406_v14 = vld [vmem:[%s7312_s27 + $0x30] sm:$0xff]   ;;  %v6408_v16 = vld [vmem:[%s7312_s27 + $0x38] sm:$0xff]   ;;  %v6410_v18 = vld [vmem:[%s7312_s27 + $0x40] sm:$0xff]  }
  0x92   : > { %v6407_v15 = vld [vmem:[%s7312_s27 + $0xb0] sm:$0xff]   ;;  %v6409_v17 = vld [vmem:[%s7312_s27 + $0xb8] sm:$0xff]   ;;  %v6411_v19 = vld [vmem:[%s7312_s27 + $0xc0] sm:$0xff]  }
  0x93   : > { %1853 = vmatpush1.bf16.msra.mxu0 %v6396_v4  ;;  %2142 = vmatpush1.bf16.msra.mxu1 %v6397_v5  ;;  %v6428_v20 = vld [vmem:[%s7329_s25 + $0x4] ss:$16 sps:$4 sm:$0xff]   ;;  %v6412_v21 = vld [vmem:[%s7312_s27 + $0x48] sm:$0xff]   ;;  %v6416_v26 = vld [vmem:[%s7312_s27 + $0x58] sm:$0xff]  }
  0x94   : > { %1854 = vmatprep.subr.bf16.mxu0 %v6933_v2  ;;  %2143 = vmatprep.subr.bf16.mxu1 %v6933_v2  ;;  %v6431_v22 = vld [vmem:[%s7329_s25 + $0xc] ss:$16 sps:$4 sm:$0xff]   ;;  %v6414_v24 = vld [vmem:[%s7312_s27 + $0x50] sm:$0xff]   ;;  %v6418_v28 = vld [vmem:[%s7312_s27 + $0x60] sm:$0xff]  }
  0x95   : > { %v6413_v23 = vld [vmem:[%s7312_s27 + $0xc8] sm:$0xff]   ;;  %1882 = vmatprep.mubr.bf16.mxu0 %v6428_v20  ;;  %2171 = vmatprep.mubr.bf16.mxu1 %v6431_v22  ;;  %v6415_v25 = vld [vmem:[%s7312_s27 + $0xd0] sm:$0xff]   ;;  %v6417_v27 = vld [vmem:[%s7312_s27 + $0xd8] sm:$0xff]  }
  0x96   : > { %v6419_v29 = vld [vmem:[%s7312_s27 + $0xe0] sm:$0xff]   ;;  %v6420_v30 = vld [vmem:[%s7312_s27 + $0x68] sm:$0xff]   ;;  %v6422_v32 = vld [vmem:[%s7312_s27 + $0x70] sm:$0xff]  }
  0x97   : > { %1855 = vmatpush1.bf16.msra.mxu0 %v6398_v6  ;;  %2144 = vmatpush1.bf16.msra.mxu1 %v6399_v7  ;;  %v6421_v31 = vld [vmem:[%s7312_s27 + $0xe8] sm:$0xff]   ;;  %v6423_v33 = vld [vmem:[%s7312_s27 + $0xf0] sm:$0xff]   ;;  %v6424_v34 = vld [vmem:[%s7312_s27 + $0x78] sm:$0xff]  }
  0x98   : > { %1856 = vmatprep.subr.bf16.mxu0 %v6933_v2  ;;  %2145 = vmatprep.subr.bf16.mxu1 %v6933_v2  ;;  %v6425_v35 = vld [vmem:[%s7312_s27 + $0xf8] sm:$0xff]   ;;  %v6426_v36 = vld [vmem:[%s7329_s25] ss:$16 sps:$4 sm:$0xff]   ;;  %v6432_v38 = vld [vmem:[%s7329_s25 + $0x24] ss:$16 sps:$4 sm:$0xff]  }
  0x99   : > { %v6429_v37 = vld [vmem:[%s7329_s25 + $0x8] ss:$16 sps:$4 sm:$0xff]   ;;  %v6434_v39 = vld [vmem:[%s7329_s25 + $0x2c] ss:$16 sps:$4 sm:$0xff]   ;;  %v6436_v40 = vld [vmem:[%s7329_s25 + $0x20] ss:$16 sps:$4 sm:$0xff]  }
  0x9a   : > { %v6437_v41 = vld [vmem:[%s7329_s25 + $0x28] ss:$16 sps:$4 sm:$0xff]   ;;  %v6438_v42 = vld [vmem:[%s7329_s25 + $0x44] ss:$16 sps:$4 sm:$0xff]   ;;  %v6440_v43 = vld [vmem:[%s7329_s25 + $0x4c] ss:$16 sps:$4 sm:$0xff]  }
  0x9b   : > { %1857 = vmatpush1.bf16.msra.mxu0 %v6400_v8  ;;  %2146 = vmatpush1.bf16.msra.mxu1 %v6401_v9  ;;  %v6442_v44 = vld [vmem:[%s7329_s25 + $0x40] ss:$16 sps:$4 sm:$0xff]   ;;  %v6443_v45 = vld [vmem:[%s7329_s25 + $0x48] ss:$16 sps:$4 sm:$0xff]   ;;  %v6444_v46 = vld [vmem:[%s7329_s25 + $0x64] ss:$16 sps:$4 sm:$0xff]  }
  0x9c   : > { %1858 = vmatprep.subr.bf16.mxu0 %v6933_v2  ;;  %2147 = vmatprep.subr.bf16.mxu1 %v6933_v2  ;;  %v6446_v47 = vld [vmem:[%s7329_s25 + $0x6c] ss:$16 sps:$4 sm:$0xff]   ;;  %v6448_v48 = vld [vmem:[%s7329_s25 + $0x60] ss:$16 sps:$4 sm:$0xff]   ;;  %v6449_v49 = vld [vmem:[%s7329_s25 + $0x68] ss:$16 sps:$4 sm:$0xff]  }
  0x9d   : > { %v6450_v50 = vld [vmem:[%s7329_s25 + $0x84] ss:$16 sps:$4 sm:$0xff]   ;;  %v6452_v51 = vld [vmem:[%s7329_s25 + $0x8c] ss:$16 sps:$4 sm:$0xff]   ;;  %v6454_v52 = vld [vmem:[%s7329_s25 + $0x80] ss:$16 sps:$4 sm:$0xff]  }
  0x9e   : > { %v6455_v53 = vld [vmem:[%s7329_s25 + $0x88] ss:$16 sps:$4 sm:$0xff]   ;;  %v6456_v54 = vld [vmem:[%s7329_s25 + $0xa4] ss:$16 sps:$4 sm:$0xff]   ;;  %v6458_v55 = vld [vmem:[%s7329_s25 + $0xac] ss:$16 sps:$4 sm:$0xff]  }
  0x9f   : > { %1859 = vmatpush1.bf16.msra.mxu0 %v6402_v10  ;;  %2148 = vmatpush1.bf16.msra.mxu1 %v6403_v11  ;;  %v6460_v56 = vld [vmem:[%s7329_s25 + $0xa0] ss:$16 sps:$4 sm:$0xff]   ;;  %v6461_v57 = vld [vmem:[%s7329_s25 + $0xa8] ss:$16 sps:$4 sm:$0xff]   ;;  %v6462_v58 = vld [vmem:[%s7329_s25 + $0xc4] ss:$16 sps:$4 sm:$0xff]  }
  0xa0   : > { %1860 = vmatprep.subr.bf16.mxu0 %v6933_v2  ;;  %2149 = vmatprep.subr.bf16.mxu1 %v6933_v2  ;;  %v6464_v59 = vld [vmem:[%s7329_s25 + $0xcc] ss:$16 sps:$4 sm:$0xff]   ;;  %v6466_v60 = vld [vmem:[%s7329_s25 + $0xc0] ss:$16 sps:$4 sm:$0xff]   ;;  %v6467_v61 = vld [vmem:[%s7329_s25 + $0xc8] ss:$16 sps:$4 sm:$0xff]  }
  0xa1   : > { %v6468_v62 = vld [vmem:[%s7329_s25 + $0xe4] ss:$16 sps:$4 sm:$0xff]   ;;  %v6470_v63 = vld [vmem:[%s7329_s25 + $0xec] ss:$16 sps:$4 sm:$0xff]   ;;  %v6472_v0 = vld [vmem:[%s7329_s25 + $0xe0] ss:$16 sps:$4 sm:$0xff]  }
  0xa2   : > { %v6473_v1 = vld [vmem:[%s7329_s25 + $0xe8] ss:$16 sps:$4 sm:$0xff]   ;;  %v6476_v3 = vld [vmem:[%s7329_s25 + $0x10c] ss:$16 sps:$4 sm:$0xff]   ;;  %v6478_v4 = vld [vmem:[%s7329_s25 + $0x100] ss:$16 sps:$4 sm:$0xff]  }
  0xa3   : > { %1861 = vmatpush1.bf16.msra.mxu0 %v6404_v12  ;;  %2150 = vmatpush1.bf16.msra.mxu1 %v6405_v13  ;;  %v6479_v5 = vld [vmem:[%s7329_s25 + $0x108] ss:$16 sps:$4 sm:$0xff]   ;;  %v6480_v6 = vld [vmem:[%s7329_s25 + $0x124] ss:$16 sps:$4 sm:$0xff]   ;;  %v6482_v7 = vld [vmem:[%s7329_s25 + $0x12c] ss:$16 sps:$4 sm:$0xff]  }
  0xa4   : > { %1862 = vmatprep.subr.bf16.mxu0 %v6933_v2  ;;  %2151 = vmatprep.subr.bf16.mxu1 %v6933_v2  ;;  %v6484_v8 = vld [vmem:[%s7329_s25 + $0x120] ss:$16 sps:$4 sm:$0xff]   ;;  %v6485_v9 = vld [vmem:[%s7329_s25 + $0x128] ss:$16 sps:$4 sm:$0xff]   ;;  %v6486_v10 = vld [vmem:[%s7329_s25 + $0x144] ss:$16 sps:$4 sm:$0xff]  }
  0xa5   : > { %v6488_v11 = vld [vmem:[%s7329_s25 + $0x14c] ss:$16 sps:$4 sm:$0xff]   ;;  %v6490_v12 = vld [vmem:[%s7329_s25 + $0x140] ss:$16 sps:$4 sm:$0xff]   ;;  %v6491_v13 = vld [vmem:[%s7329_s25 + $0x148] ss:$16 sps:$4 sm:$0xff]  }
  0xa6   : > { %v6502_v20 = vld [vmem:[%s7329_s25 + $0x180] ss:$16 sps:$4 sm:$0xff]   ;;  %v6504_v22 = vld [vmem:[%s7329_s25 + $0x1a4] ss:$16 sps:$4 sm:$0xff]  }
  0xa7   : > { %1863 = vmatpush1.bf16.msra.mxu0 %v6406_v14  ;;  %2152 = vmatpush1.bf16.msra.mxu1 %v6407_v15  ;;  %v6492_v14 = vld [vmem:[%s7329_s25 + $0x164] ss:$16 sps:$4 sm:$0xff]   ;;  %v6494_v15 = vld [vmem:[%s7329_s25 + $0x16c] ss:$16 sps:$4 sm:$0xff]  }
  0xa8   : > { %1864 = vmatprep.subr.bf16.mxu0 %v6933_v2  ;;  %2153 = vmatprep.subr.bf16.mxu1 %v6933_v2 }
  0xab   : > { %1865 = vmatpush1.bf16.msra.mxu0 %v6408_v16  ;;  %2154 = vmatpush1.bf16.msra.mxu1 %v6409_v17  ;;  %v6496_v16 = vld [vmem:[%s7329_s25 + $0x160] ss:$16 sps:$4 sm:$0xff]   ;;  %v6497_v17 = vld [vmem:[%s7329_s25 + $0x168] ss:$16 sps:$4 sm:$0xff]  }
  0xac   : > { %1866 = vmatprep.subr.bf16.mxu0 %v6933_v2  ;;  %2155 = vmatprep.subr.bf16.mxu1 %v6933_v2 }
  0xaf   : > { %1867 = vmatpush1.bf16.msra.mxu0 %v6410_v18  ;;  %2156 = vmatpush1.bf16.msra.mxu1 %v6411_v19  ;;  %v6498_v18 = vld [vmem:[%s7329_s25 + $0x184] ss:$16 sps:$4 sm:$0xff]   ;;  %v6500_v19 = vld [vmem:[%s7329_s25 + $0x18c] ss:$16 sps:$4 sm:$0xff]  }
  0xb0   : > { %1868 = vmatprep.subr.bf16.mxu0 %v6933_v2  ;;  %2157 = vmatprep.subr.bf16.mxu1 %v6933_v2 }
  0xb3   : > { %1869 = vmatpush1.bf16.msra.mxu0 %v6412_v21  ;;  %2158 = vmatpush1.bf16.msra.mxu1 %v6413_v23  ;;  %v6503_v21 = vld [vmem:[%s7329_s25 + $0x188] ss:$16 sps:$4 sm:$0xff]   ;;  %v6506_v23 = vld [vmem:[%s7329_s25 + $0x1ac] ss:$16 sps:$4 sm:$0xff]  }
  0xb4   : > { %1870 = vmatprep.subr.bf16.mxu0 %v6933_v2  ;;  %2159 = vmatprep.subr.bf16.mxu1 %v6933_v2 }
  0xb7   : > { %1871 = vmatpush1.bf16.msra.mxu0 %v6414_v24  ;;  %2160 = vmatpush1.bf16.msra.mxu1 %v6415_v25  ;;  %v6508_v24 = vld [vmem:[%s7329_s25 + $0x1a0] ss:$16 sps:$4 sm:$0xff]   ;;  %v6509_v25 = vld [vmem:[%s7329_s25 + $0x1a8] ss:$16 sps:$4 sm:$0xff]  }
  0xb8   : > { %1872 = vmatprep.subr.bf16.mxu0 %v6933_v2  ;;  %2161 = vmatprep.subr.bf16.mxu1 %v6933_v2 }
  0xbb   : > { %1873 = vmatpush1.bf16.msra.mxu0 %v6416_v26  ;;  %2162 = vmatpush1.bf16.msra.mxu1 %v6417_v27  ;;  %v6510_v26 = vld [vmem:[%s7329_s25 + $0x1c4] ss:$16 sps:$4 sm:$0xff]   ;;  %v6512_v27 = vld [vmem:[%s7329_s25 + $0x1cc] ss:$16 sps:$4 sm:$0xff]  }
  0xbc   : > { %1874 = vmatprep.subr.bf16.mxu0 %v6933_v2  ;;  %2163 = vmatprep.subr.bf16.mxu1 %v6933_v2 }
  0xbf   : > { %1875 = vmatpush1.bf16.msra.mxu0 %v6418_v28  ;;  %2164 = vmatpush1.bf16.msra.mxu1 %v6419_v29  ;;  %v6514_v28 = vld [vmem:[%s7329_s25 + $0x1c0] ss:$16 sps:$4 sm:$0xff]   ;;  %v6515_v29 = vld [vmem:[%s7329_s25 + $0x1c8] ss:$16 sps:$4 sm:$0xff]  }
  0xc0   : > { %1876 = vmatprep.subr.bf16.mxu0 %v6933_v2  ;;  %2165 = vmatprep.subr.bf16.mxu1 %v6933_v2 }
  0xc3   : > { %1877 = vmatpush1.bf16.msra.mxu0 %v6420_v30  ;;  %2166 = vmatpush1.bf16.msra.mxu1 %v6421_v31  ;;  %v6516_v30 = vld [vmem:[%s7329_s25 + $0x1e4] ss:$16 sps:$4 sm:$0xff]   ;;  %v6518_v31 = vld [vmem:[%s7329_s25 + $0x1ec] ss:$16 sps:$4 sm:$0xff]  }
  0xc4   : > { %1878 = vmatprep.subr.bf16.mxu0 %v6933_v2  ;;  %2167 = vmatprep.subr.bf16.mxu1 %v6933_v2 }
  0xc7   : > { %1879 = vmatpush1.bf16.msra.mxu0 %v6422_v32  ;;  %2168 = vmatpush1.bf16.msra.mxu1 %v6423_v33  ;;  %v6520_v32 = vld [vmem:[%s7329_s25 + $0x1e0] ss:$16 sps:$4 sm:$0xff]   ;;  %v6521_v33 = vld [vmem:[%s7329_s25 + $0x1e8] ss:$16 sps:$4 sm:$0xff]  }
  0xc8   : > { %1880 = vmatprep.subr.bf16.mxu0 %v6933_v2  ;;  %2169 = vmatprep.subr.bf16.mxu1 %v6933_v2  ;;  %v6474_v2 = vld [vmem:[%s7329_s25 + $0x104] ss:$16 sps:$4 sm:$0xff]  }
  0xcb   : > { %1881 = vmatpush1.bf16.msra.mxu0 %v6424_v34  ;;  %2170 = vmatpush1.bf16.msra.mxu1 %v6425_v35  ;;  %v6522_v34 = vld [vmem:[%s7329_s25 + $0x204] ss:$16 sps:$4 sm:$0xff]   ;;  %v6524_v35 = vld [vmem:[%s7329_s25 + $0x20c] ss:$16 sps:$4 sm:$0xff]  }
  0xce   : > { %1883 = vmatmul.mubr.bf16.vlgmr.msra.gmra.mrb[0].mxu0 %v6426_v36  ;;  %2172 = vmatmul.mubr.bf16.vlgmr.msra.gmra.mrb[0].mxu1 %v6429_v37  ;;  %v6526_v36 = vld [vmem:[%s7329_s25 + $0x200] ss:$16 sps:$4 sm:$0xff]   ;;  %v6527_v37 = vld [vmem:[%s7329_s25 + $0x208] ss:$16 sps:$4 sm:$0xff]  }
  0xcf   : > { %1890 = vmatprep.mubr.bf16.mxu0 %v6432_v38  ;;  %2179 = vmatprep.mubr.bf16.mxu1 %v6434_v39  ;;  %v6528_v38 = vld [vmem:[%s7329_s25 + $0x224] ss:$16 sps:$4 sm:$0xff]   ;;  %v6530_v39 = vld [vmem:[%s7329_s25 + $0x22c] ss:$16 sps:$4 sm:$0xff]  }
  0xd6   : > { %1891 = vmatmul.mubr.bf16.gmra.mrb[4].mxu0 %v6436_v40  ;;  %2180 = vmatmul.mubr.bf16.gmra.mrb[4].mxu1 %v6437_v41  ;;  %v6532_v40 = vld [vmem:[%s7329_s25 + $0x220] ss:$16 sps:$4 sm:$0xff]   ;;  %v6533_v41 = vld [vmem:[%s7329_s25 + $0x228] ss:$16 sps:$4 sm:$0xff]  }
  0xd7   : > { %1898 = vmatprep.mubr.bf16.mxu0 %v6438_v42  ;;  %2187 = vmatprep.mubr.bf16.mxu1 %v6440_v43  ;;  %v6534_v42 = vld [vmem:[%s7329_s25 + $0x244] ss:$16 sps:$4 sm:$0xff]   ;;  %v6536_v43 = vld [vmem:[%s7329_s25 + $0x24c] ss:$16 sps:$4 sm:$0xff]  }
  0xde   : > { %1899 = vmatmul.mubr.bf16.gmra.mrb[8].mxu0 %v6442_v44  ;;  %2188 = vmatmul.mubr.bf16.gmra.mrb[8].mxu1 %v6443_v45  ;;  %v6538_v44 = vld [vmem:[%s7329_s25 + $0x240] ss:$16 sps:$4 sm:$0xff]   ;;  %v6539_v45 = vld [vmem:[%s7329_s25 + $0x248] ss:$16 sps:$4 sm:$0xff]  }
  0xdf   : > { %1906 = vmatprep.mubr.bf16.mxu0 %v6444_v46  ;;  %2195 = vmatprep.mubr.bf16.mxu1 %v6446_v47  ;;  %v6540_v46 = vld [vmem:[%s7329_s25 + $0x264] ss:$16 sps:$4 sm:$0xff]   ;;  %v6542_v47 = vld [vmem:[%s7329_s25 + $0x26c] ss:$16 sps:$4 sm:$0xff]  }
  0xe6   : > { %1907 = vmatmul.mubr.bf16.gmra.mrb[12].mxu0 %v6448_v48  ;;  %2196 = vmatmul.mubr.bf16.gmra.mrb[12].mxu1 %v6449_v49  ;;  %v6544_v48 = vld [vmem:[%s7329_s25 + $0x260] ss:$16 sps:$4 sm:$0xff]   ;;  %v6545_v49 = vld [vmem:[%s7329_s25 + $0x268] ss:$16 sps:$4 sm:$0xff]  }
  0xe7   : > { %1914 = vmatprep.mubr.bf16.mxu0 %v6450_v50  ;;  %2203 = vmatprep.mubr.bf16.mxu1 %v6452_v51  ;;  %v6546_v50 = vld [vmem:[%s7329_s25 + $0x284] ss:$16 sps:$4 sm:$0xff]   ;;  %v6548_v51 = vld [vmem:[%s7329_s25 + $0x28c] ss:$16 sps:$4 sm:$0xff]  }
  0xee   : > { %1915 = vmatmul.mubr.bf16.gmra.mrb[16].mxu0 %v6454_v52  ;;  %2204 = vmatmul.mubr.bf16.gmra.mrb[16].mxu1 %v6455_v53  ;;  %v6550_v52 = vld [vmem:[%s7329_s25 + $0x280] ss:$16 sps:$4 sm:$0xff]   ;;  %v6551_v53 = vld [vmem:[%s7329_s25 + $0x288] ss:$16 sps:$4 sm:$0xff]  }
  0xef   : > { %1922 = vmatprep.mubr.bf16.mxu0 %v6456_v54  ;;  %2211 = vmatprep.mubr.bf16.mxu1 %v6458_v55  ;;  %v6552_v54 = vld [vmem:[%s7329_s25 + $0x2a4] ss:$16 sps:$4 sm:$0xff]   ;;  %v6554_v55 = vld [vmem:[%s7329_s25 + $0x2ac] ss:$16 sps:$4 sm:$0xff]  }
  0xf6   : > { %1923 = vmatmul.mubr.bf16.gmra.mrb[20].mxu0 %v6460_v56  ;;  %2212 = vmatmul.mubr.bf16.gmra.mrb[20].mxu1 %v6461_v57  ;;  %v6556_v56 = vld [vmem:[%s7329_s25 + $0x2a0] ss:$16 sps:$4 sm:$0xff]   ;;  %v6557_v57 = vld [vmem:[%s7329_s25 + $0x2a8] ss:$16 sps:$4 sm:$0xff]  }
  0xf7   : > { %1930 = vmatprep.mubr.bf16.mxu0 %v6462_v58  ;;  %2219 = vmatprep.mubr.bf16.mxu1 %v6464_v59  ;;  %v6558_v58 = vld [vmem:[%s7329_s25 + $0x2c4] ss:$16 sps:$4 sm:$0xff]   ;;  %v6560_v59 = vld [vmem:[%s7329_s25 + $0x2cc] ss:$16 sps:$4 sm:$0xff]  }
  0xfe   : > { %1931 = vmatmul.mubr.bf16.gmra.mrb[24].mxu0 %v6466_v60  ;;  %2220 = vmatmul.mubr.bf16.gmra.mrb[24].mxu1 %v6467_v61  ;;  %v6562_v60 = vld [vmem:[%s7329_s25 + $0x2c0] ss:$16 sps:$4 sm:$0xff]   ;;  %v6563_v61 = vld [vmem:[%s7329_s25 + $0x2c8] ss:$16 sps:$4 sm:$0xff]  }
  0xff   : > { %1938 = vmatprep.mubr.bf16.mxu0 %v6468_v62  ;;  %2227 = vmatprep.mubr.bf16.mxu1 %v6470_v63  ;;  %v6564_v62 = vld [vmem:[%s7329_s25 + $0x2e4] ss:$16 sps:$4 sm:$0xff]   ;;  %v6566_v63 = vld [vmem:[%s7329_s25 + $0x2ec] ss:$16 sps:$4 sm:$0xff]  }
 0x106   : > { %1939 = vmatmul.mubr.bf16.gmra.mrb[28].mxu0 %v6472_v0  ;;  %2228 = vmatmul.mubr.bf16.gmra.mrb[28].mxu1 %v6473_v1  ;;  %v6568_v0 = vld [vmem:[%s7329_s25 + $0x2e0] ss:$16 sps:$4 sm:$0xff]   ;;  %v6569_v1 = vld [vmem:[%s7329_s25 + $0x2e8] ss:$16 sps:$4 sm:$0xff]  }
 0x107   : > { %1946 = vmatprep.mubr.bf16.mxu0 %v6474_v2  ;;  %2235 = vmatprep.mubr.bf16.mxu1 %v6476_v3  ;;  %v6570_v2 = vld [vmem:[%s7329_s25 + $0x304] ss:$16 sps:$4 sm:$0xff]   ;;  %v6572_v3 = vld [vmem:[%s7329_s25 + $0x30c] ss:$16 sps:$4 sm:$0xff]  }
 0x10e   : > { %1947 = vmatmul.mubr.bf16.gmra.mrb[32].mxu0 %v6478_v4  ;;  %2236 = vmatmul.mubr.bf16.gmra.mrb[32].mxu1 %v6479_v5  ;;  %v6574_v4 = vld [vmem:[%s7329_s25 + $0x300] ss:$16 sps:$4 sm:$0xff]   ;;  %v6575_v5 = vld [vmem:[%s7329_s25 + $0x308] ss:$16 sps:$4 sm:$0xff]  }
 0x10f   : > { %1954 = vmatprep.mubr.bf16.mxu0 %v6480_v6  ;;  %2243 = vmatprep.mubr.bf16.mxu1 %v6482_v7  ;;  %v6576_v6 = vld [vmem:[%s7329_s25 + $0x324] ss:$16 sps:$4 sm:$0xff]   ;;  %v6578_v7 = vld [vmem:[%s7329_s25 + $0x32c] ss:$16 sps:$4 sm:$0xff]  }
 0x116   : > { %1955 = vmatmul.mubr.bf16.gmra.mrb[36].mxu0 %v6484_v8  ;;  %2244 = vmatmul.mubr.bf16.gmra.mrb[36].mxu1 %v6485_v9  ;;  %v6580_v8 = vld [vmem:[%s7329_s25 + $0x320] ss:$16 sps:$4 sm:$0xff]   ;;  %v6581_v9 = vld [vmem:[%s7329_s25 + $0x328] ss:$16 sps:$4 sm:$0xff]  }
 0x117   : > { %1962 = vmatprep.mubr.bf16.mxu0 %v6486_v10  ;;  %2251 = vmatprep.mubr.bf16.mxu1 %v6488_v11  ;;  %v6582_v10 = vld [vmem:[%s7329_s25 + $0x344] ss:$16 sps:$4 sm:$0xff]   ;;  %v6584_v11 = vld [vmem:[%s7329_s25 + $0x34c] ss:$16 sps:$4 sm:$0xff]  }
 0x11e   : > { %1963 = vmatmul.mubr.bf16.gmra.mrb[40].mxu0 %v6490_v12  ;;  %2252 = vmatmul.mubr.bf16.gmra.mrb[40].mxu1 %v6491_v13  ;;  %v6586_v12 = vld [vmem:[%s7329_s25 + $0x340] ss:$16 sps:$4 sm:$0xff]   ;;  %v6587_v13 = vld [vmem:[%s7329_s25 + $0x348] ss:$16 sps:$4 sm:$0xff]  }
 0x11f   : > { %1970 = vmatprep.mubr.bf16.mxu0 %v6492_v14  ;;  %2259 = vmatprep.mubr.bf16.mxu1 %v6494_v15  ;;  %v6588_v14 = vld [vmem:[%s7329_s25 + $0x364] ss:$16 sps:$4 sm:$0xff]   ;;  %v6590_v15 = vld [vmem:[%s7329_s25 + $0x36c] ss:$16 sps:$4 sm:$0xff]  }
 0x126   : > { %1971 = vmatmul.mubr.bf16.gmra.mrb[44].mxu0 %v6496_v16  ;;  %2260 = vmatmul.mubr.bf16.gmra.mrb[44].mxu1 %v6497_v17  ;;  %v762_v17 = vld [vmem:[#allocation2] sm:$0xff] }
 0x127   : > { %1978 = vmatprep.mubr.bf16.mxu0 %v6498_v18  ;;  %2267 = vmatprep.mubr.bf16.mxu1 %v6500_v19 }
 0x12e   : > { %1979 = vmatmul.mubr.bf16.gmra.mrb[48].mxu0 %v6502_v20  ;;  %2268 = vmatmul.mubr.bf16.gmra.mrb[48].mxu1 %v6503_v21  ;;  %v6592_v20 = vld [vmem:[%s7329_s25 + $0x360] ss:$16 sps:$4 sm:$0xff]  }
 0x12f   : > { %1986 = vmatprep.mubr.bf16.mxu0 %v6504_v22  ;;  %2275 = vmatprep.mubr.bf16.mxu1 %v6506_v23 }
 0x136   : > { %1987 = vmatmul.mubr.bf16.gmra.mrb[52].mxu0 %v6508_v24  ;;  %2276 = vmatmul.mubr.bf16.gmra.mrb[52].mxu1 %v6509_v25  ;;  %v6593_v24 = vld [vmem:[%s7329_s25 + $0x368] ss:$16 sps:$4 sm:$0xff]   ;;  %v6594_v25 = vld [vmem:[%s7329_s25 + $0x384] ss:$16 sps:$4 sm:$0xff]  }
 0x137   : > { %1994 = vmatprep.mubr.bf16.mxu0 %v6510_v26  ;;  %2283 = vmatprep.mubr.bf16.mxu1 %v6512_v27  ;;  %v763_v26 = vld [vmem:[#allocation2 + $0x8] sm:$0xff] }
 0x13e   : > { %1995 = vmatmul.mubr.bf16.gmra.mrb[56].mxu0 %v6514_v28  ;;  %2284 = vmatmul.mubr.bf16.gmra.mrb[56].mxu1 %v6515_v29  ;;  %v6596_v29 = vld [vmem:[%s7329_s25 + $0x38c] ss:$16 sps:$4 sm:$0xff]  }
 0x13f   : > { %2002 = vmatprep.mubr.bf16.mxu0 %v6516_v30  ;;  %2291 = vmatprep.mubr.bf16.mxu1 %v6518_v31 }
 0x146   : > { %2003 = vmatmul.mubr.bf16.gmra.mrb[60].mxu0 %v6520_v32  ;;  %2292 = vmatmul.mubr.bf16.gmra.mrb[60].mxu1 %v6521_v33 }
 0x147   : > { %2010 = vmatprep.mubr.bf16.mxu0 %v6522_v34  ;;  %2299 = vmatprep.mubr.bf16.mxu1 %v6524_v35  ;;  %v764_v35 = vld [vmem:[#allocation2 + $0x10] sm:$0xff] }
 0x14e   : > { %2011 = vmatmul.mubr.bf16.gmra.mrb[64].mxu0 %v6526_v36  ;;  %2300 = vmatmul.mubr.bf16.gmra.mrb[64].mxu1 %v6527_v37 }
 0x14f   : > { %2018 = vmatprep.mubr.bf16.mxu0 %v6528_v38  ;;  %2307 = vmatprep.mubr.bf16.mxu1 %v6530_v39  ;;  %v6598_v38 = vld [vmem:[%s7329_s25 + $0x380] ss:$16 sps:$4 sm:$0xff]  }
 0x156   : > { %2019 = vmatmul.mubr.bf16.gmra.mrb[68].mxu0 %v6532_v40  ;;  %2308 = vmatmul.mubr.bf16.gmra.mrb[68].mxu1 %v6533_v41 }
 0x157   : > { %2026 = vmatprep.mubr.bf16.mxu0 %v6534_v42  ;;  %2315 = vmatprep.mubr.bf16.mxu1 %v6536_v43  ;;  %v6599_v42 = vld [vmem:[%s7329_s25 + $0x388] ss:$16 sps:$4 sm:$0xff]   ;;  %v6600_v43 = vld [vmem:[%s7329_s25 + $0x3a4] ss:$16 sps:$4 sm:$0xff]  }
 0x15e   : > { %2027 = vmatmul.mubr.bf16.gmra.mrb[72].mxu0 %v6538_v44  ;;  %2316 = vmatmul.mubr.bf16.gmra.mrb[72].mxu1 %v6539_v45  ;;  %v765_v44 = vld [vmem:[#allocation2 + $0x18] sm:$0xff] }
 0x15f   : > { %2034 = vmatprep.mubr.bf16.mxu0 %v6540_v46  ;;  %2323 = vmatprep.mubr.bf16.mxu1 %v6542_v47  ;;  %v6602_v47 = vld [vmem:[%s7329_s25 + $0x3ac] ss:$16 sps:$4 sm:$0xff]  }
 0x166   : > { %2035 = vmatmul.mubr.bf16.gmra.mrb[76].mxu0 %v6544_v48  ;;  %2324 = vmatmul.mubr.bf16.gmra.mrb[76].mxu1 %v6545_v49 }
 0x167   : > { %2042 = vmatprep.mubr.bf16.mxu0 %v6546_v50  ;;  %2331 = vmatprep.mubr.bf16.mxu1 %v6548_v51 }
 0x16e   : > { %2043 = vmatmul.mubr.bf16.gmra.mrb[80].mxu0 %v6550_v52  ;;  %2332 = vmatmul.mubr.bf16.gmra.mrb[80].mxu1 %v6551_v53  ;;  %v766_v53 = vld [vmem:[#allocation2 + $0x20] sm:$0xff] }
 0x16f   : > { %2050 = vmatprep.mubr.bf16.mxu0 %v6552_v54  ;;  %2339 = vmatprep.mubr.bf16.mxu1 %v6554_v55 }
 0x176   : > { %2051 = vmatmul.mubr.bf16.gmra.mrb[84].mxu0 %v6556_v56  ;;  %2340 = vmatmul.mubr.bf16.gmra.mrb[84].mxu1 %v6557_v57  ;;  %v6604_v56 = vld [vmem:[%s7329_s25 + $0x3a0] ss:$16 sps:$4 sm:$0xff]  }
 0x177   : > { %2058 = vmatprep.mubr.bf16.mxu0 %v6558_v58  ;;  %2347 = vmatprep.mubr.bf16.mxu1 %v6560_v59 }
 0x17e   : > { %2059 = vmatmul.mubr.bf16.gmra.mrb[88].mxu0 %v6562_v60  ;;  %2348 = vmatmul.mubr.bf16.gmra.mrb[88].mxu1 %v6563_v61  ;;  %v6605_v60 = vld [vmem:[%s7329_s25 + $0x3a8] ss:$16 sps:$4 sm:$0xff]   ;;  %v6606_v61 = vld [vmem:[%s7329_s25 + $0x3c4] ss:$16 sps:$4 sm:$0xff]  }
 0x17f   : > { %2066 = vmatprep.mubr.bf16.mxu0 %v6564_v62  ;;  %2355 = vmatprep.mubr.bf16.mxu1 %v6566_v63  ;;  %v767_v62 = vld [vmem:[#allocation2 + $0x28] sm:$0xff] }
 0x186   : > { %2067 = vmatmul.mubr.bf16.gmra.mrb[92].mxu0 %v6568_v0  ;;  %2356 = vmatmul.mubr.bf16.gmra.mrb[92].mxu1 %v6569_v1  ;;  %v6608_v1 = vld [vmem:[%s7329_s25 + $0x3cc] ss:$16 sps:$4 sm:$0xff]  }
 0x187   : > { %2074 = vmatprep.mubr.bf16.mxu0 %v6570_v2  ;;  %2363 = vmatprep.mubr.bf16.mxu1 %v6572_v3 }
 0x18e   : > { %2075 = vmatmul.mubr.bf16.gmra.mrb[96].mxu0 %v6574_v4  ;;  %2364 = vmatmul.mubr.bf16.gmra.mrb[96].mxu1 %v6575_v5 }
 0x18f   : > { %2082 = vmatprep.mubr.bf16.mxu0 %v6576_v6  ;;  %2371 = vmatprep.mubr.bf16.mxu1 %v6578_v7  ;;  %v768_v7 = vld [vmem:[#allocation2 + $0x30] sm:$0xff] }
 0x196   : > { %2083 = vmatmul.mubr.bf16.gmra.mrb[100].mxu0 %v6580_v8  ;;  %2372 = vmatmul.mubr.bf16.gmra.mrb[100].mxu1 %v6581_v9 }
 0x197   : > { %2090 = vmatprep.mubr.bf16.mxu0 %v6582_v10  ;;  %2379 = vmatprep.mubr.bf16.mxu1 %v6584_v11  ;;  %v6610_v10 = vld [vmem:[%s7329_s25 + $0x3c0] ss:$16 sps:$4 sm:$0xff]  }
 0x19e   : > { %2091 = vmatmul.mubr.bf16.gmra.mrb[104].mxu0 %v6586_v12  ;;  %2380 = vmatmul.mubr.bf16.gmra.mrb[104].mxu1 %v6587_v13 }
 0x19f   : > { %2098 = vmatprep.mubr.bf16.mxu0 %v6588_v14  ;;  %2387 = vmatprep.mubr.bf16.mxu1 %v6590_v15  ;;  %v6611_v14 = vld [vmem:[%s7329_s25 + $0x3c8] ss:$16 sps:$4 sm:$0xff]   ;;  %v6612_v15 = vld [vmem:[%s7329_s25 + $0x3e4] ss:$16 sps:$4 sm:$0xff]  }
 0x1a1   : > { %v1884_v16 = vpop.f32.mrb[0].mxu0  ;;  %v2173_v18 = vpop.f32.mrb[0].mxu1 }
 0x1a2   : > { %v1886_v19 = vpop.f32.mrb[1].mxu0  ;;  %v2174_v21 = vadd.f32 %v2173_v18, %v1884_v16  ;;  %v2175_v22 = vpop.f32.mrb[1].mxu1  ;;  %v769_v16 = vld [vmem:[#allocation2 + $0x38] sm:$0xff] }
 0x1a3   : > { %v1887_v23 = vpop.f32.mrb[2].mxu0  ;;  %v2176_v27 = vpop.f32.mrb[2].mxu1  ;;  %v6614_v19 = vld [vmem:[%s7329_s25 + $0x3ec] ss:$16 sps:$4 sm:$0xff]  }
 0x1a4   : > { %v1889_v28 = vpop.f32.mrb[3].mxu0  ;;  %v2428_v30 = vadd.f32 %v2174_v21, %v762_v17  ;;  %v2177_v31 = vadd.f32 %v2176_v27, %v1887_v23  ;;  %v2178_v32 = vpop.f32.mrb[3].mxu1 }
 0x1a5   : > { %v6616_v28 = vld [vmem:[%s7329_s25 + $0x3e0] ss:$16 sps:$4 sm:$0xff]   ;;  %v6617_v32 = vld [vmem:[%s7329_s25 + $0x3e8] ss:$16 sps:$4 sm:$0xff]  }
 0x1a6   : > { %2099 = vmatmul.mubr.bf16.gmra.mrb[108].mxu0 %v6592_v20  ;;  %2492 = vst [vmem:[#allocation2] sm:$0xff] %v2428_v30  ;;  %v2429_v33 = vadd.f32 %v2177_v31, %v763_v26  ;;  %2388 = vmatmul.mubr.bf16.gmra.mrb[108].mxu1 %v6593_v24 }
 0x1a7   : > { %2106 = vmatprep.mubr.bf16.mxu0 %v6594_v25  ;;  %2395 = vmatprep.mubr.bf16.mxu1 %v6596_v29  ;;  %v770_v25 = vld [vmem:[#allocation2 + $0x40] sm:$0xff] }
 0x1a8   : > { %2493 = vst [vmem:[#allocation2 + $0x8] sm:$0xff] %v2429_v33  ;;  %v771_v33 = vld [vmem:[#allocation2 + $0x48] sm:$0xff] }
 0x1a9   : > { %v1892_v34 = vpop.f32.mrb[4].mxu0  ;;  %v2181_v36 = vpop.f32.mrb[4].mxu1 }
 0x1aa   : > { %v1894_v37 = vpop.f32.mrb[5].mxu0  ;;  %v2182_v39 = vadd.f32 %v2181_v36, %v1892_v34  ;;  %v2183_v40 = vpop.f32.mrb[5].mxu1 }
 0x1ab   : > { %v1895_v41 = vpop.f32.mrb[6].mxu0  ;;  %v2184_v45 = vpop.f32.mrb[6].mxu1 }
 0x1ac   : > { %v1897_v46 = vpop.f32.mrb[7].mxu0  ;;  %v2430_v48 = vadd.f32 %v2182_v39, %v764_v35  ;;  %v2185_v49 = vadd.f32 %v2184_v45, %v1895_v41  ;;  %v2186_v50 = vpop.f32.mrb[7].mxu1  ;;  %v772_v41 = vld [vmem:[#allocation2 + $0x50] sm:$0xff] }
 0x1ae   : > { %2107 = vmatmul.mubr.bf16.gmra.mrb[112].mxu0 %v6598_v38  ;;  %2494 = vst [vmem:[#allocation2 + $0x10] sm:$0xff] %v2430_v48  ;;  %v2431_v51 = vadd.f32 %v2185_v49, %v765_v44  ;;  %2396 = vmatmul.mubr.bf16.gmra.mrb[112].mxu1 %v6599_v42 }
 0x1af   : > { %2114 = vmatprep.mubr.bf16.mxu0 %v6600_v43  ;;  %2403 = vmatprep.mubr.bf16.mxu1 %v6602_v47  ;;  %v773_v47 = vld [vmem:[#allocation2 + $0x58] sm:$0xff] }
 0x1b0   : > { %2495 = vst [vmem:[#allocation2 + $0x18] sm:$0xff] %v2431_v51 }
 0x1b1   : > { %v1900_v52 = vpop.f32.mrb[8].mxu0  ;;  %v2189_v54 = vpop.f32.mrb[8].mxu1 }
 0x1b2   : > { %v1902_v55 = vpop.f32.mrb[9].mxu0  ;;  %v2190_v57 = vadd.f32 %v2189_v54, %v1900_v52  ;;  %v2191_v58 = vpop.f32.mrb[9].mxu1 }
 0x1b3   : > { %v1903_v59 = vpop.f32.mrb[10].mxu0  ;;  %v2192_v63 = vpop.f32.mrb[10].mxu1  ;;  %v774_v55 = vld [vmem:[#allocation2 + $0x60] sm:$0xff] }
 0x1b4   : > { %v1905_v0 = vpop.f32.mrb[11].mxu0  ;;  %v2432_v2 = vadd.f32 %v2190_v57, %v766_v53  ;;  %v2193_v3 = vadd.f32 %v2192_v63, %v1903_v59  ;;  %v2194_v4 = vpop.f32.mrb[11].mxu1 }
 0x1b6   : > { %2115 = vmatmul.mubr.bf16.gmra.mrb[116].mxu0 %v6604_v56  ;;  %2496 = vst [vmem:[#allocation2 + $0x20] sm:$0xff] %v2432_v2  ;;  %v2433_v5 = vadd.f32 %v2193_v3, %v767_v62  ;;  %2404 = vmatmul.mubr.bf16.gmra.mrb[116].mxu1 %v6605_v60 }
 0x1b7   : > { %2122 = vmatprep.mubr.bf16.mxu0 %v6606_v61  ;;  %2411 = vmatprep.mubr.bf16.mxu1 %v6608_v1  ;;  %v775_v61 = vld [vmem:[#allocation2 + $0x68] sm:$0xff] }
 0x1b8   : > { %2497 = vst [vmem:[#allocation2 + $0x28] sm:$0xff] %v2433_v5  ;;  %v776_v5 = vld [vmem:[#allocation2 + $0x70] sm:$0xff] }
 0x1b9   : > { %v1908_v6 = vpop.f32.mrb[12].mxu0  ;;  %v2197_v8 = vpop.f32.mrb[12].mxu1 }
 0x1ba   : > { %v1910_v9 = vpop.f32.mrb[13].mxu0  ;;  %v2198_v11 = vadd.f32 %v2197_v8, %v1908_v6  ;;  %v2199_v12 = vpop.f32.mrb[13].mxu1 }
 0x1bb   : > { %v1911_v13 = vpop.f32.mrb[14].mxu0  ;;  %v2200_v17 = vpop.f32.mrb[14].mxu1 }
 0x1bc   : > { %v1913_v18 = vpop.f32.mrb[15].mxu0  ;;  %v2434_v20 = vadd.f32 %v2198_v11, %v768_v7  ;;  %v2201_v21 = vadd.f32 %v2200_v17, %v1911_v13  ;;  %v2202_v22 = vpop.f32.mrb[15].mxu1  ;;  %v777_v11 = vld [vmem:[#allocation2 + $0x78] sm:$0xff] }
 0x1be   : > { %2123 = vmatmul.mubr.bf16.gmra.mrb[120].mxu0 %v6610_v10  ;;  %2498 = vst [vmem:[#allocation2 + $0x30] sm:$0xff] %v2434_v20  ;;  %v2435_v23 = vadd.f32 %v2201_v21, %v769_v16  ;;  %2412 = vmatmul.mubr.bf16.gmra.mrb[120].mxu1 %v6611_v14 }
 0x1bf   : > { %2130 = vmatprep.mubr.bf16.mxu0 %v6612_v15  ;;  %2419 = vmatprep.mubr.bf16.mxu1 %v6614_v19  ;;  %v778_v19 = vld [vmem:[#allocation2 + $0x80] sm:$0xff] }
 0x1c0   : > { %2499 = vst [vmem:[#allocation2 + $0x38] sm:$0xff] %v2435_v23 }
 0x1c1   : > { %v1916_v24 = vpop.f32.mrb[16].mxu0  ;;  %v2205_v26 = vpop.f32.mrb[16].mxu1 }
 0x1c2   : > { %v1918_v27 = vpop.f32.mrb[17].mxu0  ;;  %v2206_v29 = vadd.f32 %v2205_v26, %v1916_v24  ;;  %v2207_v30 = vpop.f32.mrb[17].mxu1 }
 0x1c3   : > { %v1919_v31 = vpop.f32.mrb[18].mxu0  ;;  %v2208_v34 = vpop.f32.mrb[18].mxu1 }
 0x1c4   : > { %v1921_v35 = vpop.f32.mrb[19].mxu0  ;;  %v2436_v36 = vadd.f32 %v2206_v29, %v770_v25  ;;  %v2209_v37 = vadd.f32 %v2208_v34, %v1919_v31  ;;  %v2210_v38 = vpop.f32.mrb[19].mxu1  ;;  %v779_v25 = vld [vmem:[#allocation2 + $0x88] sm:$0xff] }
 0x1c6   : > { %2131 = vmatmul.mubr.bf16.gmra.mrb[124].mxu0 %v6616_v28  ;;  %2500 = vst [vmem:[#allocation2 + $0x40] sm:$0xff] %v2436_v36  ;;  %v2437_v39 = vadd.f32 %v2209_v37, %v771_v33  ;;  %2420 = vmatmul.mubr.bf16.gmra.mrb[124].mxu1 %v6617_v32  ;;  %v780_v33 = vld [vmem:[#allocation2 + $0x90] sm:$0xff] }
 0x1c8   : > { %2501 = vst [vmem:[#allocation2 + $0x48] sm:$0xff] %v2437_v39  ;;  %v781_v39 = vld [vmem:[#allocation2 + $0x98] sm:$0xff] }
 0x1c9   : > { %v1924_v40 = vpop.f32.mrb[20].mxu0  ;;  %v2213_v42 = vpop.f32.mrb[20].mxu1 }
 0x1ca   : > { %v1926_v43 = vpop.f32.mrb[21].mxu0  ;;  %v2214_v44 = vadd.f32 %v2213_v42, %v1924_v40  ;;  %v2215_v45 = vpop.f32.mrb[21].mxu1 }
 0x1cb   : > { %v1927_v46 = vpop.f32.mrb[22].mxu0  ;;  %v2216_v48 = vpop.f32.mrb[22].mxu1 }
 0x1cc   : > { %v1929_v49 = vpop.f32.mrb[23].mxu0  ;;  %v2438_v50 = vadd.f32 %v2214_v44, %v772_v41  ;;  %v2217_v51 = vadd.f32 %v2216_v48, %v1927_v46  ;;  %v2218_v52 = vpop.f32.mrb[23].mxu1 }
 0x1ce   : > { %2502 = vst [vmem:[#allocation2 + $0x50] sm:$0xff] %v2438_v50  ;;  %v2439_v53 = vadd.f32 %v2217_v51, %v773_v47  ;;  %v782_v47 = vld [vmem:[#allocation2 + $0xa0] sm:$0xff] }
 0x1d0   : > { %2503 = vst [vmem:[#allocation2 + $0x58] sm:$0xff] %v2439_v53  ;;  %v783_v53 = vld [vmem:[#allocation2 + $0xa8] sm:$0xff] }
 0x1d1   : > { %v1932_v54 = vpop.f32.mrb[24].mxu0  ;;  %v2221_v56 = vpop.f32.mrb[24].mxu1 }
 0x1d2   : > { %v1934_v57 = vpop.f32.mrb[25].mxu0  ;;  %v2222_v58 = vadd.f32 %v2221_v56, %v1932_v54  ;;  %v2223_v59 = vpop.f32.mrb[25].mxu1 }
 0x1d3   : > { %v1935_v60 = vpop.f32.mrb[26].mxu0  ;;  %v2224_v62 = vpop.f32.mrb[26].mxu1 }
 0x1d4   : > { %v1937_v63 = vpop.f32.mrb[27].mxu0  ;;  %v2440_v0 = vadd.f32 %v2222_v58, %v774_v55  ;;  %v2225_v1 = vadd.f32 %v2224_v62, %v1935_v60  ;;  %v2226_v2 = vpop.f32.mrb[27].mxu1 }
 0x1d6   : > { %2504 = vst [vmem:[#allocation2 + $0x60] sm:$0xff] %v2440_v0  ;;  %v2441_v3 = vadd.f32 %v2225_v1, %v775_v61  ;;  %v784_v61 = vld [vmem:[#allocation2 + $0xb0] sm:$0xff] }
 0x1d8   : > { %2505 = vst [vmem:[#allocation2 + $0x68] sm:$0xff] %v2441_v3  ;;  %v785_v3 = vld [vmem:[#allocation2 + $0xb8] sm:$0xff] }
 0x1d9   : > { %v1940_v4 = vpop.f32.mrb[28].mxu0  ;;  %v2229_v6 = vpop.f32.mrb[28].mxu1 }
 0x1da   : > { %v1942_v7 = vpop.f32.mrb[29].mxu0  ;;  %v2230_v8 = vadd.f32 %v2229_v6, %v1940_v4  ;;  %v2231_v9 = vpop.f32.mrb[29].mxu1 }
 0x1db   : > { %v1943_v10 = vpop.f32.mrb[30].mxu0  ;;  %v2232_v12 = vpop.f32.mrb[30].mxu1 }
 0x1dc   : > { %v1945_v13 = vpop.f32.mrb[31].mxu0  ;;  %v2442_v14 = vadd.f32 %v2230_v8, %v776_v5  ;;  %v2233_v15 = vadd.f32 %v2232_v12, %v1943_v10  ;;  %v2234_v16 = vpop.f32.mrb[31].mxu1 }
 0x1de   : > { %2506 = vst [vmem:[#allocation2 + $0x70] sm:$0xff] %v2442_v14  ;;  %v2443_v17 = vadd.f32 %v2233_v15, %v777_v11  ;;  %v786_v11 = vld [vmem:[#allocation2 + $0xc0] sm:$0xff] }
 0x1e0   : > { %2507 = vst [vmem:[#allocation2 + $0x78] sm:$0xff] %v2443_v17  ;;  %v787_v17 = vld [vmem:[#allocation2 + $0xc8] sm:$0xff] }
 0x1e1   : > { %v1948_v18 = vpop.f32.mrb[32].mxu0  ;;  %v2237_v20 = vpop.f32.mrb[32].mxu1 }
 0x1e2   : > { %v1950_v21 = vpop.f32.mrb[33].mxu0  ;;  %v2238_v22 = vadd.f32 %v2237_v20, %v1948_v18  ;;  %v2239_v23 = vpop.f32.mrb[33].mxu1 }
 0x1e3   : > { %v1951_v24 = vpop.f32.mrb[34].mxu0  ;;  %v2240_v26 = vpop.f32.mrb[34].mxu1 }
 0x1e4   : > { %v1953_v27 = vpop.f32.mrb[35].mxu0  ;;  %v2444_v28 = vadd.f32 %v2238_v22, %v778_v19  ;;  %v2241_v29 = vadd.f32 %v2240_v26, %v1951_v24  ;;  %v2242_v30 = vpop.f32.mrb[35].mxu1 }
 0x1e6   : > { %2508 = vst [vmem:[#allocation2 + $0x80] sm:$0xff] %v2444_v28  ;;  %v2445_v31 = vadd.f32 %v2241_v29, %v779_v25  ;;  %v788_v25 = vld [vmem:[#allocation2 + $0xd0] sm:$0xff] }
 0x1e8   : > { %2509 = vst [vmem:[#allocation2 + $0x88] sm:$0xff] %v2445_v31  ;;  %v789_v31 = vld [vmem:[#allocation2 + $0xd8] sm:$0xff] }
 0x1e9   : > { %v1956_v32 = vpop.f32.mrb[36].mxu0  ;;  %v2245_v34 = vpop.f32.mrb[36].mxu1 }
 0x1ea   : > { %v1958_v35 = vpop.f32.mrb[37].mxu0  ;;  %v2246_v36 = vadd.f32 %v2245_v34, %v1956_v32  ;;  %v2247_v37 = vpop.f32.mrb[37].mxu1 }
 0x1eb   : > { %v1959_v38 = vpop.f32.mrb[38].mxu0  ;;  %v2248_v40 = vpop.f32.mrb[38].mxu1 }
 0x1ec   : > { %v1961_v41 = vpop.f32.mrb[39].mxu0  ;;  %v2446_v42 = vadd.f32 %v2246_v36, %v780_v33  ;;  %v2249_v43 = vadd.f32 %v2248_v40, %v1959_v38  ;;  %v2250_v44 = vpop.f32.mrb[39].mxu1 }
 0x1ee   : > { %2510 = vst [vmem:[#allocation2 + $0x90] sm:$0xff] %v2446_v42  ;;  %v2447_v45 = vadd.f32 %v2249_v43, %v781_v39  ;;  %v790_v39 = vld [vmem:[#allocation2 + $0xe0] sm:$0xff] }
 0x1f0   : > { %2511 = vst [vmem:[#allocation2 + $0x98] sm:$0xff] %v2447_v45  ;;  %v791_v45 = vld [vmem:[#allocation2 + $0xe8] sm:$0xff] }
 0x1f1   : > { %v1964_v46 = vpop.f32.mrb[40].mxu0  ;;  %v2253_v48 = vpop.f32.mrb[40].mxu1 }
 0x1f2   : > { %v1966_v49 = vpop.f32.mrb[41].mxu0  ;;  %v2254_v50 = vadd.f32 %v2253_v48, %v1964_v46  ;;  %v2255_v51 = vpop.f32.mrb[41].mxu1 }
 0x1f3   : > { %v1967_v52 = vpop.f32.mrb[42].mxu0  ;;  %v2256_v54 = vpop.f32.mrb[42].mxu1 }
 0x1f4   : > { %v1969_v55 = vpop.f32.mrb[43].mxu0  ;;  %v2448_v56 = vadd.f32 %v2254_v50, %v782_v47  ;;  %v2257_v57 = vadd.f32 %v2256_v54, %v1967_v52  ;;  %v2258_v58 = vpop.f32.mrb[43].mxu1 }
 0x1f6   : > { %2512 = vst [vmem:[#allocation2 + $0xa0] sm:$0xff] %v2448_v56  ;;  %v2449_v59 = vadd.f32 %v2257_v57, %v783_v53  ;;  %v792_v53 = vld [vmem:[#allocation2 + $0xf0] sm:$0xff] }
 0x1f8   : > { %2513 = vst [vmem:[#allocation2 + $0xa8] sm:$0xff] %v2449_v59  ;;  %v793_v59 = vld [vmem:[#allocation2 + $0xf8] sm:$0xff] }
 0x1f9   : > { %v1972_v60 = vpop.f32.mrb[44].mxu0  ;;  %v2261_v62 = vpop.f32.mrb[44].mxu1 }
 0x1fa   : > { %v1974_v63 = vpop.f32.mrb[45].mxu0  ;;  %v2262_v0 = vadd.f32 %v2261_v62, %v1972_v60  ;;  %v2263_v1 = vpop.f32.mrb[45].mxu1 }
 0x1fb   : > { %v1975_v2 = vpop.f32.mrb[46].mxu0  ;;  %v2264_v4 = vpop.f32.mrb[46].mxu1 }
 0x1fc   : > { %v1977_v5 = vpop.f32.mrb[47].mxu0  ;;  %v2450_v6 = vadd.f32 %v2262_v0, %v784_v61  ;;  %v2265_v7 = vadd.f32 %v2264_v4, %v1975_v2  ;;  %v2266_v8 = vpop.f32.mrb[47].mxu1 }
 0x1fe   : > { %2514 = vst [vmem:[#allocation2 + $0xb0] sm:$0xff] %v2450_v6  ;;  %v2451_v9 = vadd.f32 %v2265_v7, %v785_v3  ;;  %v794_v3 = vld [vmem:[#allocation2 + $0x100] sm:$0xff] }
 0x200   : > { %2515 = vst [vmem:[#allocation2 + $0xb8] sm:$0xff] %v2451_v9  ;;  %v795_v9 = vld [vmem:[#allocation2 + $0x108] sm:$0xff] }
 0x201   : > { %v1980_v10 = vpop.f32.mrb[48].mxu0  ;;  %v2269_v12 = vpop.f32.mrb[48].mxu1 }
 0x202   : > { %v1982_v13 = vpop.f32.mrb[49].mxu0  ;;  %v2270_v14 = vadd.f32 %v2269_v12, %v1980_v10  ;;  %v2271_v15 = vpop.f32.mrb[49].mxu1 }
 0x203   : > { %v1983_v16 = vpop.f32.mrb[50].mxu0  ;;  %v2272_v18 = vpop.f32.mrb[50].mxu1 }
 0x204   : > { %v1985_v19 = vpop.f32.mrb[51].mxu0  ;;  %v2452_v20 = vadd.f32 %v2270_v14, %v786_v11  ;;  %v2273_v21 = vadd.f32 %v2272_v18, %v1983_v16  ;;  %v2274_v22 = vpop.f32.mrb[51].mxu1 }
 0x206   : > { %2516 = vst [vmem:[#allocation2 + $0xc0] sm:$0xff] %v2452_v20  ;;  %v2453_v23 = vadd.f32 %v2273_v21, %v787_v17  ;;  %v796_v17 = vld [vmem:[#allocation2 + $0x110] sm:$0xff] }
 0x208   : > { %2517 = vst [vmem:[#allocation2 + $0xc8] sm:$0xff] %v2453_v23  ;;  %v797_v23 = vld [vmem:[#allocation2 + $0x118] sm:$0xff] }
 0x209   : > { %v1988_v24 = vpop.f32.mrb[52].mxu0  ;;  %v2277_v26 = vpop.f32.mrb[52].mxu1 }
 0x20a   : > { %v1990_v27 = vpop.f32.mrb[53].mxu0  ;;  %v2278_v28 = vadd.f32 %v2277_v26, %v1988_v24  ;;  %v2279_v29 = vpop.f32.mrb[53].mxu1 }
 0x20b   : > { %v1991_v30 = vpop.f32.mrb[54].mxu0  ;;  %v2280_v32 = vpop.f32.mrb[54].mxu1 }
 0x20c   : > { %v1993_v33 = vpop.f32.mrb[55].mxu0  ;;  %v2454_v34 = vadd.f32 %v2278_v28, %v788_v25  ;;  %v2281_v35 = vadd.f32 %v2280_v32, %v1991_v30  ;;  %v2282_v36 = vpop.f32.mrb[55].mxu1 }
 0x20e   : > { %2518 = vst [vmem:[#allocation2 + $0xd0] sm:$0xff] %v2454_v34  ;;  %v2455_v37 = vadd.f32 %v2281_v35, %v789_v31  ;;  %v798_v31 = vld [vmem:[#allocation2 + $0x120] sm:$0xff] }
 0x210   : > { %2519 = vst [vmem:[#allocation2 + $0xd8] sm:$0xff] %v2455_v37  ;;  %v799_v37 = vld [vmem:[#allocation2 + $0x128] sm:$0xff] }
 0x211   : > { %v1996_v38 = vpop.f32.mrb[56].mxu0  ;;  %v2285_v40 = vpop.f32.mrb[56].mxu1 }
 0x212   : > { %v1998_v41 = vpop.f32.mrb[57].mxu0  ;;  %v2286_v42 = vadd.f32 %v2285_v40, %v1996_v38  ;;  %v2287_v43 = vpop.f32.mrb[57].mxu1 }
 0x213   : > { %v1999_v44 = vpop.f32.mrb[58].mxu0  ;;  %v2288_v46 = vpop.f32.mrb[58].mxu1 }
 0x214   : > { %v2001_v47 = vpop.f32.mrb[59].mxu0  ;;  %v2456_v48 = vadd.f32 %v2286_v42, %v790_v39  ;;  %v2289_v49 = vadd.f32 %v2288_v46, %v1999_v44  ;;  %v2290_v50 = vpop.f32.mrb[59].mxu1 }
 0x216   : > { %2520 = vst [vmem:[#allocation2 + $0xe0] sm:$0xff] %v2456_v48  ;;  %v2457_v51 = vadd.f32 %v2289_v49, %v791_v45  ;;  %v800_v45 = vld [vmem:[#allocation2 + $0x130] sm:$0xff] }
 0x218   : > { %2521 = vst [vmem:[#allocation2 + $0xe8] sm:$0xff] %v2457_v51  ;;  %v801_v51 = vld [vmem:[#allocation2 + $0x138] sm:$0xff] }
 0x219   : > { %v2004_v52 = vpop.f32.mrb[60].mxu0  ;;  %v2293_v54 = vpop.f32.mrb[60].mxu1 }
 0x21a   : > { %v2006_v55 = vpop.f32.mrb[61].mxu0  ;;  %v2294_v56 = vadd.f32 %v2293_v54, %v2004_v52  ;;  %v2295_v57 = vpop.f32.mrb[61].mxu1 }
 0x21b   : > { %v2007_v58 = vpop.f32.mrb[62].mxu0  ;;  %v2296_v60 = vpop.f32.mrb[62].mxu1 }
 0x21c   : > { %v2009_v61 = vpop.f32.mrb[63].mxu0  ;;  %v2458_v62 = vadd.f32 %v2294_v56, %v792_v53  ;;  %v2297_v63 = vadd.f32 %v2296_v60, %v2007_v58  ;;  %v2298_v0 = vpop.f32.mrb[63].mxu1 }
 0x21e   : > { %2522 = vst [vmem:[#allocation2 + $0xf0] sm:$0xff] %v2458_v62  ;;  %v2459_v1 = vadd.f32 %v2297_v63, %v793_v59  ;;  %v802_v59 = vld [vmem:[#allocation2 + $0x140] sm:$0xff] }
 0x220   : > { %2523 = vst [vmem:[#allocation2 + $0xf8] sm:$0xff] %v2459_v1  ;;  %v803_v1 = vld [vmem:[#allocation2 + $0x148] sm:$0xff] }
 0x221   : > { %v2012_v2 = vpop.f32.mrb[64].mxu0  ;;  %v2301_v4 = vpop.f32.mrb[64].mxu1 }
 0x222   : > { %v2014_v5 = vpop.f32.mrb[65].mxu0  ;;  %v2302_v6 = vadd.f32 %v2301_v4, %v2012_v2  ;;  %v2303_v7 = vpop.f32.mrb[65].mxu1 }
 0x223   : > { %v2015_v8 = vpop.f32.mrb[66].mxu0  ;;  %v2304_v10 = vpop.f32.mrb[66].mxu1 }
 0x224   : > { %v2017_v11 = vpop.f32.mrb[67].mxu0  ;;  %v2460_v12 = vadd.f32 %v2302_v6, %v794_v3  ;;  %v2305_v13 = vadd.f32 %v2304_v10, %v2015_v8  ;;  %v2306_v14 = vpop.f32.mrb[67].mxu1 }
 0x226   : > { %2524 = vst [vmem:[#allocation2 + $0x100] sm:$0xff] %v2460_v12  ;;  %v2461_v15 = vadd.f32 %v2305_v13, %v795_v9  ;;  %v804_v9 = vld [vmem:[#allocation2 + $0x150] sm:$0xff] }
 0x228   : > { %2525 = vst [vmem:[#allocation2 + $0x108] sm:$0xff] %v2461_v15  ;;  %v805_v15 = vld [vmem:[#allocation2 + $0x158] sm:$0xff] }
 0x229   : > { %v2020_v16 = vpop.f32.mrb[68].mxu0  ;;  %v2309_v18 = vpop.f32.mrb[68].mxu1 }
 0x22a   : > { %v2022_v19 = vpop.f32.mrb[69].mxu0  ;;  %v2310_v20 = vadd.f32 %v2309_v18, %v2020_v16  ;;  %v2311_v21 = vpop.f32.mrb[69].mxu1 }
 0x22b   : > { %v2023_v22 = vpop.f32.mrb[70].mxu0  ;;  %v2312_v24 = vpop.f32.mrb[70].mxu1 }
 0x22c   : > { %v2025_v25 = vpop.f32.mrb[71].mxu0  ;;  %v2462_v26 = vadd.f32 %v2310_v20, %v796_v17  ;;  %v2313_v27 = vadd.f32 %v2312_v24, %v2023_v22  ;;  %v2314_v28 = vpop.f32.mrb[71].mxu1 }
 0x22e   : > { %2526 = vst [vmem:[#allocation2 + $0x110] sm:$0xff] %v2462_v26  ;;  %v2463_v29 = vadd.f32 %v2313_v27, %v797_v23  ;;  %v806_v23 = vld [vmem:[#allocation2 + $0x160] sm:$0xff] }
 0x230   : > { %2527 = vst [vmem:[#allocation2 + $0x118] sm:$0xff] %v2463_v29  ;;  %v807_v29 = vld [vmem:[#allocation2 + $0x168] sm:$0xff] }
 0x231   : > { %v2028_v30 = vpop.f32.mrb[72].mxu0  ;;  %v2317_v32 = vpop.f32.mrb[72].mxu1 }
 0x232   : > { %v2030_v33 = vpop.f32.mrb[73].mxu0  ;;  %v2318_v34 = vadd.f32 %v2317_v32, %v2028_v30  ;;  %v2319_v35 = vpop.f32.mrb[73].mxu1 }
 0x233   : > { %v2031_v36 = vpop.f32.mrb[74].mxu0  ;;  %v2320_v38 = vpop.f32.mrb[74].mxu1 }
 0x234   : > { %v2033_v39 = vpop.f32.mrb[75].mxu0  ;;  %v2464_v40 = vadd.f32 %v2318_v34, %v798_v31  ;;  %v2321_v41 = vadd.f32 %v2320_v38, %v2031_v36  ;;  %v2322_v42 = vpop.f32.mrb[75].mxu1 }
 0x236   : > { %2528 = vst [vmem:[#allocation2 + $0x120] sm:$0xff] %v2464_v40  ;;  %v2465_v43 = vadd.f32 %v2321_v41, %v799_v37  ;;  %v808_v37 = vld [vmem:[#allocation2 + $0x170] sm:$0xff] }
 0x238   : > { %2529 = vst [vmem:[#allocation2 + $0x128] sm:$0xff] %v2465_v43  ;;  %v809_v43 = vld [vmem:[#allocation2 + $0x178] sm:$0xff] }
 0x239   : > { %v2036_v44 = vpop.f32.mrb[76].mxu0  ;;  %v2325_v46 = vpop.f32.mrb[76].mxu1 }
 0x23a   : > { %v2038_v47 = vpop.f32.mrb[77].mxu0  ;;  %v2326_v48 = vadd.f32 %v2325_v46, %v2036_v44  ;;  %v2327_v49 = vpop.f32.mrb[77].mxu1 }
 0x23b   : > { %v2039_v50 = vpop.f32.mrb[78].mxu0  ;;  %v2328_v52 = vpop.f32.mrb[78].mxu1 }
 0x23c   : > { %v2041_v53 = vpop.f32.mrb[79].mxu0  ;;  %v2466_v54 = vadd.f32 %v2326_v48, %v800_v45  ;;  %v2329_v55 = vadd.f32 %v2328_v52, %v2039_v50  ;;  %v2330_v56 = vpop.f32.mrb[79].mxu1 }
 0x23e   : > { %2530 = vst [vmem:[#allocation2 + $0x130] sm:$0xff] %v2466_v54  ;;  %v2467_v57 = vadd.f32 %v2329_v55, %v801_v51  ;;  %v810_v51 = vld [vmem:[#allocation2 + $0x180] sm:$0xff] }
 0x240   : > { %2531 = vst [vmem:[#allocation2 + $0x138] sm:$0xff] %v2467_v57  ;;  %v811_v57 = vld [vmem:[#allocation2 + $0x188] sm:$0xff] }
 0x241   : > { %v2044_v58 = vpop.f32.mrb[80].mxu0  ;;  %v2333_v60 = vpop.f32.mrb[80].mxu1 }
 0x242   : > { %v2046_v61 = vpop.f32.mrb[81].mxu0  ;;  %v2334_v62 = vadd.f32 %v2333_v60, %v2044_v58  ;;  %v2335_v63 = vpop.f32.mrb[81].mxu1 }
 0x243   : > { %v2047_v0 = vpop.f32.mrb[82].mxu0  ;;  %v2336_v2 = vpop.f32.mrb[82].mxu1 }
 0x244   : > { %v2049_v3 = vpop.f32.mrb[83].mxu0  ;;  %v2468_v4 = vadd.f32 %v2334_v62, %v802_v59  ;;  %v2337_v5 = vadd.f32 %v2336_v2, %v2047_v0  ;;  %v2338_v6 = vpop.f32.mrb[83].mxu1 }
 0x246   : > { %2532 = vst [vmem:[#allocation2 + $0x140] sm:$0xff] %v2468_v4  ;;  %v2469_v7 = vadd.f32 %v2337_v5, %v803_v1  ;;  %v812_v1 = vld [vmem:[#allocation2 + $0x190] sm:$0xff] }
 0x248   : > { %2533 = vst [vmem:[#allocation2 + $0x148] sm:$0xff] %v2469_v7  ;;  %v813_v7 = vld [vmem:[#allocation2 + $0x198] sm:$0xff] }
 0x249   : > { %v2052_v8 = vpop.f32.mrb[84].mxu0  ;;  %v2341_v10 = vpop.f32.mrb[84].mxu1 }
 0x24a   : > { %v2054_v11 = vpop.f32.mrb[85].mxu0  ;;  %v2342_v12 = vadd.f32 %v2341_v10, %v2052_v8  ;;  %v2343_v13 = vpop.f32.mrb[85].mxu1 }
 0x24b   : > { %v2055_v14 = vpop.f32.mrb[86].mxu0  ;;  %v2344_v16 = vpop.f32.mrb[86].mxu1 }
 0x24c   : > { %v2057_v17 = vpop.f32.mrb[87].mxu0  ;;  %v2470_v18 = vadd.f32 %v2342_v12, %v804_v9  ;;  %v2345_v19 = vadd.f32 %v2344_v16, %v2055_v14  ;;  %v2346_v20 = vpop.f32.mrb[87].mxu1 }
 0x24e   : > { %2534 = vst [vmem:[#allocation2 + $0x150] sm:$0xff] %v2470_v18  ;;  %v2471_v21 = vadd.f32 %v2345_v19, %v805_v15  ;;  %v814_v15 = vld [vmem:[#allocation2 + $0x1a0] sm:$0xff] }
 0x250   : > { %2535 = vst [vmem:[#allocation2 + $0x158] sm:$0xff] %v2471_v21  ;;  %v815_v21 = vld [vmem:[#allocation2 + $0x1a8] sm:$0xff] }
 0x251   : > { %v2060_v22 = vpop.f32.mrb[88].mxu0  ;;  %v2349_v24 = vpop.f32.mrb[88].mxu1 }
 0x252   : > { %v2062_v25 = vpop.f32.mrb[89].mxu0  ;;  %v2350_v26 = vadd.f32 %v2349_v24, %v2060_v22  ;;  %v2351_v27 = vpop.f32.mrb[89].mxu1 }
 0x253   : > { %v2063_v28 = vpop.f32.mrb[90].mxu0  ;;  %v2352_v30 = vpop.f32.mrb[90].mxu1 }
 0x254   : > { %v2065_v31 = vpop.f32.mrb[91].mxu0  ;;  %v2472_v32 = vadd.f32 %v2350_v26, %v806_v23  ;;  %v2353_v33 = vadd.f32 %v2352_v30, %v2063_v28  ;;  %v2354_v34 = vpop.f32.mrb[91].mxu1 }
 0x256   : > { %2536 = vst [vmem:[#allocation2 + $0x160] sm:$0xff] %v2472_v32  ;;  %v2473_v35 = vadd.f32 %v2353_v33, %v807_v29  ;;  %v816_v29 = vld [vmem:[#allocation2 + $0x1b0] sm:$0xff] }
 0x258   : > { %2537 = vst [vmem:[#allocation2 + $0x168] sm:$0xff] %v2473_v35  ;;  %v817_v35 = vld [vmem:[#allocation2 + $0x1b8] sm:$0xff] }
 0x259   : > { %v2068_v36 = vpop.f32.mrb[92].mxu0  ;;  %v2357_v38 = vpop.f32.mrb[92].mxu1 }
 0x25a   : > { %v2070_v39 = vpop.f32.mrb[93].mxu0  ;;  %v2358_v40 = vadd.f32 %v2357_v38, %v2068_v36  ;;  %v2359_v41 = vpop.f32.mrb[93].mxu1 }
 0x25b   : > { %v2071_v42 = vpop.f32.mrb[94].mxu0  ;;  %v2360_v44 = vpop.f32.mrb[94].mxu1 }
 0x25c   : > { %v2073_v45 = vpop.f32.mrb[95].mxu0  ;;  %v2474_v46 = vadd.f32 %v2358_v40, %v808_v37  ;;  %v2361_v47 = vadd.f32 %v2360_v44, %v2071_v42  ;;  %v2362_v48 = vpop.f32.mrb[95].mxu1 }
 0x25e   : > { %2538 = vst [vmem:[#allocation2 + $0x170] sm:$0xff] %v2474_v46  ;;  %v2475_v49 = vadd.f32 %v2361_v47, %v809_v43  ;;  %v818_v43 = vld [vmem:[#allocation2 + $0x1c0] sm:$0xff] }
 0x260   : > { %2539 = vst [vmem:[#allocation2 + $0x178] sm:$0xff] %v2475_v49  ;;  %v819_v49 = vld [vmem:[#allocation2 + $0x1c8] sm:$0xff] }
 0x261   : > { %v2076_v50 = vpop.f32.mrb[96].mxu0  ;;  %v2365_v52 = vpop.f32.mrb[96].mxu1 }
 0x262   : > { %v2078_v53 = vpop.f32.mrb[97].mxu0  ;;  %v2366_v54 = vadd.f32 %v2365_v52, %v2076_v50  ;;  %v2367_v55 = vpop.f32.mrb[97].mxu1 }
 0x263   : > { %v2079_v56 = vpop.f32.mrb[98].mxu0  ;;  %v2368_v58 = vpop.f32.mrb[98].mxu1 }
 0x264   : > { %v2081_v59 = vpop.f32.mrb[99].mxu0  ;;  %v2476_v60 = vadd.f32 %v2366_v54, %v810_v51  ;;  %v2369_v61 = vadd.f32 %v2368_v58, %v2079_v56  ;;  %v2370_v62 = vpop.f32.mrb[99].mxu1 }
 0x266   : > { %2540 = vst [vmem:[#allocation2 + $0x180] sm:$0xff] %v2476_v60  ;;  %v2477_v63 = vadd.f32 %v2369_v61, %v811_v57  ;;  %v820_v57 = vld [vmem:[#allocation2 + $0x1d0] sm:$0xff] }
 0x268   : > { %2541 = vst [vmem:[#allocation2 + $0x188] sm:$0xff] %v2477_v63  ;;  %v821_v63 = vld [vmem:[#allocation2 + $0x1d8] sm:$0xff] }
 0x269   : > { %v2084_v0 = vpop.f32.mrb[100].mxu0  ;;  %v2373_v2 = vpop.f32.mrb[100].mxu1 }
 0x26a   : > { %v2086_v3 = vpop.f32.mrb[101].mxu0  ;;  %v2374_v4 = vadd.f32 %v2373_v2, %v2084_v0  ;;  %v2375_v5 = vpop.f32.mrb[101].mxu1 }
 0x26b   : > { %v2087_v6 = vpop.f32.mrb[102].mxu0  ;;  %v2376_v8 = vpop.f32.mrb[102].mxu1 }
 0x26c   : > { %v2089_v9 = vpop.f32.mrb[103].mxu0  ;;  %v2478_v10 = vadd.f32 %v2374_v4, %v812_v1  ;;  %v2377_v11 = vadd.f32 %v2376_v8, %v2087_v6  ;;  %v2378_v12 = vpop.f32.mrb[103].mxu1 }
 0x26e   : > { %2542 = vst [vmem:[#allocation2 + $0x190] sm:$0xff] %v2478_v10  ;;  %v2479_v13 = vadd.f32 %v2377_v11, %v813_v7  ;;  %v822_v7 = vld [vmem:[#allocation2 + $0x1e0] sm:$0xff] }
 0x270   : > { %2543 = vst [vmem:[#allocation2 + $0x198] sm:$0xff] %v2479_v13  ;;  %v823_v13 = vld [vmem:[#allocation2 + $0x1e8] sm:$0xff] }
 0x271   : > { %v2092_v14 = vpop.f32.mrb[104].mxu0  ;;  %v2381_v16 = vpop.f32.mrb[104].mxu1 }
 0x272   : > { %v2094_v17 = vpop.f32.mrb[105].mxu0  ;;  %v2382_v18 = vadd.f32 %v2381_v16, %v2092_v14  ;;  %v2383_v19 = vpop.f32.mrb[105].mxu1 }
 0x273   : > { %v2095_v20 = vpop.f32.mrb[106].mxu0  ;;  %v2384_v22 = vpop.f32.mrb[106].mxu1 }
 0x274   : > { %v2097_v23 = vpop.f32.mrb[107].mxu0  ;;  %v2480_v24 = vadd.f32 %v2382_v18, %v814_v15  ;;  %v2385_v25 = vadd.f32 %v2384_v22, %v2095_v20  ;;  %v2386_v26 = vpop.f32.mrb[107].mxu1 }
 0x276   : > { %2544 = vst [vmem:[#allocation2 + $0x1a0] sm:$0xff] %v2480_v24  ;;  %v2481_v27 = vadd.f32 %v2385_v25, %v815_v21  ;;  %v824_v21 = vld [vmem:[#allocation2 + $0x1f0] sm:$0xff] }
 0x278   : > { %2545 = vst [vmem:[#allocation2 + $0x1a8] sm:$0xff] %v2481_v27  ;;  %v825_v27 = vld [vmem:[#allocation2 + $0x1f8] sm:$0xff] }
 0x279   : > { %v2100_v28 = vpop.f32.mrb[108].mxu0  ;;  %v2389_v30 = vpop.f32.mrb[108].mxu1 }
 0x27a   : > { %v2102_v31 = vpop.f32.mrb[109].mxu0  ;;  %v2390_v32 = vadd.f32 %v2389_v30, %v2100_v28  ;;  %v2391_v33 = vpop.f32.mrb[109].mxu1 }
 0x27b   : > { %v2103_v34 = vpop.f32.mrb[110].mxu0  ;;  %v2392_v36 = vpop.f32.mrb[110].mxu1 }
 0x27c   : > { %v2105_v37 = vpop.f32.mrb[111].mxu0  ;;  %v2482_v38 = vadd.f32 %v2390_v32, %v816_v29  ;;  %v2393_v39 = vadd.f32 %v2392_v36, %v2103_v34  ;;  %v2394_v40 = vpop.f32.mrb[111].mxu1 }
 0x27e   : > { %2546 = vst [vmem:[#allocation2 + $0x1b0] sm:$0xff] %v2482_v38  ;;  %v2483_v41 = vadd.f32 %v2393_v39, %v817_v35 }
 0x280   : > { %2547 = vst [vmem:[#allocation2 + $0x1b8] sm:$0xff] %v2483_v41 }
 0x281   : > { %v2108_v42 = vpop.f32.mrb[112].mxu0  ;;  %v2397_v44 = vpop.f32.mrb[112].mxu1 }
 0x282   : > { %v2110_v45 = vpop.f32.mrb[113].mxu0  ;;  %v2398_v46 = vadd.f32 %v2397_v44, %v2108_v42  ;;  %v2399_v47 = vpop.f32.mrb[113].mxu1 }
 0x283   : > { %v2111_v48 = vpop.f32.mrb[114].mxu0  ;;  %v2400_v50 = vpop.f32.mrb[114].mxu1 }
 0x284   : > { %v2113_v51 = vpop.f32.mrb[115].mxu0  ;;  %v2484_v52 = vadd.f32 %v2398_v46, %v818_v43  ;;  %v2401_v53 = vadd.f32 %v2400_v50, %v2111_v48  ;;  %v2402_v54 = vpop.f32.mrb[115].mxu1 }
 0x286   : > { %2548 = vst [vmem:[#allocation2 + $0x1c0] sm:$0xff] %v2484_v52  ;;  %v2485_v55 = vadd.f32 %v2401_v53, %v819_v49 }
 0x288   : > { %2549 = vst [vmem:[#allocation2 + $0x1c8] sm:$0xff] %v2485_v55 }
 0x289   : > { %v2116_v56 = vpop.f32.mrb[116].mxu0  ;;  %v2405_v58 = vpop.f32.mrb[116].mxu1 }
 0x28a   : > { %v2118_v59 = vpop.f32.mrb[117].mxu0  ;;  %v2406_v60 = vadd.f32 %v2405_v58, %v2116_v56  ;;  %v2407_v61 = vpop.f32.mrb[117].mxu1 }
 0x28b   : > { %v2119_v62 = vpop.f32.mrb[118].mxu0  ;;  %v2408_v0 = vpop.f32.mrb[118].mxu1 }
 0x28c   : > { %v2121_v1 = vpop.f32.mrb[119].mxu0  ;;  %v2486_v2 = vadd.f32 %v2406_v60, %v820_v57  ;;  %v2409_v3 = vadd.f32 %v2408_v0, %v2119_v62  ;;  %v2410_v4 = vpop.f32.mrb[119].mxu1 }
 0x28e   : > { %2550 = vst [vmem:[#allocation2 + $0x1d0] sm:$0xff] %v2486_v2  ;;  %v2487_v5 = vadd.f32 %v2409_v3, %v821_v63 }
 0x290   : > { %2551 = vst [vmem:[#allocation2 + $0x1d8] sm:$0xff] %v2487_v5 }
 0x291   : > { %v2124_v6 = vpop.f32.mrb[120].mxu0  ;;  %v2413_v8 = vpop.f32.mrb[120].mxu1 }
 0x292   : > { %v2126_v9 = vpop.f32.mrb[121].mxu0  ;;  %v2414_v10 = vadd.f32 %v2413_v8, %v2124_v6  ;;  %v2415_v11 = vpop.f32.mrb[121].mxu1 }
 0x293   : > { %v2127_v12 = vpop.f32.mrb[122].mxu0  ;;  %v2416_v14 = vpop.f32.mrb[122].mxu1 }
 0x294   : > { %v2129_v15 = vpop.f32.mrb[123].mxu0  ;;  %v2488_v16 = vadd.f32 %v2414_v10, %v822_v7  ;;  %v2417_v17 = vadd.f32 %v2416_v14, %v2127_v12  ;;  %v2418_v18 = vpop.f32.mrb[123].mxu1 }
 0x296   : > { %2552 = vst [vmem:[#allocation2 + $0x1e0] sm:$0xff] %v2488_v16  ;;  %v2489_v19 = vadd.f32 %v2417_v17, %v823_v13 }
 0x298   : > { %2553 = vst [vmem:[#allocation2 + $0x1e8] sm:$0xff] %v2489_v19 }
 0x299   : > { %v2132_v20 = vpop.f32.mrb[124].mxu0  ;;  %v2421_v22 = vpop.f32.mrb[124].mxu1 }
 0x29a   : > { %v2134_v23 = vpop.f32.mrb[125].mxu0  ;;  %v2422_v24 = vadd.f32 %v2421_v22, %v2132_v20  ;;  %v2423_v25 = vpop.f32.mrb[125].mxu1  ;;  %2559 = sbr.rel (%p5148_p13) target bundleno = 1342 (0x53e), region = 87 }
 0x29b   : > { %v2135_v26 = vpop.f32.mrb[126].mxu0  ;;  %v2424_v28 = vpop.f32.mrb[126].mxu1 }
 0x29c   : > { %v2137_v29 = vpop.f32.mrb[127].mxu0  ;;  %v2490_v30 = vadd.f32 %v2422_v24, %v824_v21  ;;  %v2425_v31 = vadd.f32 %v2424_v28, %v2135_v26  ;;  %v2426_v32 = vpop.f32.mrb[127].mxu1 }
 0x29e   : > { %2554 = vst [vmem:[#allocation2 + $0x1f0] sm:$0xff] %v2490_v30  ;;  %v2491_v33 = vadd.f32 %v2425_v31, %v825_v27 }
 0x2a0   : > { %2555 = vst [vmem:[#allocation2 + $0x1f8] sm:$0xff] %v2491_v33 }
 0x2a1   : > { %v2823_v34 = vld [vmem:[%s9110_s5] sm:$0xff]  ;;  %v2824_v35 = vld [vmem:[%s9110_s5 + $0x8] sm:$0xff]  ;;  %v2825_v36 = vld [vmem:[%s9110_s5 + $0x10] sm:$0xff] }
 0x2a2   : > { %v6272_v37 = vpack.c.bf16 %v2824_v35, %v2823_v34  ;;  %v2826_v38 = vld [vmem:[%s9110_s5 + $0x18] sm:$0xff]  ;;  %v2827_v40 = vld [vmem:[%s9110_s5 + $0x20] sm:$0xff]  ;;  %v2828_v41 = vld [vmem:[%s9110_s5 + $0x28] sm:$0xff] }
 0x2a3   : > { %v6276_v39 = vpack.c.bf16 %v2826_v38, %v2825_v36  ;;  %v6280_v42 = vpack.c.bf16 %v2828_v41, %v2827_v40  ;;  %v2560_v43 = vld [vmem:[#allocation2] sm:$0xff]  ;;  %v2829_v45 = vld [vmem:[%s9110_s5 + $0x30] sm:$0xff]  ;;  %v2830_v46 = vld [vmem:[%s9110_s5 + $0x38] sm:$0xff] }
 0x2a4   : > { %6273 = vmatprep.subr.bf16.mxu0 %v6272_v37  ;;  %v7610_v44 = vld [vmem:[%s9107_s2] ss:$0 sm:$0xff]  ;;  %v6284_v48 = vpack.c.bf16 %v2830_v46, %v2829_v45  ;;  %v2832_v50 = vld [vmem:[%s9110_s5 + $0x48] sm:$0xff]  ;;  %v2833_v52 = vld [vmem:[%s9110_s5 + $0x50] sm:$0xff] }
 0x2a5   : > { %6275 = vmatpush3.bf16.msra.mxu0 %v6272_v37  ;;  %v7619_v47 = vadd.f32 %v7610_v44, %v2560_v43  ;;  %v2831_v49 = vld [vmem:[%s9110_s5 + $0x40] sm:$0xff]  ;;  %v2834_v53 = vld [vmem:[%s9110_s5 + $0x58] sm:$0xff]  ;;  %v2836_v56 = vld [vmem:[%s9110_s5 + $0x68] sm:$0xff] }
 0x2a6   : > { %6277 = vmatprep.subr.bf16.mxu0 %v6276_v39  ;;  %v6288_v51 = vpack.c.bf16 %v2832_v50, %v2831_v49  ;;  %v6292_v54 = vpack.c.bf16 %v2834_v53, %v2833_v52  ;;  %v2835_v55 = vld [vmem:[%s9110_s5 + $0x60] sm:$0xff]  ;;  %v2837_v58 = vld [vmem:[%s9110_s5 + $0x70] sm:$0xff]  ;;  %v2838_v59 = vld [vmem:[%s9110_s5 + $0x78] sm:$0xff] }
 0x2a7   : > { %9197 = vst [vmem:[#allocation6_spill] sm:$0xff] %v7619_v47  ;;  %6048 = vmatprep.mubr.f32.mxu0 %v7619_v47  ;;  %v6296_v57 = vpack.c.bf16 %v2836_v56, %v2835_v55  ;;  %v6300_v60 = vpack.c.bf16 %v2838_v59, %v2837_v58  ;;  %v2561_v61 = vld [vmem:[#allocation2 + $0x8] sm:$0xff]  ;;  %v2562_v62 = vld [vmem:[#allocation2 + $0x10] sm:$0xff]  ;;  %v2563_v1 = vld [vmem:[#allocation2 + $0x18] sm:$0xff] }
 0x2a8   : > { %v7647_v63 = vadd.f32 %v7610_v44, %v2561_v61  ;;  %v7650_v0 = vadd.f32 %v7610_v44, %v2562_v62  ;;  %v2564_v2 = vld [vmem:[#allocation2 + $0x20] sm:$0xff]  ;;  %v7654_v3 = vadd.f32 %v7610_v44, %v2563_v1  ;;  %v2565_v5 = vld [vmem:[#allocation2 + $0x28] sm:$0xff]  ;;  %v2566_v6 = vld [vmem:[#allocation2 + $0x30] sm:$0xff] }
 0x2a9   : > { %6279 = vmatpush3.bf16.msra.mxu0 %v6276_v39  ;;  %v7658_v4 = vadd.f32 %v7610_v44, %v2564_v2  ;;  %v7662_v7 = vadd.f32 %v7610_v44, %v2565_v5  ;;  %v7666_v8 = vadd.f32 %v7610_v44, %v2566_v6  ;;  %v2567_v9 = vld [vmem:[#allocation2 + $0x38] sm:$0xff]  ;;  %v2568_v10 = vld [vmem:[#allocation2 + $0x40] sm:$0xff]  ;;  %v2569_v13 = vld [vmem:[#allocation2 + $0x48] sm:$0xff] }
 0x2aa   : > { %6281 = vmatprep.subr.bf16.mxu0 %v6280_v42  ;;  %9198 = vst [vmem:[#allocation7_spill] sm:$0xff] %v7647_v63  ;;  %v7670_v11 = vadd.f32 %v7610_v44, %v2567_v9  ;;  %v7674_v12 = vadd.f32 %v7610_v44, %v2568_v10  ;;  %v2570_v14 = vld [vmem:[#allocation2 + $0x50] sm:$0xff]  ;;  %v7678_v15 = vadd.f32 %v7610_v44, %v2569_v13  ;;  %v2571_v17 = vld [vmem:[#allocation2 + $0x58] sm:$0xff]  ;;  %v2572_v18 = vld [vmem:[#allocation2 + $0x60] sm:$0xff] }
 0x2ab   : > { %v7682_v16 = vadd.f32 %v7610_v44, %v2570_v14  ;;  %v7686_v19 = vadd.f32 %v7610_v44, %v2571_v17  ;;  %v7690_v20 = vadd.f32 %v7610_v44, %v2572_v18  ;;  %v2573_v21 = vld [vmem:[#allocation2 + $0x68] sm:$0xff]  ;;  %v2574_v22 = vld [vmem:[#allocation2 + $0x70] sm:$0xff]  ;;  %v2575_v25 = vld [vmem:[#allocation2 + $0x78] sm:$0xff] }
 0x2ac   : > { %v7694_v23 = vadd.f32 %v7610_v44, %v2573_v21  ;;  %v7698_v24 = vadd.f32 %v7610_v44, %v2574_v22  ;;  %v2576_v26 = vld [vmem:[#allocation2 + $0x80] sm:$0xff]  ;;  %v7702_v27 = vadd.f32 %v7610_v44, %v2575_v25  ;;  %v2577_v29 = vld [vmem:[#allocation2 + $0x88] sm:$0xff]  ;;  %v2578_v30 = vld [vmem:[#allocation2 + $0x90] sm:$0xff] }
 0x2ad   : > { %6283 = vmatpush3.bf16.msra.mxu0 %v6280_v42  ;;  %v7706_v28 = vadd.f32 %v7610_v44, %v2576_v26  ;;  %v7710_v31 = vadd.f32 %v7610_v44, %v2577_v29  ;;  %v7714_v32 = vadd.f32 %v7610_v44, %v2578_v30  ;;  %v2579_v33 = vld [vmem:[#allocation2 + $0x98] sm:$0xff]  ;;  %v2580_v34 = vld [vmem:[#allocation2 + $0xa0] sm:$0xff]  ;;  %v2581_v37 = vld [vmem:[#allocation2 + $0xa8] sm:$0xff] }
 0x2ae   : > { %6285 = vmatprep.subr.bf16.mxu0 %v6284_v48  ;;  %v7718_v35 = vadd.f32 %v7610_v44, %v2579_v33  ;;  %v7722_v36 = vadd.f32 %v7610_v44, %v2580_v34  ;;  %v2582_v38 = vld [vmem:[#allocation2 + $0xb0] sm:$0xff]  ;;  %v7726_v39 = vadd.f32 %v7610_v44, %v2581_v37  ;;  %v2583_v41 = vld [vmem:[#allocation2 + $0xb8] sm:$0xff]  ;;  %v2584_v42 = vld [vmem:[#allocation2 + $0xc0] sm:$0xff] }
 0x2af   : > { %v7730_v40 = vadd.f32 %v7610_v44, %v2582_v38  ;;  %v7734_v43 = vadd.f32 %v7610_v44, %v2583_v41  ;;  %v7738_v45 = vadd.f32 %v7610_v44, %v2584_v42  ;;  %v2585_v46 = vld [vmem:[#allocation2 + $0xc8] sm:$0xff]  ;;  %v2588_v52 = vld [vmem:[#allocation2 + $0xe0] sm:$0xff]  ;;  %v2590_v56 = vld [vmem:[#allocation2 + $0xf0] sm:$0xff] }
 0x2b0   : > { %v7742_v49 = vadd.f32 %v7610_v44, %v2585_v46  ;;  %v2589_v55 = vld [vmem:[#allocation2 + $0xe8] sm:$0xff]  ;;  %v7762_v58 = vadd.f32 %v7610_v44, %v2590_v56  ;;  %v2591_v59 = vld [vmem:[#allocation2 + $0xf8] sm:$0xff]  ;;  %v2594_v2 = vld [vmem:[#allocation2 + $0x110] sm:$0xff] }
 0x2b1   : > { %6287 = vmatpush3.bf16.msra.mxu0 %v6284_v48  ;;  %v2586_v48 = vld [vmem:[#allocation2 + $0xd0] sm:$0xff]  ;;  %v7766_v61 = vadd.f32 %v7610_v44, %v2591_v59  ;;  %v2593_v1 = vld [vmem:[#allocation2 + $0x108] sm:$0xff]  ;;  %v7778_v6 = vadd.f32 %v7610_v44, %v2594_v2  ;;  %v2595_v9 = vld [vmem:[#allocation2 + $0x118] sm:$0xff] }
 0x2b2   : > { %6289 = vmatprep.subr.bf16.mxu0 %v6288_v51  ;;  %v7746_v50 = vadd.f32 %v7610_v44, %v2586_v48  ;;  %v7774_v5 = vadd.f32 %v7610_v44, %v2593_v1  ;;  %v2596_v10 = vld [vmem:[#allocation2 + $0x120] sm:$0xff]  ;;  %v7782_v13 = vadd.f32 %v7610_v44, %v2595_v9  ;;  %v2597_v17 = vld [vmem:[#allocation2 + $0x128] sm:$0xff]  ;;  %v2598_v18 = vld [vmem:[#allocation2 + $0x130] sm:$0xff] }
 0x2b3   : > { %v7786_v14 = vadd.f32 %v7610_v44, %v2596_v10  ;;  %v7790_v21 = vadd.f32 %v7610_v44, %v2597_v17  ;;  %v7794_v22 = vadd.f32 %v7610_v44, %v2598_v18  ;;  %v2599_v25 = vld [vmem:[#allocation2 + $0x138] sm:$0xff]  ;;  %v2600_v26 = vld [vmem:[#allocation2 + $0x140] sm:$0xff]  ;;  %v2601_v33 = vld [vmem:[#allocation2 + $0x148] sm:$0xff] }
 0x2b4   : > { %v7798_v29 = vadd.f32 %v7610_v44, %v2599_v25  ;;  %v7802_v30 = vadd.f32 %v7610_v44, %v2600_v26  ;;  %v2602_v34 = vld [vmem:[#allocation2 + $0x150] sm:$0xff]  ;;  %v7806_v37 = vadd.f32 %v7610_v44, %v2601_v33  ;;  %v2603_v41 = vld [vmem:[#allocation2 + $0x158] sm:$0xff]  ;;  %v2604_v42 = vld [vmem:[#allocation2 + $0x160] sm:$0xff] }
 0x2b5   : > { %6291 = vmatpush3.bf16.msra.mxu0 %v6288_v51  ;;  %v2587_v51 = vld [vmem:[#allocation2 + $0xd8] sm:$0xff]  ;;  %v7810_v38 = vadd.f32 %v7610_v44, %v2602_v34  ;;  %v7814_v46 = vadd.f32 %v7610_v44, %v2603_v41  ;;  %v7818_v48 = vadd.f32 %v7610_v44, %v2604_v42  ;;  %v4127_v1 = vld [vmem:[%s9112_s7] sm:$0xff]  ;;  %v4128_v2 = vld [vmem:[%s9112_s7 + $0x8] sm:$0xff] }
 0x2b6   : > { %6293 = vmatprep.subr.bf16.mxu0 %v6292_v54  ;;  %v7750_v53 = vadd.f32 %v7610_v44, %v2587_v51  ;;  %v2605_v51 = vld [vmem:[#allocation2 + $0x168] sm:$0xff]  ;;  %v2607_v59 = vld [vmem:[#allocation2 + $0x178] sm:$0xff]  ;;  %v6304_v10 = vpack.c.bf16 %v4128_v2, %v4127_v1  ;;  %v2610_v25 = vld [vmem:[#allocation2 + $0x190] sm:$0xff] }
 0x2b7   : > { %v7836_v9 = vadd.f32 %v7610_v44, %v2607_v59  ;;  %v2609_v18 = vld [vmem:[#allocation2 + $0x188] sm:$0xff]  ;;  %v4129_v26 = vld [vmem:[%s9112_s7 + $0x10] sm:$0xff]  ;;  %v4130_v33 = vld [vmem:[%s9112_s7 + $0x18] sm:$0xff]  ;;  %v7854_v42 = vadd.f32 %v7610_v44, %v2610_v25 }
 0x2b8   : > { %6305 = vmatprep.subr.bf16.mxu1 %v6304_v10  ;;  %v7850_v34 = vadd.f32 %v7610_v44, %v2609_v18  ;;  %v6308_v41 = vpack.c.bf16 %v4130_v33, %v4129_v26  ;;  %v2613_v1 = vld [vmem:[#allocation2 + $0x1a8] sm:$0xff]  ;;  %v4131_v2 = vld [vmem:[%s9112_s7 + $0x20] sm:$0xff]  ;;  %v2614_v18 = vld [vmem:[#allocation2 + $0x1b0] sm:$0xff] }
 0x2b9   : > { %6295 = vmatpush3.bf16.msra.mxu0 %v6292_v54  ;;  %v7754_v54 = vadd.f32 %v7610_v44, %v2588_v52  ;;  %v2606_v52 = vld [vmem:[#allocation2 + $0x170] sm:$0xff]  ;;  %6307 = vmatpush3.bf16.msra.mxu1 %v6304_v10  ;;  %9200 = vst [vmem:[#allocation9_spill] sm:$0xff] %v7854_v42  ;;  %v4132_v10 = vld [vmem:[%s9112_s7 + $0x28] sm:$0xff]  ;;  %v7872_v26 = vadd.f32 %v7610_v44, %v2613_v1 }
 0x2ba   : > { %6297 = vmatprep.subr.bf16.mxu0 %v6296_v57  ;;  %v7826_v56 = vadd.f32 %v7610_v44, %v2606_v52  ;;  %9199 = vst [vmem:[#allocation8_spill] sm:$0xff] %v7850_v34  ;;  %v2612_v52 = vld [vmem:[#allocation2 + $0x1a0] sm:$0xff]  ;;  %6309 = vmatprep.subr.bf16.mxu1 %v6308_v41  ;;  %v6312_v25 = vpack.c.bf16 %v4132_v10, %v4131_v2 }
 0x2bb   : > { %9203 = vst [vmem:[#allocation12_spill] sm:$0xff] %v7872_v26  ;;  %v7876_v33 = vadd.f32 %v7610_v44, %v2614_v18  ;;  %v2616_v2 = vld [vmem:[#allocation2 + $0x1c0] sm:$0xff] }
 0x2bc   : > { %v7890_v18 = vadd.f32 %v7610_v44, %v2616_v2 }
 0x2bd   : > { %6299 = vmatpush3.bf16.msra.mxu0 %v6296_v57  ;;  %v7758_v57 = vadd.f32 %v7610_v44, %v2589_v55  ;;  %v7822_v55 = vadd.f32 %v7610_v44, %v2605_v51  ;;  %v2611_v51 = vld [vmem:[#allocation2 + $0x198] sm:$0xff]  ;;  %6311 = vmatpush3.bf16.msra.mxu1 %v6308_v41  ;;  %9204 = vst [vmem:[#allocation13_spill] sm:$0xff] %v7876_v33 }
 0x2be   : > { %6301 = vmatprep.subr.bf16.mxu0 %v6300_v60  ;;  %v7858_v59 = vadd.f32 %v7610_v44, %v2611_v51  ;;  %6313 = vmatprep.subr.bf16.mxu1 %v6312_v25  ;;  %v2615_v41 = vld [vmem:[#allocation2 + $0x1b8] sm:$0xff]  ;;  %v4133_v51 = vld [vmem:[%s9112_s7 + $0x30] sm:$0xff]  ;;  %9206 = vst [vmem:[#allocation15_spill] sm:$0xff] %v7890_v18 }
 0x2bf   : > { %v7886_v1 = vadd.f32 %v7610_v44, %v2615_v41 }
 0x2c0   : > { %9201 = vst [vmem:[#allocation10_spill] sm:$0xff] %v7858_v59 }
 0x2c1   : > { %6303 = vmatpush3.bf16.msra.mxu0 %v6300_v60  ;;  %v2592_v60 = vld [vmem:[#allocation2 + $0x100] sm:$0xff]  ;;  %6315 = vmatpush3.bf16.msra.mxu1 %v6312_v25  ;;  %9205 = vst [vmem:[#allocation14_spill] sm:$0xff] %v7886_v1  ;;  %v2617_v25 = vld [vmem:[#allocation2 + $0x1c8] sm:$0xff] }
 0x2c2   : > { %v7770_v62 = vadd.f32 %v7610_v44, %v2592_v60  ;;  %v2608_v60 = vld [vmem:[#allocation2 + $0x180] sm:$0xff]  ;;  %v7900_v41 = vadd.f32 %v7610_v44, %v2617_v25 }
 0x2c3   : > { %v7840_v17 = vadd.f32 %v7610_v44, %v2608_v60  ;;  %v7862_v60 = vadd.f32 %v7610_v44, %v2612_v52  ;;  %v4134_v52 = vld [vmem:[%s9112_s7 + $0x38] sm:$0xff] }
 0x2c4   : > { %6049 = vmatmul.mubr.f32.vlgmr.msra.gmra.mrb[0].mxu0 %v7647_v63  ;;  %v6316_v10 = vpack.c.bf16 %v4134_v52, %v4133_v51  ;;  %v4136_v51 = vld [vmem:[%s9112_s7 + $0x48] sm:$0xff]  ;;  %v2618_v52 = vld [vmem:[#allocation2 + $0x1d0] sm:$0xff]  ;;  %9207 = vst [vmem:[#allocation16_spill] sm:$0xff] %v7900_v41 }
 0x2c5   : > { %6051 = vmatprep.mubr.f32.mxu0 %v7650_v0  ;;  %9202 = vst [vmem:[#allocation11_spill] sm:$0xff] %v7862_v60  ;;  %v7904_v2 = vadd.f32 %v7610_v44, %v2618_v52  ;;  %v2621_v52 = vld [vmem:[#allocation2 + $0x1e8] sm:$0xff] }
 0x2c6   : > { %6317 = vmatprep.subr.bf16.mxu1 %v6316_v10 }
 0x2c7   : > { %6319 = vmatpush3.bf16.msra.mxu1 %v6316_v10  ;;  %9208 = vst [vmem:[#allocation17_spill] sm:$0xff] %v7904_v2  ;;  %v2619_v10 = vld [vmem:[#allocation2 + $0x1d8] sm:$0xff] }
 0x2c8   : > { %6052 = vmatmul.mubr.f32.gmra.mrb[2].mxu0 %v7654_v3  ;;  %v7914_v25 = vadd.f32 %v7610_v44, %v2619_v10  ;;  %v7928_v10 = vadd.f32 %v7610_v44, %v2621_v52  ;;  %v4142_v52 = vld [vmem:[%s9112_s7 + $0x78] sm:$0xff] }
 0x2c9   : > { %6054 = vmatprep.mubr.f32.mxu0 %v7658_v4 }
 0x2ca   : > { %9209 = vst [vmem:[#allocation18_spill] sm:$0xff] %v7914_v25  ;;  %9211 = vst [vmem:[#allocation20_spill] sm:$0xff] %v7928_v10 }
 0x2cc   : > { %6055 = vmatmul.mubr.f32.gmra.mrb[4].mxu0 %v7662_v7 }
 0x2cd   : > { %6057 = vmatprep.mubr.f32.mxu0 %v7666_v8 }
 0x2d0   : > { %6058 = vmatmul.mubr.f32.gmra.mrb[6].mxu0 %v7670_v11 }
 0x2d1   : > { %6060 = vmatprep.mubr.f32.mxu0 %v7674_v12 }
 0x2d4   : > { %6061 = vmatmul.mubr.f32.gmra.mrb[8].mxu0 %v7678_v15 }
 0x2d5   : > { %6063 = vmatprep.mubr.f32.mxu0 %v7682_v16 }
 0x2d8   : > { %6064 = vmatmul.mubr.f32.gmra.mrb[10].mxu0 %v7686_v19 }
 0x2d9   : > { %6066 = vmatprep.mubr.f32.mxu0 %v7690_v20 }
 0x2dc   : > { %6067 = vmatmul.mubr.f32.gmra.mrb[12].mxu0 %v7694_v23 }
 0x2dd   : > { %6069 = vmatprep.mubr.f32.mxu0 %v7698_v24 }
 0x2e0   : > { %6070 = vmatmul.mubr.f32.gmra.mrb[14].mxu0 %v7702_v27 }
 0x2e1   : > { %6072 = vmatprep.mubr.f32.mxu0 %v7706_v28 }
 0x2e4   : > { %6073 = vmatmul.mubr.f32.gmra.mrb[16].mxu0 %v7710_v31 }
 0x2e5   : > { %6075 = vmatprep.mubr.f32.mxu0 %v7714_v32 }
 0x2e8   : > { %6076 = vmatmul.mubr.f32.gmra.mrb[18].mxu0 %v7718_v35 }
 0x2e9   : > { %6078 = vmatprep.mubr.f32.mxu0 %v7722_v36 }
 0x2ec   : > { %6079 = vmatmul.mubr.f32.gmra.mrb[20].mxu0 %v7726_v39 }
 0x2ed   : > { %6081 = vmatprep.mubr.f32.mxu0 %v7730_v40 }
 0x2f0   : > { %6082 = vmatmul.mubr.f32.gmra.mrb[22].mxu0 %v7734_v43 }
 0x2f1   : > { %6084 = vmatprep.mubr.f32.mxu0 %v7738_v45 }
 0x2f4   : > { %6085 = vmatmul.mubr.f32.gmra.mrb[24].mxu0 %v7742_v49 }
 0x2f5   : > { %6087 = vmatprep.mubr.f32.mxu0 %v7746_v50 }
 0x2f8   : > { %6088 = vmatmul.mubr.f32.gmra.mrb[26].mxu0 %v7750_v53 }
 0x2f9   : > { %6090 = vmatprep.mubr.f32.mxu0 %v7754_v54 }
 0x2fc   : > { %6091 = vmatmul.mubr.f32.gmra.mrb[28].mxu0 %v7758_v57 }
 0x2fd   : > { %6093 = vmatprep.mubr.f32.mxu0 %v7762_v58 }
 0x300   : > { %6094 = vmatmul.mubr.f32.gmra.mrb[30].mxu0 %v7766_v61 }
 0x301   : > { %6096 = vmatprep.mubr.f32.mxu0 %v7770_v62 }
 0x304   : > { %6097 = vmatmul.mubr.f32.gmra.mrb[32].mxu0 %v7774_v5 }
 0x305   : > { %6099 = vmatprep.mubr.f32.mxu0 %v7778_v6 }
 0x308   : > { %6100 = vmatmul.mubr.f32.gmra.mrb[34].mxu0 %v7782_v13 }
 0x309   : > { %6102 = vmatprep.mubr.f32.mxu0 %v7786_v14 }
 0x30c   : > { %6103 = vmatmul.mubr.f32.gmra.mrb[36].mxu0 %v7790_v21 }
 0x30d   : > { %6105 = vmatprep.mubr.f32.mxu0 %v7794_v22 }
 0x310   : > { %6106 = vmatmul.mubr.f32.gmra.mrb[38].mxu0 %v7798_v29 }
 0x311   : > { %6108 = vmatprep.mubr.f32.mxu0 %v7802_v30 }
 0x314   : > { %6109 = vmatmul.mubr.f32.gmra.mrb[40].mxu0 %v7806_v37 }
 0x315   : > { %6111 = vmatprep.mubr.f32.mxu0 %v7810_v38 }
 0x318   : > { %6112 = vmatmul.mubr.f32.gmra.mrb[42].mxu0 %v7814_v46 }
 0x319   : > { %6114 = vmatprep.mubr.f32.mxu0 %v7818_v48 }
 0x31c   : > { %6115 = vmatmul.mubr.f32.gmra.mrb[44].mxu0 %v7822_v55 }
 0x31d   : > { %6117 = vmatprep.mubr.f32.mxu0 %v7826_v56 }
 0x320   : > { %6118 = vmatmul.mubr.f32.gmra.mrb[46].mxu0 %v7836_v9 }
 0x321   : > { %6120 = vmatprep.mubr.f32.mxu0 %v7840_v17 }
 0x324   : > { %6121 = vmatmul.mubr.f32.gmra.mrb[48].mxu0 %v7850_v34  ;;  %v8022_v34 = vld [vmem:[%s7317_s19 + $0x50] sm:$0xff]  }
 0x325   : > { %6123 = vmatprep.mubr.f32.mxu0 %v7854_v42 }
 0x328   : > { %6124 = vmatmul.mubr.f32.gmra.mrb[50].mxu0 %v7858_v59  ;;  %v7984_v59 = vld [vmem:[%s7317_s19 + $0x40] sm:$0xff]  }
 0x329   : > { %6126 = vmatprep.mubr.f32.mxu0 %v7862_v60  ;;  %v4135_v60 = vld [vmem:[%s9112_s7 + $0x40] sm:$0xff] }
 0x32c   : > { %6127 = vmatmul.mubr.f32.gmra.mrb[52].mxu0 %v7872_v26  ;;  %v6320_v26 = vpack.c.bf16 %v4136_v51, %v4135_v60  ;;  %v4138_v60 = vld [vmem:[%s9112_s7 + $0x58] sm:$0xff]  ;;  %v2620_v51 = vld [vmem:[#allocation2 + $0x1e0] sm:$0xff] }
 0x32d   : > { %6129 = vmatprep.mubr.f32.mxu0 %v7876_v33  ;;  %v4137_v33 = vld [vmem:[%s9112_s7 + $0x50] sm:$0xff] }
 0x32e   : > { %6321 = vmatprep.subr.bf16.mxu1 %v6320_v26 }
 0x32f   : > { %6323 = vmatpush3.bf16.msra.mxu1 %v6320_v26  ;;  %v7918_v26 = vadd.f32 %v7610_v44, %v2620_v51  ;;  %v2623_v51 = vld [vmem:[#allocation2 + $0x1f8] sm:$0xff] }
 0x330   : > { %6130 = vmatmul.mubr.f32.gmra.mrb[54].mxu0 %v7886_v1  ;;  %v6324_v1 = vpack.c.bf16 %v4138_v60, %v4137_v33  ;;  %v4140_v33 = vld [vmem:[%s9112_s7 + $0x68] sm:$0xff]  ;;  %v2622_v60 = vld [vmem:[#allocation2 + $0x1f0] sm:$0xff] }
 0x331   : > { %6132 = vmatprep.mubr.f32.mxu0 %v7890_v18  ;;  %9210 = vst [vmem:[#allocation19_spill] sm:$0xff] %v7918_v26  ;;  %v4139_v18 = vld [vmem:[%s9112_s7 + $0x60] sm:$0xff] }
 0x332   : > { %6325 = vmatprep.subr.bf16.mxu1 %v6324_v1 }
 0x333   : > { %6327 = vmatpush3.bf16.msra.mxu1 %v6324_v1  ;;  %v7932_v1 = vadd.f32 %v7610_v44, %v2622_v60  ;;  %v7942_v60 = vadd.f32 %v7610_v44, %v2623_v51  ;;  %v7958_v44 = vld [vmem:[%s7317_s19 + $0x20] sm:$0xff]   ;;  %v7961_v51 = vld [vmem:[%s7317_s19 + $0x28] sm:$0xff]  }
 0x334   : > { %6133 = vmatmul.mubr.f32.gmra.mrb[56].mxu0 %v7900_v41  ;;  %v6328_v41 = vpack.c.bf16 %v4140_v33, %v4139_v18  ;;  %v4141_v18 = vld [vmem:[%s9112_s7 + $0x70] sm:$0xff] }
 0x335   : > { %6135 = vmatprep.mubr.f32.mxu0 %v7904_v2  ;;  %9212 = vst [vmem:[#allocation21_spill] sm:$0xff] %v7932_v1  ;;  %v6332_v33 = vpack.c.bf16 %v4142_v52, %v4141_v18  ;;  %9213 = vst [vmem:[#allocation22_spill] sm:$0xff] %v7942_v60  ;;  %v7952_v52 = vld [vmem:[%s7317_s19 + $0x10] sm:$0xff]  }
 0x336   : > { %6329 = vmatprep.subr.bf16.mxu1 %v6328_v41 }
 0x337   : > { %6331 = vmatpush3.bf16.msra.mxu1 %v6328_v41  ;;  %v7947_v41 = vld [vmem:[%s7317_s19 + $0x8] sm:$0xff]  }
 0x338   : > { %6136 = vmatmul.mubr.f32.gmra.mrb[58].mxu0 %v7914_v25  ;;  %6333 = vmatprep.subr.bf16.mxu1 %v6332_v33  ;;  %9214 = vst [vmem:[#allocation23_spill] sm:$0xff] %v7947_v41  ;;  %v7969_v25 = vld [vmem:[%s7317_s19 + $0x38] sm:$0xff]   ;;  %v9218_v2 = vunpack.c.h.bf16 %v7947_v41 }
 0x339   : > { %6138 = vmatprep.mubr.f32.mxu0 %v7918_v26  ;;  %v9134_v26 = vunpack.c.l.bf16 %v7947_v41  ;;  %9217 = vst [vmem:[#allocation26_spill] sm:$0xff] %v7969_v25  ;;  %v9220_v41 = vunpack.c.l.bf16 %v7952_v52 }
 0x33a   : > { %v7979_v47 = vsub.f32 %v7654_v3, %v9218_v2  ;;  %v9221_v3 = vunpack.c.h.bf16 %v7952_v52 }
 0x33b   : > { %6335 = vmatpush3.bf16.msra.mxu1 %v6332_v33  ;;  %v7974_v18 = vsub.f32 %v7650_v0, %v9134_v26  ;;  %v8000_v42 = vsub.f32 %v7658_v4, %v9220_v41  ;;  %v9224_v26 = vunpack.c.l.bf16 %v7958_v44 }
 0x33c   : > { %6139 = vmatmul.mubr.f32.gmra.mrb[60].mxu0 %v7928_v10  ;;  %v7955_v10 = vld [vmem:[%s7317_s19 + $0x18] sm:$0xff]   ;;  %v8008_v2 = vsub.f32 %v7662_v7, %v9221_v3  ;;  %v9225_v3 = vunpack.c.h.bf16 %v7958_v44 }
 0x33d   : > { %6141 = vmatprep.mubr.f32.mxu0 %v7932_v1  ;;  %9215 = vst [vmem:[#allocation24_spill] sm:$0xff] %v7955_v10  ;;  %v7966_v1 = vld [vmem:[%s7317_s19 + $0x30] sm:$0xff]   ;;  %v9222_v63 = vunpack.c.l.bf16 %v7955_v10  ;;  %v9223_v4 = vunpack.c.h.bf16 %v7955_v10  ;;  %v8027_v7 = vsub.f32 %v7674_v12, %v9224_v26  ;;  %v8045_v10 = vld [vmem:[%s7317_s19 + $0x58] sm:$0xff]  }
 0x33e   : > { %9216 = vst [vmem:[#allocation25_spill] sm:$0xff] %v7966_v1  ;;  %9229 = vst [vmem:[#allocation29_spill] sm:$0xff] %v8045_v10  ;;  %v9230_v12 = vunpack.c.l.bf16 %v7966_v1 }
 0x33f   : > { %v8013_v33 = vsub.f32 %v7666_v8, %v9222_v63  ;;  %v8018_v41 = vsub.f32 %v7670_v11, %v9223_v4  ;;  %v8032_v63 = vsub.f32 %v7678_v15, %v9225_v3  ;;  %v9226_v8 = vunpack.c.l.bf16 %v7961_v51 }
 0x340   : > { %6142 = vmatmul.mubr.f32.gmra.mrb[62].mxu0 %v7942_v60  ;;  %v7987_v60 = vld [vmem:[%s7317_s19 + $0x48] sm:$0xff]   ;;  %v9227_v4 = vunpack.c.h.bf16 %v7961_v51  ;;  %v8050_v26 = vsub.f32 %v7690_v20, %v9230_v12  ;;  %v9231_v15 = vunpack.c.h.bf16 %v7966_v1  ;;  %v9237_v12 = vunpack.c.l.bf16 %v7984_v59 }
 0x341   : > { %9219 = vst [vmem:[#allocation27_spill] sm:$0xff] %v7987_v60  ;;  %v8037_v11 = vsub.f32 %v7682_v16, %v9226_v8  ;;  %v9232_v16 = vunpack.c.l.bf16 %v7969_v25  ;;  %v8071_v20 = vld [vmem:[%s7317_s19 + $0x68] sm:$0xff]  }
 0x342   : > { %v8042_v0 = vsub.f32 %v7686_v19, %v9227_v4  ;;  %v8055_v3 = vsub.f32 %v7694_v23, %v9231_v15  ;;  %v9233_v19 = vunpack.c.h.bf16 %v7969_v25  ;;  %9236 = vst [vmem:[#allocation32_spill] sm:$0xff] %v8071_v20  ;;  %v8076_v23 = vsub.f32 %v7706_v28, %v9237_v12  ;;  %v8093_v25 = vld [vmem:[%s7317_s19 + $0x78] sm:$0xff]  }
 0x343   : > { %v8060_v8 = vsub.f32 %v7698_v24, %v9232_v16  ;;  %v9238_v15 = vunpack.c.h.bf16 %v7984_v59  ;;  %v9240_v24 = vunpack.c.l.bf16 %v7987_v60  ;;  %9242 = vst [vmem:[#allocation35_spill] sm:$0xff] %v8093_v25 }
 0x344   : > { %9228 = vst [vmem:[#allocation28_spill] sm:$0xff] %v8042_v0  ;;  %v8065_v4 = vsub.f32 %v7702_v27, %v9233_v19  ;;  %v8068_v0 = vld [vmem:[%s7317_s19 + $0x60] sm:$0xff]   ;;  %v8090_v19 = vld [vmem:[%s7317_s19 + $0x70] sm:$0xff]  }
 0x345   : > { %9235 = vst [vmem:[#allocation31_spill] sm:$0xff] %v8068_v0  ;;  %v8081_v1 = vsub.f32 %v7710_v31, %v9238_v15  ;;  %v8086_v16 = vsub.f32 %v7714_v32, %v9240_v24  ;;  %9241 = vst [vmem:[#allocation34_spill] sm:$0xff] %v8090_v19  ;;  %v8107_v32 = vld [vmem:[%s7317_s19 + $0x88] sm:$0xff]   ;;  %v9249_v31 = vunpack.c.l.bf16 %v8045_v10  ;;  %v8142_v27 = vld [vmem:[%s7317_s19 + $0x90] sm:$0xff]  }
 0x346   : > { %9234 = vst [vmem:[#allocation30_spill] sm:$0xff] %v8065_v4  ;;  %v9243_v4 = vunpack.c.h.bf16 %v7987_v60  ;;  %9246 = vst [vmem:[#allocation38_spill] sm:$0xff] %v8107_v32 }
 0x347   : > { %9239 = vst [vmem:[#allocation33_spill] sm:$0xff] %v8081_v1  ;;  %v8104_v1 = vld [vmem:[%s7317_s19 + $0x80] sm:$0xff]   ;;  %v8133_v15 = vsub.f32 %v7730_v40, %v9249_v31  ;;  %9251 = vst [vmem:[#allocation39_spill] sm:$0xff] %v8142_v27  ;;  %v9256_v31 = vunpack.c.l.bf16 %v8071_v20 }
 0x348   : > { %v8098_v28 = vsub.f32 %v7718_v35, %v9243_v4  ;;  %9245 = vst [vmem:[#allocation37_spill] sm:$0xff] %v8104_v1  ;;  %v9248_v4 = vunpack.c.h.bf16 %v8022_v34  ;;  %v9252_v35 = vunpack.c.l.bf16 %v8068_v0 }
 0x34a   : > { %9244 = vst [vmem:[#allocation36_spill] sm:$0xff] %v8098_v28  ;;  %v9247_v28 = vunpack.c.l.bf16 %v8022_v34  ;;  %v8128_v12 = vsub.f32 %v7726_v39, %v9248_v4  ;;  %v8147_v39 = vsub.f32 %v7738_v45, %v9252_v35  ;;  %v9254_v4 = vunpack.c.h.bf16 %v8068_v0  ;;  %v8462_v0 = vld [vmem:[%s7322_s17 + $0xb8] sm:$0xff]  }
 0x34b   : > { %v9261_v45 = vunpack.c.l.bf16 %v8090_v19  ;;  %9328 = vst [vmem:[#allocation73_spill] sm:$0xff] %v8462_v0  ;;  %v8500_v0 = vld [vmem:[%s7322_s17 + $0xe0] sm:$0xff]  }
 0x34c   : > { %v8120_v24 = vsub.f32 %v7722_v36, %v9247_v28  ;;  %v9250_v36 = vunpack.c.h.bf16 %v8045_v10  ;;  %9253 = vst [vmem:[#allocation40_spill] sm:$0xff] %v8147_v39  ;;  %v8152_v40 = vsub.f32 %v7742_v49, %v9254_v4  ;;  %v8165_v10 = vld [vmem:[%s7317_s19 + $0x98] sm:$0xff]   ;;  %v9263_v49 = vunpack.c.h.bf16 %v8090_v19  ;;  %9335 = vst [vmem:[#allocation76_spill] sm:$0xff] %v8500_v0 }
 0x34d   : > { %9260 = vst [vmem:[#allocation44_spill] sm:$0xff] %v8165_v10  ;;  %v8170_v35 = vsub.f32 %v7754_v54, %v9261_v45  ;;  %v8191_v54 = vld [vmem:[%s7317_s19 + $0xa8] sm:$0xff]   ;;  %v9271_v45 = vunpack.c.l.bf16 %v8104_v1 }
 0x34e   : > { %v8138_v28 = vsub.f32 %v7734_v43, %v9250_v36  ;;  %9255 = vst [vmem:[#allocation41_spill] sm:$0xff] %v8152_v40  ;;  %v8157_v43 = vsub.f32 %v7746_v50, %v9256_v31  ;;  %v9258_v36 = vunpack.c.h.bf16 %v8071_v20  ;;  %v8175_v4 = vsub.f32 %v7758_v57, %v9263_v49  ;;  %v8188_v20 = vld [vmem:[%s7317_s19 + $0xa0] sm:$0xff]   ;;  %9270 = vst [vmem:[#allocation50_spill] sm:$0xff] %v8191_v54  ;;  %v8478_v40 = vld [vmem:[%s7322_s17 + $0xc8] sm:$0xff]  }
 0x34f   : > { %9262 = vst [vmem:[#allocation45_spill] sm:$0xff] %v8170_v35  ;;  %v9265_v50 = vunpack.c.l.bf16 %v8093_v25  ;;  %9269 = vst [vmem:[#allocation49_spill] sm:$0xff] %v8188_v20  ;;  %v8196_v57 = vsub.f32 %v7770_v62, %v9271_v45  ;;  %v9273_v49 = vunpack.c.h.bf16 %v8104_v1  ;;  %v8407_v1 = vld [vmem:[%s7322_s17 + $0x70] sm:$0xff]   ;;  %v8436_v35 = vld [vmem:[%s7322_s17 + $0x98] sm:$0xff]  }
 0x350   : > { %9257 = vst [vmem:[#allocation42_spill] sm:$0xff] %v8157_v43  ;;  %v8162_v60 = vsub.f32 %v7750_v53, %v9258_v36  ;;  %9264 = vst [vmem:[#allocation46_spill] sm:$0xff] %v8175_v4  ;;  %v9267_v53 = vunpack.c.h.bf16 %v8093_v25  ;;  %v8213_v25 = vld [vmem:[%s7317_s19 + $0xb8] sm:$0xff]  }
 0x351   : > { %v8180_v31 = vsub.f32 %v7762_v58, %v9265_v50  ;;  %9272 = vst [vmem:[#allocation51_spill] sm:$0xff] %v8196_v57  ;;  %v8201_v19 = vsub.f32 %v7774_v5, %v9273_v49  ;;  %v9275_v58 = vunpack.c.l.bf16 %v8107_v32  ;;  %9278 = vst [vmem:[#allocation55_spill] sm:$0xff] %v8213_v25  ;;  %v9287_v5 = vunpack.c.l.bf16 %v8165_v10 }
 0x352   : > { %9259 = vst [vmem:[#allocation43_spill] sm:$0xff] %v8162_v60  ;;  %v8185_v36 = vsub.f32 %v7766_v61, %v9267_v53  ;;  %v8210_v53 = vld [vmem:[%s7317_s19 + $0xb0] sm:$0xff]   ;;  %v9292_v61 = vunpack.c.l.bf16 %v8188_v20 }
 0x353   : > { %9266 = vst [vmem:[#allocation47_spill] sm:$0xff] %v8180_v31  ;;  %9274 = vst [vmem:[#allocation52_spill] sm:$0xff] %v8201_v19  ;;  %v8206_v50 = vsub.f32 %v7778_v6, %v9275_v58  ;;  %v8224_v19 = vld [vmem:[%s7317_s19 + $0xc0] sm:$0xff]   ;;  %v8227_v6 = vld [vmem:[%s7317_s19 + $0xc8] sm:$0xff]   ;;  %v8253_v49 = vsub.f32 %v7794_v22, %v9287_v5  ;;  %v9296_v5 = vunpack.c.l.bf16 %v8191_v54 }
 0x354   : > { %9268 = vst [vmem:[#allocation48_spill] sm:$0xff] %v8185_v36  ;;  %9277 = vst [vmem:[#allocation54_spill] sm:$0xff] %v8210_v53  ;;  %v9279_v36 = vunpack.c.h.bf16 %v8107_v32  ;;  %v8429_v31 = vld [vmem:[%s7322_s17 + $0x90] sm:$0xff]  }
 0x355   : > { %9276 = vst [vmem:[#allocation53_spill] sm:$0xff] %v8206_v50  ;;  %9281 = vst [vmem:[#allocation57_spill] sm:$0xff] %v8224_v19 }
 0x356   : > { %v8218_v62 = vsub.f32 %v7782_v13, %v9279_v36  ;;  %9282 = vst [vmem:[#allocation58_spill] sm:$0xff] %v8227_v6  ;;  %v9285_v36 = vunpack.c.h.bf16 %v8142_v27  ;;  %9288 = vst [vmem:[#allocation61_spill] sm:$0xff] %v8253_v49  ;;  %v8262_v13 = vld [vmem:[%s7317_s19 + $0xd0] sm:$0xff]   ;;  %v9320_v49 = vld [vmem:[#allocation7_spill] sm:$0xff] }
 0x357   : > { %9291 = vst [vmem:[#allocation63_spill] sm:$0xff] %v8262_v13 }
 0x358   : > { %9280 = vst [vmem:[#allocation56_spill] sm:$0xff] %v8218_v62  ;;  %v9283_v62 = vunpack.c.l.bf16 %v8142_v27  ;;  %v8248_v45 = vsub.f32 %v7790_v21, %v9285_v36  ;;  %v8267_v21 = vsub.f32 %v7802_v30, %v9292_v61  ;;  %v9294_v36 = vunpack.c.h.bf16 %v8188_v20  ;;  %v8412_v27 = vld [vmem:[%s7322_s17 + $0x78] sm:$0xff]  }
 0x359   : > { %v9300_v30 = vunpack.c.l.bf16 %v8210_v53  ;;  %v9302_v20 = vunpack.c.h.bf16 %v8210_v53 }
 0x35a   : > { %v8240_v58 = vsub.f32 %v7786_v14, %v9283_v62  ;;  %9286 = vst [vmem:[#allocation60_spill] sm:$0xff] %v8248_v45  ;;  %v9289_v14 = vunpack.c.h.bf16 %v8165_v10  ;;  %9293 = vst [vmem:[#allocation64_spill] sm:$0xff] %v8267_v21  ;;  %v8272_v22 = vsub.f32 %v7806_v37, %v9294_v36  ;;  %v5348_v10 = vld [vmem:[%s7322_s17] sm:$0xff]   ;;  %v8402_v21 = vld [vmem:[%s7322_s17 + $0x68] sm:$0xff]  }
 0x35b   : > { %v8288_v61 = vsub.f32 %v7818_v48, %v9300_v30  ;;  %v8293_v37 = vsub.f32 %v7822_v55, %v9302_v20  ;;  %v8307_v48 = vld [vmem:[%s7322_s17 + $0x10] sm:$0xff]   ;;  %v8310_v30 = vld [vmem:[%s7317_s19] sm:$0xff]   ;;  %v9308_v55 = vunpack.c.l.bf16 %v8224_v19 }
 0x35c   : > { %9284 = vst [vmem:[#allocation59_spill] sm:$0xff] %v8240_v58  ;;  %v8258_v62 = vsub.f32 %v7798_v29, %v9289_v14  ;;  %9295 = vst [vmem:[#allocation65_spill] sm:$0xff] %v8272_v22  ;;  %v8277_v29 = vsub.f32 %v7810_v38, %v9296_v5  ;;  %v9298_v14 = vunpack.c.h.bf16 %v8191_v54  ;;  %v9304_v38 = vunpack.c.l.bf16 %v8213_v25 }
 0x35d   : > { %9301 = vst [vmem:[#allocation68_spill] sm:$0xff] %v8288_v61  ;;  %9303 = vst [vmem:[#allocation69_spill] sm:$0xff] %v8293_v37  ;;  %v8315_v20 = vsub.f32 %v7840_v17, %v9308_v55  ;;  %v9316_v37 = vunpack.c.h.bf16 %v8227_v6  ;;  %v9317_v61 = vld [vmem:[#allocation10_spill] sm:$0xff]  ;;  %v9319_v54 = vunpack.c.h.bf16 %v8310_v30 }
 0x35e   : > { %9290 = vst [vmem:[#allocation62_spill] sm:$0xff] %v8258_v62  ;;  %9297 = vst [vmem:[#allocation66_spill] sm:$0xff] %v8277_v29  ;;  %v8282_v32 = vsub.f32 %v7814_v46, %v9298_v14  ;;  %v8298_v36 = vsub.f32 %v7826_v56, %v9304_v38  ;;  %v9306_v46 = vunpack.c.h.bf16 %v8213_v25  ;;  %v5763_v14 = vld [vmem:[%s7322_s17 + $0x8] sm:$0xff]   ;;  %v9310_v56 = vunpack.c.h.bf16 %v8224_v19  ;;  %v9311_v38 = vld [vmem:[#allocation8_spill] sm:$0xff] }
 0x35f   : > { %9309 = vst [vmem:[#allocation72_spill] sm:$0xff] %v8315_v20  ;;  %v8334_v17 = vsub.f32 %v9317_v61, %v9316_v37  ;;  %v5350_v19 = vunpack.c.h.bf16 %v5348_v10  ;;  %v8361_v20 = vld [vmem:[%s9111_s6] ss:$0 sm:$0xff]  ;;  %v8374_v62 = vld [vmem:[%s7322_s17 + $0x50] sm:$0xff]   ;;  %v8381_v45 = vsub.f32 %v9320_v49, %v9319_v54  ;;  %v8424_v49 = vld [vmem:[%s7322_s17 + $0x88] sm:$0xff]  }
 0x360   : > { %9299 = vst [vmem:[#allocation67_spill] sm:$0xff] %v8282_v32  ;;  %9305 = vst [vmem:[#allocation70_spill] sm:$0xff] %v8298_v36  ;;  %v8303_v5 = vsub.f32 %v7836_v9, %v9306_v46  ;;  %v8320_v53 = vsub.f32 %v9311_v38, %v9310_v56  ;;  %v9313_v9 = vunpack.c.l.bf16 %v8227_v6  ;;  %v9314_v46 = vld [vmem:[#allocation9_spill] sm:$0xff]  ;;  %v5349_v56 = vunpack.c.l.bf16 %v5348_v10  ;;  %v8338_v38 = vld [vmem:[%s7322_s17 + $0x20] sm:$0xff]  }
 0x361   : > { %v8329_v36 = vld [vmem:[%s7322_s17 + $0x18] sm:$0xff]   ;;  %9318 = vst [vmem:[#allocation10_spill] sm:$0xff] %v8334_v17  ;;  %v8355_v17 = vld [vmem:[%s7322_s17 + $0x40] sm:$0xff]   ;;  %v8368_v10 = vld [vmem:[%s7322_s17 + $0x48] sm:$0xff]  }
 0x362   : > { %9307 = vst [vmem:[#allocation71_spill] sm:$0xff] %v8303_v5  ;;  %9312 = vst [vmem:[#allocation8_spill] sm:$0xff] %v8320_v53  ;;  %v8325_v25 = vsub.f32 %v9314_v46, %v9313_v9  ;;  %v8341_v53 = vld [vmem:[%s7322_s17 + $0x28] sm:$0xff]   ;;  %v5354_v9 = vunpack.c.h.bf16 %v5763_v14  ;;  %v5353_v46 = vunpack.c.l.bf16 %v5763_v14  ;;  %v5358_v5 = vunpack.c.h.bf16 %v8307_v48  ;;  %v8348_v6 = vld [vmem:[%s7322_s17 + $0x38] sm:$0xff]  }
 0x363   : > { %v8395_v55 = vld [vmem:[%s7322_s17 + $0x60] sm:$0xff]   ;;  %v9327_v60 = vunpack.c.l.bf16 %v8329_v36 }
 0x364   : > { %9315 = vst [vmem:[#allocation9_spill] sm:$0xff] %v8325_v25  ;;  %v8345_v25 = vld [vmem:[%s7322_s17 + $0x30] sm:$0xff]  }
 0x397   : > { %v6050_v13 = vpop.f32.mrb[0].mxu0 }
 0x398   : > { %v3225_v32 = vadd.f32 %v6050_v13, %v5350_v19  ;;  %v2905_v14 = vpop.f32.mrb[1].mxu0  ;;  %v8384_v19 = vld [vmem:[%s7322_s17 + $0x58] sm:$0xff]  }
 0x399   : > { %v3224_v61 = vadd.f32 %v5349_v56, %v2905_v14  ;;  %v9321_v56 = vunpack.c.l.bf16 %v8310_v30  ;;  %v9322_v14 = vld [vmem:[#allocation6_spill] sm:$0xff] }
 0x39a   : > { %v3296_v13 = vadd.f32 %v8361_v20, %v3225_v32  ;;  %v8448_v32 = vld [vmem:[%s7322_s17 + $0xa8] sm:$0xff]  }
 0x39b   : > { %v8392_v37 = vsub.f32 %v9322_v14, %v9321_v56  ;;  %v3295_v29 = vadd.f32 %v8361_v20, %v3224_v61  ;;  %v6053_v54 = vpop.f32.mrb[2].mxu0  ;;  %v8418_v14 = vld [vmem:[%s7322_s17 + $0x80] sm:$0xff]   ;;  %9324 = vst [vmem:[#allocation7_spill] sm:$0xff] %v8448_v32  ;;  %v9331_v32 = vunpack.c.l.bf16 %v8338_v38 }
 0x39c   : > { %v5152_v22 = vmul.f32 -1.442695, %v3296_v13  ;;  %v3227_v58 = vadd.f32 %v6053_v54, %v5354_v9  ;;  %v2915_v50 = vpop.f32.mrb[3].mxu0  ;;  %v8442_v54 = vld [vmem:[%s7322_s17 + $0xa0] sm:$0xff]   ;;  %v8455_v13 = vld [vmem:[%s7322_s17 + $0xb0] sm:$0xff]  }
 0x39d   : > { %v5151_v61 = vmul.f32 -1.442695, %v3295_v29  ;;  %v3226_v57 = vadd.f32 %v5353_v46, %v2915_v50  ;;  %9326 = vst [vmem:[#allocation6_spill] sm:$0xff] %v8455_v13  ;;  %v8484_v13 = vld [vmem:[%s7322_s17 + $0xd0] sm:$0xff]  }
 0x39e   : > { %6618 = vpow2.f32 %v5152_v22  ;;  %v3298_v9 = vadd.f32 %v8361_v20, %v3227_v58  ;;  %9332 = vst [vmem:[#allocation75_spill] sm:$0xff] %v8484_v13  ;;  %v8516_v13 = vld [vmem:[%s7322_s17 + $0xf0] sm:$0xff]  }
 0x39f   : > { %6620 = vpow2.f32 %v5151_v61  ;;  %v3297_v50 = vadd.f32 %v8361_v20, %v3226_v57  ;;  %v6056_v29 = vpop.f32.mrb[4].mxu0  ;;  %v9323_v57 = vunpack.c.l.bf16 %v8307_v48  ;;  %9339 = vst [vmem:[#allocation78_spill] sm:$0xff] %v8516_v13 }
 0x3a0   : > { %v5154_v22 = vmul.f32 -1.442695, %v3298_v9  ;;  %v3229_v58 = vadd.f32 %v6056_v29, %v5358_v5  ;;  %v2925_v56 = vpop.f32.mrb[5].mxu0 }
 0x3a1   : > { %v5153_v61 = vmul.f32 -1.442695, %v3297_v50  ;;  %v3228_v4 = vadd.f32 %v9323_v57, %v2925_v56  ;;  %v9330_v57 = vunpack.c.h.bf16 %v8338_v38  ;;  %v9338_v38 = vunpack.c.l.bf16 %v8345_v25 }
 0x3a2   : > { %6622 = vpow2.f32 %v5154_v22  ;;  %v3300_v5 = vadd.f32 %v8361_v20, %v3229_v58  ;;  %v9325_v58 = vunpack.c.h.bf16 %v8329_v36 }
 0x3a3   : > { %6624 = vpow2.f32 %v5153_v61  ;;  %v3299_v48 = vadd.f32 %v8361_v20, %v3228_v4  ;;  %v6059_v56 = vpop.f32.mrb[6].mxu0  ;;  %v8468_v61 = vld [vmem:[%s7322_s17 + $0xc0] sm:$0xff]  }
 0x3a4   : > { %v5156_v22 = vmul.f32 -1.442695, %v3300_v5  ;;  %v3231_v9 = vadd.f32 %v6059_v56, %v9325_v58  ;;  %v2935_v46 = vpop.f32.mrb[7].mxu0  ;;  %9329 = vst [vmem:[#allocation74_spill] sm:$0xff] %v8468_v61  ;;  %v8495_v56 = vld [vmem:[%s7322_s17 + $0xd8] sm:$0xff]   ;;  %v9334_v61 = vunpack.c.l.bf16 %v8341_v53 }
 0x3a5   : > { %v5155_v4 = vmul.f32 -1.442695, %v3299_v48  ;;  %v3230_v50 = vadd.f32 %v9327_v60, %v2935_v46  ;;  %v9333_v48 = vunpack.c.h.bf16 %v8341_v53 }
 0x3a6   : > { %6626 = vpow2.f32 %v5156_v22  ;;  %v3302_v5 = vadd.f32 %v8361_v20, %v3231_v9 }
 0x3a7   : > { %6628 = vpow2.f32 %v5155_v4  ;;  %v3301_v36 = vadd.f32 %v8361_v20, %v3230_v50  ;;  %v6062_v60 = vpop.f32.mrb[8].mxu0 }
 0x3a8   : > { %v6619_v43 = vpop.eup %6618  ;;  %v5158_v22 = vmul.f32 -1.442695, %v3302_v5  ;;  %v3233_v9 = vadd.f32 %v6062_v60, %v9330_v57  ;;  %v2945_v29 = vpop.f32.mrb[9].mxu0 }
 0x3a9   : > { %v6621_v4 = vpop.eup %6620  ;;  %v3552_v50 = vadd.f32 1.0, %v6619_v43  ;;  %v5157_v39 = vmul.f32 -1.442695, %v3301_v36  ;;  %v3232_v46 = vadd.f32 %v9331_v32, %v2945_v29 }
 0x3aa   : > { %v3551_v5 = vadd.f32 1.0, %v6621_v4  ;;  %6630 = vpow2.f32 %v5158_v22  ;;  %v3304_v57 = vadd.f32 %v8361_v20, %v3233_v9 }
 0x3ab   : > { %6632 = vrcp.f32 %v3552_v50  ;;  %v3303_v58 = vadd.f32 %v8361_v20, %v3232_v46  ;;  %v6065_v43 = vpop.f32.mrb[10].mxu0 }
 0x3ac   : > { %v6623_v32 = vpop.eup %6622  ;;  %6634 = vrcp.f32 %v3551_v5  ;;  %v5160_v29 = vmul.f32 -1.442695, %v3304_v57  ;;  %v3235_v4 = vadd.f32 %v6065_v43, %v9333_v48  ;;  %v2955_v22 = vpop.f32.mrb[11].mxu0 }
 0x3ad   : > { %v6625_v50 = vpop.eup %6624  ;;  %v3554_v60 = vadd.f32 1.0, %v6623_v32  ;;  %6636 = vpow2.f32 %v5157_v39  ;;  %v5159_v46 = vmul.f32 -1.442695, %v3303_v58  ;;  %v3234_v36 = vadd.f32 %v9334_v61, %v2955_v22 }
 0x3ae   : > { %v3553_v5 = vadd.f32 1.0, %v6625_v50  ;;  %6638 = vpow2.f32 %v5160_v29  ;;  %v3306_v57 = vadd.f32 %v8361_v20, %v3235_v4  ;;  %v9336_v32 = vunpack.c.h.bf16 %v8345_v25  ;;  %v8511_v50 = vld [vmem:[%s7322_s17 + $0xe8] sm:$0xff]  }
 0x3af   : > { %6640 = vrcp.f32 %v3554_v60  ;;  %v3305_v43 = vadd.f32 %v8361_v20, %v3234_v36  ;;  %v6068_v9 = vpop.f32.mrb[12].mxu0  ;;  %9337 = vst [vmem:[#allocation77_spill] sm:$0xff] %v8511_v50  ;;  %v9341_v58 = vunpack.c.l.bf16 %v8348_v6 }
 0x3b0   : > { %v6627_v53 = vpop.eup %6626  ;;  %6642 = vrcp.f32 %v3553_v5  ;;  %v5162_v61 = vmul.f32 -1.442695, %v3306_v57  ;;  %v3237_v22 = vadd.f32 %v6068_v9, %v9336_v32  ;;  %v2965_v29 = vpop.f32.mrb[13].mxu0 }
 0x3b1   : > { %v6629_v60 = vpop.eup %6628  ;;  %v3556_v48 = vadd.f32 1.0, %v6627_v53  ;;  %6644 = vpow2.f32 %v5159_v46  ;;  %v5161_v36 = vmul.f32 -1.442695, %v3305_v43  ;;  %v3236_v39 = vadd.f32 %v9338_v38, %v2965_v29 }
 0x3b2   : > { %v3555_v5 = vadd.f32 1.0, %v6629_v60  ;;  %6646 = vpow2.f32 %v5162_v61  ;;  %v3308_v57 = vadd.f32 %v8361_v20, %v3237_v22  ;;  %v9340_v38 = vunpack.c.h.bf16 %v8348_v6  ;;  %v8527_v22 = vld [vmem:[%s7322_s17 + $0xf8] sm:$0xff]  }
 0x3b3   : > { %6648 = vrcp.f32 %v3556_v48  ;;  %v3307_v32 = vadd.f32 %v8361_v20, %v3236_v39  ;;  %v6071_v4 = vpop.f32.mrb[14].mxu0 }
 0x3b4   : > { %v6631_v43 = vpop.eup %6630  ;;  %6650 = vrcp.f32 %v3555_v5  ;;  %v5164_v25 = vmul.f32 -1.442695, %v3308_v57  ;;  %v3239_v29 = vadd.f32 %v6071_v4, %v9340_v38  ;;  %v2975_v60 = vpop.f32.mrb[15].mxu0 }
 0x3b5   : > { %v6633_v9 = vpop.eup %6632  ;;  %v3558_v48 = vadd.f32 1.0, %v6631_v43  ;;  %6652 = vpow2.f32 %v5161_v36  ;;  %v5163_v39 = vmul.f32 -1.442695, %v3307_v32  ;;  %v3238_v53 = vadd.f32 %v9341_v58, %v2975_v60 }
 0x3b6   : > { %v6635_v0 = vpop.eup %6634  ;;  %6654 = vpow2.f32 %v5164_v25  ;;  %v3310_v5 = vadd.f32 %v8361_v20, %v3239_v29  ;;  %v3936_v57 = vmul.f32 %v6633_v9, %v8381_v45  ;;  %v5474_v36 = vunpack.c.h.bf16 %v8527_v22 }
 0x3b7   : > { %v6637_v38 = vpop.eup %6636  ;;  %6656 = vrcp.f32 %v3558_v48  ;;  %v3309_v61 = vadd.f32 %v8361_v20, %v3238_v53  ;;  %v6074_v46 = vpop.f32.mrb[16].mxu0  ;;  %v3935_v43 = vmul.f32 %v6635_v0, %v8392_v37  ;;  %v9342_v25 = vunpack.c.h.bf16 %v8355_v17 }
 0x3b8   : > { %v6639_v32 = vpop.eup %6638  ;;  %v3557_v6 = vadd.f32 1.0, %v6637_v38  ;;  %6658 = vpow2.f32 %v5163_v39  ;;  %v5166_v58 = vmul.f32 -1.442695, %v3310_v5  ;;  %v2985_v60 = vpop.f32.mrb[17].mxu0  ;;  %v9343_v48 = vunpack.c.l.bf16 %v8355_v17 }
 0x3b9   : > { %v3241_v29 = vadd.f32 %v6074_v46, %v9342_v25  ;;  %v6641_v45 = vpop.eup %6640  ;;  %v3560_v9 = vadd.f32 1.0, %v6639_v32  ;;  %v5165_v4 = vmul.f32 -1.442695, %v3309_v61  ;;  %v9344_v53 = vunpack.c.l.bf16 %v8310_v30 }
 0x3ba   : > { %v3240_v13 = vadd.f32 %v9343_v48, %v2985_v60  ;;  %v6643_v0 = vpop.eup %6642  ;;  %6660 = vrcp.f32 %v3557_v6  ;;  %v9345_v39 = vunpack.c.h.bf16 %v8310_v30  ;;  %v3938_v38 = vmul.f32 %v6641_v45, %v7979_v47 }
 0x3bb   : > { %v3999_v50 = vadd.f32 %v9344_v53, %v3935_v43  ;;  %v3312_v37 = vadd.f32 %v8361_v20, %v3241_v29  ;;  %v6645_v46 = vpop.eup %6644  ;;  %6662 = vrcp.f32 %v3560_v9  ;;  %v6077_v61 = vpop.f32.mrb[18].mxu0  ;;  %v3937_v17 = vmul.f32 %v6643_v0, %v7974_v18  ;;  %v9348_v0 = vld [vmem:[#allocation23_spill] sm:$0xff] }
 0x3bc   : > { %v4000_v5 = vadd.f32 %v9345_v39, %v3936_v57  ;;  %v3311_v32 = vadd.f32 %v8361_v20, %v3240_v13  ;;  %v6647_v60 = vpop.eup %6646  ;;  %v3559_v48 = vadd.f32 1.0, %v6645_v46  ;;  %6664 = vpow2.f32 %v5166_v58  ;;  %v2995_v53 = vpop.f32.mrb[19].mxu0 }
 0x3bd   : > { %v4063_v25 = vmax.f32 %v3999_v50, 0.0  ;;  %v5168_v43 = vmul.f32 -1.442695, %v3312_v37  ;;  %v9346_v6 = vunpack.c.h.bf16 %v8368_v10  ;;  %v6649_v30 = vpop.eup %6648  ;;  %v3562_v57 = vadd.f32 1.0, %v6647_v60 }
 0x3be   : > { %6666 = vpow2.f32 %v5165_v4  ;;  %v5167_v47 = vmul.f32 -1.442695, %v3311_v32  ;;  %v9347_v45 = vunpack.c.l.bf16 %v8368_v10  ;;  %v6651_v13 = vpop.eup %6650  ;;  %v4064_v50 = vmax.f32 %v4000_v5, 0.0 }
 0x3bf   : > { %v3243_v29 = vadd.f32 %v6077_v61, %v9346_v6  ;;  %6176 = vmatprep.mubr.f32.mxu1 %v4063_v25  ;;  %6668 = vrcp.f32 %v3559_v48  ;;  %v9349_v58 = vunpack.c.l.bf16 %v9348_v0  ;;  %v6653_v39 = vpop.eup %6652  ;;  %v6080_v61 = vpop.f32.mrb[20].mxu0  ;;  %v9350_v4 = vunpack.c.h.bf16 %v9348_v0 }
 0x3c0   : > { %v3242_v9 = vadd.f32 %v9347_v45, %v2995_v53  ;;  %6670 = vrcp.f32 %v3562_v57  ;;  %v3939_v10 = vmul.f32 %v6651_v13, %v8000_v42  ;;  %v6655_v60 = vpop.eup %6654  ;;  %v3561_v25 = vadd.f32 1.0, %v6653_v39  ;;  %6177 = vmatmul.mubr.f32.vlgmr.msra.gmra.mrb[0].mxu1 %v4064_v50 }
 0x3c1   : > { %v3314_v18 = vadd.f32 %v8361_v20, %v3243_v29  ;;  %v4001_v37 = vadd.f32 %v9349_v58, %v3937_v17  ;;  %v4002_v32 = vadd.f32 %v9350_v4, %v3938_v38  ;;  %6672 = vpow2.f32 %v5168_v43  ;;  %v3005_v29 = vpop.f32.mrb[21].mxu0  ;;  %v6657_v17 = vpop.eup %6656 }
 0x3c2   : > { %v3313_v46 = vadd.f32 %v8361_v20, %v3242_v9  ;;  %v9351_v5 = vunpack.c.h.bf16 %v8374_v62  ;;  %v3564_v53 = vadd.f32 1.0, %v6655_v60  ;;  %6674 = vpow2.f32 %v5167_v47  ;;  %v6659_v0 = vpop.eup %6658 }
 0x3c3   : > { %v5170_v48 = vmul.f32 -1.442695, %v3314_v18  ;;  %v9352_v45 = vunpack.c.l.bf16 %v8374_v62  ;;  %6676 = vrcp.f32 %v3561_v25  ;;  %v4065_v38 = vmax.f32 %v4001_v37, 0.0  ;;  %v6083_v50 = vpop.f32.mrb[22].mxu0 }
 0x3c4   : > { %v3245_v6 = vadd.f32 %v6080_v61, %v9351_v5  ;;  %v5169_v57 = vmul.f32 -1.442695, %v3313_v46  ;;  %v4066_v13 = vmax.f32 %v4002_v32, 0.0  ;;  %6678 = vrcp.f32 %v3564_v53  ;;  %v6661_v61 = vpop.eup %6660  ;;  %v3015_v4 = vpop.f32.mrb[23].mxu0 }
 0x3c5   : > { %v3244_v9 = vadd.f32 %v9352_v45, %v3005_v29  ;;  %v3563_v43 = vadd.f32 1.0, %v6659_v0  ;;  %v9353_v58 = vunpack.c.l.bf16 %v7952_v52  ;;  %6680 = vpow2.f32 %v5170_v48  ;;  %6179 = vmatprep.mubr.f32.mxu1 %v4065_v38  ;;  %v6663_v37 = vpop.eup %6662 }
 0x3c6   : > { %v3316_v42 = vadd.f32 %v8361_v20, %v3245_v6  ;;  %v9354_v62 = vunpack.c.h.bf16 %v8384_v19  ;;  %v3940_v60 = vmul.f32 %v6649_v30, %v8008_v2  ;;  %6180 = vmatmul.mubr.f32.gmra.mrb[2].mxu1 %v4066_v13  ;;  %v9355_v25 = vunpack.c.l.bf16 %v8384_v19  ;;  %v6665_v29 = vpop.eup %6664 }
 0x3c7   : > { %v3315_v18 = vadd.f32 %v8361_v20, %v3244_v9  ;;  %v4003_v39 = vadd.f32 %v9353_v58, %v3939_v10  ;;  %6682 = vrcp.f32 %v3563_v43  ;;  %v9356_v48 = vunpack.c.h.bf16 %v7952_v52  ;;  %v6086_v30 = vpop.f32.mrb[24].mxu0 }
 0x3c8   : > { %v5172_v47 = vmul.f32 -1.442695, %v3316_v42  ;;  %v3247_v46 = vadd.f32 %v6083_v50, %v9354_v62  ;;  %v3246_v5 = vadd.f32 %v9355_v25, %v3015_v4  ;;  %6684 = vpow2.f32 %v5169_v57  ;;  %v6667_v9 = vpop.eup %6666  ;;  %v3025_v43 = vpop.f32.mrb[25].mxu0 }
 0x3c9   : > { %v5171_v32 = vmul.f32 -1.442695, %v3315_v18  ;;  %v4067_v6 = vmax.f32 %v4003_v39, 0.0  ;;  %v4004_v53 = vadd.f32 %v9356_v48, %v3940_v60  ;;  %v3941_v45 = vmul.f32 %v6661_v61, %v8013_v33  ;;  %v6669_v42 = vpop.eup %6668 }
 0x3ca   : > { %v3318_v10 = vadd.f32 %v8361_v20, %v3247_v46  ;;  %v3566_v0 = vadd.f32 1.0, %v6665_v29  ;;  %6686 = vpow2.f32 %v5172_v47  ;;  %v3317_v2 = vadd.f32 %v8361_v20, %v3246_v5  ;;  %v8579_v18 = vpop.eup %6670 }
 0x3cb   : > { %6182 = vmatprep.mubr.f32.mxu1 %v4067_v6  ;;  %v3942_v19 = vmul.f32 %v6657_v17, %v8018_v41  ;;  %v3565_v38 = vadd.f32 1.0, %v6667_v9  ;;  %6688 = vpow2.f32 %v5171_v32  ;;  %v4068_v13 = vmax.f32 %v4004_v53, 0.0  ;;  %v6673_v61 = vpop.eup %6672  ;;  %v9359_v41 = vld [vmem:[#allocation24_spill] sm:$0xff] }
 0x3cc   : > { %v5174_v57 = vmul.f32 -1.442695, %v3318_v10  ;;  %6690 = vrcp.f32 %v3566_v0  ;;  %v5173_v52 = vmul.f32 -1.442695, %v3317_v2  ;;  %v9357_v33 = vunpack.c.h.bf16 %v8395_v55  ;;  %v6675_v60 = vpop.eup %6674 }
 0x3cd   : > { %v9358_v58 = vunpack.c.l.bf16 %v8395_v55  ;;  %6692 = vrcp.f32 %v3565_v38  ;;  %6183 = vmatmul.mubr.f32.gmra.mrb[4].mxu1 %v4068_v13  ;;  %v9360_v17 = vunpack.c.l.bf16 %v9359_v41  ;;  %v9361_v62 = vunpack.c.h.bf16 %v9359_v41  ;;  %v6089_v55 = vpop.f32.mrb[26].mxu0  ;;  %v6677_v6 = vpop.eup %6676 }
 0x3ce   : > { %v3249_v50 = vadd.f32 %v6086_v30, %v9357_v33  ;;  %v3943_v4 = vmul.f32 %v6669_v42, %v8027_v7  ;;  %v3568_v32 = vadd.f32 1.0, %v6673_v61  ;;  %6694 = vpow2.f32 %v5174_v57  ;;  %v3035_v53 = vpop.f32.mrb[27].mxu0 }
 0x3cf   : > { %v3248_v39 = vadd.f32 %v9358_v58, %v3025_v43  ;;  %v4005_v47 = vadd.f32 %v9360_v17, %v3941_v45  ;;  %v4006_v46 = vadd.f32 %v9361_v62, %v3942_v19  ;;  %v3567_v29 = vadd.f32 1.0, %v6675_v60  ;;  %v8592_v45 = vpop.eup %6678 }
 0x3d0   : > { %v3320_v25 = vadd.f32 %v8361_v20, %v3249_v50  ;;  %6696 = vpow2.f32 %v5173_v52  ;;  %v9362_v7 = vunpack.c.h.bf16 %v8402_v21  ;;  %v6681_v30 = vpop.eup %6680  ;;  %v9363_v19 = vunpack.c.l.bf16 %v8402_v21  ;;  %v6092_v50 = vpop.f32.mrb[28].mxu0 }
 0x3d1   : > { %v3319_v5 = vadd.f32 %v8361_v20, %v3248_v39  ;;  %v4069_v10 = vmax.f32 %v4005_v47, 0.0  ;;  %v4070_v48 = vmax.f32 %v4006_v46, 0.0  ;;  %6698 = vrcp.f32 %v3568_v32  ;;  %v6683_v43 = vpop.eup %6682  ;;  %v3045_v47 = vpop.f32.mrb[29].mxu0 }
 0x3d2   : > { %v5176_v9 = vmul.f32 -1.442695, %v3320_v25  ;;  %v3251_v2 = vadd.f32 %v6089_v55, %v9362_v7  ;;  %6700 = vrcp.f32 %v3567_v29  ;;  %v3250_v42 = vadd.f32 %v9363_v19, %v3035_v53  ;;  %v6685_v39 = vpop.eup %6684  ;;  %v9369_v7 = vld [vmem:[#allocation28_spill] sm:$0xff] }
 0x3d3   : > { %v5175_v0 = vmul.f32 -1.442695, %v3319_v5  ;;  %6185 = vmatprep.mubr.f32.mxu1 %v4069_v10  ;;  %v9364_v38 = vunpack.c.l.bf16 %v7958_v44  ;;  %v3944_v13 = vmul.f32 %v6663_v37, %v8032_v63  ;;  %v3570_v52 = vadd.f32 1.0, %v6681_v30  ;;  %v6095_v53 = vpop.f32.mrb[30].mxu0 }
 0x3d4   : > { %6702 = vpow2.f32 %v5176_v9  ;;  %6186 = vmatmul.mubr.f32.gmra.mrb[6].mxu1 %v4070_v48  ;;  %v3322_v33 = vadd.f32 %v8361_v20, %v3251_v2  ;;  %v3945_v58 = vmul.f32 %v6677_v6, %v8037_v11  ;;  %v3321_v61 = vadd.f32 %v8361_v20, %v3250_v42  ;;  %v6687_v62 = vpop.eup %6686  ;;  %v3055_v19 = vpop.f32.mrb[31].mxu0 }
 0x3d5   : > { %v4007_v57 = vadd.f32 %v9364_v38, %v3943_v4  ;;  %6704 = vpow2.f32 %v5175_v0  ;;  %v9365_v41 = vunpack.c.h.bf16 %v7958_v44  ;;  %v3569_v63 = vadd.f32 1.0, %v6685_v39  ;;  %v6689_v60 = vpop.eup %6688 }
 0x3d6   : > { %6706 = vrcp.f32 %v3570_v52  ;;  %v5178_v37 = vmul.f32 -1.442695, %v3322_v33  ;;  %v9366_v46 = vunpack.c.h.bf16 %v8407_v1  ;;  %v3572_v32 = vadd.f32 1.0, %v6687_v62  ;;  %v6691_v6 = vpop.eup %6690 }
 0x3d7   : > { %v4071_v21 = vmax.f32 %v4007_v57, 0.0  ;;  %v4008_v17 = vadd.f32 %v9365_v41, %v3944_v13  ;;  %v5177_v25 = vmul.f32 -1.442695, %v3321_v61  ;;  %v9367_v5 = vunpack.c.l.bf16 %v8407_v1  ;;  %v6693_v9 = vpop.eup %6692 }
 0x3d8   : > { %v3253_v4 = vadd.f32 %v6092_v50, %v9366_v46  ;;  %6708 = vrcp.f32 %v3569_v63  ;;  %v3571_v44 = vadd.f32 1.0, %v6689_v60  ;;  %v9368_v10 = vunpack.c.l.bf16 %v7961_v51  ;;  %v6695_v42 = vpop.eup %6694 }
 0x3d9   : > { %6188 = vmatprep.mubr.f32.mxu1 %v4071_v21  ;;  %v4072_v11 = vmax.f32 %v4008_v17, 0.0  ;;  %v3252_v55 = vadd.f32 %v9367_v5, %v3045_v47  ;;  %6710 = vrcp.f32 %v3572_v32  ;;  %v3946_v2 = vmul.f32 %v8579_v18, %v9369_v7  ;;  %v6098_v47 = vpop.f32.mrb[32].mxu0 }
 0x3da   : > { %v3324_v29 = vadd.f32 %v8361_v20, %v3253_v4  ;;  %v4009_v48 = vadd.f32 %v9368_v10, %v3945_v58  ;;  %v9370_v1 = vunpack.c.h.bf16 %v8412_v27  ;;  %6712 = vrcp.f32 %v3571_v44  ;;  %v6697_v33 = vpop.eup %6696 }
 0x3db   : > { %6189 = vmatmul.mubr.f32.gmra.mrb[8].mxu1 %v4072_v11  ;;  %v3323_v0 = vadd.f32 %v8361_v20, %v3252_v55  ;;  %v9371_v13 = vunpack.c.l.bf16 %v8412_v27  ;;  %v3574_v50 = vadd.f32 1.0, %v6695_v42  ;;  %6714 = vpow2.f32 %v5178_v37  ;;  %v8622_v21 = vpop.eup %6698  ;;  %v9374_v55 = vld [vmem:[#allocation25_spill] sm:$0xff] }
 0x3dc   : > { %v3255_v30 = vadd.f32 %v6095_v53, %v9370_v1  ;;  %v5180_v38 = vmul.f32 -1.442695, %v3324_v29  ;;  %v4073_v57 = vmax.f32 %v4009_v48, 0.0  ;;  %v9372_v39 = vunpack.c.h.bf16 %v7961_v51  ;;  %v6701_v62 = vpop.eup %6700  ;;  %v3065_v51 = vpop.f32.mrb[33].mxu0 }
 0x3dd   : > { %v3254_v52 = vadd.f32 %v9371_v13, %v3055_v19  ;;  %v5179_v58 = vmul.f32 -1.442695, %v3323_v0  ;;  %v3573_v18 = vadd.f32 1.0, %v6697_v33  ;;  %6716 = vpow2.f32 %v5177_v25  ;;  %v6101_v0 = vpop.f32.mrb[34].mxu0 }
 0x3de   : > { %v4010_v61 = vadd.f32 %v9372_v39, %v3946_v2  ;;  %6191 = vmatprep.mubr.f32.mxu1 %v4073_v57  ;;  %v3326_v41 = vadd.f32 %v8361_v20, %v3255_v30  ;;  %6718 = vrcp.f32 %v3574_v50  ;;  %v3947_v63 = vmul.f32 %v6683_v43, %v8050_v26  ;;  %v6703_v46 = vpop.eup %6702  ;;  %v3075_v30 = vpop.f32.mrb[35].mxu0  ;;  %v9378_v57 = vld [vmem:[#allocation30_spill] sm:$0xff] }
 0x3df   : > { %v3325_v17 = vadd.f32 %v8361_v20, %v3254_v52  ;;  %v3948_v37 = vmul.f32 %v8592_v45, %v8055_v3  ;;  %6720 = vrcp.f32 %v3573_v18  ;;  %v9373_v32 = vunpack.c.h.bf16 %v8418_v14  ;;  %v6705_v11 = vpop.eup %6704 }
 0x3e0   : > { %v4074_v27 = vmax.f32 %v4010_v61, 0.0  ;;  %v5182_v4 = vmul.f32 -1.442695, %v3326_v41  ;;  %v3576_v5 = vadd.f32 1.0, %v6703_v46  ;;  %6722 = vpow2.f32 %v5180_v38  ;;  %v6707_v10 = vpop.eup %6706 }
 0x3e1   : > { %v5181_v60 = vmul.f32 -1.442695, %v3325_v17  ;;  %v3257_v25 = vadd.f32 %v6098_v47, %v9373_v32  ;;  %v9375_v44 = vunpack.c.l.bf16 %v9374_v55  ;;  %v9376_v26 = vunpack.c.h.bf16 %v9374_v55  ;;  %v6104_v47 = vpop.f32.mrb[36].mxu0  ;;  %v9385_v55 = vld [vmem:[#allocation33_spill] sm:$0xff] }
 0x3e2   : > { %6192 = vmatmul.mubr.f32.gmra.mrb[10].mxu1 %v4074_v27  ;;  %v3575_v3 = vadd.f32 1.0, %v6705_v11  ;;  %6724 = vpow2.f32 %v5179_v58  ;;  %v9377_v48 = vunpack.c.l.bf16 %v8418_v14  ;;  %v3949_v1 = vmul.f32 %v6693_v9, %v8060_v8  ;;  %v6709_v19 = vpop.eup %6708  ;;  %v9379_v14 = vld [vmem:[#allocation26_spill] sm:$0xff] }
 0x3e3   : > { %v4011_v29 = vadd.f32 %v9375_v44, %v3947_v63  ;;  %v4012_v43 = vadd.f32 %v9376_v26, %v3948_v37  ;;  %v3328_v45 = vadd.f32 %v8361_v20, %v3257_v25  ;;  %6726 = vrcp.f32 %v3576_v5  ;;  %v8641_v52 = vpop.eup %6710 }
 0x3e4   : > { %v3256_v53 = vadd.f32 %v9377_v48, %v3065_v51  ;;  %6728 = vrcp.f32 %v3575_v3  ;;  %v3950_v13 = vmul.f32 %v6691_v6, %v9378_v57  ;;  %v9380_v33 = vunpack.c.l.bf16 %v9379_v14  ;;  %v8649_v61 = vpop.eup %6712 }
 0x3e5   : > { %v4075_v7 = vmax.f32 %v4011_v29, 0.0  ;;  %v4076_v2 = vmax.f32 %v4012_v43, 0.0  ;;  %v5184_v42 = vmul.f32 -1.442695, %v3328_v45  ;;  %6730 = vpow2.f32 %v5182_v4  ;;  %v6715_v27 = vpop.eup %6714 }
 0x3e6   : > { %v3327_v38 = vadd.f32 %v8361_v20, %v3256_v53  ;;  %v4013_v50 = vadd.f32 %v9380_v33, %v3949_v1  ;;  %v9381_v58 = vunpack.c.h.bf16 %v8424_v49  ;;  %v9382_v8 = vunpack.c.l.bf16 %v8424_v49  ;;  %v3085_v49 = vpop.f32.mrb[37].mxu0 }
 0x3e7   : > { %6194 = vmatprep.mubr.f32.mxu1 %v4075_v7  ;;  %6732 = vpow2.f32 %v5181_v60  ;;  %v9383_v6 = vunpack.c.h.bf16 %v9379_v14  ;;  %v3951_v17 = vmul.f32 %v6701_v62, %v8076_v23  ;;  %v6717_v46 = vpop.eup %6716  ;;  %v3578_v4 = vadd.f32 1.0, %v6715_v27  ;;  %v6107_v53 = vpop.f32.mrb[38].mxu0 }
 0x3e8   : > { %v3259_v39 = vadd.f32 %v6101_v0, %v9381_v58  ;;  %v3258_v9 = vadd.f32 %v9382_v8, %v3075_v30  ;;  %6195 = vmatmul.mubr.f32.gmra.mrb[12].mxu1 %v4076_v2  ;;  %v5183_v18 = vmul.f32 -1.442695, %v3327_v38  ;;  %6734 = vpow2.f32 %v5184_v42  ;;  %v8658_v11 = vpop.eup %6718  ;;  %v3095_v42 = vpop.f32.mrb[39].mxu0 }
 0x3e9   : > { %v4014_v41 = vadd.f32 %v9383_v6, %v3950_v13  ;;  %v4077_v63 = vmax.f32 %v4013_v50, 0.0  ;;  %v9384_v32 = vunpack.c.l.bf16 %v7984_v59  ;;  %v3577_v5 = vadd.f32 1.0, %v6717_v46  ;;  %v8662_v29 = vpop.eup %6720 }
 0x3ea   : > { %v3330_v37 = vadd.f32 %v8361_v20, %v3259_v39  ;;  %v3329_v51 = vadd.f32 %v8361_v20, %v3258_v9  ;;  %6736 = vpow2.f32 %v5183_v18  ;;  %v3952_v44 = vmul.f32 %v8622_v21, %v9385_v55  ;;  %v6723_v0 = vpop.eup %6722  ;;  %v9389_v21 = vld [vmem:[#allocation36_spill] sm:$0xff]  ;;  %v6110_v18 = vpop.f32.mrb[40].mxu0 }
 0x3eb   : > { %v4078_v60 = vmax.f32 %v4014_v41, 0.0  ;;  %v4015_v25 = vadd.f32 %v9384_v32, %v3951_v17  ;;  %6197 = vmatprep.mubr.f32.mxu1 %v4077_v63  ;;  %6738 = vrcp.f32 %v3578_v4  ;;  %v9386_v43 = vunpack.c.h.bf16 %v8429_v31 }
 0x3ec   : > { %v5186_v23 = vmul.f32 -1.442695, %v3330_v37  ;;  %v5185_v62 = vmul.f32 -1.442695, %v3329_v51  ;;  %v9387_v45 = vunpack.c.l.bf16 %v8429_v31  ;;  %6740 = vrcp.f32 %v3577_v5  ;;  %v6725_v38 = vpop.eup %6724  ;;  %v3105_v37 = vpop.f32.mrb[41].mxu0 }
 0x3ed   : > { %6198 = vmatmul.mubr.f32.gmra.mrb[14].mxu1 %v4078_v60  ;;  %v4079_v26 = vmax.f32 %v4015_v25, 0.0  ;;  %v3261_v3 = vadd.f32 %v6104_v47, %v9386_v43  ;;  %v9388_v7 = vunpack.c.h.bf16 %v7984_v59  ;;  %v3953_v1 = vmul.f32 %v6709_v19, %v8086_v16  ;;  %v8674_v14 = vpop.eup %6726  ;;  %v9390_v59 = vld [vmem:[#allocation27_spill] sm:$0xff] }
 0x3ee   : > { %v3260_v48 = vadd.f32 %v9387_v45, %v3085_v49  ;;  %v3954_v30 = vmul.f32 %v6707_v10, %v9389_v21  ;;  %v3580_v57 = vadd.f32 1.0, %v6723_v0  ;;  %6742 = vpow2.f32 %v5186_v23  ;;  %v8678_v16 = vpop.eup %6728 }
 0x3ef   : > { %v4016_v2 = vadd.f32 %v9388_v7, %v3952_v44  ;;  %6200 = vmatprep.mubr.f32.mxu1 %v4079_v26  ;;  %v3332_v13 = vadd.f32 %v8361_v20, %v3261_v3  ;;  %v3579_v33 = vadd.f32 1.0, %v6725_v38  ;;  %6744 = vpow2.f32 %v5185_v62  ;;  %v6731_v6 = vpop.eup %6730  ;;  %v6113_v26 = vpop.f32.mrb[42].mxu0 }
 0x3f0   : > { %v3331_v31 = vadd.f32 %v8361_v20, %v3260_v48  ;;  %v9391_v58 = vunpack.c.l.bf16 %v9390_v59  ;;  %6746 = vrcp.f32 %v3580_v57  ;;  %v9392_v8 = vunpack.c.h.bf16 %v9390_v59  ;;  %v3115_v3 = vpop.f32.mrb[43].mxu0  ;;  %v9399_v57 = vld [vmem:[#allocation7_spill] sm:$0xff] }
 0x3f1   : > { %v4080_v50 = vmax.f32 %v4016_v2, 0.0  ;;  %v5188_v10 = vmul.f32 -1.442695, %v3332_v13  ;;  %6748 = vrcp.f32 %v3579_v33  ;;  %v9393_v17 = vunpack.c.h.bf16 %v8436_v35  ;;  %v6733_v51 = vpop.eup %6732  ;;  %v6116_v33 = vpop.f32.mrb[44].mxu0 }
 0x3f2   : > { %v4017_v39 = vadd.f32 %v9391_v58, %v3953_v1  ;;  %v5187_v19 = vmul.f32 -1.442695, %v3331_v31  ;;  %v4018_v9 = vadd.f32 %v9392_v8, %v3954_v30  ;;  %v9394_v27 = vunpack.c.l.bf16 %v8436_v35  ;;  %v6735_v60 = vpop.eup %6734  ;;  %v9401_v58 = vld [vmem:[#allocation29_spill] sm:$0xff] }
 0x3f3   : > { %6201 = vmatmul.mubr.f32.gmra.mrb[16].mxu1 %v4080_v50  ;;  %v3263_v47 = vadd.f32 %v6107_v53, %v9393_v17  ;;  %v3582_v49 = vadd.f32 1.0, %v6731_v6  ;;  %6750 = vpow2.f32 %v5188_v10  ;;  %v3955_v4 = vmul.f32 %v8649_v61, %v8120_v24 }
 0x3f4   : > { %v4081_v41 = vmax.f32 %v4017_v39, 0.0  ;;  %v3262_v63 = vadd.f32 %v9394_v27, %v3095_v42  ;;  %v4082_v46 = vmax.f32 %v4018_v9, 0.0  ;;  %v3581_v32 = vadd.f32 1.0, %v6733_v51  ;;  %v6737_v23 = vpop.eup %6736  ;;  %v3125_v39 = vpop.f32.mrb[45].mxu0  ;;  %v8719_v9 = vld [vmem:[%s9111_s6] ss:$0 sm:$0xff] }
 0x3f5   : > { %6752 = vpow2.f32 %v5187_v19  ;;  %v3334_v25 = vadd.f32 %v8361_v20, %v3263_v47  ;;  %v3584_v35 = vadd.f32 1.0, %v6735_v60  ;;  %v9395_v62 = vunpack.c.l.bf16 %v8022_v34  ;;  %v8694_v45 = vpop.eup %6738  ;;  %v9405_v51 = vld [vmem:[#allocation40_spill] sm:$0xff] }
 0x3f6   : > { %6203 = vmatprep.mubr.f32.mxu1 %v4081_v41  ;;  %v3333_v5 = vadd.f32 %v8361_v20, %v3262_v63  ;;  %6754 = vrcp.f32 %v3582_v49  ;;  %v3956_v44 = vmul.f32 %v8641_v52, %v8128_v12  ;;  %v3583_v24 = vadd.f32 1.0, %v6737_v23  ;;  %v6741_v1 = vpop.eup %6740 }
 0x3f7   : > { %v4019_v55 = vadd.f32 %v9395_v62, %v3955_v4  ;;  %6756 = vrcp.f32 %v3581_v32  ;;  %6204 = vmatmul.mubr.f32.gmra.mrb[18].mxu1 %v4082_v46  ;;  %v5190_v61 = vmul.f32 -1.442695, %v3334_v25  ;;  %v9396_v53 = vunpack.c.h.bf16 %v8022_v34  ;;  %v6119_v46 = vpop.f32.mrb[46].mxu0  ;;  %v9406_v25 = vld [vmem:[#allocation41_spill] sm:$0xff] }
 0x3f8   : > { %v5189_v43 = vmul.f32 -1.442695, %v3333_v5  ;;  %6758 = vrcp.f32 %v3584_v35  ;;  %v9397_v7 = vunpack.c.h.bf16 %v8442_v54  ;;  %v9398_v12 = vunpack.c.l.bf16 %v8442_v54  ;;  %v6743_v42 = vpop.eup %6742  ;;  %v3135_v23 = vpop.f32.mrb[47].mxu0 }
 0x3f9   : > { %v4083_v48 = vmax.f32 %v4019_v55, 0.0  ;;  %v4020_v0 = vadd.f32 %v9396_v53, %v3956_v44  ;;  %6760 = vrcp.f32 %v3583_v24  ;;  %v3957_v21 = vmul.f32 %v8662_v29, %v8133_v15  ;;  %v6745_v50 = vpop.eup %6744  ;;  %v9407_v55 = vld [vmem:[#allocation31_spill] sm:$0xff] }
 0x3fa   : > { %v3265_v2 = vadd.f32 %v6110_v18, %v9397_v7  ;;  %v3264_v52 = vadd.f32 %v9398_v12, %v3105_v37  ;;  %v3958_v30 = vmul.f32 %v8658_v11, %v8138_v28  ;;  %6762 = vpow2.f32 %v5190_v61  ;;  %v8712_v28 = vpop.eup %6746 }
 0x3fb   : > { %6206 = vmatprep.mubr.f32.mxu1 %v4083_v48  ;;  %v4084_v38 = vmax.f32 %v4020_v0, 0.0  ;;  %v9400_v13 = vunpack.c.h.bf16 %v9399_v57  ;;  %v3586_v59 = vadd.f32 1.0, %v6743_v42  ;;  %6764 = vpow2.f32 %v5189_v43 }
 0x3fc   : > { %v3336_v34 = vadd.f32 %v8361_v20, %v3265_v2  ;;  %v3335_v54 = vadd.f32 %v8361_v20, %v3264_v52  ;;  %v9402_v15 = vunpack.c.l.bf16 %v9401_v58  ;;  %v3585_v11 = vadd.f32 1.0, %v6745_v50  ;;  %v6749_v20 = vpop.eup %6748  ;;  %v9413_v52 = vld [vmem:[#allocation42_spill] sm:$0xff] }
 0x3fd   : > { %v3267_v31 = vadd.f32 %v6113_v26, %v9400_v13  ;;  %6207 = vmatmul.mubr.f32.gmra.mrb[20].mxu1 %v4084_v38  ;;  %v9403_v19 = vunpack.c.h.bf16 %v9401_v58  ;;  %6766 = vrcp.f32 %v3586_v59  ;;  %v9404_v17 = vunpack.c.l.bf16 %v9399_v57  ;;  %v6751_v27 = vpop.eup %6750  ;;  %v9414_v57 = vld [vmem:[#allocation43_spill] sm:$0xff]  ;;  %v9415_v59 = vld [vmem:[#allocation32_spill] sm:$0xff] }
 0x3fe   : > { %v4021_v29 = vadd.f32 %v9402_v15, %v3957_v21  ;;  %v5192_v10 = vmul.f32 -1.442695, %v3336_v34  ;;  %v5191_v6 = vmul.f32 -1.442695, %v3335_v54  ;;  %6768 = vrcp.f32 %v3585_v11  ;;  %v9417_v15 = vld [vmem:[#allocation73_spill] sm:$0xff] }
 0x3ff   : > { %v4022_v8 = vadd.f32 %v9403_v19, %v3958_v30  ;;  %v3338_v18 = vadd.f32 %v8719_v9, %v3267_v31  ;;  %v3266_v47 = vadd.f32 %v9404_v17, %v3115_v3  ;;  %v3959_v49 = vmul.f32 %v8678_v16, %v9405_v51  ;;  %v6753_v4 = vpop.eup %6752  ;;  %v9409_v16 = vld [vmem:[#allocation6_spill] sm:$0xff]  ;;  %v6122_v30 = vpop.f32.mrb[48].mxu0  ;;  %v9421_v51 = vld [vmem:[#allocation45_spill] sm:$0xff] }
 0x400   : > { %v4085_v41 = vmax.f32 %v4021_v29, 0.0  ;;  %v3588_v60 = vadd.f32 1.0, %v6751_v27  ;;  %6770 = vpow2.f32 %v5192_v10  ;;  %v3960_v5 = vmul.f32 %v8674_v14, %v9406_v25  ;;  %v8729_v35 = vpop.eup %6754  ;;  %v3145_v31 = vpop.f32.mrb[49].mxu0 }
 0x401   : > { %v4086_v63 = vmax.f32 %v4022_v8, 0.0  ;;  %v5194_v37 = vmul.f32 -1.442695, %v3338_v18  ;;  %v3337_v32 = vadd.f32 %v8719_v9, %v3266_v47  ;;  %v3587_v62 = vadd.f32 1.0, %v6753_v4  ;;  %v8735_v43 = vpop.eup %6756  ;;  %v6125_v47 = vpop.f32.mrb[50].mxu0 }
 0x402   : > { %6209 = vmatprep.mubr.f32.mxu1 %v4085_v41  ;;  %6772 = vpow2.f32 %v5191_v6  ;;  %v9408_v44 = vunpack.c.l.bf16 %v9407_v55  ;;  %v9410_v24 = vunpack.c.h.bf16 %v9409_v16  ;;  %v9411_v48 = vunpack.c.h.bf16 %v9407_v55  ;;  %v8741_v7 = vpop.eup %6758 }
 0x403   : > { %6210 = vmatmul.mubr.f32.gmra.mrb[22].mxu1 %v4086_v63  ;;  %6774 = vrcp.f32 %v3588_v60  ;;  %v5193_v3 = vmul.f32 -1.442695, %v3337_v32  ;;  %v9412_v14 = vunpack.c.l.bf16 %v9409_v16  ;;  %v3961_v21 = vmul.f32 %v6741_v1, %v9413_v52  ;;  %v8745_v42 = vpop.eup %6760  ;;  %v9422_v32 = vld [vmem:[#allocation46_spill] sm:$0xff] }
 0x404   : > { %v4023_v26 = vadd.f32 %v9408_v44, %v3959_v49  ;;  %v3269_v61 = vadd.f32 %v6116_v33, %v9410_v24  ;;  %v4024_v53 = vadd.f32 %v9411_v48, %v3960_v5  ;;  %6776 = vrcp.f32 %v3587_v62  ;;  %v6763_v33 = vpop.eup %6762  ;;  %v9423_v5 = vld [vmem:[#allocation74_spill] sm:$0xff] }
 0x405   : > { %v3268_v0 = vadd.f32 %v9412_v14, %v3125_v39  ;;  %6778 = vpow2.f32 %v5194_v37  ;;  %v3962_v13 = vmul.f32 %v8694_v45, %v9414_v57  ;;  %v9416_v54 = vunpack.c.l.bf16 %v9415_v59  ;;  %v6765_v39 = vpop.eup %6764 }
 0x406   : > { %v4087_v2 = vmax.f32 %v4023_v26, 0.0  ;;  %v3340_v12 = vadd.f32 %v8719_v9, %v3269_v61  ;;  %v4088_v38 = vmax.f32 %v4024_v53, 0.0  ;;  %6780 = vpow2.f32 %v5193_v3  ;;  %v9425_v26 = vld [vmem:[#allocation34_spill] sm:$0xff] }
 0x407   : > { %v3339_v34 = vadd.f32 %v8719_v9, %v3268_v0  ;;  %v4025_v58 = vadd.f32 %v9416_v54, %v3961_v21  ;;  %v9418_v1 = vunpack.c.h.bf16 %v9417_v15  ;;  %v3590_v11 = vadd.f32 1.0, %v6763_v33  ;;  %v8759_v27 = vpop.eup %6766 }
 0x408   : > { %6212 = vmatprep.mubr.f32.mxu1 %v4087_v2  ;;  %v5196_v50 = vmul.f32 -1.442695, %v3340_v12  ;;  %v9419_v19 = vunpack.c.h.bf16 %v9415_v59  ;;  %v9420_v45 = vunpack.c.l.bf16 %v9417_v15  ;;  %v3589_v6 = vadd.f32 1.0, %v6765_v39  ;;  %v8763_v4 = vpop.eup %6768  ;;  %v9430_v59 = vld [vmem:[#allocation48_spill] sm:$0xff]  ;;  %v9432_v39 = vld [vmem:[#allocation35_spill] sm:$0xff] }
 0x409   : > { %v3271_v29 = vadd.f32 %v6119_v46, %v9418_v1  ;;  %6213 = vmatmul.mubr.f32.gmra.mrb[24].mxu1 %v4088_v38  ;;  %v5195_v10 = vmul.f32 -1.442695, %v3339_v34  ;;  %v4089_v41 = vmax.f32 %v4025_v58, 0.0  ;;  %v3963_v49 = vmul.f32 %v6749_v20, %v9421_v51  ;;  %v3155_v46 = vpop.f32.mrb[51].mxu0 }
 0x40a   : > { %v4026_v8 = vadd.f32 %v9419_v19, %v3962_v13  ;;  %v3270_v18 = vadd.f32 %v9420_v45, %v3135_v23  ;;  %6782 = vpow2.f32 %v5196_v50  ;;  %v3964_v25 = vmul.f32 %v8712_v28, %v9422_v32  ;;  %v6771_v55 = vpop.eup %6770  ;;  %v6128_v0 = vpop.f32.mrb[52].mxu0  ;;  %v9429_v13 = vld [vmem:[#allocation47_spill] sm:$0xff] }
 0x40b   : > { %v3342_v17 = vadd.f32 %v8719_v9, %v3271_v29  ;;  %6784 = vrcp.f32 %v3590_v11  ;;  %6215 = vmatprep.mubr.f32.mxu1 %v4089_v41  ;;  %v9424_v23 = vunpack.c.h.bf16 %v9423_v5  ;;  %v9426_v16 = vunpack.c.l.bf16 %v9425_v26 }
 0x40c   : > { %v4090_v63 = vmax.f32 %v4026_v8, 0.0  ;;  %v3341_v37 = vadd.f32 %v8719_v9, %v3270_v18  ;;  %6786 = vrcp.f32 %v3589_v6  ;;  %v9427_v20 = vunpack.c.l.bf16 %v9423_v5  ;;  %v6773_v3 = vpop.eup %6772  ;;  %v9437_v5 = vld [vmem:[#allocation37_spill] sm:$0xff] }
 0x40d   : > { %v5198_v60 = vmul.f32 -1.442695, %v3342_v17  ;;  %v3273_v62 = vadd.f32 %v6122_v30, %v9424_v23  ;;  %6788 = vpow2.f32 %v5195_v10  ;;  %v4027_v24 = vadd.f32 %v9426_v16, %v3963_v49  ;;  %v8776_v2 = vpop.eup %6774  ;;  %v3165_v30 = vpop.f32.mrb[53].mxu0 }
 0x40e   : > { %6216 = vmatmul.mubr.f32.gmra.mrb[26].mxu1 %v4090_v63  ;;  %v5197_v44 = vmul.f32 -1.442695, %v3341_v37  ;;  %v3272_v61 = vadd.f32 %v9427_v20, %v3145_v31  ;;  %v3592_v48 = vadd.f32 1.0, %v6771_v55  ;;  %v9428_v53 = vunpack.c.h.bf16 %v9425_v26  ;;  %v8779_v38 = vpop.eup %6776  ;;  %v6131_v8 = vpop.f32.mrb[54].mxu0  ;;  %v9436_v37 = vld [vmem:[#allocation51_spill] sm:$0xff]  ;;  %v9439_v55 = vld [vmem:[#allocation52_spill] sm:$0xff] }
 0x40f   : > { %6790 = vpow2.f32 %v5198_v60  ;;  %v3344_v28 = vadd.f32 %v8719_v9, %v3273_v62  ;;  %v3591_v12 = vadd.f32 1.0, %v6773_v3  ;;  %v4091_v52 = vmax.f32 %v4027_v24, 0.0  ;;  %v6779_v33 = vpop.eup %6778  ;;  %v3175_v41 = vpop.f32.mrb[55].mxu0  ;;  %v9440_v26 = vld [vmem:[#allocation75_spill] sm:$0xff] }
 0x410   : > { %v4028_v14 = vadd.f32 %v9428_v53, %v3964_v25  ;;  %6792 = vpow2.f32 %v5197_v44  ;;  %v3343_v21 = vadd.f32 %v8719_v9, %v3272_v61  ;;  %v3965_v31 = vmul.f32 %v8735_v43, %v9429_v13  ;;  %v6781_v1 = vpop.eup %6780 }
 0x411   : > { %6794 = vrcp.f32 %v3592_v48  ;;  %v5200_v57 = vmul.f32 -1.442695, %v3344_v28  ;;  %6218 = vmatprep.mubr.f32.mxu1 %v4091_v52  ;;  %v3966_v54 = vmul.f32 %v8729_v35, %v9430_v59  ;;  %v9431_v58 = vunpack.c.h.bf16 %v8478_v40  ;;  %v9443_v48 = vld [vmem:[#allocation53_spill] sm:$0xff] }
 0x412   : > { %v4092_v34 = vmax.f32 %v4028_v14, 0.0  ;;  %6796 = vrcp.f32 %v3591_v12  ;;  %v5199_v50 = vmul.f32 -1.442695, %v3343_v21  ;;  %v3594_v29 = vadd.f32 1.0, %v6779_v33  ;;  %v9444_v14 = vld [vmem:[#allocation56_spill] sm:$0xff] }
 0x413   : > { %v3275_v15 = vadd.f32 %v6125_v47, %v9431_v58  ;;  %6798 = vpow2.f32 %v5200_v57  ;;  %v9433_v11 = vunpack.c.l.bf16 %v9432_v39  ;;  %v9434_v19 = vunpack.c.l.bf16 %v8478_v40 }
 0x414   : > { %6219 = vmatmul.mubr.f32.gmra.mrb[28].mxu1 %v4092_v34  ;;  %v3593_v45 = vadd.f32 1.0, %v6781_v1  ;;  %6800 = vpow2.f32 %v5199_v50  ;;  %v9435_v18 = vunpack.c.h.bf16 %v9432_v39  ;;  %v6783_v17 = vpop.eup %6782  ;;  %v3967_v51 = vmul.f32 %v8745_v42, %v9436_v37  ;;  %v6134_v42 = vpop.f32.mrb[56].mxu0  ;;  %v9446_v50 = vld [vmem:[#allocation38_spill] sm:$0xff]  ;;  %v9451_v37 = vld [vmem:[#allocation59_spill] sm:$0xff] }
 0x415   : > { %v4029_v10 = vadd.f32 %v9433_v11, %v3965_v31  ;;  %v3274_v43 = vadd.f32 %v9434_v19, %v3155_v46  ;;  %v3346_v35 = vadd.f32 %v8719_v9, %v3275_v15  ;;  %6802 = vrcp.f32 %v3594_v29  ;;  %v8797_v49 = vpop.eup %6784  ;;  %v3185_v12 = vpop.f32.mrb[57].mxu0 }
 0x416   : > { %v4030_v6 = vadd.f32 %v9435_v18, %v3966_v54  ;;  %6804 = vrcp.f32 %v3593_v45  ;;  %v3596_v40 = vadd.f32 1.0, %v6783_v17  ;;  %v8799_v32 = vpop.eup %6786  ;;  %v9438_v23 = vunpack.c.l.bf16 %v9437_v5  ;;  %v6137_v58 = vpop.f32.mrb[58].mxu0 }
 0x417   : > { %v4093_v47 = vmax.f32 %v4029_v10, 0.0  ;;  %v3345_v63 = vadd.f32 %v8719_v9, %v3274_v43  ;;  %v5202_v60 = vmul.f32 -1.442695, %v3346_v35  ;;  %v3968_v44 = vmul.f32 %v8741_v7, %v9439_v55  ;;  %v6789_v20 = vpop.eup %6788  ;;  %v3195_v10 = vpop.f32.mrb[59].mxu0 }
 0x418   : > { %v4094_v46 = vmax.f32 %v4030_v6, 0.0  ;;  %v4031_v62 = vadd.f32 %v9438_v23, %v3967_v51  ;;  %v9441_v16 = vunpack.c.h.bf16 %v9440_v26  ;;  %6806 = vrcp.f32 %v3596_v40 }
 0x419   : > { %6221 = vmatprep.mubr.f32.mxu1 %v4093_v47  ;;  %v5201_v25 = vmul.f32 -1.442695, %v3345_v63  ;;  %v9442_v61 = vunpack.c.l.bf16 %v9440_v26  ;;  %v3969_v53 = vmul.f32 %v8763_v4, %v9443_v48  ;;  %v3970_v28 = vmul.f32 %v8759_v27, %v9444_v14  ;;  %v6791_v52 = vpop.eup %6790 }
 0x41a   : > { %v3277_v24 = vadd.f32 %v6128_v0, %v9441_v16  ;;  %6222 = vmatmul.mubr.f32.gmra.mrb[30].mxu1 %v4094_v46  ;;  %v3595_v21 = vadd.f32 1.0, %v6789_v20  ;;  %6808 = vpow2.f32 %v5202_v60  ;;  %v4095_v7 = vmax.f32 %v4031_v62, 0.0  ;;  %v6793_v57 = vpop.eup %6792  ;;  %v9454_v62 = vld [vmem:[#allocation60_spill] sm:$0xff] }
 0x41b   : > { %v3276_v3 = vadd.f32 %v9442_v61, %v3165_v30  ;;  %v9445_v0 = vunpack.c.h.bf16 %v9437_v5  ;;  %v3598_v13 = vadd.f32 1.0, %v6791_v52  ;;  %6810 = vpow2.f32 %v5201_v25  ;;  %v8817_v33 = vpop.eup %6794 }
 0x41c   : > { %v3348_v31 = vadd.f32 %v8719_v9, %v3277_v24  ;;  %6812 = vrcp.f32 %v3595_v21  ;;  %v3597_v4 = vadd.f32 1.0, %v6793_v57  ;;  %6224 = vmatprep.mubr.f32.mxu1 %v4095_v7  ;;  %v9447_v59 = vunpack.c.l.bf16 %v9446_v50  ;;  %v8821_v15 = vpop.eup %6796  ;;  %v9461_v57 = vld [vmem:[#allocation77_spill] sm:$0xff] }
 0x41d   : > { %v4032_v34 = vadd.f32 %v9445_v0, %v3968_v44  ;;  %v3347_v30 = vadd.f32 %v8719_v9, %v3276_v3  ;;  %6814 = vrcp.f32 %v3598_v13  ;;  %v9448_v39 = vunpack.c.h.bf16 %v9446_v50  ;;  %v6799_v19 = vpop.eup %6798  ;;  %v9460_v0 = vld [vmem:[#allocation62_spill] sm:$0xff] }
 0x41e   : > { %v4033_v54 = vadd.f32 %v9447_v59, %v3969_v53  ;;  %v5204_v1 = vmul.f32 -1.442695, %v3348_v31  ;;  %6816 = vrcp.f32 %v3597_v4  ;;  %v9449_v45 = vunpack.c.h.bf16 %v8495_v56  ;;  %v6801_v17 = vpop.eup %6800 }
 0x41f   : > { %v4096_v27 = vmax.f32 %v4032_v34, 0.0  ;;  %v5203_v29 = vmul.f32 -1.442695, %v3347_v30  ;;  %v4034_v11 = vadd.f32 %v9448_v39, %v3970_v28  ;;  %v9450_v6 = vunpack.c.l.bf16 %v8495_v56  ;;  %v8831_v40 = vpop.eup %6802  ;;  %v9452_v56 = vld [vmem:[#allocation39_spill] sm:$0xff] }
 0x420   : > { %v4097_v43 = vmax.f32 %v4033_v54, 0.0  ;;  %v3279_v18 = vadd.f32 %v6131_v8, %v9449_v45  ;;  %v3600_v47 = vadd.f32 1.0, %v6799_v19  ;;  %6818 = vpow2.f32 %v5204_v1  ;;  %v6140_v8 = vpop.f32.mrb[60].mxu0  ;;  %v8835_v5 = vpop.eup %6804 }
 0x421   : > { %6225 = vmatmul.mubr.f32.gmra.mrb[32].mxu1 %v4096_v27  ;;  %v3278_v35 = vadd.f32 %v9450_v6, %v3175_v41  ;;  %v4098_v63 = vmax.f32 %v4034_v11, 0.0  ;;  %v3971_v51 = vmul.f32 %v8779_v38, %v9451_v37  ;;  %v3599_v46 = vadd.f32 1.0, %v6801_v17  ;;  %v9455_v38 = vld [vmem:[#allocation76_spill] sm:$0xff]  ;;  %v3205_v16 = vpop.f32.mrb[61].mxu0  ;;  %v9468_v37 = vld [vmem:[#allocation65_spill] sm:$0xff] }
 0x422   : > { %6820 = vpow2.f32 %v5203_v29  ;;  %6227 = vmatprep.mubr.f32.mxu1 %v4097_v43  ;;  %v3350_v60 = vadd.f32 %v8719_v9, %v3279_v18  ;;  %v9453_v41 = vunpack.c.l.bf16 %v9452_v56  ;;  %v3972_v55 = vmul.f32 %v8776_v2, %v9454_v62  ;;  %v8845_v48 = vpop.eup %6806  ;;  %v9459_v2 = vld [vmem:[#allocation61_spill] sm:$0xff]  ;;  %v6143_v31 = vpop.f32.mrb[62].mxu0  ;;  %v9463_v29 = vld [vmem:[#allocation44_spill] sm:$0xff] }
 0x423   : > { %v3349_v25 = vadd.f32 %v8719_v9, %v3278_v35  ;;  %6822 = vrcp.f32 %v3600_v47  ;;  %v9456_v44 = vunpack.c.h.bf16 %v9455_v38  ;;  %v9457_v61 = vunpack.c.l.bf16 %v9455_v38  ;;  %v3215_v59 = vpop.f32.mrb[63].mxu0  ;;  %v9467_v6 = vld [vmem:[#allocation64_spill] sm:$0xff] }
 0x424   : > { %v4035_v23 = vadd.f32 %v9453_v41, %v3971_v51  ;;  %6824 = vrcp.f32 %v3599_v46  ;;  %v5206_v24 = vmul.f32 -1.442695, %v3350_v60  ;;  %v9458_v14 = vunpack.c.h.bf16 %v9452_v56  ;;  %v9469_v56 = vld [vmem:[#allocation49_spill] sm:$0xff] }
 0x425   : > { %v3281_v26 = vadd.f32 %v6134_v42, %v9456_v44  ;;  %6228 = vmatmul.mubr.f32.gmra.mrb[34].mxu1 %v4098_v63  ;;  %v5205_v20 = vmul.f32 -1.442695, %v3349_v25  ;;  %v3280_v3 = vadd.f32 %v9457_v61, %v3185_v12  ;;  %v3973_v21 = vmul.f32 %v8799_v32, %v9459_v2  ;;  %v6809_v42 = vpop.eup %6808 }
 0x426   : > { %v4099_v53 = vmax.f32 %v4035_v23, 0.0  ;;  %v4036_v28 = vadd.f32 %v9458_v14, %v3972_v55  ;;  %6826 = vpow2.f32 %v5206_v24  ;;  %v3974_v34 = vmul.f32 %v8797_v49, %v9460_v0  ;;  %v6811_v30 = vpop.eup %6810  ;;  %v9472_v55 = vld [vmem:[#allocation78_spill] sm:$0xff] }
 0x427   : > { %v3352_v52 = vadd.f32 %v8719_v9, %v3281_v26  ;;  %v3351_v7 = vadd.f32 %v8719_v9, %v3280_v3  ;;  %v9462_v12 = vunpack.c.h.bf16 %v9461_v57  ;;  %v3602_v4 = vadd.f32 1.0, %v6809_v42  ;;  %v8857_v54 = vpop.eup %6812  ;;  %v6875_v26 = vld [vmem:[%s7322_s17 + $0xf8] sm:$0xff]  }
 0x428   : > { %6828 = vpow2.f32 %v5205_v20  ;;  %6230 = vmatprep.mubr.f32.mxu1 %v4099_v53  ;;  %v4100_v27 = vmax.f32 %v4036_v28, 0.0  ;;  %v3601_v32 = vadd.f32 1.0, %v6811_v30  ;;  %v9464_v39 = vunpack.c.l.bf16 %v9463_v29  ;;  %v8863_v43 = vpop.eup %6814 }
 0x429   : > { %v3283_v13 = vadd.f32 %v6137_v58, %v9462_v12  ;;  %v5208_v50 = vmul.f32 -1.442695, %v3352_v52  ;;  %v5207_v1 = vmul.f32 -1.442695, %v3351_v7  ;;  %v9465_v49 = vunpack.c.h.bf16 %v9463_v29  ;;  %v6817_v17 = vpop.eup %6816  ;;  %v9476_v7 = vld [vmem:[#allocation67_spill] sm:$0xff] }
 0x42a   : > { %v4037_v11 = vadd.f32 %v9464_v39, %v3973_v21  ;;  %6830 = vrcp.f32 %v3602_v4  ;;  %6231 = vmatmul.mubr.f32.gmra.mrb[36].mxu1 %v4100_v27  ;;  %v9466_v45 = vunpack.c.l.bf16 %v9461_v57  ;;  %v3975_v35 = vmul.f32 %v8821_v15, %v9467_v6  ;;  %v6819_v46 = vpop.eup %6818  ;;  %v9481_v6 = vld [vmem:[#allocation69_spill] sm:$0xff] }
 0x42b   : > { %v4038_v19 = vadd.f32 %v9465_v49, %v3974_v34  ;;  %v3354_v58 = vadd.f32 %v8719_v9, %v3283_v13  ;;  %6832 = vrcp.f32 %v3601_v32  ;;  %v3976_v51 = vmul.f32 %v8817_v33, %v9468_v37  ;;  %v9483_v37 = vld [vmem:[#allocation71_spill] sm:$0xff] }
 0x42c   : > { %v3282_v18 = vadd.f32 %v9466_v45, %v3195_v10  ;;  %v4101_v47 = vmax.f32 %v4037_v11, 0.0  ;;  %6834 = vpow2.f32 %v5208_v50  ;;  %v9470_v41 = vunpack.c.l.bf16 %v9469_v56  ;;  %v6821_v10 = vpop.eup %6820  ;;  %v9480_v45 = vld [vmem:[#allocation68_spill] sm:$0xff] }
 0x42d   : > { %v4102_v63 = vmax.f32 %v4038_v19, 0.0  ;;  %v5210_v60 = vmul.f32 -1.442695, %v3354_v58  ;;  %6836 = vpow2.f32 %v5207_v1  ;;  %v9471_v15 = vunpack.c.h.bf16 %v9469_v56  ;;  %v8880_v33 = vpop.eup %6822  ;;  %v8899_v19 = vld [vmem:[%s7317_s19 + $0xd8] sm:$0xff]   ;;  %v9485_v56 = vld [vmem:[#allocation63_spill] sm:$0xff] }
 0x42e   : > { %v3353_v25 = vadd.f32 %v8719_v9, %v3282_v18  ;;  %v4039_v23 = vadd.f32 %v9470_v41, %v3975_v35  ;;  %6233 = vmatprep.mubr.f32.mxu1 %v4101_v47  ;;  %v9473_v38 = vunpack.c.h.bf16 %v9472_v55  ;;  %v5473_v24 = vunpack.c.l.bf16 %v6875_v26  ;;  %v6825_v14 = vpop.eup %6824 }
 0x42f   : > { %v4040_v62 = vadd.f32 %v9471_v15, %v3976_v51  ;;  %v3604_v20 = vadd.f32 1.0, %v6819_v46  ;;  %v3603_v61 = vadd.f32 1.0, %v6821_v10  ;;  %6234 = vmatmul.mubr.f32.gmra.mrb[38].mxu1 %v4102_v63  ;;  %6838 = vpow2.f32 %v5210_v60  ;;  %v9484_v46 = vld [vmem:[#allocation72_spill] sm:$0xff] }
 0x430   : > { %v3285_v44 = vadd.f32 %v6140_v8, %v9473_v38  ;;  %v5209_v3 = vmul.f32 -1.442695, %v3353_v25  ;;  %v4103_v53 = vmax.f32 %v4039_v23, 0.0  ;;  %v9474_v2 = vunpack.c.l.bf16 %v9472_v55  ;;  %v9475_v8 = vld [vmem:[#allocation66_spill] sm:$0xff]  ;;  %v6827_v57 = vpop.eup %6826  ;;  %v9487_v23 = vld [vmem:[#allocation11_spill] sm:$0xff] }
 0x431   : > { %v4104_v28 = vmax.f32 %v4040_v62, 0.0  ;;  %6840 = vrcp.f32 %v3603_v61  ;;  %v3977_v42 = vmul.f32 %v8835_v5, %v9475_v8  ;;  %v3978_v0 = vmul.f32 %v8831_v40, %v9476_v7 }
 0x432   : > { %v3356_v52 = vadd.f32 %v8719_v9, %v3285_v44  ;;  %v3284_v21 = vadd.f32 %v9474_v2, %v3205_v16  ;;  %6236 = vmatprep.mubr.f32.mxu1 %v4103_v53  ;;  %v3287_v34 = vadd.f32 %v6143_v31, %v5474_v36  ;;  %6842 = vpow2.f32 %v5209_v3  ;;  %v6829_v4 = vpop.eup %6828  ;;  %v9477_v16 = vld [vmem:[#allocation50_spill] sm:$0xff] }
 0x433   : > { %v3286_v30 = vadd.f32 %v5473_v24, %v3215_v59  ;;  %6844 = vrcp.f32 %v3604_v20  ;;  %6237 = vmatmul.mubr.f32.gmra.mrb[40].mxu1 %v4104_v28  ;;  %v9478_v27 = vunpack.c.l.bf16 %v9477_v16  ;;  %v9479_v5 = vunpack.c.h.bf16 %v9477_v16  ;;  %v8920_v20 = vld [vmem:[%s7317_s19 + $0xe0] sm:$0xff]  }
 0x434   : > { %v5212_v12 = vmul.f32 -1.442695, %v3356_v52  ;;  %v3355_v13 = vadd.f32 %v8719_v9, %v3284_v21  ;;  %v3358_v40 = vadd.f32 %v8719_v9, %v3287_v34  ;;  %v3605_v22 = vadd.f32 1.0, %v6829_v4  ;;  %v6831_v1 = vpop.eup %6830  ;;  %v9494_v21 = vld [vmem:[#allocation57_spill] sm:$0xff]  ;;  %v9497_v34 = vld [vmem:[#allocation12_spill] sm:$0xff] }
 0x435   : > { %v4041_v50 = vadd.f32 %v9478_v27, %v3977_v42  ;;  %v4042_v32 = vadd.f32 %v9479_v5, %v3978_v0  ;;  %v3357_v31 = vadd.f32 %v8719_v9, %v3286_v30  ;;  %v3606_v29 = vadd.f32 1.0, %v6827_v57  ;;  %v6833_v49 = vpop.eup %6832  ;;  %v9482_v9 = vld [vmem:[#allocation70_spill] sm:$0xff]  ;;  %v9499_v4 = vld [vmem:[#allocation9_spill] sm:$0xff] }
 0x436   : > { %6846 = vpow2.f32 %v5212_v12  ;;  %v5211_v36 = vmul.f32 -1.442695, %v3355_v13  ;;  %v5214_v11 = vmul.f32 -1.442695, %v3358_v40  ;;  %v3979_v18 = vmul.f32 %v8857_v54, %v9480_v45  ;;  %v6835_v47 = vpop.eup %6834  ;;  %v9488_v54 = vld [vmem:[#allocation54_spill] sm:$0xff]  ;;  %v9498_v13 = vld [vmem:[#allocation8_spill] sm:$0xff] }
 0x437   : > { %v4105_v59 = vmax.f32 %v4041_v50, 0.0  ;;  %v4106_v39 = vmax.f32 %v4042_v32, 0.0  ;;  %6848 = vrcp.f32 %v3605_v22  ;;  %v5213_v58 = vmul.f32 -1.442695, %v3357_v31  ;;  %v6837_v25 = vpop.eup %6836  ;;  %v9500_v50 = vld [vmem:[#allocation13_spill] sm:$0xff]  ;;  %v8938_v31 = vld [vmem:[%s7317_s19 + $0xe8] sm:$0xff]  }
 0x438   : > { %v3980_v35 = vmul.f32 %v8845_v48, %v9481_v6  ;;  %6850 = vpow2.f32 %v5211_v36  ;;  %v3981_v63 = vmul.f32 %v6817_v17, %v9482_v9  ;;  %v3982_v51 = vmul.f32 %v8863_v43, %v9483_v37  ;;  %v9491_v43 = vld [vmem:[#allocation55_spill] sm:$0xff] }
 0x439   : > { %6239 = vmatprep.mubr.f32.mxu1 %v4105_v59  ;;  %v3983_v60 = vmul.f32 %v6825_v14, %v9484_v46  ;;  %v9486_v41 = vunpack.c.l.bf16 %v9485_v56  ;;  %6852 = vpow2.f32 %v5214_v11  ;;  %v9489_v48 = vunpack.c.l.bf16 %v9488_v54  ;;  %v6839_v24 = vpop.eup %6838 }
 0x43a   : > { %6240 = vmatmul.mubr.f32.gmra.mrb[42].mxu1 %v4106_v39  ;;  %v9490_v62 = vunpack.c.h.bf16 %v9488_v54  ;;  %v5585_v17 = vunpack.c.l.bf16 %v8899_v19  ;;  %v3607_v38 = vadd.f32 1.0, %v6837_v25  ;;  %6854 = vpow2.f32 %v5213_v58 }
 0x43b   : > { %v3923_v10 = vsub.f32 %v9487_v23, %v9486_v41  ;;  %v4043_v15 = vadd.f32 %v9489_v48, %v3979_v18  ;;  %v9492_v44 = vunpack.c.l.bf16 %v9491_v43  ;;  %6856 = vrcp.f32 %v3606_v29  ;;  %v6841_v28 = vpop.eup %6840  ;;  %v9504_v18 = vld [vmem:[#allocation10_spill] sm:$0xff] }
 0x43c   : > { %v4044_v55 = vadd.f32 %v9490_v62, %v3980_v35  ;;  %v3608_v61 = vadd.f32 1.0, %v6835_v47  ;;  %v9493_v53 = vunpack.c.h.bf16 %v9491_v43  ;;  %6858 = vrcp.f32 %v3607_v38  ;;  %v6843_v7 = vpop.eup %6842  ;;  %v9507_v48 = vld [vmem:[#allocation14_spill] sm:$0xff] }
 0x43d   : > { %v4045_v26 = vadd.f32 %v9492_v44, %v3981_v63  ;;  %v4107_v3 = vmax.f32 %v4043_v15, 0.0  ;;  %v9495_v8 = vunpack.c.l.bf16 %v9494_v21  ;;  %v9496_v0 = vunpack.c.h.bf16 %v9485_v56  ;;  %v6845_v27 = vpop.eup %6844  ;;  %v9505_v63 = vld [vmem:[#allocation15_spill] sm:$0xff] }
 0x43e   : > { %v4046_v14 = vadd.f32 %v9493_v53, %v3982_v51  ;;  %v4108_v52 = vmax.f32 %v4044_v55, 0.0  ;;  %v5586_v12 = vunpack.c.h.bf16 %v8899_v19  ;;  %v3984_v30 = vmul.f32 %v8880_v33, %v9498_v13  ;;  %v9501_v33 = vld [vmem:[#allocation58_spill] sm:$0xff]  ;;  %v9509_v53 = vld [vmem:[#allocation16_spill] sm:$0xff] }
 0x43f   : > { %v4109_v2 = vmax.f32 %v4045_v26, 0.0  ;;  %v4047_v42 = vadd.f32 %v9495_v8, %v3983_v60  ;;  %v3924_v57 = vsub.f32 %v9497_v34, %v9496_v0  ;;  %6242 = vmatprep.mubr.f32.mxu1 %v4107_v3  ;;  %v3985_v16 = vmul.f32 %v6833_v49, %v9499_v4 }
 0x440   : > { %v3925_v5 = vsub.f32 %v9500_v50, %v5585_v17  ;;  %v5589_v32 = vunpack.c.l.bf16 %v8920_v20  ;;  %v3609_v40 = vadd.f32 1.0, %v6843_v7  ;;  %6243 = vmatmul.mubr.f32.gmra.mrb[44].mxu1 %v4108_v52  ;;  %v3987_v22 = vmul.f32 %v6841_v28, %v3923_v10  ;;  %v6847_v36 = vpop.eup %6846  ;;  %v9510_v28 = vld [vmem:[#allocation17_spill] sm:$0xff] }
 0x441   : > { %6860 = vrcp.f32 %v3608_v61  ;;  %v3610_v29 = vadd.f32 1.0, %v6839_v24  ;;  %6245 = vmatprep.mubr.f32.mxu1 %v4109_v2  ;;  %v4111_v59 = vmax.f32 %v4047_v42, 0.0  ;;  %v9502_v39 = vunpack.c.l.bf16 %v9501_v33  ;;  %v6849_v35 = vpop.eup %6848  ;;  %v8959_v24 = vld [vmem:[%s7317_s19 + $0xf0] sm:$0xff]  }
 0x442   : > { %6862 = vrcp.f32 %v3609_v40  ;;  %v4110_v49 = vmax.f32 %v4046_v14, 0.0  ;;  %v9503_v58 = vunpack.c.h.bf16 %v9494_v21  ;;  %v3986_v6 = vmul.f32 %v6831_v1, %v9504_v18  ;;  %v6851_v9 = vpop.eup %6850  ;;  %v5824_v21 = vld [vmem:[%s7317_s19 + $0xf8] sm:$0xff]  }
 0x443   : > { %v4049_v11 = vadd.f32 %v9502_v39, %v3985_v16  ;;  %v5590_v47 = vunpack.c.h.bf16 %v8920_v20  ;;  %v3927_v37 = vsub.f32 %v9505_v63, %v5589_v32  ;;  %v5593_v51 = vunpack.c.l.bf16 %v8938_v31  ;;  %v9515_v18 = vld [vmem:[#allocation21_spill] sm:$0xff] }
 0x444   : > { %v4048_v45 = vadd.f32 %v9503_v58, %v3984_v30  ;;  %v3612_v46 = vadd.f32 1.0, %v6847_v36  ;;  %6246 = vmatmul.mubr.f32.gmra.mrb[46].mxu1 %v4110_v49  ;;  %v9506_v60 = vmov %v9486_v41  ;;  %v6853_v41 = vpop.eup %6852  ;;  %6864 = vrcp.f32 %v3610_v29  ;;  %v9514_v58 = vld [vmem:[#allocation20_spill] sm:$0xff] }
 0x445   : > { %v4051_v25 = vadd.f32 %v9506_v60, %v3987_v22  ;;  %v3611_v23 = vadd.f32 1.0, %v6851_v9  ;;  %6248 = vmatprep.mubr.f32.mxu1 %v4111_v59  ;;  %v4113_v1 = vmax.f32 %v4049_v11, 0.0  ;;  %v3989_v10 = vmul.f32 %v6849_v35, %v3925_v5  ;;  %v6855_v54 = vpop.eup %6854 }
 0x446   : > { %v3926_v15 = vsub.f32 %v9507_v48, %v5586_v12  ;;  %v4112_v62 = vmax.f32 %v4048_v45, 0.0  ;;  %v9508_v55 = vunpack.c.h.bf16 %v9501_v33  ;;  %v3988_v43 = vmul.f32 %v6845_v27, %v3924_v57  ;;  %v6857_v44 = vpop.eup %6856  ;;  %v9512_v27 = vld [vmem:[#allocation18_spill] sm:$0xff] }
 0x447   : > { %v5594_v26 = vunpack.c.h.bf16 %v8938_v31  ;;  %6866 = vrcp.f32 %v3611_v23  ;;  %v3613_v61 = vadd.f32 1.0, %v6855_v54  ;;  %v6859_v3 = vpop.eup %6858  ;;  %v3928_v14 = vsub.f32 %v9509_v53, %v5590_v47  ;;  %v9513_v31 = vld [vmem:[#allocation19_spill] sm:$0xff]  ;;  %v9516_v23 = vld [vmem:[#allocation22_spill] sm:$0xff] }
 0x448   : > { %v4050_v38 = vadd.f32 %v9508_v55, %v3986_v6  ;;  %v3929_v52 = vsub.f32 %v9510_v28, %v5593_v51  ;;  %6868 = vrcp.f32 %v3612_v46  ;;  %6249 = vmatmul.mubr.f32.gmra.mrb[48].mxu1 %v4112_v62  ;;  %v4115_v2 = vmax.f32 %v4051_v25, 0.0 }
 0x449   : > { %v3614_v8 = vadd.f32 1.0, %v6853_v41  ;;  %6870 = vrcp.f32 %v3613_v61  ;;  %6251 = vmatprep.mubr.f32.mxu1 %v4113_v1  ;;  %v4053_v42 = vadd.f32 %v5585_v17, %v3989_v10  ;;  %v3991_v7 = vmul.f32 %v6859_v3, %v3927_v37 }
 0x44a   : > { %v5597_v0 = vunpack.c.l.bf16 %v8959_v24  ;;  %v4114_v34 = vmax.f32 %v4050_v38, 0.0  ;;  %v9511_v57 = vunpack.c.h.bf16 %v9485_v56  ;;  %v3990_v30 = vmul.f32 %v6857_v44, %v3926_v15 }
 0x44b   : > { %v6861_v4 = vpop.eup %6860  ;;  %v3930_v50 = vsub.f32 %v9512_v27, %v5594_v26  ;;  %v5598_v5 = vunpack.c.h.bf16 %v8959_v24  ;;  %v5601_v40 = vunpack.c.l.bf16 %v5824_v21  ;;  %6872 = vrcp.f32 %v3614_v8 }
 0x44c   : > { %v4052_v13 = vadd.f32 %v9511_v57, %v3988_v43  ;;  %v6863_v16 = vpop.eup %6862  ;;  %6252 = vmatmul.mubr.f32.gmra.mrb[50].mxu1 %v4114_v34  ;;  %v4117_v22 = vmax.f32 %v4053_v42, 0.0  ;;  %v4055_v17 = vadd.f32 %v5589_v32, %v3991_v7  ;;  %v3931_v29 = vsub.f32 %v9513_v31, %v5597_v0 }
 0x44d   : > { %6254 = vmatprep.mubr.f32.mxu1 %v4115_v2  ;;  %v3993_v36 = vmul.f32 %v6863_v16, %v3929_v52  ;;  %v4054_v59 = vadd.f32 %v5586_v12, %v3990_v30  ;;  %v3992_v33 = vmul.f32 %v6861_v4, %v3928_v14  ;;  %v5602_v11 = vunpack.c.h.bf16 %v5824_v21 }
 0x44e   : > { %v4116_v56 = vmax.f32 %v4052_v13, 0.0  ;;  %v6865_v39 = vpop.eup %6864  ;;  %v3932_v45 = vsub.f32 %v9514_v58, %v5598_v5  ;;  %v3933_v6 = vsub.f32 %v9515_v18, %v5601_v40  ;;  %v4119_v35 = vmax.f32 %v4055_v17, 0.0 }
 0x44f   : > { %v4057_v9 = vadd.f32 %v5593_v51, %v3993_v36  ;;  %v4118_v63 = vmax.f32 %v4054_v59, 0.0  ;;  %v4056_v37 = vadd.f32 %v5590_v47, %v3992_v33  ;;  %v3994_v46 = vmul.f32 %v6865_v39, %v3930_v50 }
 0x450   : > { %6255 = vmatmul.mubr.f32.gmra.mrb[52].mxu1 %v4116_v56  ;;  %v3934_v1 = vsub.f32 %v9516_v23, %v5602_v11 }
 0x451   : > { %v6867_v49 = vpop.eup %6866  ;;  %6257 = vmatprep.mubr.f32.mxu1 %v4117_v22  ;;  %v4121_v60 = vmax.f32 %v4057_v9, 0.0  ;;  %v4120_v10 = vmax.f32 %v4056_v37, 0.0  ;;  %v4058_v54 = vadd.f32 %v5594_v26, %v3994_v46  ;;  %v8986_v26 = vld [vmem:[%s9113_s8] ss:$0 sm:$0xff] }
 0x452   : > { %v6869_v32 = vpop.eup %6868  ;;  %v3995_v19 = vmul.f32 %v6867_v49, %v3931_v29 }
 0x453   : > { %v6871_v12 = vpop.eup %6870  ;;  %v3996_v48 = vmul.f32 %v6869_v32, %v3932_v45  ;;  %v4122_v20 = vmax.f32 %v4058_v54, 0.0 }
 0x454   : > { %6258 = vmatmul.mubr.f32.gmra.mrb[54].mxu1 %v4118_v63  ;;  %v4059_v25 = vadd.f32 %v5597_v0, %v3995_v19  ;;  %v3997_v41 = vmul.f32 %v6871_v12, %v3933_v6 }
 0x455   : > { %6260 = vmatprep.mubr.f32.mxu1 %v4119_v35  ;;  %v6873_v15 = vpop.eup %6872  ;;  %v4060_v47 = vadd.f32 %v5598_v5, %v3996_v48 }
 0x456   : > { %v4123_v51 = vmax.f32 %v4059_v25, 0.0  ;;  %v4061_v62 = vadd.f32 %v5601_v40, %v3997_v41  ;;  %v3998_v55 = vmul.f32 %v6873_v15, %v3934_v1 }
 0x457   : > { %v4124_v43 = vmax.f32 %v4060_v47, 0.0 }
 0x458   : > { %6261 = vmatmul.mubr.f32.gmra.mrb[56].mxu1 %v4120_v10  ;;  %v4125_v38 = vmax.f32 %v4061_v62, 0.0  ;;  %v4062_v44 = vadd.f32 %v5602_v11, %v3998_v55 }
 0x459   : > { %6263 = vmatprep.mubr.f32.mxu1 %v4121_v60 }
 0x45a   : > { %v4126_v24 = vmax.f32 %v4062_v44, 0.0 }
 0x45c   : > { %6264 = vmatmul.mubr.f32.gmra.mrb[58].mxu1 %v4122_v20 }
 0x45d   : > { %6266 = vmatprep.mubr.f32.mxu1 %v4123_v51 }
 0x460   : > { %6267 = vmatmul.mubr.f32.gmra.mrb[60].mxu1 %v4124_v43 }
 0x461   : > { %6269 = vmatprep.mubr.f32.mxu1 %v4125_v38 }
 0x464   : > { %6270 = vmatmul.mubr.f32.gmra.mrb[62].mxu1 %v4126_v24 }
 0x493   : > { %v6178_v61 = vpop.f32.mrb[0].mxu1 }
 0x494   : > { %v4222_v3 = vadd.f32 %v6178_v61, %v8986_v26  ;;  %v4216_v53 = vpop.f32.mrb[1].mxu1 }
 0x495   : > { %v4217_v14 = vadd.f32 %v8986_v26, %v4216_v53 }
 0x497   : > { %v5606_v28 = vpack.c.bf16 %v4222_v3, %v4217_v14 }
 0x499   : > { %v6181_v52 = vpop.f32.mrb[2].mxu1  ;;  %5607 = vst [vmem:[%s7327_s20] sm:$0xff] %v5606_v28  }
 0x49a   : > { %v4232_v2 = vadd.f32 %v6181_v52, %v8986_v26  ;;  %v4226_v21 = vpop.f32.mrb[3].mxu1 }
 0x49b   : > { %v4227_v8 = vadd.f32 %v8986_v26, %v4226_v21 }
 0x49d   : > { %v5611_v42 = vpack.c.bf16 %v4232_v2, %v4227_v8 }
 0x49f   : > { %5825 = vst [vmem:[%s7327_s20 + $0x8] sm:$0xff] %v5611_v42  }
 0x4a0   : > { %v6184_v7 = vpop.f32.mrb[4].mxu1 }
 0x4a1   : > { %v4242_v0 = vadd.f32 %v6184_v7, %v8986_v26  ;;  %v4236_v34 = vpop.f32.mrb[5].mxu1 }
 0x4a2   : > { %v4237_v57 = vadd.f32 %v8986_v26, %v4236_v34 }
 0x4a4   : > { %v5616_v13 = vpack.c.bf16 %v4242_v0, %v4237_v57 }
 0x4a6   : > { %5826 = vst [vmem:[%s7327_s20 + $0x10] sm:$0xff] %v5616_v13  }
 0x4a7   : > { %v6187_v30 = vpop.f32.mrb[6].mxu1 }
 0x4a8   : > { %v4252_v4 = vadd.f32 %v6187_v30, %v8986_v26  ;;  %v4246_v16 = vpop.f32.mrb[7].mxu1 }
 0x4a9   : > { %v4247_v27 = vadd.f32 %v8986_v26, %v4246_v16 }
 0x4ab   : > { %v5621_v50 = vpack.c.bf16 %v4252_v4, %v4247_v27 }
 0x4ad   : > { %5827 = vst [vmem:[%s7327_s20 + $0x18] sm:$0xff] %v5621_v50  }
 0x4ae   : > { %v6190_v5 = vpop.f32.mrb[8].mxu1 }
 0x4af   : > { %v4262_v40 = vadd.f32 %v6190_v5, %v8986_v26  ;;  %v4256_v22 = vpop.f32.mrb[9].mxu1 }
 0x4b0   : > { %v4257_v17 = vadd.f32 %v8986_v26, %v4256_v22 }
 0x4b2   : > { %v5626_v36 = vpack.c.bf16 %v4262_v40, %v4257_v17 }
 0x4b4   : > { %5828 = vst [vmem:[%s7327_s20 + $0x20] sm:$0xff] %v5626_v36  }
 0x4b5   : > { %v6193_v31 = vpop.f32.mrb[10].mxu1 }
 0x4b6   : > { %v4272_v29 = vadd.f32 %v6193_v31, %v8986_v26  ;;  %v4266_v56 = vpop.f32.mrb[11].mxu1 }
 0x4b7   : > { %v4267_v59 = vadd.f32 %v8986_v26, %v4266_v56 }
 0x4b9   : > { %v5631_v33 = vpack.c.bf16 %v4272_v29, %v4267_v59 }
 0x4bb   : > { %v6196_v39 = vpop.f32.mrb[12].mxu1  ;;  %5829 = vst [vmem:[%s7327_s20 + $0x28] sm:$0xff] %v5631_v33  }
 0x4bc   : > { %v4282_v11 = vadd.f32 %v6196_v39, %v8986_v26  ;;  %v4276_v49 = vpop.f32.mrb[13].mxu1 }
 0x4bd   : > { %v4277_v58 = vadd.f32 %v8986_v26, %v4276_v49 }
 0x4bf   : > { %v5636_v45 = vpack.c.bf16 %v4282_v11, %v4277_v58 }
 0x4c0   : > { %v6199_v18 = vpop.f32.mrb[14].mxu1 }
 0x4c1   : > { %v4292_v6 = vadd.f32 %v6199_v18, %v8986_v26  ;;  %v4286_v35 = vpop.f32.mrb[15].mxu1  ;;  %5830 = vst [vmem:[%s7327_s20 + $0x30] sm:$0xff] %v5636_v45  }
 0x4c2   : > { %v4287_v9 = vadd.f32 %v8986_v26, %v4286_v35 }
 0x4c4   : > { %v5641_v32 = vpack.c.bf16 %v4292_v6, %v4287_v9 }
 0x4c6   : > { %v6202_v63 = vpop.f32.mrb[16].mxu1  ;;  %5831 = vst [vmem:[%s7327_s20 + $0x38] sm:$0xff] %v5641_v32  }
 0x4c7   : > { %v4302_v37 = vadd.f32 %v6202_v63, %v8986_v26  ;;  %v4296_v46 = vpop.f32.mrb[17].mxu1 }
 0x4c8   : > { %v4297_v19 = vadd.f32 %v8986_v26, %v4296_v46 }
 0x4ca   : > { %v5646_v12 = vpack.c.bf16 %v4302_v37, %v4297_v19  ;;  %v6205_v60 = vpop.f32.mrb[18].mxu1 }
 0x4cb   : > { %v4312_v25 = vadd.f32 %v6205_v60, %v8986_v26  ;;  %v4306_v41 = vpop.f32.mrb[19].mxu1 }
 0x4cc   : > { %5832 = vst [vmem:[%s7327_s20 + $0x40] sm:$0xff] %v5646_v12   ;;  %v4307_v23 = vadd.f32 %v8986_v26, %v4306_v41 }
 0x4ce   : > { %v5651_v1 = vpack.c.bf16 %v4312_v25, %v4307_v23 }
 0x4d0   : > { %v6208_v10 = vpop.f32.mrb[20].mxu1  ;;  %5833 = vst [vmem:[%s7327_s20 + $0x48] sm:$0xff] %v5651_v1  }
 0x4d1   : > { %v4322_v54 = vadd.f32 %v6208_v10, %v8986_v26  ;;  %v4316_v48 = vpop.f32.mrb[21].mxu1 }
 0x4d2   : > { %v4317_v15 = vadd.f32 %v8986_v26, %v4316_v48 }
 0x4d4   : > { %v5656_v51 = vpack.c.bf16 %v4322_v54, %v4317_v15 }
 0x4d6   : > { %v6211_v62 = vpop.f32.mrb[22].mxu1  ;;  %5834 = vst [vmem:[%s7327_s20 + $0x50] sm:$0xff] %v5656_v51  }
 0x4d7   : > { %v4332_v20 = vadd.f32 %v6211_v62, %v8986_v26  ;;  %v4326_v47 = vpop.f32.mrb[23].mxu1 }
 0x4d8   : > { %v4327_v55 = vadd.f32 %v8986_v26, %v4326_v47 }
 0x4da   : > { %v5661_v38 = vpack.c.bf16 %v4332_v20, %v4327_v55 }
 0x4dc   : > { %v6214_v43 = vpop.f32.mrb[24].mxu1  ;;  %5835 = vst [vmem:[%s7327_s20 + $0x58] sm:$0xff] %v5661_v38  }
 0x4dd   : > { %v4342_v44 = vadd.f32 %v6214_v43, %v8986_v26  ;;  %v4336_v24 = vpop.f32.mrb[25].mxu1 }
 0x4de   : > { %v4337_v61 = vadd.f32 %v8986_v26, %v4336_v24 }
 0x4e0   : > { %v5666_v3 = vpack.c.bf16 %v4342_v44, %v4337_v61 }
 0x4e1   : > { %v6217_v53 = vpop.f32.mrb[26].mxu1 }
 0x4e2   : > { %v4352_v14 = vadd.f32 %v6217_v53, %v8986_v26  ;;  %v4346_v28 = vpop.f32.mrb[27].mxu1  ;;  %5836 = vst [vmem:[%s7327_s20 + $0x60] sm:$0xff] %v5666_v3  }
 0x4e3   : > { %v4347_v52 = vadd.f32 %v8986_v26, %v4346_v28 }
 0x4e5   : > { %v5671_v2 = vpack.c.bf16 %v4352_v14, %v4347_v52 }
 0x4e7   : > { %v6220_v21 = vpop.f32.mrb[28].mxu1  ;;  %5837 = vst [vmem:[%s7327_s20 + $0x68] sm:$0xff] %v5671_v2  }
 0x4e8   : > { %v4362_v8 = vadd.f32 %v6220_v21, %v8986_v26  ;;  %v4356_v42 = vpop.f32.mrb[29].mxu1 }
 0x4e9   : > { %v4357_v7 = vadd.f32 %v8986_v26, %v4356_v42 }
 0x4eb   : > { %v5676_v0 = vpack.c.bf16 %v4362_v8, %v4357_v7 }
 0x4ed   : > { %v6223_v34 = vpop.f32.mrb[30].mxu1  ;;  %5838 = vst [vmem:[%s7327_s20 + $0x70] sm:$0xff] %v5676_v0  }
 0x4ee   : > { %v4372_v57 = vadd.f32 %v6223_v34, %v8986_v26  ;;  %v4366_v13 = vpop.f32.mrb[31].mxu1 }
 0x4ef   : > { %v4367_v30 = vadd.f32 %v8986_v26, %v4366_v13 }
 0x4f1   : > { %v5681_v4 = vpack.c.bf16 %v4372_v57, %v4367_v30 }
 0x4f3   : > { %5839 = vst [vmem:[%s7327_s20 + $0x78] sm:$0xff] %v5681_v4  }
 0x4f4   : > { %v6226_v16 = vpop.f32.mrb[32].mxu1 }
 0x4f5   : > { %v4382_v27 = vadd.f32 %v6226_v16, %v8986_v26  ;;  %v4376_v50 = vpop.f32.mrb[33].mxu1 }
 0x4f6   : > { %v4377_v5 = vadd.f32 %v8986_v26, %v4376_v50 }
 0x4f8   : > { %v5686_v40 = vpack.c.bf16 %v4382_v27, %v4377_v5  ;;  %v6229_v22 = vpop.f32.mrb[34].mxu1 }
 0x4f9   : > { %v4392_v17 = vadd.f32 %v6229_v22, %v8986_v26  ;;  %v4386_v36 = vpop.f32.mrb[35].mxu1 }
 0x4fa   : > { %5840 = vst [vmem:[%s7327_s20 + $0x80] sm:$0xff] %v5686_v40   ;;  %v4387_v31 = vadd.f32 %v8986_v26, %v4386_v36 }
 0x4fc   : > { %v5691_v29 = vpack.c.bf16 %v4392_v17, %v4387_v31 }
 0x4fd   : > { %v6232_v56 = vpop.f32.mrb[36].mxu1 }
 0x4fe   : > { %5841 = vst [vmem:[%s7327_s20 + $0x88] sm:$0xff] %v5691_v29   ;;  %v4402_v59 = vadd.f32 %v6232_v56, %v8986_v26  ;;  %v4396_v33 = vpop.f32.mrb[37].mxu1 }
 0x4ff   : > { %v4397_v39 = vadd.f32 %v8986_v26, %v4396_v33 }
 0x501   : > { %v5696_v11 = vpack.c.bf16 %v4402_v59, %v4397_v39 }
 0x502   : > { %v6235_v49 = vpop.f32.mrb[38].mxu1 }
 0x503   : > { %v4412_v58 = vadd.f32 %v6235_v49, %v8986_v26  ;;  %v4406_v45 = vpop.f32.mrb[39].mxu1  ;;  %5842 = vst [vmem:[%s7327_s20 + $0x90] sm:$0xff] %v5696_v11  }
 0x504   : > { %v4407_v18 = vadd.f32 %v8986_v26, %v4406_v45 }
 0x506   : > { %v5701_v6 = vpack.c.bf16 %v4412_v58, %v4407_v18  ;;  %v6238_v35 = vpop.f32.mrb[40].mxu1 }
 0x507   : > { %v4422_v9 = vadd.f32 %v6238_v35, %v8986_v26  ;;  %v4416_v32 = vpop.f32.mrb[41].mxu1 }
 0x508   : > { %5843 = vst [vmem:[%s7327_s20 + $0x98] sm:$0xff] %v5701_v6   ;;  %v4417_v63 = vadd.f32 %v8986_v26, %v4416_v32 }
 0x50a   : > { %v5706_v37 = vpack.c.bf16 %v4422_v9, %v4417_v63 }
 0x50c   : > { %5844 = vst [vmem:[%s7327_s20 + $0xa0] sm:$0xff] %v5706_v37  }
 0x50d   : > { %v6241_v46 = vpop.f32.mrb[42].mxu1 }
 0x50e   : > { %v4432_v19 = vadd.f32 %v6241_v46, %v8986_v26  ;;  %v4426_v12 = vpop.f32.mrb[43].mxu1 }
 0x50f   : > { %v4427_v60 = vadd.f32 %v8986_v26, %v4426_v12 }
 0x511   : > { %v5711_v25 = vpack.c.bf16 %v4432_v19, %v4427_v60 }
 0x513   : > { %v6244_v41 = vpop.f32.mrb[44].mxu1  ;;  %5845 = vst [vmem:[%s7327_s20 + $0xa8] sm:$0xff] %v5711_v25  }
 0x514   : > { %v4442_v23 = vadd.f32 %v6244_v41, %v8986_v26  ;;  %v4436_v1 = vpop.f32.mrb[45].mxu1 }
 0x515   : > { %v4437_v10 = vadd.f32 %v8986_v26, %v4436_v1 }
 0x517   : > { %v5716_v54 = vpack.c.bf16 %v4442_v23, %v4437_v10  ;;  %v6247_v48 = vpop.f32.mrb[46].mxu1 }
 0x518   : > { %v4452_v15 = vadd.f32 %v6247_v48, %v8986_v26  ;;  %v4446_v51 = vpop.f32.mrb[47].mxu1 }
 0x519   : > { %5846 = vst [vmem:[%s7327_s20 + $0xb0] sm:$0xff] %v5716_v54   ;;  %v4447_v62 = vadd.f32 %v8986_v26, %v4446_v51 }
 0x51b   : > { %v5721_v20 = vpack.c.bf16 %v4452_v15, %v4447_v62  ;;  %v6250_v47 = vpop.f32.mrb[48].mxu1 }
 0x51c   : > { %v4462_v55 = vadd.f32 %v6250_v47, %v8986_v26  ;;  %v4456_v38 = vpop.f32.mrb[49].mxu1 }
 0x51d   : > { %5847 = vst [vmem:[%s7327_s20 + $0xb8] sm:$0xff] %v5721_v20   ;;  %v4457_v43 = vadd.f32 %v8986_v26, %v4456_v38 }
 0x51f   : > { %v5726_v44 = vpack.c.bf16 %v4462_v55, %v4457_v43  ;;  %v6253_v24 = vpop.f32.mrb[50].mxu1 }
 0x520   : > { %v4472_v61 = vadd.f32 %v6253_v24, %v8986_v26  ;;  %v4466_v3 = vpop.f32.mrb[51].mxu1 }
 0x521   : > { %5848 = vst [vmem:[%s7327_s20 + $0xc0] sm:$0xff] %v5726_v44   ;;  %v4467_v53 = vadd.f32 %v8986_v26, %v4466_v3 }
 0x523   : > { %v5731_v14 = vpack.c.bf16 %v4472_v61, %v4467_v53  ;;  %v6256_v28 = vpop.f32.mrb[52].mxu1 }
 0x524   : > { %v4482_v52 = vadd.f32 %v6256_v28, %v8986_v26  ;;  %v4476_v2 = vpop.f32.mrb[53].mxu1 }
 0x525   : > { %5849 = vst [vmem:[%s7327_s20 + $0xc8] sm:$0xff] %v5731_v14   ;;  %v4477_v21 = vadd.f32 %v8986_v26, %v4476_v2 }
 0x527   : > { %v5736_v8 = vpack.c.bf16 %v4482_v52, %v4477_v21  ;;  %v6259_v42 = vpop.f32.mrb[54].mxu1 }
 0x528   : > { %v4492_v7 = vadd.f32 %v6259_v42, %v8986_v26  ;;  %v4486_v0 = vpop.f32.mrb[55].mxu1 }
 0x529   : > { %5850 = vst [vmem:[%s7327_s20 + $0xd0] sm:$0xff] %v5736_v8   ;;  %v4487_v34 = vadd.f32 %v8986_v26, %v4486_v0 }
 0x52b   : > { %v5741_v57 = vpack.c.bf16 %v4492_v7, %v4487_v34  ;;  %v6262_v13 = vpop.f32.mrb[56].mxu1 }
 0x52c   : > { %v4502_v30 = vadd.f32 %v6262_v13, %v8986_v26  ;;  %v4496_v4 = vpop.f32.mrb[57].mxu1 }
 0x52d   : > { %5851 = vst [vmem:[%s7327_s20 + $0xd8] sm:$0xff] %v5741_v57   ;;  %v4497_v16 = vadd.f32 %v8986_v26, %v4496_v4 }
 0x52f   : > { %v5746_v27 = vpack.c.bf16 %v4502_v30, %v4497_v16  ;;  %v6265_v50 = vpop.f32.mrb[58].mxu1 }
 0x530   : > { %v4512_v5 = vadd.f32 %v6265_v50, %v8986_v26  ;;  %v4506_v40 = vpop.f32.mrb[59].mxu1 }
 0x531   : > { %5852 = vst [vmem:[%s7327_s20 + $0xe0] sm:$0xff] %v5746_v27   ;;  %v4507_v22 = vadd.f32 %v8986_v26, %v4506_v40 }
 0x533   : > { %v5751_v17 = vpack.c.bf16 %v4512_v5, %v4507_v22  ;;  %v6268_v36 = vpop.f32.mrb[60].mxu1 }
 0x534   : > { %v4522_v31 = vadd.f32 %v6268_v36, %v8986_v26  ;;  %v4516_v29 = vpop.f32.mrb[61].mxu1 }
 0x535   : > { %5853 = vst [vmem:[%s7327_s20 + $0xe8] sm:$0xff] %v5751_v17   ;;  %v4517_v56 = vadd.f32 %v8986_v26, %v4516_v29 }
 0x537   : > { %v5756_v59 = vpack.c.bf16 %v4522_v31, %v4517_v56  ;;  %v6271_v33 = vpop.f32.mrb[62].mxu1 }
 0x538   : > { %v4532_v39 = vadd.f32 %v6271_v33, %v8986_v26  ;;  %v4526_v11 = vpop.f32.mrb[63].mxu1 }
 0x539   : > { %5854 = vst [vmem:[%s7327_s20 + $0xf0] sm:$0xff] %v5756_v59   ;;  %v4527_v49 = vadd.f32 %v8986_v26, %v4526_v11 }
 0x53b   : > { %v5761_v58 = vpack.c.bf16 %v4532_v39, %v4527_v49 }
 0x53d   : > { %5855 = vst [vmem:[%s7327_s20 + $0xf8] sm:$0xff] %v5761_v58  }
 0x53e PF: > { %s19_s15 = sadd.s32 1, %s6930_s15   ;;  %s9517_s0 = sld [smem:[#allocation4_spill]] }
 0x53f   : > { %p16_p0 = scmp.ge.s32.totalorder %s19_s15, 6   ;;  %s9518_s16 = sld [smem:[#allocation5_spill]] }
 0x540   : > { %s9519_s30 = smov %s6910_s10  ;;  %s9520_s10 = smov %s7035_s22 }
 0x541   : > { %s9521_s11 = smov %s6922_s13  ;;  %s9522_s12 = smov %s6926_s14 }
 0x542   :  { %18 = sbr.rel (!%p16_p0) target bundleno = 6 (0x6), region = 131 }
 0x544   : > { %s9523_s13 = smov %s9517_s0 }
 0x545   : > { %s9524_s14 = smov %s9518_s16 }

</bundles_post_ra>
